<compile_context>
chip_gen: v6e
topology: v6e:2x2x1
jax: 0.10.0
libtpu: 0.0.40
codegen_flags: <defaults>
</compile_context>

<pallas_src>
import functools

import jax
import jax.numpy as jnp
import numpy as np
from jax.experimental import pallas as pl
from jax.experimental.pallas import tpu as pltpu

# ---- hyperparameters (from train.py) -----------------------------------------
N_EMBD = 64
BLOCK_SIZE = 8
N_HEAD = 8
N_LAYER = 4
VOCAB_SIZE = 2002
HEAD_SIZE = N_EMBD // N_HEAD            # 8
HIDDEN = 4 * N_EMBD                     # 256 (already lane aligned)
C_PAD = 128                             # lane-dense padding of the channel dim
VOCAB_PAD = 2048                        # lane-aligned padding of the vocab dim
LN_EPS = 1e-5
MM_DTYPE = jnp.bfloat16                 # MXU operand dtype (accumulate in f32)
ATTN_SCALE = float(N_EMBD) ** -0.5      # train.py Head: C = x.shape[-1] = n_embd


# ---- in-kernel math helpers ---------------------------------------------------
def _ln_masked(v, g, b, lane_valid):
    """LayerNorm over the first N_EMBD lanes of a (rows, C_PAD) activation.

    Padded lanes of `v` are exactly zero and g/b are zero-padded, so the output
    keeps the padded lanes at exactly zero (residual stream stays clean)."""
    mu = jnp.sum(v, axis=-1, keepdims=True) * (1.0 / N_EMBD)
    d = jnp.where(lane_valid, v - mu, 0.0)
    var = jnp.sum(d * d, axis=-1, keepdims=True) * (1.0 / N_EMBD)
    return d * jax.lax.rsqrt(var + LN_EPS) * g + b


def _gelu_erf(x):
    """Exact-erf GELU (PyTorch nn.GELU default); erf via Abramowitz-Stegun
    7.1.26 polynomial (max abs err 1.5e-7) so only exp/mul/add are needed."""
    u = x * 0.7071067811865476
    au = jnp.abs(u)
    t = 1.0 / (1.0 + 0.3275911 * au)
    poly = ((((1.061405429 * t - 1.453152027) * t + 1.421413741) * t
             - 0.284496736) * t + 0.254829592) * t
    erf_au = 1.0 - poly * jnp.exp(-au * au)
    erf_u = jnp.where(u >= 0.0, erf_au, -erf_au)
    return 0.5 * x * (1.0 + erf_u)


def _softmax_last(s):
    m = jnp.max(s, axis=-1, keepdims=True)
    e = jnp.exp(s - m)
    return e * pl.reciprocal(jnp.sum(e, axis=-1, keepdims=True), approx=True)


# ---- Pallas kernel -----------------------------------------------------------
def transformer_kernel(B, T, xb_ref, te_ref, pe_ref,
                       ln1_g, ln1_b, wqkv, wproj, bproj,
                       ln2_g, ln2_b, w1, b1, w2, b2,
                       lnf_g, lnf_b, wlm, blm, out_ref):
    R = B * T

    # ---- masks built once, shared by every layer ------------------------------
    lane_valid = jax.lax.broadcasted_iota(jnp.int32, (1, C_PAD), 1) < N_EMBD

    hl = jax.lax.broadcasted_iota(jnp.int32, (N_HEAD, 1, C_PAD), 2)
    hh = jax.lax.broadcasted_iota(jnp.int32, (N_HEAD, 1, C_PAD), 0)
    head_mask = ((hl >= hh * HEAD_SIZE) &
                 (hl < (hh + 1) * HEAD_SIZE)).astype(jnp.float32)   # (H, 1, C_PAD)

    ri = jax.lax.broadcasted_iota(jnp.int32, (R, R), 0)
    ci = jax.lax.broadcasted_iota(jnp.int32, (R, R), 1)
    if T & (T - 1) == 0:                      # power-of-two seq len -> shift/and
        sh = T.bit_length() - 1
        same_seq = (ri >> sh) == (ci >> sh)
        causal = (ci & (T - 1)) <= (ri & (T - 1))
    else:
        same_seq = (ri // T) == (ci // T)
        causal = (ci % T) <= (ri % T)
    valid = same_seq & causal                 # block-diagonal causal over B*T rows

    # ---- token + positional embedding (one-hot "gather" on the MXU) -----------
    vocab_iota = jax.lax.broadcasted_iota(jnp.int32, (R, VOCAB_PAD), 1)
    onehot = (vocab_iota == xb_ref[...]).astype(jnp.float32)        # (R, VOCAB_PAD)
    x = jnp.dot(onehot, te_ref[...],
                preferred_element_type=jnp.float32) + pe_ref[...]   # (R, C_PAD) f32

    # ---- transformer blocks ----------------------------------------------------
    for l in range(N_LAYER):
        # multi-head causal self-attention (dropout == identity in eval mode)
        xn = _ln_masked(x, ln1_g[l], ln1_b[l], lane_valid)
        qkv = jnp.dot(xn.astype(MM_DTYPE), wqkv[l],
                      preferred_element_type=jnp.float32)           # (R, 3*C_PAD)
        q = qkv[:, 0 * C_PAD:1 * C_PAD]       # 128-lane aligned slices
        k = qkv[:, 1 * C_PAD:2 * C_PAD]
        v = qkv[:, 2 * C_PAD:3 * C_PAD]

        kh = head_mask * k[None, :, :]        # (H, R, C_PAD) head-masked keys
        vh = head_mask * v[None, :, :]        # (H, R, C_PAD) head-masked values
        qb = jnp.broadcast_to(q[None, :, :], (N_HEAD, R, C_PAD))

        # scale already folded into the Q columns of wqkv
        s = jnp.einsum('hqd,hkd->hqk', qb, kh,
                       preferred_element_type=jnp.float32)          # (H, R, R)
        s = jnp.where(valid[None, :, :], s, -jnp.inf)
        p = _softmax_last(s)
        o = jnp.einsum('hqk,hkd->hqd', p, vh,
                       preferred_element_type=jnp.float32)          # (H, R, C_PAD)
        o = jnp.sum(o, axis=0)                # heads merge in place (vh masking)
        o = jnp.dot(o.astype(MM_DTYPE), wproj[l],
                    preferred_element_type=jnp.float32) + bproj[l]
        x = x + o

        # feed-forward (exact-erf GELU, dropout == identity)
        xn = _ln_masked(x, ln2_g[l], ln2_b[l], lane_valid)
        h = jnp.dot(xn.astype(MM_DTYPE), w1[l],
                    preferred_element_type=jnp.float32) + b1[l]
        h = _gelu_erf(h)
        x = x + jnp.dot(h.astype(MM_DTYPE), w2[l],
                        preferred_element_type=jnp.float32) + b2[l]

    # ---- final LayerNorm + LM head (lane-dense 2048-wide store) ---------------
    xn = _ln_masked(x, lnf_g[...], lnf_b[...], lane_valid)
    out_ref[...] = jnp.dot(xn.astype(MM_DTYPE), wlm[...],
                           preferred_element_type=jnp.float32) + blm[...]


# ---- weight preparation (padding / fusion / casts, done host-side) ------------
def _prepare_weights(p):
    cpad = C_PAD - N_EMBD
    vpad = VOCAB_PAD - VOCAB_SIZE

    def pad_last(a):
        return jnp.pad(a, [(0, 0)] * (a.ndim - 1) + [(0, cpad)])

    w = {}
    # fused QKV weight; attention scale folded into the Q columns (exact *0.125)
    wqkv = jnp.concatenate([pad_last(p['wq'] * ATTN_SCALE),
                            pad_last(p['wk']),
                            pad_last(p['wv'])], axis=-1)             # (L, 64, 384)
    w['wqkv'] = jnp.pad(wqkv, ((0, 0), (0, cpad), (0, 0))).astype(MM_DTYPE)
    w['wproj'] = jnp.pad(p['wproj'], ((0, 0), (0, cpad), (0, cpad))).astype(MM_DTYPE)
    w['w1'] = jnp.pad(p['w1'], ((0, 0), (0, cpad), (0, 0))).astype(MM_DTYPE)
    w['w2'] = jnp.pad(p['w2'], ((0, 0), (0, 0), (0, cpad))).astype(MM_DTYPE)
    w['wlm'] = jnp.pad(p['wlm'], ((0, cpad), (0, vpad))).astype(MM_DTYPE)
    w['te'] = jnp.pad(p['te'], ((0, vpad), (0, cpad))).astype(jnp.float32)
    w['pe'] = jnp.pad(p['pe'], ((0, 0), (0, cpad))).astype(jnp.float32)
    for name in ('ln1_g', 'ln1_b', 'ln2_g', 'ln2_b',
                 'bproj', 'b2', 'lnf_g', 'lnf_b'):
        w[name] = pad_last(p[name]).astype(jnp.float32)
    w['b1'] = p['b1'].astype(jnp.float32)
    w['blm'] = jnp.pad(p['blm'], (0, vpad)).reshape(1, VOCAB_PAD).astype(jnp.float32)
    return w


# ---- wrapper -----------------------------------------------------------------
def transformer_forward(Xb, params):
    B, T = Xb.shape
    w = _prepare_weights(params)
    xb = Xb.reshape(B * T, 1).astype(jnp.int32)
    pe_rows = jnp.tile(w['pe'][:T], (B, 1))            # (B*T, C_PAD)

    args = [xb, w['te'], pe_rows,
            w['ln1_g'], w['ln1_b'], w['wqkv'], w['wproj'], w['bproj'],
            w['ln2_g'], w['ln2_b'], w['w1'], w['b1'], w['w2'], w['b2'],
            w['lnf_g'], w['lnf_b'], w['wlm'], w['blm']]

    vmem = pl.BlockSpec(memory_space=pltpu.MemorySpace.VMEM)
    # Single invocation (no grid): weights + activations (~3 MiB) are resident in
    # VMEM once, so there is no per-step overhead and no re-staging of invariant
    # weights.  For large B*T, tile rows on a "parallel" grid axis instead.
    logits2d = pl.pallas_call(
        functools.partial(transformer_kernel, B, T),
        out_shape=jax.ShapeDtypeStruct((B * T, VOCAB_PAD), jnp.float32),
        in_specs=[vmem] * len(args),
        out_specs=vmem,
    )(*args)
    return logits2d.reshape(B, T, VOCAB_PAD)[..., :VOCAB_SIZE]


# ---- deterministic parameter init (synthetic weights, no checkpoint) ----------
def init_params(key):
    keys = iter(jax.random.split(key, 16))

    def nrm(shape, scale=0.02):
        return (scale * jax.random.normal(next(keys), shape)).astype(jnp.float32)

    p = {}
    p['te'] = nrm((VOCAB_SIZE, N_EMBD))
    p['pe'] = nrm((BLOCK_SIZE, N_EMBD))
    p['ln1_g'] = jnp.ones((N_LAYER, 1, N_EMBD), jnp.float32)
    p['ln1_b'] = jnp.zeros((N_LAYER, 1, N_EMBD), jnp.float32)
    p['ln2_g'] = jnp.ones((N_LAYER, 1, N_EMBD), jnp.float32)
    p['ln2_b'] = jnp.zeros((N_LAYER, 1, N_EMBD), jnp.float32)
    p['wq'] = nrm((N_LAYER, N_EMBD, N_EMBD))
    p['wk'] = nrm((N_LAYER, N_EMBD, N_EMBD))
    p['wv'] = nrm((N_LAYER, N_EMBD, N_EMBD))
    p['wproj'] = nrm((N_LAYER, N_EMBD, N_EMBD))
    p['bproj'] = nrm((N_LAYER, 1, N_EMBD), 0.01)
    p['w1'] = nrm((N_LAYER, N_EMBD, HIDDEN))
    p['b1'] = nrm((N_LAYER, 1, HIDDEN), 0.01)
    p['w2'] = nrm((N_LAYER, HIDDEN, N_EMBD))
    p['b2'] = nrm((N_LAYER, 1, N_EMBD), 0.01)
    p['lnf_g'] = jnp.ones((1, N_EMBD), jnp.float32)
    p['lnf_b'] = jnp.zeros((1, N_EMBD), jnp.float32)
    p['wlm'] = nrm((N_EMBD, VOCAB_SIZE))
    p['blm'] = nrm((VOCAB_SIZE,), 0.01)
    return p


# ---- pure-JAX reference (mirrors the PyTorch forward, eval mode, f32) ---------
def _ref_layernorm(v, g, b):
    mu = jnp.mean(v, axis=-1, keepdims=True)
    var = jnp.mean((v - mu) ** 2, axis=-1, keepdims=True)
    return (v - mu) * jax.lax.rsqrt(var + LN_EPS) * g + b


def _ref_gelu(x):
    return 0.5 * x * (1.0 + jax.lax.erf(x * 0.7071067811865476))


def reference_forward(Xb, p):
    B, T = Xb.shape
    x = (p['te'][Xb] + p['pe'][jnp.arange(T)]).astype(jnp.float32)
    causal = jnp.tril(jnp.ones((T, T), dtype=bool))
    for l in range(N_LAYER):
        xn = _ref_layernorm(x, p['ln1_g'][l], p['ln1_b'][l])
        q = xn @ p['wq'][l]
        k = xn @ p['wk'][l]
        v = xn @ p['wv'][l]
        qh = q.reshape(B, T, N_HEAD, HEAD_SIZE)
        kh = k.reshape(B, T, N_HEAD, HEAD_SIZE)
        vh = v.reshape(B, T, N_HEAD, HEAD_SIZE)
        s = jnp.einsum('bthd,bshd->bhts', qh, kh) * ATTN_SCALE
        s = jnp.where(causal[None, None], s, -jnp.inf)
        a = jax.nn.softmax(s, axis=-1)
        o = jnp.einsum('bhts,bshd->bthd', a, vh).reshape(B, T, N_EMBD)
        x = x + o @ p['wproj'][l] + p['bproj'][l]
        xn = _ref_layernorm(x, p['ln2_g'][l], p['ln2_b'][l])
        h = _ref_gelu(xn @ p['w1'][l] + p['b1'][l])
        x = x + h @ p['w2'][l] + p['b2'][l]
    x = _ref_layernorm(x, p['lnf_g'], p['lnf_b'])
    return x @ p['wlm'] + p['blm']


if __name__ == "__main__":
    key = jax.random.PRNGKey(0)
    pkey, xkey = jax.random.split(key)
    params = init_params(pkey)

    B, T = 2, BLOCK_SIZE
    Xb = jax.random.randint(xkey, (B, T), 0, VOCAB_SIZE, dtype=jnp.int32)

    forward = jax.jit(transformer_forward)
    logits = forward(Xb, params)
    jax.block_until_ready(logits)
    assert logits.shape == (B, T, VOCAB_SIZE)

    ref = reference_forward(Xb, params)
    # Kernel uses bf16 MXU operands with f32 accumulation; the reference is
    # pure f32 -> allow ~1e-2-scale deviation on the logits.
    np.testing.assert_allclose(np.asarray(logits), np.asarray(ref),
                               rtol=2e-2, atol=2e-2)

    # targets=None branch of the PyTorch forward -> loss is None (not exercised).
    print("KERNEL_OK")
</pallas_src>

<mosaic_0001>
module attributes {stable_mosaic.version = 11 : i64} {
  func.func @transformer_kernel(%arg0: memref<16x1xi32, #tpu.memory_space<vmem>>, %arg1: memref<2048x128xf32, #tpu.memory_space<vmem>>, %arg2: memref<16x128xf32, #tpu.memory_space<vmem>>, %arg3: memref<4x1x128xf32, #tpu.memory_space<vmem>>, %arg4: memref<4x1x128xf32, #tpu.memory_space<vmem>>, %arg5: memref<4x128x384xbf16, #tpu.memory_space<vmem>>, %arg6: memref<4x128x128xbf16, #tpu.memory_space<vmem>>, %arg7: memref<4x1x128xf32, #tpu.memory_space<vmem>>, %arg8: memref<4x1x128xf32, #tpu.memory_space<vmem>>, %arg9: memref<4x1x128xf32, #tpu.memory_space<vmem>>, %arg10: memref<4x128x256xbf16, #tpu.memory_space<vmem>>, %arg11: memref<4x1x256xf32, #tpu.memory_space<vmem>>, %arg12: memref<4x256x128xbf16, #tpu.memory_space<vmem>>, %arg13: memref<4x1x128xf32, #tpu.memory_space<vmem>>, %arg14: memref<1x128xf32, #tpu.memory_space<vmem>>, %arg15: memref<1x128xf32, #tpu.memory_space<vmem>>, %arg16: memref<128x2048xbf16, #tpu.memory_space<vmem>>, %arg17: memref<1x2048xf32, #tpu.memory_space<vmem>>, %arg18: memref<16x2048xf32, #tpu.memory_space<vmem>>) attributes {dimension_semantics = [], scalar_prefetch = 0 : i64, scratch_operands = 0 : i64, tpu.core_type = #tpu.core_type<tc>} {
    %0 = tpu.iota {dimensions = array<i32: 1>} : vector<1x128xi32>
    %c64_i32 = arith.constant 64 : i32
    %1 = vector.broadcast %c64_i32 : i32 to vector<1x128xi32>
    %2 = arith.cmpi slt, %0, %1 : vector<1x128xi32>
    %3 = tpu.iota {dimensions = array<i32: 2>} : vector<8x1x128xi32>
    %4 = tpu.iota {dimensions = array<i32: 0>} : vector<8x1x128xi32>
    %c8_i32 = arith.constant 8 : i32
    %5 = vector.broadcast %c8_i32 : i32 to vector<8x1x128xi32>
    %6 = arith.muli %4, %5 : vector<8x1x128xi32>
    %7 = arith.cmpi sge, %3, %6 : vector<8x1x128xi32>
    %c1_i32 = arith.constant 1 : i32
    %8 = vector.broadcast %c1_i32 : i32 to vector<8x1x128xi32>
    %9 = arith.addi %4, %8 : vector<8x1x128xi32>
    %c8_i32_0 = arith.constant 8 : i32
    %10 = vector.broadcast %c8_i32_0 : i32 to vector<8x1x128xi32>
    %11 = arith.muli %9, %10 : vector<8x1x128xi32>
    %12 = arith.cmpi slt, %3, %11 : vector<8x1x128xi32>
    %13 = arith.andi %7, %12 : vector<8x1x128xi1>
    %14 = arith.extui %13 : vector<8x1x128xi1> to vector<8x1x128xi32>
    %15 = arith.sitofp %14 : vector<8x1x128xi32> to vector<8x1x128xf32>
    %16 = tpu.iota {dimensions = array<i32: 0>} : vector<16x16xi32>
    %17 = tpu.iota {dimensions = array<i32: 1>} : vector<16x16xi32>
    %c3_i32 = arith.constant 3 : i32
    %18 = vector.broadcast %c3_i32 : i32 to vector<16x16xi32>
    %19 = arith.shrsi %16, %18 : vector<16x16xi32>
    %c3_i32_1 = arith.constant 3 : i32
    %20 = vector.broadcast %c3_i32_1 : i32 to vector<16x16xi32>
    %21 = arith.shrsi %17, %20 : vector<16x16xi32>
    %22 = arith.cmpi eq, %19, %21 : vector<16x16xi32>
    %c7_i32 = arith.constant 7 : i32
    %23 = vector.broadcast %c7_i32 : i32 to vector<16x16xi32>
    %24 = arith.andi %17, %23 : vector<16x16xi32>
    %c7_i32_2 = arith.constant 7 : i32
    %25 = vector.broadcast %c7_i32_2 : i32 to vector<16x16xi32>
    %26 = arith.andi %16, %25 : vector<16x16xi32>
    %27 = arith.cmpi sle, %24, %26 : vector<16x16xi32>
    %28 = arith.andi %22, %27 : vector<16x16xi1>
    %29 = tpu.iota {dimensions = array<i32: 1>} : vector<16x2048xi32>
    %c0 = arith.constant 0 : index
    %c0_3 = arith.constant 0 : index
    %30 = vector.load %arg0[%c0, %c0_3] : memref<16x1xi32, #tpu.memory_space<vmem>>, vector<16x1xi32>
    %31 = vector.broadcast %30 : vector<16x1xi32> to vector<16x2048xi32>
    %32 = arith.cmpi eq, %29, %31 : vector<16x2048xi32>
    %33 = arith.extui %32 : vector<16x2048xi1> to vector<16x2048xi32>
    %34 = arith.sitofp %33 : vector<16x2048xi32> to vector<16x2048xf32>
    %c0_4 = arith.constant 0 : index
    %c0_5 = arith.constant 0 : index
    %35 = vector.load %arg1[%c0_4, %c0_5] : memref<2048x128xf32, #tpu.memory_space<vmem>>, vector<2048x128xf32>
    %cst = arith.constant dense<0.000000e+00> : vector<16x128xf32>
    %36 = tpu.matmul %34, %35, %cst {dimension_numbers = #tpu.dot_dimension_numbers<[1], [0], [0], [1], [0, 0, 1, 1], [], []>} : vector<16x2048xf32>, vector<2048x128xf32>, vector<16x128xf32> -> vector<16x128xf32>
    %c0_6 = arith.constant 0 : index
    %c0_7 = arith.constant 0 : index
    %37 = vector.load %arg2[%c0_6, %c0_7] : memref<16x128xf32, #tpu.memory_space<vmem>>, vector<16x128xf32>
    %38 = arith.addf %36, %37 : vector<16x128xf32>
    %c0_8 = arith.constant 0 : index
    %c0_9 = arith.constant 0 : index
    %c0_10 = arith.constant 0 : index
    %39 = vector.load %arg3[%c0_8, %c0_9, %c0_10] : memref<4x1x128xf32, #tpu.memory_space<vmem>>, vector<1x1x128xf32>
    %40 = vector.shape_cast %39 : vector<1x1x128xf32> to vector<1x128xf32>
    %c0_11 = arith.constant 0 : index
    %c0_12 = arith.constant 0 : index
    %c0_13 = arith.constant 0 : index
    %41 = vector.load %arg4[%c0_11, %c0_12, %c0_13] : memref<4x1x128xf32, #tpu.memory_space<vmem>>, vector<1x1x128xf32>
    %42 = vector.shape_cast %41 : vector<1x1x128xf32> to vector<1x128xf32>
    %cst_14 = arith.constant dense<0.000000e+00> : vector<16xf32>
    %43 = vector.multi_reduction <add>, %38, %cst_14 [1] : vector<16x128xf32> to vector<16xf32>
    %44 = vector.shape_cast %43 : vector<16xf32> to vector<16x1xf32>
    %cst_15 = arith.constant 1.562500e-02 : f32
    %45 = vector.broadcast %cst_15 : f32 to vector<16x1xf32>
    %46 = arith.mulf %44, %45 : vector<16x1xf32>
    %47 = vector.broadcast %46 : vector<16x1xf32> to vector<16x128xf32>
    %48 = arith.subf %38, %47 : vector<16x128xf32>
    %cst_16 = arith.constant 0.000000e+00 : f32
    %49 = vector.shape_cast %2 : vector<1x128xi1> to vector<1x128xi1>
    %50 = vector.broadcast %49 : vector<1x128xi1> to vector<16x128xi1>
    %51 = vector.broadcast %cst_16 : f32 to vector<16x128xf32>
    %52 = arith.select %50, %48, %51 : vector<16x128xi1>, vector<16x128xf32>
    %53 = arith.mulf %52, %52 : vector<16x128xf32>
    %cst_17 = arith.constant dense<0.000000e+00> : vector<16xf32>
    %54 = vector.multi_reduction <add>, %53, %cst_17 [1] : vector<16x128xf32> to vector<16xf32>
    %55 = vector.shape_cast %54 : vector<16xf32> to vector<16x1xf32>
    %cst_18 = arith.constant 1.562500e-02 : f32
    %56 = vector.broadcast %cst_18 : f32 to vector<16x1xf32>
    %57 = arith.mulf %55, %56 : vector<16x1xf32>
    %cst_19 = arith.constant 9.99999974E-6 : f32
    %58 = vector.broadcast %cst_19 : f32 to vector<16x1xf32>
    %59 = arith.addf %57, %58 : vector<16x1xf32>
    %60 = math.rsqrt %59 : vector<16x1xf32>
    %61 = vector.broadcast %60 : vector<16x1xf32> to vector<16x128xf32>
    %62 = arith.mulf %52, %61 : vector<16x128xf32>
    %63 = vector.broadcast %40 : vector<1x128xf32> to vector<16x128xf32>
    %64 = arith.mulf %62, %63 : vector<16x128xf32>
    %65 = vector.broadcast %42 : vector<1x128xf32> to vector<16x128xf32>
    %66 = arith.addf %64, %65 : vector<16x128xf32>
    %67 = arith.truncf %66 : vector<16x128xf32> to vector<16x128xbf16>
    %c0_20 = arith.constant 0 : index
    %c0_21 = arith.constant 0 : index
    %c0_22 = arith.constant 0 : index
    %68 = vector.load %arg5[%c0_20, %c0_21, %c0_22] : memref<4x128x384xbf16, #tpu.memory_space<vmem>>, vector<1x128x384xbf16>
    %69 = vector.shape_cast %68 : vector<1x128x384xbf16> to vector<128x384xbf16>
    %cst_23 = arith.constant dense<0.000000e+00> : vector<16x384xf32>
    %70 = tpu.matmul %67, %69, %cst_23 {dimension_numbers = #tpu.dot_dimension_numbers<[1], [0], [0], [1], [0, 0, 1, 1], [], []>} : vector<16x128xbf16>, vector<128x384xbf16>, vector<16x384xf32> -> vector<16x384xf32>
    %71 = vector.extract_strided_slice %70 {offsets = [0, 0], sizes = [16, 128], strides = [1, 1]} : vector<16x384xf32> to vector<16x128xf32>
    %72 = vector.extract_strided_slice %70 {offsets = [0, 128], sizes = [16, 128], strides = [1, 1]} : vector<16x384xf32> to vector<16x128xf32>
    %73 = vector.extract_strided_slice %70 {offsets = [0, 256], sizes = [16, 128], strides = [1, 1]} : vector<16x384xf32> to vector<16x128xf32>
    %74 = vector.shape_cast %72 : vector<16x128xf32> to vector<1x16x128xf32>
    %75 = vector.broadcast %15 : vector<8x1x128xf32> to vector<8x16x128xf32>
    %76 = vector.broadcast %74 : vector<1x16x128xf32> to vector<8x16x128xf32>
    %77 = arith.mulf %75, %76 : vector<8x16x128xf32>
    %78 = vector.shape_cast %73 : vector<16x128xf32> to vector<1x16x128xf32>
    %79 = vector.broadcast %15 : vector<8x1x128xf32> to vector<8x16x128xf32>
    %80 = vector.broadcast %78 : vector<1x16x128xf32> to vector<8x16x128xf32>
    %81 = arith.mulf %79, %80 : vector<8x16x128xf32>
    %82 = vector.shape_cast %71 : vector<16x128xf32> to vector<1x16x128xf32>
    %83 = vector.shape_cast %82 : vector<1x16x128xf32> to vector<1x16x128xf32>
    %84 = vector.broadcast %83 : vector<1x16x128xf32> to vector<8x16x128xf32>
    "tpu.trace_start"() <{level = 10 : i32, message = "hqd,hkd->hqk"}> : () -> ()
    %cst_24 = arith.constant dense<0.000000e+00> : vector<8x16x16xf32>
    %85 = tpu.matmul %84, %77, %cst_24 {dimension_numbers = #tpu.dot_dimension_numbers<[2], [2], [1], [1], [0, 0, 0, 1, 1, 1], [0], [0]>} : vector<8x16x128xf32>, vector<8x16x128xf32>, vector<8x16x16xf32> -> vector<8x16x16xf32>
    "tpu.trace_stop"() : () -> ()
    %86 = vector.shape_cast %28 : vector<16x16xi1> to vector<1x16x16xi1>
    %cst_25 = arith.constant 0xFF800000 : f32
    %87 = vector.shape_cast %86 : vector<1x16x16xi1> to vector<1x16x16xi1>
    %88 = vector.broadcast %87 : vector<1x16x16xi1> to vector<8x16x16xi1>
    %89 = vector.broadcast %cst_25 : f32 to vector<8x16x16xf32>
    %90 = arith.select %88, %85, %89 : vector<8x16x16xi1>, vector<8x16x16xf32>
    %cst_26 = arith.constant dense<0xFF800000> : vector<8x16xf32>
    %91 = vector.multi_reduction <maximumf>, %90, %cst_26 [2] : vector<8x16x16xf32> to vector<8x16xf32>
    %92 = vector.shape_cast %91 : vector<8x16xf32> to vector<8x16x1xf32>
    %93 = vector.broadcast %92 : vector<8x16x1xf32> to vector<8x16x16xf32>
    %94 = arith.subf %90, %93 : vector<8x16x16xf32>
    %95 = math.exp %94 : vector<8x16x16xf32>
    %cst_27 = arith.constant dense<0.000000e+00> : vector<8x16xf32>
    %96 = vector.multi_reduction <add>, %95, %cst_27 [2] : vector<8x16x16xf32> to vector<8x16xf32>
    %97 = vector.shape_cast %96 : vector<8x16xf32> to vector<8x16x1xf32>
    %98 = tpu.reciprocal %97 {approx = true} : vector<8x16x1xf32> -> vector<8x16x1xf32>
    %99 = vector.broadcast %98 : vector<8x16x1xf32> to vector<8x16x16xf32>
    %100 = arith.mulf %95, %99 : vector<8x16x16xf32>
    "tpu.trace_start"() <{level = 10 : i32, message = "hqk,hkd->hqd"}> : () -> ()
    %cst_28 = arith.constant dense<0.000000e+00> : vector<8x16x128xf32>
    %101 = tpu.matmul %100, %81, %cst_28 {dimension_numbers = #tpu.dot_dimension_numbers<[2], [1], [1], [2], [0, 0, 0, 1, 1, 2], [0], [0]>} : vector<8x16x16xf32>, vector<8x16x128xf32>, vector<8x16x128xf32> -> vector<8x16x128xf32>
    "tpu.trace_stop"() : () -> ()
    %cst_29 = arith.constant dense<0.000000e+00> : vector<16x128xf32>
    %102 = vector.multi_reduction <add>, %101, %cst_29 [0] : vector<8x16x128xf32> to vector<16x128xf32>
    %103 = arith.truncf %102 : vector<16x128xf32> to vector<16x128xbf16>
    %c0_30 = arith.constant 0 : index
    %c0_31 = arith.constant 0 : index
    %c0_32 = arith.constant 0 : index
    %104 = vector.load %arg6[%c0_30, %c0_31, %c0_32] : memref<4x128x128xbf16, #tpu.memory_space<vmem>>, vector<1x128x128xbf16>
    %105 = vector.shape_cast %104 : vector<1x128x128xbf16> to vector<128x128xbf16>
    %cst_33 = arith.constant dense<0.000000e+00> : vector<16x128xf32>
    %106 = tpu.matmul %103, %105, %cst_33 {dimension_numbers = #tpu.dot_dimension_numbers<[1], [0], [0], [1], [0, 0, 1, 1], [], []>} : vector<16x128xbf16>, vector<128x128xbf16>, vector<16x128xf32> -> vector<16x128xf32>
    %c0_34 = arith.constant 0 : index
    %c0_35 = arith.constant 0 : index
    %c0_36 = arith.constant 0 : index
    %107 = vector.load %arg7[%c0_34, %c0_35, %c0_36] : memref<4x1x128xf32, #tpu.memory_space<vmem>>, vector<1x1x128xf32>
    %108 = vector.shape_cast %107 : vector<1x1x128xf32> to vector<1x128xf32>
    %109 = vector.broadcast %108 : vector<1x128xf32> to vector<16x128xf32>
    %110 = arith.addf %106, %109 : vector<16x128xf32>
    %111 = arith.addf %38, %110 : vector<16x128xf32>
    %c0_37 = arith.constant 0 : index
    %c0_38 = arith.constant 0 : index
    %c0_39 = arith.constant 0 : index
    %112 = vector.load %arg8[%c0_37, %c0_38, %c0_39] : memref<4x1x128xf32, #tpu.memory_space<vmem>>, vector<1x1x128xf32>
    %113 = vector.shape_cast %112 : vector<1x1x128xf32> to vector<1x128xf32>
    %c0_40 = arith.constant 0 : index
    %c0_41 = arith.constant 0 : index
    %c0_42 = arith.constant 0 : index
    %114 = vector.load %arg9[%c0_40, %c0_41, %c0_42] : memref<4x1x128xf32, #tpu.memory_space<vmem>>, vector<1x1x128xf32>
    %115 = vector.shape_cast %114 : vector<1x1x128xf32> to vector<1x128xf32>
    %cst_43 = arith.constant dense<0.000000e+00> : vector<16xf32>
    %116 = vector.multi_reduction <add>, %111, %cst_43 [1] : vector<16x128xf32> to vector<16xf32>
    %117 = vector.shape_cast %116 : vector<16xf32> to vector<16x1xf32>
    %cst_44 = arith.constant 1.562500e-02 : f32
    %118 = vector.broadcast %cst_44 : f32 to vector<16x1xf32>
    %119 = arith.mulf %117, %118 : vector<16x1xf32>
    %120 = vector.broadcast %119 : vector<16x1xf32> to vector<16x128xf32>
    %121 = arith.subf %111, %120 : vector<16x128xf32>
    %cst_45 = arith.constant 0.000000e+00 : f32
    %122 = vector.shape_cast %2 : vector<1x128xi1> to vector<1x128xi1>
    %123 = vector.broadcast %122 : vector<1x128xi1> to vector<16x128xi1>
    %124 = vector.broadcast %cst_45 : f32 to vector<16x128xf32>
    %125 = arith.select %123, %121, %124 : vector<16x128xi1>, vector<16x128xf32>
    %126 = arith.mulf %125, %125 : vector<16x128xf32>
    %cst_46 = arith.constant dense<0.000000e+00> : vector<16xf32>
    %127 = vector.multi_reduction <add>, %126, %cst_46 [1] : vector<16x128xf32> to vector<16xf32>
    %128 = vector.shape_cast %127 : vector<16xf32> to vector<16x1xf32>
    %cst_47 = arith.constant 1.562500e-02 : f32
    %129 = vector.broadcast %cst_47 : f32 to vector<16x1xf32>
    %130 = arith.mulf %128, %129 : vector<16x1xf32>
    %cst_48 = arith.constant 9.99999974E-6 : f32
    %131 = vector.broadcast %cst_48 : f32 to vector<16x1xf32>
    %132 = arith.addf %130, %131 : vector<16x1xf32>
    %133 = math.rsqrt %132 : vector<16x1xf32>
    %134 = vector.broadcast %133 : vector<16x1xf32> to vector<16x128xf32>
    %135 = arith.mulf %125, %134 : vector<16x128xf32>
    %136 = vector.broadcast %113 : vector<1x128xf32> to vector<16x128xf32>
    %137 = arith.mulf %135, %136 : vector<16x128xf32>
    %138 = vector.broadcast %115 : vector<1x128xf32> to vector<16x128xf32>
    %139 = arith.addf %137, %138 : vector<16x128xf32>
    %140 = arith.truncf %139 : vector<16x128xf32> to vector<16x128xbf16>
    %c0_49 = arith.constant 0 : index
    %c0_50 = arith.constant 0 : index
    %c0_51 = arith.constant 0 : index
    %141 = vector.load %arg10[%c0_49, %c0_50, %c0_51] : memref<4x128x256xbf16, #tpu.memory_space<vmem>>, vector<1x128x256xbf16>
    %142 = vector.shape_cast %141 : vector<1x128x256xbf16> to vector<128x256xbf16>
    %cst_52 = arith.constant dense<0.000000e+00> : vector<16x256xf32>
    %143 = tpu.matmul %140, %142, %cst_52 {dimension_numbers = #tpu.dot_dimension_numbers<[1], [0], [0], [1], [0, 0, 1, 1], [], []>} : vector<16x128xbf16>, vector<128x256xbf16>, vector<16x256xf32> -> vector<16x256xf32>
    %c0_53 = arith.constant 0 : index
    %c0_54 = arith.constant 0 : index
    %c0_55 = arith.constant 0 : index
    %144 = vector.load %arg11[%c0_53, %c0_54, %c0_55] : memref<4x1x256xf32, #tpu.memory_space<vmem>>, vector<1x1x256xf32>
    %145 = vector.shape_cast %144 : vector<1x1x256xf32> to vector<1x256xf32>
    %146 = vector.broadcast %145 : vector<1x256xf32> to vector<16x256xf32>
    %147 = arith.addf %143, %146 : vector<16x256xf32>
    %cst_56 = arith.constant 0.707106769 : f32
    %148 = vector.broadcast %cst_56 : f32 to vector<16x256xf32>
    %149 = arith.mulf %147, %148 : vector<16x256xf32>
    %150 = math.absf %149 : vector<16x256xf32>
    %cst_57 = arith.constant 0.327591091 : f32
    %151 = vector.broadcast %cst_57 : f32 to vector<16x256xf32>
    %152 = arith.mulf %151, %150 : vector<16x256xf32>
    %cst_58 = arith.constant 1.000000e+00 : f32
    %153 = vector.broadcast %cst_58 : f32 to vector<16x256xf32>
    %154 = arith.addf %153, %152 : vector<16x256xf32>
    %cst_59 = arith.constant 1.000000e+00 : f32
    %155 = vector.broadcast %cst_59 : f32 to vector<16x256xf32>
    %156 = arith.divf %155, %154 : vector<16x256xf32>
    %cst_60 = arith.constant 1.06140542 : f32
    %157 = vector.broadcast %cst_60 : f32 to vector<16x256xf32>
    %158 = arith.mulf %157, %156 : vector<16x256xf32>
    %cst_61 = arith.constant 1.45315206 : f32
    %159 = vector.broadcast %cst_61 : f32 to vector<16x256xf32>
    %160 = arith.subf %158, %159 : vector<16x256xf32>
    %161 = arith.mulf %160, %156 : vector<16x256xf32>
    %cst_62 = arith.constant 1.42141378 : f32
    %162 = vector.broadcast %cst_62 : f32 to vector<16x256xf32>
    %163 = arith.addf %161, %162 : vector<16x256xf32>
    %164 = arith.mulf %163, %156 : vector<16x256xf32>
    %cst_63 = arith.constant 0.284496725 : f32
    %165 = vector.broadcast %cst_63 : f32 to vector<16x256xf32>
    %166 = arith.subf %164, %165 : vector<16x256xf32>
    %167 = arith.mulf %166, %156 : vector<16x256xf32>
    %cst_64 = arith.constant 0.254829586 : f32
    %168 = vector.broadcast %cst_64 : f32 to vector<16x256xf32>
    %169 = arith.addf %167, %168 : vector<16x256xf32>
    %170 = arith.mulf %169, %156 : vector<16x256xf32>
    %cst_65 = arith.constant 0.000000e+00 : f32
    %171 = vector.broadcast %cst_65 : f32 to vector<16x256xf32>
    %172 = arith.subf %171, %150 : vector<16x256xf32>
    %173 = arith.mulf %172, %150 : vector<16x256xf32>
    %174 = math.exp %173 : vector<16x256xf32>
    %175 = arith.mulf %170, %174 : vector<16x256xf32>
    %cst_66 = arith.constant 1.000000e+00 : f32
    %176 = vector.broadcast %cst_66 : f32 to vector<16x256xf32>
    %177 = arith.subf %176, %175 : vector<16x256xf32>
    %cst_67 = arith.constant 0.000000e+00 : f32
    %178 = vector.broadcast %cst_67 : f32 to vector<16x256xf32>
    %179 = arith.cmpf oge, %149, %178 : vector<16x256xf32>
    %cst_68 = arith.constant 0.000000e+00 : f32
    %180 = vector.broadcast %cst_68 : f32 to vector<16x256xf32>
    %181 = arith.subf %180, %177 : vector<16x256xf32>
    %182 = arith.select %179, %177, %181 : vector<16x256xi1>, vector<16x256xf32>
    %cst_69 = arith.constant 5.000000e-01 : f32
    %183 = vector.broadcast %cst_69 : f32 to vector<16x256xf32>
    %184 = arith.mulf %183, %147 : vector<16x256xf32>
    %cst_70 = arith.constant 1.000000e+00 : f32
    %185 = vector.broadcast %cst_70 : f32 to vector<16x256xf32>
    %186 = arith.addf %185, %182 : vector<16x256xf32>
    %187 = arith.mulf %184, %186 : vector<16x256xf32>
    %188 = arith.truncf %187 : vector<16x256xf32> to vector<16x256xbf16>
    %c0_71 = arith.constant 0 : index
    %c0_72 = arith.constant 0 : index
    %c0_73 = arith.constant 0 : index
    %189 = vector.load %arg12[%c0_71, %c0_72, %c0_73] : memref<4x256x128xbf16, #tpu.memory_space<vmem>>, vector<1x256x128xbf16>
    %190 = vector.shape_cast %189 : vector<1x256x128xbf16> to vector<256x128xbf16>
    %cst_74 = arith.constant dense<0.000000e+00> : vector<16x128xf32>
    %191 = tpu.matmul %188, %190, %cst_74 {dimension_numbers = #tpu.dot_dimension_numbers<[1], [0], [0], [1], [0, 0, 1, 1], [], []>} : vector<16x256xbf16>, vector<256x128xbf16>, vector<16x128xf32> -> vector<16x128xf32>
    %192 = arith.addf %111, %191 : vector<16x128xf32>
    %c0_75 = arith.constant 0 : index
    %c0_76 = arith.constant 0 : index
    %c0_77 = arith.constant 0 : index
    %193 = vector.load %arg13[%c0_75, %c0_76, %c0_77] : memref<4x1x128xf32, #tpu.memory_space<vmem>>, vector<1x1x128xf32>
    %194 = vector.shape_cast %193 : vector<1x1x128xf32> to vector<1x128xf32>
    %195 = vector.broadcast %194 : vector<1x128xf32> to vector<16x128xf32>
    %196 = arith.addf %192, %195 : vector<16x128xf32>
    %c1 = arith.constant 1 : index
    %c0_78 = arith.constant 0 : index
    %c0_79 = arith.constant 0 : index
    %197 = vector.load %arg3[%c1, %c0_78, %c0_79] : memref<4x1x128xf32, #tpu.memory_space<vmem>>, vector<1x1x128xf32>
    %198 = vector.shape_cast %197 : vector<1x1x128xf32> to vector<1x128xf32>
    %c1_80 = arith.constant 1 : index
    %c0_81 = arith.constant 0 : index
    %c0_82 = arith.constant 0 : index
    %199 = vector.load %arg4[%c1_80, %c0_81, %c0_82] : memref<4x1x128xf32, #tpu.memory_space<vmem>>, vector<1x1x128xf32>
    %200 = vector.shape_cast %199 : vector<1x1x128xf32> to vector<1x128xf32>
    %cst_83 = arith.constant dense<0.000000e+00> : vector<16xf32>
    %201 = vector.multi_reduction <add>, %196, %cst_83 [1] : vector<16x128xf32> to vector<16xf32>
    %202 = vector.shape_cast %201 : vector<16xf32> to vector<16x1xf32>
    %cst_84 = arith.constant 1.562500e-02 : f32
    %203 = vector.broadcast %cst_84 : f32 to vector<16x1xf32>
    %204 = arith.mulf %202, %203 : vector<16x1xf32>
    %205 = vector.broadcast %204 : vector<16x1xf32> to vector<16x128xf32>
    %206 = arith.subf %196, %205 : vector<16x128xf32>
    %cst_85 = arith.constant 0.000000e+00 : f32
    %207 = vector.shape_cast %2 : vector<1x128xi1> to vector<1x128xi1>
    %208 = vector.broadcast %207 : vector<1x128xi1> to vector<16x128xi1>
    %209 = vector.broadcast %cst_85 : f32 to vector<16x128xf32>
    %210 = arith.select %208, %206, %209 : vector<16x128xi1>, vector<16x128xf32>
    %211 = arith.mulf %210, %210 : vector<16x128xf32>
    %cst_86 = arith.constant dense<0.000000e+00> : vector<16xf32>
    %212 = vector.multi_reduction <add>, %211, %cst_86 [1] : vector<16x128xf32> to vector<16xf32>
    %213 = vector.shape_cast %212 : vector<16xf32> to vector<16x1xf32>
    %cst_87 = arith.constant 1.562500e-02 : f32
    %214 = vector.broadcast %cst_87 : f32 to vector<16x1xf32>
    %215 = arith.mulf %213, %214 : vector<16x1xf32>
    %cst_88 = arith.constant 9.99999974E-6 : f32
    %216 = vector.broadcast %cst_88 : f32 to vector<16x1xf32>
    %217 = arith.addf %215, %216 : vector<16x1xf32>
    %218 = math.rsqrt %217 : vector<16x1xf32>
    %219 = vector.broadcast %218 : vector<16x1xf32> to vector<16x128xf32>
    %220 = arith.mulf %210, %219 : vector<16x128xf32>
    %221 = vector.broadcast %198 : vector<1x128xf32> to vector<16x128xf32>
    %222 = arith.mulf %220, %221 : vector<16x128xf32>
    %223 = vector.broadcast %200 : vector<1x128xf32> to vector<16x128xf32>
    %224 = arith.addf %222, %223 : vector<16x128xf32>
    %225 = arith.truncf %224 : vector<16x128xf32> to vector<16x128xbf16>
    %c1_89 = arith.constant 1 : index
    %c0_90 = arith.constant 0 : index
    %c0_91 = arith.constant 0 : index
    %226 = vector.load %arg5[%c1_89, %c0_90, %c0_91] : memref<4x128x384xbf16, #tpu.memory_space<vmem>>, vector<1x128x384xbf16>
    %227 = vector.shape_cast %226 : vector<1x128x384xbf16> to vector<128x384xbf16>
    %cst_92 = arith.constant dense<0.000000e+00> : vector<16x384xf32>
    %228 = tpu.matmul %225, %227, %cst_92 {dimension_numbers = #tpu.dot_dimension_numbers<[1], [0], [0], [1], [0, 0, 1, 1], [], []>} : vector<16x128xbf16>, vector<128x384xbf16>, vector<16x384xf32> -> vector<16x384xf32>
    %229 = vector.extract_strided_slice %228 {offsets = [0, 0], sizes = [16, 128], strides = [1, 1]} : vector<16x384xf32> to vector<16x128xf32>
    %230 = vector.extract_strided_slice %228 {offsets = [0, 128], sizes = [16, 128], strides = [1, 1]} : vector<16x384xf32> to vector<16x128xf32>
    %231 = vector.extract_strided_slice %228 {offsets = [0, 256], sizes = [16, 128], strides = [1, 1]} : vector<16x384xf32> to vector<16x128xf32>
    %232 = vector.shape_cast %230 : vector<16x128xf32> to vector<1x16x128xf32>
    %233 = vector.broadcast %15 : vector<8x1x128xf32> to vector<8x16x128xf32>
    %234 = vector.broadcast %232 : vector<1x16x128xf32> to vector<8x16x128xf32>
    %235 = arith.mulf %233, %234 : vector<8x16x128xf32>
    %236 = vector.shape_cast %231 : vector<16x128xf32> to vector<1x16x128xf32>
    %237 = vector.broadcast %15 : vector<8x1x128xf32> to vector<8x16x128xf32>
    %238 = vector.broadcast %236 : vector<1x16x128xf32> to vector<8x16x128xf32>
    %239 = arith.mulf %237, %238 : vector<8x16x128xf32>
    %240 = vector.shape_cast %229 : vector<16x128xf32> to vector<1x16x128xf32>
    %241 = vector.shape_cast %240 : vector<1x16x128xf32> to vector<1x16x128xf32>
    %242 = vector.broadcast %241 : vector<1x16x128xf32> to vector<8x16x128xf32>
    "tpu.trace_start"() <{level = 10 : i32, message = "hqd,hkd->hqk"}> : () -> ()
    %cst_93 = arith.constant dense<0.000000e+00> : vector<8x16x16xf32>
    %243 = tpu.matmul %242, %235, %cst_93 {dimension_numbers = #tpu.dot_dimension_numbers<[2], [2], [1], [1], [0, 0, 0, 1, 1, 1], [0], [0]>} : vector<8x16x128xf32>, vector<8x16x128xf32>, vector<8x16x16xf32> -> vector<8x16x16xf32>
    "tpu.trace_stop"() : () -> ()
    %244 = vector.shape_cast %28 : vector<16x16xi1> to vector<1x16x16xi1>
    %cst_94 = arith.constant 0xFF800000 : f32
    %245 = vector.shape_cast %244 : vector<1x16x16xi1> to vector<1x16x16xi1>
    %246 = vector.broadcast %245 : vector<1x16x16xi1> to vector<8x16x16xi1>
    %247 = vector.broadcast %cst_94 : f32 to vector<8x16x16xf32>
    %248 = arith.select %246, %243, %247 : vector<8x16x16xi1>, vector<8x16x16xf32>
    %cst_95 = arith.constant dense<0xFF800000> : vector<8x16xf32>
    %249 = vector.multi_reduction <maximumf>, %248, %cst_95 [2] : vector<8x16x16xf32> to vector<8x16xf32>
    %250 = vector.shape_cast %249 : vector<8x16xf32> to vector<8x16x1xf32>
    %251 = vector.broadcast %250 : vector<8x16x1xf32> to vector<8x16x16xf32>
    %252 = arith.subf %248, %251 : vector<8x16x16xf32>
    %253 = math.exp %252 : vector<8x16x16xf32>
    %cst_96 = arith.constant dense<0.000000e+00> : vector<8x16xf32>
    %254 = vector.multi_reduction <add>, %253, %cst_96 [2] : vector<8x16x16xf32> to vector<8x16xf32>
    %255 = vector.shape_cast %254 : vector<8x16xf32> to vector<8x16x1xf32>
    %256 = tpu.reciprocal %255 {approx = true} : vector<8x16x1xf32> -> vector<8x16x1xf32>
    %257 = vector.broadcast %256 : vector<8x16x1xf32> to vector<8x16x16xf32>
    %258 = arith.mulf %253, %257 : vector<8x16x16xf32>
    "tpu.trace_start"() <{level = 10 : i32, message = "hqk,hkd->hqd"}> : () -> ()
    %cst_97 = arith.constant dense<0.000000e+00> : vector<8x16x128xf32>
    %259 = tpu.matmul %258, %239, %cst_97 {dimension_numbers = #tpu.dot_dimension_numbers<[2], [1], [1], [2], [0, 0, 0, 1, 1, 2], [0], [0]>} : vector<8x16x16xf32>, vector<8x16x128xf32>, vector<8x16x128xf32> -> vector<8x16x128xf32>
    "tpu.trace_stop"() : () -> ()
    %cst_98 = arith.constant dense<0.000000e+00> : vector<16x128xf32>
    %260 = vector.multi_reduction <add>, %259, %cst_98 [0] : vector<8x16x128xf32> to vector<16x128xf32>
    %261 = arith.truncf %260 : vector<16x128xf32> to vector<16x128xbf16>
    %c1_99 = arith.constant 1 : index
    %c0_100 = arith.constant 0 : index
    %c0_101 = arith.constant 0 : index
    %262 = vector.load %arg6[%c1_99, %c0_100, %c0_101] : memref<4x128x128xbf16, #tpu.memory_space<vmem>>, vector<1x128x128xbf16>
    %263 = vector.shape_cast %262 : vector<1x128x128xbf16> to vector<128x128xbf16>
    %cst_102 = arith.constant dense<0.000000e+00> : vector<16x128xf32>
    %264 = tpu.matmul %261, %263, %cst_102 {dimension_numbers = #tpu.dot_dimension_numbers<[1], [0], [0], [1], [0, 0, 1, 1], [], []>} : vector<16x128xbf16>, vector<128x128xbf16>, vector<16x128xf32> -> vector<16x128xf32>
    %c1_103 = arith.constant 1 : index
    %c0_104 = arith.constant 0 : index
    %c0_105 = arith.constant 0 : index
    %265 = vector.load %arg7[%c1_103, %c0_104, %c0_105] : memref<4x1x128xf32, #tpu.memory_space<vmem>>, vector<1x1x128xf32>
    %266 = vector.shape_cast %265 : vector<1x1x128xf32> to vector<1x128xf32>
    %267 = vector.broadcast %266 : vector<1x128xf32> to vector<16x128xf32>
    %268 = arith.addf %264, %267 : vector<16x128xf32>
    %269 = arith.addf %196, %268 : vector<16x128xf32>
    %c1_106 = arith.constant 1 : index
    %c0_107 = arith.constant 0 : index
    %c0_108 = arith.constant 0 : index
    %270 = vector.load %arg8[%c1_106, %c0_107, %c0_108] : memref<4x1x128xf32, #tpu.memory_space<vmem>>, vector<1x1x128xf32>
    %271 = vector.shape_cast %270 : vector<1x1x128xf32> to vector<1x128xf32>
    %c1_109 = arith.constant 1 : index
    %c0_110 = arith.constant 0 : index
    %c0_111 = arith.constant 0 : index
    %272 = vector.load %arg9[%c1_109, %c0_110, %c0_111] : memref<4x1x128xf32, #tpu.memory_space<vmem>>, vector<1x1x128xf32>
    %273 = vector.shape_cast %272 : vector<1x1x128xf32> to vector<1x128xf32>
    %cst_112 = arith.constant dense<0.000000e+00> : vector<16xf32>
    %274 = vector.multi_reduction <add>, %269, %cst_112 [1] : vector<16x128xf32> to vector<16xf32>
    %275 = vector.shape_cast %274 : vector<16xf32> to vector<16x1xf32>
    %cst_113 = arith.constant 1.562500e-02 : f32
    %276 = vector.broadcast %cst_113 : f32 to vector<16x1xf32>
    %277 = arith.mulf %275, %276 : vector<16x1xf32>
    %278 = vector.broadcast %277 : vector<16x1xf32> to vector<16x128xf32>
    %279 = arith.subf %269, %278 : vector<16x128xf32>
    %cst_114 = arith.constant 0.000000e+00 : f32
    %280 = vector.shape_cast %2 : vector<1x128xi1> to vector<1x128xi1>
    %281 = vector.broadcast %280 : vector<1x128xi1> to vector<16x128xi1>
    %282 = vector.broadcast %cst_114 : f32 to vector<16x128xf32>
    %283 = arith.select %281, %279, %282 : vector<16x128xi1>, vector<16x128xf32>
    %284 = arith.mulf %283, %283 : vector<16x128xf32>
    %cst_115 = arith.constant dense<0.000000e+00> : vector<16xf32>
    %285 = vector.multi_reduction <add>, %284, %cst_115 [1] : vector<16x128xf32> to vector<16xf32>
    %286 = vector.shape_cast %285 : vector<16xf32> to vector<16x1xf32>
    %cst_116 = arith.constant 1.562500e-02 : f32
    %287 = vector.broadcast %cst_116 : f32 to vector<16x1xf32>
    %288 = arith.mulf %286, %287 : vector<16x1xf32>
    %cst_117 = arith.constant 9.99999974E-6 : f32
    %289 = vector.broadcast %cst_117 : f32 to vector<16x1xf32>
    %290 = arith.addf %288, %289 : vector<16x1xf32>
    %291 = math.rsqrt %290 : vector<16x1xf32>
    %292 = vector.broadcast %291 : vector<16x1xf32> to vector<16x128xf32>
    %293 = arith.mulf %283, %292 : vector<16x128xf32>
    %294 = vector.broadcast %271 : vector<1x128xf32> to vector<16x128xf32>
    %295 = arith.mulf %293, %294 : vector<16x128xf32>
    %296 = vector.broadcast %273 : vector<1x128xf32> to vector<16x128xf32>
    %297 = arith.addf %295, %296 : vector<16x128xf32>
    %298 = arith.truncf %297 : vector<16x128xf32> to vector<16x128xbf16>
    %c1_118 = arith.constant 1 : index
    %c0_119 = arith.constant 0 : index
    %c0_120 = arith.constant 0 : index
    %299 = vector.load %arg10[%c1_118, %c0_119, %c0_120] : memref<4x128x256xbf16, #tpu.memory_space<vmem>>, vector<1x128x256xbf16>
    %300 = vector.shape_cast %299 : vector<1x128x256xbf16> to vector<128x256xbf16>
    %cst_121 = arith.constant dense<0.000000e+00> : vector<16x256xf32>
    %301 = tpu.matmul %298, %300, %cst_121 {dimension_numbers = #tpu.dot_dimension_numbers<[1], [0], [0], [1], [0, 0, 1, 1], [], []>} : vector<16x128xbf16>, vector<128x256xbf16>, vector<16x256xf32> -> vector<16x256xf32>
    %c1_122 = arith.constant 1 : index
    %c0_123 = arith.constant 0 : index
    %c0_124 = arith.constant 0 : index
    %302 = vector.load %arg11[%c1_122, %c0_123, %c0_124] : memref<4x1x256xf32, #tpu.memory_space<vmem>>, vector<1x1x256xf32>
    %303 = vector.shape_cast %302 : vector<1x1x256xf32> to vector<1x256xf32>
    %304 = vector.broadcast %303 : vector<1x256xf32> to vector<16x256xf32>
    %305 = arith.addf %301, %304 : vector<16x256xf32>
    %cst_125 = arith.constant 0.707106769 : f32
    %306 = vector.broadcast %cst_125 : f32 to vector<16x256xf32>
    %307 = arith.mulf %305, %306 : vector<16x256xf32>
    %308 = math.absf %307 : vector<16x256xf32>
    %cst_126 = arith.constant 0.327591091 : f32
    %309 = vector.broadcast %cst_126 : f32 to vector<16x256xf32>
    %310 = arith.mulf %309, %308 : vector<16x256xf32>
    %cst_127 = arith.constant 1.000000e+00 : f32
    %311 = vector.broadcast %cst_127 : f32 to vector<16x256xf32>
    %312 = arith.addf %311, %310 : vector<16x256xf32>
    %cst_128 = arith.constant 1.000000e+00 : f32
    %313 = vector.broadcast %cst_128 : f32 to vector<16x256xf32>
    %314 = arith.divf %313, %312 : vector<16x256xf32>
    %cst_129 = arith.constant 1.06140542 : f32
    %315 = vector.broadcast %cst_129 : f32 to vector<16x256xf32>
    %316 = arith.mulf %315, %314 : vector<16x256xf32>
    %cst_130 = arith.constant 1.45315206 : f32
    %317 = vector.broadcast %cst_130 : f32 to vector<16x256xf32>
    %318 = arith.subf %316, %317 : vector<16x256xf32>
    %319 = arith.mulf %318, %314 : vector<16x256xf32>
    %cst_131 = arith.constant 1.42141378 : f32
    %320 = vector.broadcast %cst_131 : f32 to vector<16x256xf32>
    %321 = arith.addf %319, %320 : vector<16x256xf32>
    %322 = arith.mulf %321, %314 : vector<16x256xf32>
    %cst_132 = arith.constant 0.284496725 : f32
    %323 = vector.broadcast %cst_132 : f32 to vector<16x256xf32>
    %324 = arith.subf %322, %323 : vector<16x256xf32>
    %325 = arith.mulf %324, %314 : vector<16x256xf32>
    %cst_133 = arith.constant 0.254829586 : f32
    %326 = vector.broadcast %cst_133 : f32 to vector<16x256xf32>
    %327 = arith.addf %325, %326 : vector<16x256xf32>
    %328 = arith.mulf %327, %314 : vector<16x256xf32>
    %cst_134 = arith.constant 0.000000e+00 : f32
    %329 = vector.broadcast %cst_134 : f32 to vector<16x256xf32>
    %330 = arith.subf %329, %308 : vector<16x256xf32>
    %331 = arith.mulf %330, %308 : vector<16x256xf32>
    %332 = math.exp %331 : vector<16x256xf32>
    %333 = arith.mulf %328, %332 : vector<16x256xf32>
    %cst_135 = arith.constant 1.000000e+00 : f32
    %334 = vector.broadcast %cst_135 : f32 to vector<16x256xf32>
    %335 = arith.subf %334, %333 : vector<16x256xf32>
    %cst_136 = arith.constant 0.000000e+00 : f32
    %336 = vector.broadcast %cst_136 : f32 to vector<16x256xf32>
    %337 = arith.cmpf oge, %307, %336 : vector<16x256xf32>
    %cst_137 = arith.constant 0.000000e+00 : f32
    %338 = vector.broadcast %cst_137 : f32 to vector<16x256xf32>
    %339 = arith.subf %338, %335 : vector<16x256xf32>
    %340 = arith.select %337, %335, %339 : vector<16x256xi1>, vector<16x256xf32>
    %cst_138 = arith.constant 5.000000e-01 : f32
    %341 = vector.broadcast %cst_138 : f32 to vector<16x256xf32>
    %342 = arith.mulf %341, %305 : vector<16x256xf32>
    %cst_139 = arith.constant 1.000000e+00 : f32
    %343 = vector.broadcast %cst_139 : f32 to vector<16x256xf32>
    %344 = arith.addf %343, %340 : vector<16x256xf32>
    %345 = arith.mulf %342, %344 : vector<16x256xf32>
    %346 = arith.truncf %345 : vector<16x256xf32> to vector<16x256xbf16>
    %c1_140 = arith.constant 1 : index
    %c0_141 = arith.constant 0 : index
    %c0_142 = arith.constant 0 : index
    %347 = vector.load %arg12[%c1_140, %c0_141, %c0_142] : memref<4x256x128xbf16, #tpu.memory_space<vmem>>, vector<1x256x128xbf16>
    %348 = vector.shape_cast %347 : vector<1x256x128xbf16> to vector<256x128xbf16>
    %cst_143 = arith.constant dense<0.000000e+00> : vector<16x128xf32>
    %349 = tpu.matmul %346, %348, %cst_143 {dimension_numbers = #tpu.dot_dimension_numbers<[1], [0], [0], [1], [0, 0, 1, 1], [], []>} : vector<16x256xbf16>, vector<256x128xbf16>, vector<16x128xf32> -> vector<16x128xf32>
    %350 = arith.addf %269, %349 : vector<16x128xf32>
    %c1_144 = arith.constant 1 : index
    %c0_145 = arith.constant 0 : index
    %c0_146 = arith.constant 0 : index
    %351 = vector.load %arg13[%c1_144, %c0_145, %c0_146] : memref<4x1x128xf32, #tpu.memory_space<vmem>>, vector<1x1x128xf32>
    %352 = vector.shape_cast %351 : vector<1x1x128xf32> to vector<1x128xf32>
    %353 = vector.broadcast %352 : vector<1x128xf32> to vector<16x128xf32>
    %354 = arith.addf %350, %353 : vector<16x128xf32>
    %c2 = arith.constant 2 : index
    %c0_147 = arith.constant 0 : index
    %c0_148 = arith.constant 0 : index
    %355 = vector.load %arg3[%c2, %c0_147, %c0_148] : memref<4x1x128xf32, #tpu.memory_space<vmem>>, vector<1x1x128xf32>
    %356 = vector.shape_cast %355 : vector<1x1x128xf32> to vector<1x128xf32>
    %c2_149 = arith.constant 2 : index
    %c0_150 = arith.constant 0 : index
    %c0_151 = arith.constant 0 : index
    %357 = vector.load %arg4[%c2_149, %c0_150, %c0_151] : memref<4x1x128xf32, #tpu.memory_space<vmem>>, vector<1x1x128xf32>
    %358 = vector.shape_cast %357 : vector<1x1x128xf32> to vector<1x128xf32>
    %cst_152 = arith.constant dense<0.000000e+00> : vector<16xf32>
    %359 = vector.multi_reduction <add>, %354, %cst_152 [1] : vector<16x128xf32> to vector<16xf32>
    %360 = vector.shape_cast %359 : vector<16xf32> to vector<16x1xf32>
    %cst_153 = arith.constant 1.562500e-02 : f32
    %361 = vector.broadcast %cst_153 : f32 to vector<16x1xf32>
    %362 = arith.mulf %360, %361 : vector<16x1xf32>
    %363 = vector.broadcast %362 : vector<16x1xf32> to vector<16x128xf32>
    %364 = arith.subf %354, %363 : vector<16x128xf32>
    %cst_154 = arith.constant 0.000000e+00 : f32
    %365 = vector.shape_cast %2 : vector<1x128xi1> to vector<1x128xi1>
    %366 = vector.broadcast %365 : vector<1x128xi1> to vector<16x128xi1>
    %367 = vector.broadcast %cst_154 : f32 to vector<16x128xf32>
    %368 = arith.select %366, %364, %367 : vector<16x128xi1>, vector<16x128xf32>
    %369 = arith.mulf %368, %368 : vector<16x128xf32>
    %cst_155 = arith.constant dense<0.000000e+00> : vector<16xf32>
    %370 = vector.multi_reduction <add>, %369, %cst_155 [1] : vector<16x128xf32> to vector<16xf32>
    %371 = vector.shape_cast %370 : vector<16xf32> to vector<16x1xf32>
    %cst_156 = arith.constant 1.562500e-02 : f32
    %372 = vector.broadcast %cst_156 : f32 to vector<16x1xf32>
    %373 = arith.mulf %371, %372 : vector<16x1xf32>
    %cst_157 = arith.constant 9.99999974E-6 : f32
    %374 = vector.broadcast %cst_157 : f32 to vector<16x1xf32>
    %375 = arith.addf %373, %374 : vector<16x1xf32>
    %376 = math.rsqrt %375 : vector<16x1xf32>
    %377 = vector.broadcast %376 : vector<16x1xf32> to vector<16x128xf32>
    %378 = arith.mulf %368, %377 : vector<16x128xf32>
    %379 = vector.broadcast %356 : vector<1x128xf32> to vector<16x128xf32>
    %380 = arith.mulf %378, %379 : vector<16x128xf32>
    %381 = vector.broadcast %358 : vector<1x128xf32> to vector<16x128xf32>
    %382 = arith.addf %380, %381 : vector<16x128xf32>
    %383 = arith.truncf %382 : vector<16x128xf32> to vector<16x128xbf16>
    %c2_158 = arith.constant 2 : index
    %c0_159 = arith.constant 0 : index
    %c0_160 = arith.constant 0 : index
    %384 = vector.load %arg5[%c2_158, %c0_159, %c0_160] : memref<4x128x384xbf16, #tpu.memory_space<vmem>>, vector<1x128x384xbf16>
    %385 = vector.shape_cast %384 : vector<1x128x384xbf16> to vector<128x384xbf16>
    %cst_161 = arith.constant dense<0.000000e+00> : vector<16x384xf32>
    %386 = tpu.matmul %383, %385, %cst_161 {dimension_numbers = #tpu.dot_dimension_numbers<[1], [0], [0], [1], [0, 0, 1, 1], [], []>} : vector<16x128xbf16>, vector<128x384xbf16>, vector<16x384xf32> -> vector<16x384xf32>
    %387 = vector.extract_strided_slice %386 {offsets = [0, 0], sizes = [16, 128], strides = [1, 1]} : vector<16x384xf32> to vector<16x128xf32>
    %388 = vector.extract_strided_slice %386 {offsets = [0, 128], sizes = [16, 128], strides = [1, 1]} : vector<16x384xf32> to vector<16x128xf32>
    %389 = vector.extract_strided_slice %386 {offsets = [0, 256], sizes = [16, 128], strides = [1, 1]} : vector<16x384xf32> to vector<16x128xf32>
    %390 = vector.shape_cast %388 : vector<16x128xf32> to vector<1x16x128xf32>
    %391 = vector.broadcast %15 : vector<8x1x128xf32> to vector<8x16x128xf32>
    %392 = vector.broadcast %390 : vector<1x16x128xf32> to vector<8x16x128xf32>
    %393 = arith.mulf %391, %392 : vector<8x16x128xf32>
    %394 = vector.shape_cast %389 : vector<16x128xf32> to vector<1x16x128xf32>
    %395 = vector.broadcast %15 : vector<8x1x128xf32> to vector<8x16x128xf32>
    %396 = vector.broadcast %394 : vector<1x16x128xf32> to vector<8x16x128xf32>
    %397 = arith.mulf %395, %396 : vector<8x16x128xf32>
    %398 = vector.shape_cast %387 : vector<16x128xf32> to vector<1x16x128xf32>
    %399 = vector.shape_cast %398 : vector<1x16x128xf32> to vector<1x16x128xf32>
    %400 = vector.broadcast %399 : vector<1x16x128xf32> to vector<8x16x128xf32>
    "tpu.trace_start"() <{level = 10 : i32, message = "hqd,hkd->hqk"}> : () -> ()
    %cst_162 = arith.constant dense<0.000000e+00> : vector<8x16x16xf32>
    %401 = tpu.matmul %400, %393, %cst_162 {dimension_numbers = #tpu.dot_dimension_numbers<[2], [2], [1], [1], [0, 0, 0, 1, 1, 1], [0], [0]>} : vector<8x16x128xf32>, vector<8x16x128xf32>, vector<8x16x16xf32> -> vector<8x16x16xf32>
    "tpu.trace_stop"() : () -> ()
    %402 = vector.shape_cast %28 : vector<16x16xi1> to vector<1x16x16xi1>
    %cst_163 = arith.constant 0xFF800000 : f32
    %403 = vector.shape_cast %402 : vector<1x16x16xi1> to vector<1x16x16xi1>
    %404 = vector.broadcast %403 : vector<1x16x16xi1> to vector<8x16x16xi1>
    %405 = vector.broadcast %cst_163 : f32 to vector<8x16x16xf32>
    %406 = arith.select %404, %401, %405 : vector<8x16x16xi1>, vector<8x16x16xf32>
    %cst_164 = arith.constant dense<0xFF800000> : vector<8x16xf32>
    %407 = vector.multi_reduction <maximumf>, %406, %cst_164 [2] : vector<8x16x16xf32> to vector<8x16xf32>
    %408 = vector.shape_cast %407 : vector<8x16xf32> to vector<8x16x1xf32>
    %409 = vector.broadcast %408 : vector<8x16x1xf32> to vector<8x16x16xf32>
    %410 = arith.subf %406, %409 : vector<8x16x16xf32>
    %411 = math.exp %410 : vector<8x16x16xf32>
    %cst_165 = arith.constant dense<0.000000e+00> : vector<8x16xf32>
    %412 = vector.multi_reduction <add>, %411, %cst_165 [2] : vector<8x16x16xf32> to vector<8x16xf32>
    %413 = vector.shape_cast %412 : vector<8x16xf32> to vector<8x16x1xf32>
    %414 = tpu.reciprocal %413 {approx = true} : vector<8x16x1xf32> -> vector<8x16x1xf32>
    %415 = vector.broadcast %414 : vector<8x16x1xf32> to vector<8x16x16xf32>
    %416 = arith.mulf %411, %415 : vector<8x16x16xf32>
    "tpu.trace_start"() <{level = 10 : i32, message = "hqk,hkd->hqd"}> : () -> ()
    %cst_166 = arith.constant dense<0.000000e+00> : vector<8x16x128xf32>
    %417 = tpu.matmul %416, %397, %cst_166 {dimension_numbers = #tpu.dot_dimension_numbers<[2], [1], [1], [2], [0, 0, 0, 1, 1, 2], [0], [0]>} : vector<8x16x16xf32>, vector<8x16x128xf32>, vector<8x16x128xf32> -> vector<8x16x128xf32>
    "tpu.trace_stop"() : () -> ()
    %cst_167 = arith.constant dense<0.000000e+00> : vector<16x128xf32>
    %418 = vector.multi_reduction <add>, %417, %cst_167 [0] : vector<8x16x128xf32> to vector<16x128xf32>
    %419 = arith.truncf %418 : vector<16x128xf32> to vector<16x128xbf16>
    %c2_168 = arith.constant 2 : index
    %c0_169 = arith.constant 0 : index
    %c0_170 = arith.constant 0 : index
    %420 = vector.load %arg6[%c2_168, %c0_169, %c0_170] : memref<4x128x128xbf16, #tpu.memory_space<vmem>>, vector<1x128x128xbf16>
    %421 = vector.shape_cast %420 : vector<1x128x128xbf16> to vector<128x128xbf16>
    %cst_171 = arith.constant dense<0.000000e+00> : vector<16x128xf32>
    %422 = tpu.matmul %419, %421, %cst_171 {dimension_numbers = #tpu.dot_dimension_numbers<[1], [0], [0], [1], [0, 0, 1, 1], [], []>} : vector<16x128xbf16>, vector<128x128xbf16>, vector<16x128xf32> -> vector<16x128xf32>
    %c2_172 = arith.constant 2 : index
    %c0_173 = arith.constant 0 : index
    %c0_174 = arith.constant 0 : index
    %423 = vector.load %arg7[%c2_172, %c0_173, %c0_174] : memref<4x1x128xf32, #tpu.memory_space<vmem>>, vector<1x1x128xf32>
    %424 = vector.shape_cast %423 : vector<1x1x128xf32> to vector<1x128xf32>
    %425 = vector.broadcast %424 : vector<1x128xf32> to vector<16x128xf32>
    %426 = arith.addf %422, %425 : vector<16x128xf32>
    %427 = arith.addf %354, %426 : vector<16x128xf32>
    %c2_175 = arith.constant 2 : index
    %c0_176 = arith.constant 0 : index
    %c0_177 = arith.constant 0 : index
    %428 = vector.load %arg8[%c2_175, %c0_176, %c0_177] : memref<4x1x128xf32, #tpu.memory_space<vmem>>, vector<1x1x128xf32>
    %429 = vector.shape_cast %428 : vector<1x1x128xf32> to vector<1x128xf32>
    %c2_178 = arith.constant 2 : index
    %c0_179 = arith.constant 0 : index
    %c0_180 = arith.constant 0 : index
    %430 = vector.load %arg9[%c2_178, %c0_179, %c0_180] : memref<4x1x128xf32, #tpu.memory_space<vmem>>, vector<1x1x128xf32>
    %431 = vector.shape_cast %430 : vector<1x1x128xf32> to vector<1x128xf32>
    %cst_181 = arith.constant dense<0.000000e+00> : vector<16xf32>
    %432 = vector.multi_reduction <add>, %427, %cst_181 [1] : vector<16x128xf32> to vector<16xf32>
    %433 = vector.shape_cast %432 : vector<16xf32> to vector<16x1xf32>
    %cst_182 = arith.constant 1.562500e-02 : f32
    %434 = vector.broadcast %cst_182 : f32 to vector<16x1xf32>
    %435 = arith.mulf %433, %434 : vector<16x1xf32>
    %436 = vector.broadcast %435 : vector<16x1xf32> to vector<16x128xf32>
    %437 = arith.subf %427, %436 : vector<16x128xf32>
    %cst_183 = arith.constant 0.000000e+00 : f32
    %438 = vector.shape_cast %2 : vector<1x128xi1> to vector<1x128xi1>
    %439 = vector.broadcast %438 : vector<1x128xi1> to vector<16x128xi1>
    %440 = vector.broadcast %cst_183 : f32 to vector<16x128xf32>
    %441 = arith.select %439, %437, %440 : vector<16x128xi1>, vector<16x128xf32>
    %442 = arith.mulf %441, %441 : vector<16x128xf32>
    %cst_184 = arith.constant dense<0.000000e+00> : vector<16xf32>
    %443 = vector.multi_reduction <add>, %442, %cst_184 [1] : vector<16x128xf32> to vector<16xf32>
    %444 = vector.shape_cast %443 : vector<16xf32> to vector<16x1xf32>
    %cst_185 = arith.constant 1.562500e-02 : f32
    %445 = vector.broadcast %cst_185 : f32 to vector<16x1xf32>
    %446 = arith.mulf %444, %445 : vector<16x1xf32>
    %cst_186 = arith.constant 9.99999974E-6 : f32
    %447 = vector.broadcast %cst_186 : f32 to vector<16x1xf32>
    %448 = arith.addf %446, %447 : vector<16x1xf32>
    %449 = math.rsqrt %448 : vector<16x1xf32>
    %450 = vector.broadcast %449 : vector<16x1xf32> to vector<16x128xf32>
    %451 = arith.mulf %441, %450 : vector<16x128xf32>
    %452 = vector.broadcast %429 : vector<1x128xf32> to vector<16x128xf32>
    %453 = arith.mulf %451, %452 : vector<16x128xf32>
    %454 = vector.broadcast %431 : vector<1x128xf32> to vector<16x128xf32>
    %455 = arith.addf %453, %454 : vector<16x128xf32>
    %456 = arith.truncf %455 : vector<16x128xf32> to vector<16x128xbf16>
    %c2_187 = arith.constant 2 : index
    %c0_188 = arith.constant 0 : index
    %c0_189 = arith.constant 0 : index
    %457 = vector.load %arg10[%c2_187, %c0_188, %c0_189] : memref<4x128x256xbf16, #tpu.memory_space<vmem>>, vector<1x128x256xbf16>
    %458 = vector.shape_cast %457 : vector<1x128x256xbf16> to vector<128x256xbf16>
    %cst_190 = arith.constant dense<0.000000e+00> : vector<16x256xf32>
    %459 = tpu.matmul %456, %458, %cst_190 {dimension_numbers = #tpu.dot_dimension_numbers<[1], [0], [0], [1], [0, 0, 1, 1], [], []>} : vector<16x128xbf16>, vector<128x256xbf16>, vector<16x256xf32> -> vector<16x256xf32>
    %c2_191 = arith.constant 2 : index
    %c0_192 = arith.constant 0 : index
    %c0_193 = arith.constant 0 : index
    %460 = vector.load %arg11[%c2_191, %c0_192, %c0_193] : memref<4x1x256xf32, #tpu.memory_space<vmem>>, vector<1x1x256xf32>
    %461 = vector.shape_cast %460 : vector<1x1x256xf32> to vector<1x256xf32>
    %462 = vector.broadcast %461 : vector<1x256xf32> to vector<16x256xf32>
    %463 = arith.addf %459, %462 : vector<16x256xf32>
    %cst_194 = arith.constant 0.707106769 : f32
    %464 = vector.broadcast %cst_194 : f32 to vector<16x256xf32>
    %465 = arith.mulf %463, %464 : vector<16x256xf32>
    %466 = math.absf %465 : vector<16x256xf32>
    %cst_195 = arith.constant 0.327591091 : f32
    %467 = vector.broadcast %cst_195 : f32 to vector<16x256xf32>
    %468 = arith.mulf %467, %466 : vector<16x256xf32>
    %cst_196 = arith.constant 1.000000e+00 : f32
    %469 = vector.broadcast %cst_196 : f32 to vector<16x256xf32>
    %470 = arith.addf %469, %468 : vector<16x256xf32>
    %cst_197 = arith.constant 1.000000e+00 : f32
    %471 = vector.broadcast %cst_197 : f32 to vector<16x256xf32>
    %472 = arith.divf %471, %470 : vector<16x256xf32>
    %cst_198 = arith.constant 1.06140542 : f32
    %473 = vector.broadcast %cst_198 : f32 to vector<16x256xf32>
    %474 = arith.mulf %473, %472 : vector<16x256xf32>
    %cst_199 = arith.constant 1.45315206 : f32
    %475 = vector.broadcast %cst_199 : f32 to vector<16x256xf32>
    %476 = arith.subf %474, %475 : vector<16x256xf32>
    %477 = arith.mulf %476, %472 : vector<16x256xf32>
    %cst_200 = arith.constant 1.42141378 : f32
    %478 = vector.broadcast %cst_200 : f32 to vector<16x256xf32>
    %479 = arith.addf %477, %478 : vector<16x256xf32>
    %480 = arith.mulf %479, %472 : vector<16x256xf32>
    %cst_201 = arith.constant 0.284496725 : f32
    %481 = vector.broadcast %cst_201 : f32 to vector<16x256xf32>
    %482 = arith.subf %480, %481 : vector<16x256xf32>
    %483 = arith.mulf %482, %472 : vector<16x256xf32>
    %cst_202 = arith.constant 0.254829586 : f32
    %484 = vector.broadcast %cst_202 : f32 to vector<16x256xf32>
    %485 = arith.addf %483, %484 : vector<16x256xf32>
    %486 = arith.mulf %485, %472 : vector<16x256xf32>
    %cst_203 = arith.constant 0.000000e+00 : f32
    %487 = vector.broadcast %cst_203 : f32 to vector<16x256xf32>
    %488 = arith.subf %487, %466 : vector<16x256xf32>
    %489 = arith.mulf %488, %466 : vector<16x256xf32>
    %490 = math.exp %489 : vector<16x256xf32>
    %491 = arith.mulf %486, %490 : vector<16x256xf32>
    %cst_204 = arith.constant 1.000000e+00 : f32
    %492 = vector.broadcast %cst_204 : f32 to vector<16x256xf32>
    %493 = arith.subf %492, %491 : vector<16x256xf32>
    %cst_205 = arith.constant 0.000000e+00 : f32
    %494 = vector.broadcast %cst_205 : f32 to vector<16x256xf32>
    %495 = arith.cmpf oge, %465, %494 : vector<16x256xf32>
    %cst_206 = arith.constant 0.000000e+00 : f32
    %496 = vector.broadcast %cst_206 : f32 to vector<16x256xf32>
    %497 = arith.subf %496, %493 : vector<16x256xf32>
    %498 = arith.select %495, %493, %497 : vector<16x256xi1>, vector<16x256xf32>
    %cst_207 = arith.constant 5.000000e-01 : f32
    %499 = vector.broadcast %cst_207 : f32 to vector<16x256xf32>
    %500 = arith.mulf %499, %463 : vector<16x256xf32>
    %cst_208 = arith.constant 1.000000e+00 : f32
    %501 = vector.broadcast %cst_208 : f32 to vector<16x256xf32>
    %502 = arith.addf %501, %498 : vector<16x256xf32>
    %503 = arith.mulf %500, %502 : vector<16x256xf32>
    %504 = arith.truncf %503 : vector<16x256xf32> to vector<16x256xbf16>
    %c2_209 = arith.constant 2 : index
    %c0_210 = arith.constant 0 : index
    %c0_211 = arith.constant 0 : index
    %505 = vector.load %arg12[%c2_209, %c0_210, %c0_211] : memref<4x256x128xbf16, #tpu.memory_space<vmem>>, vector<1x256x128xbf16>
    %506 = vector.shape_cast %505 : vector<1x256x128xbf16> to vector<256x128xbf16>
    %cst_212 = arith.constant dense<0.000000e+00> : vector<16x128xf32>
    %507 = tpu.matmul %504, %506, %cst_212 {dimension_numbers = #tpu.dot_dimension_numbers<[1], [0], [0], [1], [0, 0, 1, 1], [], []>} : vector<16x256xbf16>, vector<256x128xbf16>, vector<16x128xf32> -> vector<16x128xf32>
    %508 = arith.addf %427, %507 : vector<16x128xf32>
    %c2_213 = arith.constant 2 : index
    %c0_214 = arith.constant 0 : index
    %c0_215 = arith.constant 0 : index
    %509 = vector.load %arg13[%c2_213, %c0_214, %c0_215] : memref<4x1x128xf32, #tpu.memory_space<vmem>>, vector<1x1x128xf32>
    %510 = vector.shape_cast %509 : vector<1x1x128xf32> to vector<1x128xf32>
    %511 = vector.broadcast %510 : vector<1x128xf32> to vector<16x128xf32>
    %512 = arith.addf %508, %511 : vector<16x128xf32>
    %c3 = arith.constant 3 : index
    %c0_216 = arith.constant 0 : index
    %c0_217 = arith.constant 0 : index
    %513 = vector.load %arg3[%c3, %c0_216, %c0_217] : memref<4x1x128xf32, #tpu.memory_space<vmem>>, vector<1x1x128xf32>
    %514 = vector.shape_cast %513 : vector<1x1x128xf32> to vector<1x128xf32>
    %c3_218 = arith.constant 3 : index
    %c0_219 = arith.constant 0 : index
    %c0_220 = arith.constant 0 : index
    %515 = vector.load %arg4[%c3_218, %c0_219, %c0_220] : memref<4x1x128xf32, #tpu.memory_space<vmem>>, vector<1x1x128xf32>
    %516 = vector.shape_cast %515 : vector<1x1x128xf32> to vector<1x128xf32>
    %cst_221 = arith.constant dense<0.000000e+00> : vector<16xf32>
    %517 = vector.multi_reduction <add>, %512, %cst_221 [1] : vector<16x128xf32> to vector<16xf32>
    %518 = vector.shape_cast %517 : vector<16xf32> to vector<16x1xf32>
    %cst_222 = arith.constant 1.562500e-02 : f32
    %519 = vector.broadcast %cst_222 : f32 to vector<16x1xf32>
    %520 = arith.mulf %518, %519 : vector<16x1xf32>
    %521 = vector.broadcast %520 : vector<16x1xf32> to vector<16x128xf32>
    %522 = arith.subf %512, %521 : vector<16x128xf32>
    %cst_223 = arith.constant 0.000000e+00 : f32
    %523 = vector.shape_cast %2 : vector<1x128xi1> to vector<1x128xi1>
    %524 = vector.broadcast %523 : vector<1x128xi1> to vector<16x128xi1>
    %525 = vector.broadcast %cst_223 : f32 to vector<16x128xf32>
    %526 = arith.select %524, %522, %525 : vector<16x128xi1>, vector<16x128xf32>
    %527 = arith.mulf %526, %526 : vector<16x128xf32>
    %cst_224 = arith.constant dense<0.000000e+00> : vector<16xf32>
    %528 = vector.multi_reduction <add>, %527, %cst_224 [1] : vector<16x128xf32> to vector<16xf32>
    %529 = vector.shape_cast %528 : vector<16xf32> to vector<16x1xf32>
    %cst_225 = arith.constant 1.562500e-02 : f32
    %530 = vector.broadcast %cst_225 : f32 to vector<16x1xf32>
    %531 = arith.mulf %529, %530 : vector<16x1xf32>
    %cst_226 = arith.constant 9.99999974E-6 : f32
    %532 = vector.broadcast %cst_226 : f32 to vector<16x1xf32>
    %533 = arith.addf %531, %532 : vector<16x1xf32>
    %534 = math.rsqrt %533 : vector<16x1xf32>
    %535 = vector.broadcast %534 : vector<16x1xf32> to vector<16x128xf32>
    %536 = arith.mulf %526, %535 : vector<16x128xf32>
    %537 = vector.broadcast %514 : vector<1x128xf32> to vector<16x128xf32>
    %538 = arith.mulf %536, %537 : vector<16x128xf32>
    %539 = vector.broadcast %516 : vector<1x128xf32> to vector<16x128xf32>
    %540 = arith.addf %538, %539 : vector<16x128xf32>
    %541 = arith.truncf %540 : vector<16x128xf32> to vector<16x128xbf16>
    %c3_227 = arith.constant 3 : index
    %c0_228 = arith.constant 0 : index
    %c0_229 = arith.constant 0 : index
    %542 = vector.load %arg5[%c3_227, %c0_228, %c0_229] : memref<4x128x384xbf16, #tpu.memory_space<vmem>>, vector<1x128x384xbf16>
    %543 = vector.shape_cast %542 : vector<1x128x384xbf16> to vector<128x384xbf16>
    %cst_230 = arith.constant dense<0.000000e+00> : vector<16x384xf32>
    %544 = tpu.matmul %541, %543, %cst_230 {dimension_numbers = #tpu.dot_dimension_numbers<[1], [0], [0], [1], [0, 0, 1, 1], [], []>} : vector<16x128xbf16>, vector<128x384xbf16>, vector<16x384xf32> -> vector<16x384xf32>
    %545 = vector.extract_strided_slice %544 {offsets = [0, 0], sizes = [16, 128], strides = [1, 1]} : vector<16x384xf32> to vector<16x128xf32>
    %546 = vector.extract_strided_slice %544 {offsets = [0, 128], sizes = [16, 128], strides = [1, 1]} : vector<16x384xf32> to vector<16x128xf32>
    %547 = vector.extract_strided_slice %544 {offsets = [0, 256], sizes = [16, 128], strides = [1, 1]} : vector<16x384xf32> to vector<16x128xf32>
    %548 = vector.shape_cast %546 : vector<16x128xf32> to vector<1x16x128xf32>
    %549 = vector.broadcast %15 : vector<8x1x128xf32> to vector<8x16x128xf32>
    %550 = vector.broadcast %548 : vector<1x16x128xf32> to vector<8x16x128xf32>
    %551 = arith.mulf %549, %550 : vector<8x16x128xf32>
    %552 = vector.shape_cast %547 : vector<16x128xf32> to vector<1x16x128xf32>
    %553 = vector.broadcast %15 : vector<8x1x128xf32> to vector<8x16x128xf32>
    %554 = vector.broadcast %552 : vector<1x16x128xf32> to vector<8x16x128xf32>
    %555 = arith.mulf %553, %554 : vector<8x16x128xf32>
    %556 = vector.shape_cast %545 : vector<16x128xf32> to vector<1x16x128xf32>
    %557 = vector.shape_cast %556 : vector<1x16x128xf32> to vector<1x16x128xf32>
    %558 = vector.broadcast %557 : vector<1x16x128xf32> to vector<8x16x128xf32>
    "tpu.trace_start"() <{level = 10 : i32, message = "hqd,hkd->hqk"}> : () -> ()
    %cst_231 = arith.constant dense<0.000000e+00> : vector<8x16x16xf32>
    %559 = tpu.matmul %558, %551, %cst_231 {dimension_numbers = #tpu.dot_dimension_numbers<[2], [2], [1], [1], [0, 0, 0, 1, 1, 1], [0], [0]>} : vector<8x16x128xf32>, vector<8x16x128xf32>, vector<8x16x16xf32> -> vector<8x16x16xf32>
    "tpu.trace_stop"() : () -> ()
    %560 = vector.shape_cast %28 : vector<16x16xi1> to vector<1x16x16xi1>
    %cst_232 = arith.constant 0xFF800000 : f32
    %561 = vector.shape_cast %560 : vector<1x16x16xi1> to vector<1x16x16xi1>
    %562 = vector.broadcast %561 : vector<1x16x16xi1> to vector<8x16x16xi1>
    %563 = vector.broadcast %cst_232 : f32 to vector<8x16x16xf32>
    %564 = arith.select %562, %559, %563 : vector<8x16x16xi1>, vector<8x16x16xf32>
    %cst_233 = arith.constant dense<0xFF800000> : vector<8x16xf32>
    %565 = vector.multi_reduction <maximumf>, %564, %cst_233 [2] : vector<8x16x16xf32> to vector<8x16xf32>
    %566 = vector.shape_cast %565 : vector<8x16xf32> to vector<8x16x1xf32>
    %567 = vector.broadcast %566 : vector<8x16x1xf32> to vector<8x16x16xf32>
    %568 = arith.subf %564, %567 : vector<8x16x16xf32>
    %569 = math.exp %568 : vector<8x16x16xf32>
    %cst_234 = arith.constant dense<0.000000e+00> : vector<8x16xf32>
    %570 = vector.multi_reduction <add>, %569, %cst_234 [2] : vector<8x16x16xf32> to vector<8x16xf32>
    %571 = vector.shape_cast %570 : vector<8x16xf32> to vector<8x16x1xf32>
    %572 = tpu.reciprocal %571 {approx = true} : vector<8x16x1xf32> -> vector<8x16x1xf32>
    %573 = vector.broadcast %572 : vector<8x16x1xf32> to vector<8x16x16xf32>
    %574 = arith.mulf %569, %573 : vector<8x16x16xf32>
    "tpu.trace_start"() <{level = 10 : i32, message = "hqk,hkd->hqd"}> : () -> ()
    %cst_235 = arith.constant dense<0.000000e+00> : vector<8x16x128xf32>
    %575 = tpu.matmul %574, %555, %cst_235 {dimension_numbers = #tpu.dot_dimension_numbers<[2], [1], [1], [2], [0, 0, 0, 1, 1, 2], [0], [0]>} : vector<8x16x16xf32>, vector<8x16x128xf32>, vector<8x16x128xf32> -> vector<8x16x128xf32>
    "tpu.trace_stop"() : () -> ()
    %cst_236 = arith.constant dense<0.000000e+00> : vector<16x128xf32>
    %576 = vector.multi_reduction <add>, %575, %cst_236 [0] : vector<8x16x128xf32> to vector<16x128xf32>
    %577 = arith.truncf %576 : vector<16x128xf32> to vector<16x128xbf16>
    %c3_237 = arith.constant 3 : index
    %c0_238 = arith.constant 0 : index
    %c0_239 = arith.constant 0 : index
    %578 = vector.load %arg6[%c3_237, %c0_238, %c0_239] : memref<4x128x128xbf16, #tpu.memory_space<vmem>>, vector<1x128x128xbf16>
    %579 = vector.shape_cast %578 : vector<1x128x128xbf16> to vector<128x128xbf16>
    %cst_240 = arith.constant dense<0.000000e+00> : vector<16x128xf32>
    %580 = tpu.matmul %577, %579, %cst_240 {dimension_numbers = #tpu.dot_dimension_numbers<[1], [0], [0], [1], [0, 0, 1, 1], [], []>} : vector<16x128xbf16>, vector<128x128xbf16>, vector<16x128xf32> -> vector<16x128xf32>
    %c3_241 = arith.constant 3 : index
    %c0_242 = arith.constant 0 : index
    %c0_243 = arith.constant 0 : index
    %581 = vector.load %arg7[%c3_241, %c0_242, %c0_243] : memref<4x1x128xf32, #tpu.memory_space<vmem>>, vector<1x1x128xf32>
    %582 = vector.shape_cast %581 : vector<1x1x128xf32> to vector<1x128xf32>
    %583 = vector.broadcast %582 : vector<1x128xf32> to vector<16x128xf32>
    %584 = arith.addf %580, %583 : vector<16x128xf32>
    %585 = arith.addf %512, %584 : vector<16x128xf32>
    %c3_244 = arith.constant 3 : index
    %c0_245 = arith.constant 0 : index
    %c0_246 = arith.constant 0 : index
    %586 = vector.load %arg8[%c3_244, %c0_245, %c0_246] : memref<4x1x128xf32, #tpu.memory_space<vmem>>, vector<1x1x128xf32>
    %587 = vector.shape_cast %586 : vector<1x1x128xf32> to vector<1x128xf32>
    %c3_247 = arith.constant 3 : index
    %c0_248 = arith.constant 0 : index
    %c0_249 = arith.constant 0 : index
    %588 = vector.load %arg9[%c3_247, %c0_248, %c0_249] : memref<4x1x128xf32, #tpu.memory_space<vmem>>, vector<1x1x128xf32>
    %589 = vector.shape_cast %588 : vector<1x1x128xf32> to vector<1x128xf32>
    %cst_250 = arith.constant dense<0.000000e+00> : vector<16xf32>
    %590 = vector.multi_reduction <add>, %585, %cst_250 [1] : vector<16x128xf32> to vector<16xf32>
    %591 = vector.shape_cast %590 : vector<16xf32> to vector<16x1xf32>
    %cst_251 = arith.constant 1.562500e-02 : f32
    %592 = vector.broadcast %cst_251 : f32 to vector<16x1xf32>
    %593 = arith.mulf %591, %592 : vector<16x1xf32>
    %594 = vector.broadcast %593 : vector<16x1xf32> to vector<16x128xf32>
    %595 = arith.subf %585, %594 : vector<16x128xf32>
    %cst_252 = arith.constant 0.000000e+00 : f32
    %596 = vector.shape_cast %2 : vector<1x128xi1> to vector<1x128xi1>
    %597 = vector.broadcast %596 : vector<1x128xi1> to vector<16x128xi1>
    %598 = vector.broadcast %cst_252 : f32 to vector<16x128xf32>
    %599 = arith.select %597, %595, %598 : vector<16x128xi1>, vector<16x128xf32>
    %600 = arith.mulf %599, %599 : vector<16x128xf32>
    %cst_253 = arith.constant dense<0.000000e+00> : vector<16xf32>
    %601 = vector.multi_reduction <add>, %600, %cst_253 [1] : vector<16x128xf32> to vector<16xf32>
    %602 = vector.shape_cast %601 : vector<16xf32> to vector<16x1xf32>
    %cst_254 = arith.constant 1.562500e-02 : f32
    %603 = vector.broadcast %cst_254 : f32 to vector<16x1xf32>
    %604 = arith.mulf %602, %603 : vector<16x1xf32>
    %cst_255 = arith.constant 9.99999974E-6 : f32
    %605 = vector.broadcast %cst_255 : f32 to vector<16x1xf32>
    %606 = arith.addf %604, %605 : vector<16x1xf32>
    %607 = math.rsqrt %606 : vector<16x1xf32>
    %608 = vector.broadcast %607 : vector<16x1xf32> to vector<16x128xf32>
    %609 = arith.mulf %599, %608 : vector<16x128xf32>
    %610 = vector.broadcast %587 : vector<1x128xf32> to vector<16x128xf32>
    %611 = arith.mulf %609, %610 : vector<16x128xf32>
    %612 = vector.broadcast %589 : vector<1x128xf32> to vector<16x128xf32>
    %613 = arith.addf %611, %612 : vector<16x128xf32>
    %614 = arith.truncf %613 : vector<16x128xf32> to vector<16x128xbf16>
    %c3_256 = arith.constant 3 : index
    %c0_257 = arith.constant 0 : index
    %c0_258 = arith.constant 0 : index
    %615 = vector.load %arg10[%c3_256, %c0_257, %c0_258] : memref<4x128x256xbf16, #tpu.memory_space<vmem>>, vector<1x128x256xbf16>
    %616 = vector.shape_cast %615 : vector<1x128x256xbf16> to vector<128x256xbf16>
    %cst_259 = arith.constant dense<0.000000e+00> : vector<16x256xf32>
    %617 = tpu.matmul %614, %616, %cst_259 {dimension_numbers = #tpu.dot_dimension_numbers<[1], [0], [0], [1], [0, 0, 1, 1], [], []>} : vector<16x128xbf16>, vector<128x256xbf16>, vector<16x256xf32> -> vector<16x256xf32>
    %c3_260 = arith.constant 3 : index
    %c0_261 = arith.constant 0 : index
    %c0_262 = arith.constant 0 : index
    %618 = vector.load %arg11[%c3_260, %c0_261, %c0_262] : memref<4x1x256xf32, #tpu.memory_space<vmem>>, vector<1x1x256xf32>
    %619 = vector.shape_cast %618 : vector<1x1x256xf32> to vector<1x256xf32>
    %620 = vector.broadcast %619 : vector<1x256xf32> to vector<16x256xf32>
    %621 = arith.addf %617, %620 : vector<16x256xf32>
    %cst_263 = arith.constant 0.707106769 : f32
    %622 = vector.broadcast %cst_263 : f32 to vector<16x256xf32>
    %623 = arith.mulf %621, %622 : vector<16x256xf32>
    %624 = math.absf %623 : vector<16x256xf32>
    %cst_264 = arith.constant 0.327591091 : f32
    %625 = vector.broadcast %cst_264 : f32 to vector<16x256xf32>
    %626 = arith.mulf %625, %624 : vector<16x256xf32>
    %cst_265 = arith.constant 1.000000e+00 : f32
    %627 = vector.broadcast %cst_265 : f32 to vector<16x256xf32>
    %628 = arith.addf %627, %626 : vector<16x256xf32>
    %cst_266 = arith.constant 1.000000e+00 : f32
    %629 = vector.broadcast %cst_266 : f32 to vector<16x256xf32>
    %630 = arith.divf %629, %628 : vector<16x256xf32>
    %cst_267 = arith.constant 1.06140542 : f32
    %631 = vector.broadcast %cst_267 : f32 to vector<16x256xf32>
    %632 = arith.mulf %631, %630 : vector<16x256xf32>
    %cst_268 = arith.constant 1.45315206 : f32
    %633 = vector.broadcast %cst_268 : f32 to vector<16x256xf32>
    %634 = arith.subf %632, %633 : vector<16x256xf32>
    %635 = arith.mulf %634, %630 : vector<16x256xf32>
    %cst_269 = arith.constant 1.42141378 : f32
    %636 = vector.broadcast %cst_269 : f32 to vector<16x256xf32>
    %637 = arith.addf %635, %636 : vector<16x256xf32>
    %638 = arith.mulf %637, %630 : vector<16x256xf32>
    %cst_270 = arith.constant 0.284496725 : f32
    %639 = vector.broadcast %cst_270 : f32 to vector<16x256xf32>
    %640 = arith.subf %638, %639 : vector<16x256xf32>
    %641 = arith.mulf %640, %630 : vector<16x256xf32>
    %cst_271 = arith.constant 0.254829586 : f32
    %642 = vector.broadcast %cst_271 : f32 to vector<16x256xf32>
    %643 = arith.addf %641, %642 : vector<16x256xf32>
    %644 = arith.mulf %643, %630 : vector<16x256xf32>
    %cst_272 = arith.constant 0.000000e+00 : f32
    %645 = vector.broadcast %cst_272 : f32 to vector<16x256xf32>
    %646 = arith.subf %645, %624 : vector<16x256xf32>
    %647 = arith.mulf %646, %624 : vector<16x256xf32>
    %648 = math.exp %647 : vector<16x256xf32>
    %649 = arith.mulf %644, %648 : vector<16x256xf32>
    %cst_273 = arith.constant 1.000000e+00 : f32
    %650 = vector.broadcast %cst_273 : f32 to vector<16x256xf32>
    %651 = arith.subf %650, %649 : vector<16x256xf32>
    %cst_274 = arith.constant 0.000000e+00 : f32
    %652 = vector.broadcast %cst_274 : f32 to vector<16x256xf32>
    %653 = arith.cmpf oge, %623, %652 : vector<16x256xf32>
    %cst_275 = arith.constant 0.000000e+00 : f32
    %654 = vector.broadcast %cst_275 : f32 to vector<16x256xf32>
    %655 = arith.subf %654, %651 : vector<16x256xf32>
    %656 = arith.select %653, %651, %655 : vector<16x256xi1>, vector<16x256xf32>
    %cst_276 = arith.constant 5.000000e-01 : f32
    %657 = vector.broadcast %cst_276 : f32 to vector<16x256xf32>
    %658 = arith.mulf %657, %621 : vector<16x256xf32>
    %cst_277 = arith.constant 1.000000e+00 : f32
    %659 = vector.broadcast %cst_277 : f32 to vector<16x256xf32>
    %660 = arith.addf %659, %656 : vector<16x256xf32>
    %661 = arith.mulf %658, %660 : vector<16x256xf32>
    %662 = arith.truncf %661 : vector<16x256xf32> to vector<16x256xbf16>
    %c3_278 = arith.constant 3 : index
    %c0_279 = arith.constant 0 : index
    %c0_280 = arith.constant 0 : index
    %663 = vector.load %arg12[%c3_278, %c0_279, %c0_280] : memref<4x256x128xbf16, #tpu.memory_space<vmem>>, vector<1x256x128xbf16>
    %664 = vector.shape_cast %663 : vector<1x256x128xbf16> to vector<256x128xbf16>
    %cst_281 = arith.constant dense<0.000000e+00> : vector<16x128xf32>
    %665 = tpu.matmul %662, %664, %cst_281 {dimension_numbers = #tpu.dot_dimension_numbers<[1], [0], [0], [1], [0, 0, 1, 1], [], []>} : vector<16x256xbf16>, vector<256x128xbf16>, vector<16x128xf32> -> vector<16x128xf32>
    %666 = arith.addf %585, %665 : vector<16x128xf32>
    %c3_282 = arith.constant 3 : index
    %c0_283 = arith.constant 0 : index
    %c0_284 = arith.constant 0 : index
    %667 = vector.load %arg13[%c3_282, %c0_283, %c0_284] : memref<4x1x128xf32, #tpu.memory_space<vmem>>, vector<1x1x128xf32>
    %668 = vector.shape_cast %667 : vector<1x1x128xf32> to vector<1x128xf32>
    %669 = vector.broadcast %668 : vector<1x128xf32> to vector<16x128xf32>
    %670 = arith.addf %666, %669 : vector<16x128xf32>
    %c0_285 = arith.constant 0 : index
    %c0_286 = arith.constant 0 : index
    %671 = vector.load %arg14[%c0_285, %c0_286] : memref<1x128xf32, #tpu.memory_space<vmem>>, vector<1x128xf32>
    %c0_287 = arith.constant 0 : index
    %c0_288 = arith.constant 0 : index
    %672 = vector.load %arg15[%c0_287, %c0_288] : memref<1x128xf32, #tpu.memory_space<vmem>>, vector<1x128xf32>
    %cst_289 = arith.constant dense<0.000000e+00> : vector<16xf32>
    %673 = vector.multi_reduction <add>, %670, %cst_289 [1] : vector<16x128xf32> to vector<16xf32>
    %674 = vector.shape_cast %673 : vector<16xf32> to vector<16x1xf32>
    %cst_290 = arith.constant 1.562500e-02 : f32
    %675 = vector.broadcast %cst_290 : f32 to vector<16x1xf32>
    %676 = arith.mulf %674, %675 : vector<16x1xf32>
    %677 = vector.broadcast %676 : vector<16x1xf32> to vector<16x128xf32>
    %678 = arith.subf %670, %677 : vector<16x128xf32>
    %cst_291 = arith.constant 0.000000e+00 : f32
    %679 = vector.shape_cast %2 : vector<1x128xi1> to vector<1x128xi1>
    %680 = vector.broadcast %679 : vector<1x128xi1> to vector<16x128xi1>
    %681 = vector.broadcast %cst_291 : f32 to vector<16x128xf32>
    %682 = arith.select %680, %678, %681 : vector<16x128xi1>, vector<16x128xf32>
    %683 = arith.mulf %682, %682 : vector<16x128xf32>
    %cst_292 = arith.constant dense<0.000000e+00> : vector<16xf32>
    %684 = vector.multi_reduction <add>, %683, %cst_292 [1] : vector<16x128xf32> to vector<16xf32>
    %685 = vector.shape_cast %684 : vector<16xf32> to vector<16x1xf32>
    %cst_293 = arith.constant 1.562500e-02 : f32
    %686 = vector.broadcast %cst_293 : f32 to vector<16x1xf32>
    %687 = arith.mulf %685, %686 : vector<16x1xf32>
    %cst_294 = arith.constant 9.99999974E-6 : f32
    %688 = vector.broadcast %cst_294 : f32 to vector<16x1xf32>
    %689 = arith.addf %687, %688 : vector<16x1xf32>
    %690 = math.rsqrt %689 : vector<16x1xf32>
    %691 = vector.broadcast %690 : vector<16x1xf32> to vector<16x128xf32>
    %692 = arith.mulf %682, %691 : vector<16x128xf32>
    %693 = vector.broadcast %671 : vector<1x128xf32> to vector<16x128xf32>
    %694 = arith.mulf %692, %693 : vector<16x128xf32>
    %695 = vector.broadcast %672 : vector<1x128xf32> to vector<16x128xf32>
    %696 = arith.addf %694, %695 : vector<16x128xf32>
    %697 = arith.truncf %696 : vector<16x128xf32> to vector<16x128xbf16>
    %c0_295 = arith.constant 0 : index
    %c0_296 = arith.constant 0 : index
    %698 = vector.load %arg16[%c0_295, %c0_296] : memref<128x2048xbf16, #tpu.memory_space<vmem>>, vector<128x2048xbf16>
    %cst_297 = arith.constant dense<0.000000e+00> : vector<16x2048xf32>
    %699 = tpu.matmul %697, %698, %cst_297 {dimension_numbers = #tpu.dot_dimension_numbers<[1], [0], [0], [1], [0, 0, 1, 1], [], []>} : vector<16x128xbf16>, vector<128x2048xbf16>, vector<16x2048xf32> -> vector<16x2048xf32>
    %c0_298 = arith.constant 0 : index
    %c0_299 = arith.constant 0 : index
    %700 = vector.load %arg17[%c0_298, %c0_299] : memref<1x2048xf32, #tpu.memory_space<vmem>>, vector<1x2048xf32>
    %701 = vector.broadcast %700 : vector<1x2048xf32> to vector<16x2048xf32>
    %702 = arith.addf %699, %701 : vector<16x2048xf32>
    %c0_300 = arith.constant 0 : index
    %c0_301 = arith.constant 0 : index
    %703 = vector.load %arg18[%c0_300, %c0_301] : memref<16x2048xf32, #tpu.memory_space<vmem>>, vector<16x2048xf32>
    tpu.vector_store %arg18[%c0_300, %c0_301], %702 {strides = array<i32>} : memref<16x2048xf32, #tpu.memory_space<vmem>>, vector<16x2048xf32>,
    return
  }
}

</mosaic_0001>

<bundles_post_ra>
// kernel: transformer_forward.1
= control target key start
LH: loop header
LB: loop body
LE: loop exit
PB: predicated region body
PF: predicated region fallthrough
CT: control target
= control target key end

     0   :  { %s18768_s0 = inlined_call_operand.vmem [shape: s32[16,1], index: 0, kind: input, shape index: {}]   ;;  %s18769_s1 = inlined_call_operand.vmem [shape: f32[2048,128], index: 1, kind: input, shape index: {}]   ;;  %s18770_s2 = inlined_call_operand.vmem [shape: f32[16,128], index: 2, kind: input, shape index: {}]   ;;  %s18771_s3 = inlined_call_operand.vmem [shape: f32[4,1,128], index: 3, kind: input, shape index: {}]   ;;  %s18772_s4 = inlined_call_operand.vmem [shape: f32[4,1,128], index: 4, kind: input, shape index: {}]   ;;  %s18773_s5 = inlined_call_operand.vmem [shape: bf16[4,128,384], index: 5, kind: input, shape index: {}]   ;;  %s18774_s6 = inlined_call_operand.vmem [shape: bf16[4,128,128], index: 6, kind: input, shape index: {}]   ;;  %s18775_s7 = inlined_call_operand.vmem [shape: f32[4,1,128], index: 7, kind: input, shape index: {}]   ;;  %s18776_s8 = inlined_call_operand.vmem [shape: f32[4,1,128], index: 8, kind: input, shape index: {}]   ;;  %s18777_s9 = inlined_call_operand.vmem [shape: f32[4,1,128], index: 9, kind: input, shape index: {}]   ;;  %s18778_s10 = inlined_call_operand.vmem [shape: bf16[4,128,256], index: 10, kind: input, shape index: {}]   ;;  %s18779_s11 = inlined_call_operand.vmem [shape: f32[4,1,256], index: 11, kind: input, shape index: {}]   ;;  %s18780_s12 = inlined_call_operand.vmem [shape: bf16[4,256,128], index: 12, kind: input, shape index: {}]   ;;  %s18781_s13 = inlined_call_operand.vmem [shape: f32[4,1,128], index: 13, kind: input, shape index: {}]   ;;  %s18782_s14 = inlined_call_operand.vmem [shape: f32[1,128], index: 14, kind: input, shape index: {}]   ;;  %s18783_s15 = inlined_call_operand.vmem [shape: f32[1,128], index: 15, kind: input, shape index: {}]   ;;  %s18784_s16 = inlined_call_operand.vmem [shape: bf16[128,2048], index: 16, kind: input, shape index: {}]   ;;  %s18785_s17 = inlined_call_operand.vmem [shape: f32[1,2048], index: 17, kind: input, shape index: {}]   ;;  %s18786_s18 = inlined_call_operand.hbm [shape: f32[16,2048], index: 18, kind: output, shape index: {}]  }
   0x1   :  { %18791 = sst [smem:[#allocation5_spill]] %s18768_s0 }
   0x2   :  { %18792 = sst [smem:[#allocation6_spill]] %s18769_s1 }
   0x3   :  { %18793 = sst [smem:[#allocation7_spill]] %s18770_s2 }
   0x4   :  { %18794 = sst [smem:[#allocation8_spill]] %s18781_s13 }
   0x5   :  { %s18795_s29 = sld [smem:[#allocation5_spill]]  ;;  %v14831_v2 = vmov 0  }
   0x6   :  { %s18796_s13 = sld [smem:[#allocation6_spill]]  ;;  %14132 = vset.pattern.permute.xlu0 %v14831_v2 }
   0xb   :  { %v133_v0 = vld [vmem:[%s18795_s29] sm:$0xff]  ;;  %v134_v9 = vld [vmem:[%s18795_s29 + $0x8] sm:$0xff] }
   0xc   :  { %v268_v1 = vld [vmem:[%s18796_s13 + $0xf8] sm:$0xff]  ;;  %136 = vperm.xlu0 %14132, %v133_v0   ;;  %v267_v6 = vld [vmem:[%s18796_s13 + $0xf0] sm:$0xff]  ;;  %v266_v11 = vld [vmem:[%s18796_s13 + $0xe8] sm:$0xff] }
   0xd   :  { %12797 = vmatprep.subr.mxu0 %v268_v1  ;;  %v300_v3 = vld [vmem:[%s18796_s13 + $0x1f8] sm:$0xff]  ;;  %v299_v7 = vld [vmem:[%s18796_s13 + $0x1f0] sm:$0xff]  ;;  %v298_v12 = vld [vmem:[%s18796_s13 + $0x1e8] sm:$0xff] }
   0xe   :  { %v252_v4 = vld [vmem:[%s18796_s13 + $0x78] sm:$0xff]  ;;  %12835 = vmatprep.subr.mxu1 %v300_v3  ;;  %v251_v8 = vld [vmem:[%s18796_s13 + $0x70] sm:$0xff]  ;;  %v250_v13 = vld [vmem:[%s18796_s13 + $0x68] sm:$0xff] }
   0xf   :  { %v284_v5 = vld [vmem:[%s18796_s13 + $0x178] sm:$0xff]  ;;  %12798 = vmatpush3.msra.mxu0 %v252_v4  ;;  %v283_v10 = vld [vmem:[%s18796_s13 + $0x170] sm:$0xff]  ;;  %v282_v14 = vld [vmem:[%s18796_s13 + $0x168] sm:$0xff] }
  0x10   :  { %12836 = vmatpush3.msra.mxu1 %v284_v5  ;;  %12799 = vmatprep.subr.mxu0 %v267_v6  ;;  %v265_v15 = vld [vmem:[%s18796_s13 + $0xe0] sm:$0xff]  ;;  %v264_v19 = vld [vmem:[%s18796_s13 + $0xd8] sm:$0xff]  ;;  %v263_v23 = vld [vmem:[%s18796_s13 + $0xd0] sm:$0xff]  ;;  %v61_v6 = vlaneseq }
  0x11   :  { %12837 = vmatprep.subr.mxu1 %v299_v7  ;;  %12800 = vmatpush3.msra.mxu0 %v251_v8  ;;  %v297_v16 = vld [vmem:[%s18796_s13 + $0x1e0] sm:$0xff]  ;;  %v296_v20 = vld [vmem:[%s18796_s13 + $0x1d8] sm:$0xff]  ;;  %v295_v24 = vld [vmem:[%s18796_s13 + $0x1d0] sm:$0xff] }
  0x12   :  { %12838 = vmatpush3.msra.mxu1 %v283_v10  ;;  %139 = vperm.xlu0 %14132, %v134_v9   ;;  %v249_v17 = vld [vmem:[%s18796_s13 + $0x60] sm:$0xff]  ;;  %v248_v21 = vld [vmem:[%s18796_s13 + $0x58] sm:$0xff]  ;;  %v247_v25 = vld [vmem:[%s18796_s13 + $0x50] sm:$0xff]  ;;  %v15139_v7 = vand.u32 127, %v61_v6 }
  0x13   :  { %12801 = vmatprep.subr.mxu0 %v266_v11  ;;  %12839 = vmatprep.subr.mxu1 %v298_v12  ;;  %v281_v18 = vld [vmem:[%s18796_s13 + $0x160] sm:$0xff]  ;;  %v280_v22 = vld [vmem:[%s18796_s13 + $0x158] sm:$0xff]  ;;  %v279_v26 = vld [vmem:[%s18796_s13 + $0x150] sm:$0xff] }
  0x14   :  { %12802 = vmatpush3.msra.mxu0 %v250_v13  ;;  %12840 = vmatpush3.msra.mxu1 %v282_v14  ;;  %v262_v27 = vld [vmem:[%s18796_s13 + $0xc8] sm:$0xff]  ;;  %v261_v31 = vld [vmem:[%s18796_s13 + $0xc0] sm:$0xff]  ;;  %v260_v35 = vld [vmem:[%s18796_s13 + $0xb8] sm:$0xff]  ;;  %v118_v8 = vadd.s32 128, %v15139_v7  ;;  %v120_v9 = vadd.s32 384, %v15139_v7  ;;  %v119_v10 = vadd.s32 256, %v15139_v7 }
  0x15   :  { %12803 = vmatprep.subr.mxu0 %v265_v15  ;;  %12841 = vmatprep.subr.mxu1 %v297_v16  ;;  %v294_v28 = vld [vmem:[%s18796_s13 + $0x1c8] sm:$0xff]  ;;  %v293_v32 = vld [vmem:[%s18796_s13 + $0x1c0] sm:$0xff]  ;;  %v292_v36 = vld [vmem:[%s18796_s13 + $0x1b8] sm:$0xff] }
  0x16   :  { %12804 = vmatpush3.msra.mxu0 %v249_v17  ;;  %12842 = vmatpush3.msra.mxu1 %v281_v18  ;;  %v246_v29 = vld [vmem:[%s18796_s13 + $0x48] sm:$0xff]  ;;  %v245_v33 = vld [vmem:[%s18796_s13 + $0x40] sm:$0xff]  ;;  %v244_v37 = vld [vmem:[%s18796_s13 + $0x38] sm:$0xff]  ;;  %v14832_v18 = vmov 1.0  }
  0x17   :  { %12805 = vmatprep.subr.mxu0 %v264_v19  ;;  %12843 = vmatprep.subr.mxu1 %v296_v20  ;;  %v278_v30 = vld [vmem:[%s18796_s13 + $0x148] sm:$0xff]  ;;  %v277_v34 = vld [vmem:[%s18796_s13 + $0x140] sm:$0xff]  ;;  %v276_v38 = vld [vmem:[%s18796_s13 + $0x138] sm:$0xff]  ;;  %v15172_v19 = vadd.s32 640, %v15139_v7  ;;  %v15175_v20 = vadd.s32 896, %v15139_v7 }
  0x18   :  { %12806 = vmatpush3.msra.mxu0 %v248_v21  ;;  %12844 = vmatpush3.msra.mxu1 %v280_v22  ;;  %v259_v39 = vld [vmem:[%s18796_s13 + $0xb0] sm:$0xff]  ;;  %v258_v43 = vld [vmem:[%s18796_s13 + $0xa8] sm:$0xff]  ;;  %v257_v47 = vld [vmem:[%s18796_s13 + $0xa0] sm:$0xff] }
  0x19   :  { %12807 = vmatprep.subr.mxu0 %v263_v23  ;;  %12845 = vmatprep.subr.mxu1 %v295_v24  ;;  %v291_v40 = vld [vmem:[%s18796_s13 + $0x1b0] sm:$0xff]  ;;  %v290_v44 = vld [vmem:[%s18796_s13 + $0x1a8] sm:$0xff]  ;;  %v289_v48 = vld [vmem:[%s18796_s13 + $0x1a0] sm:$0xff] }
  0x1a   :  { %12808 = vmatpush3.msra.mxu0 %v247_v25  ;;  %12846 = vmatpush3.msra.mxu1 %v279_v26  ;;  %v243_v41 = vld [vmem:[%s18796_s13 + $0x30] sm:$0xff]  ;;  %v242_v45 = vld [vmem:[%s18796_s13 + $0x28] sm:$0xff]  ;;  %v241_v49 = vld [vmem:[%s18796_s13 + $0x20] sm:$0xff] }
  0x1b   :  { %12809 = vmatprep.subr.mxu0 %v262_v27  ;;  %12847 = vmatprep.subr.mxu1 %v294_v28  ;;  %v275_v42 = vld [vmem:[%s18796_s13 + $0x130] sm:$0xff]  ;;  %v274_v46 = vld [vmem:[%s18796_s13 + $0x128] sm:$0xff]  ;;  %v273_v50 = vld [vmem:[%s18796_s13 + $0x120] sm:$0xff] }
  0x1c   :  { %12810 = vmatpush3.msra.mxu0 %v246_v29  ;;  %12848 = vmatpush3.msra.mxu1 %v278_v30  ;;  %v256_v51 = vld [vmem:[%s18796_s13 + $0x98] sm:$0xff]  ;;  %v255_v55 = vld [vmem:[%s18796_s13 + $0x90] sm:$0xff]  ;;  %v254_v59 = vld [vmem:[%s18796_s13 + $0x88] sm:$0xff] }
  0x1d   :  { %12811 = vmatprep.subr.mxu0 %v261_v31  ;;  %12849 = vmatprep.subr.mxu1 %v293_v32  ;;  %v288_v52 = vld [vmem:[%s18796_s13 + $0x198] sm:$0xff]  ;;  %v287_v56 = vld [vmem:[%s18796_s13 + $0x190] sm:$0xff]  ;;  %v286_v60 = vld [vmem:[%s18796_s13 + $0x188] sm:$0xff] }
  0x1e   :  { %12812 = vmatpush3.msra.mxu0 %v245_v33  ;;  %12850 = vmatpush3.msra.mxu1 %v277_v34  ;;  %v240_v53 = vld [vmem:[%s18796_s13 + $0x18] sm:$0xff]  ;;  %v239_v57 = vld [vmem:[%s18796_s13 + $0x10] sm:$0xff]  ;;  %v238_v61 = vld [vmem:[%s18796_s13 + $0x8] sm:$0xff] }
  0x1f   :  { %12813 = vmatprep.subr.mxu0 %v260_v35  ;;  %12851 = vmatprep.subr.mxu1 %v292_v36  ;;  %v272_v54 = vld [vmem:[%s18796_s13 + $0x118] sm:$0xff]  ;;  %v271_v58 = vld [vmem:[%s18796_s13 + $0x110] sm:$0xff]  ;;  %v270_v62 = vld [vmem:[%s18796_s13 + $0x108] sm:$0xff] }
  0x20   :  { %12814 = vmatpush3.msra.mxu0 %v244_v37  ;;  %12852 = vmatpush3.msra.mxu1 %v276_v38  ;;  %v253_v63 = vld [vmem:[%s18796_s13 + $0x80] sm:$0xff]  ;;  %v332_v4 = vld [vmem:[%s18796_s13 + $0x2f8] sm:$0xff]  ;;  %v331_v14 = vld [vmem:[%s18796_s13 + $0x2f0] sm:$0xff] }
  0x21   :  { %12815 = vmatprep.subr.mxu0 %v259_v39  ;;  %12853 = vmatprep.subr.mxu1 %v291_v40  ;;  %v285_v0 = vld [vmem:[%s18796_s13 + $0x180] sm:$0xff]  ;;  %v364_v5 = vld [vmem:[%s18796_s13 + $0x3f8] sm:$0xff]  ;;  %v363_v15 = vld [vmem:[%s18796_s13 + $0x3f0] sm:$0xff] }
  0x22   :  { %12816 = vmatpush3.msra.mxu0 %v243_v41  ;;  %12854 = vmatpush3.msra.mxu1 %v275_v42  ;;  %v237_v1 = vld [vmem:[%s18796_s13] sm:$0xff]  ;;  %v316_v11 = vld [vmem:[%s18796_s13 + $0x278] sm:$0xff]  ;;  %v315_v16 = vld [vmem:[%s18796_s13 + $0x270] sm:$0xff] }
  0x23   :  { %12817 = vmatprep.subr.mxu0 %v258_v43  ;;  %12855 = vmatprep.subr.mxu1 %v290_v44  ;;  %v269_v3 = vld [vmem:[%s18796_s13 + $0x100] sm:$0xff]  ;;  %v348_v12 = vld [vmem:[%s18796_s13 + $0x378] sm:$0xff]  ;;  %v347_v17 = vld [vmem:[%s18796_s13 + $0x370] sm:$0xff] }
  0x24   :  { %12818 = vmatpush3.msra.mxu0 %v242_v45  ;;  %12856 = vmatpush3.msra.mxu1 %v274_v46  ;;  %v330_v21 = vld [vmem:[%s18796_s13 + $0x2e8] sm:$0xff]  ;;  %v329_v26 = vld [vmem:[%s18796_s13 + $0x2e0] sm:$0xff]  ;;  %v328_v30 = vld [vmem:[%s18796_s13 + $0x2d8] sm:$0xff] }
  0x25   :  { %12819 = vmatprep.subr.mxu0 %v257_v47  ;;  %12857 = vmatprep.subr.mxu1 %v289_v48  ;;  %v362_v22 = vld [vmem:[%s18796_s13 + $0x3e8] sm:$0xff]  ;;  %v361_v27 = vld [vmem:[%s18796_s13 + $0x3e0] sm:$0xff]  ;;  %v360_v31 = vld [vmem:[%s18796_s13 + $0x3d8] sm:$0xff] }
  0x26   :  { %12820 = vmatpush3.msra.mxu0 %v241_v49  ;;  %12858 = vmatpush3.msra.mxu1 %v273_v50  ;;  %v314_v24 = vld [vmem:[%s18796_s13 + $0x268] sm:$0xff]  ;;  %v313_v28 = vld [vmem:[%s18796_s13 + $0x260] sm:$0xff]  ;;  %v312_v32 = vld [vmem:[%s18796_s13 + $0x258] sm:$0xff] }
  0x27   :  { %12821 = vmatprep.subr.mxu0 %v256_v51  ;;  %12859 = vmatprep.subr.mxu1 %v288_v52  ;;  %v346_v25 = vld [vmem:[%s18796_s13 + $0x368] sm:$0xff]  ;;  %v345_v29 = vld [vmem:[%s18796_s13 + $0x360] sm:$0xff]  ;;  %v344_v33 = vld [vmem:[%s18796_s13 + $0x358] sm:$0xff] }
  0x28   :  { %12822 = vmatpush3.msra.mxu0 %v240_v53  ;;  %12860 = vmatpush3.msra.mxu1 %v272_v54  ;;  %v327_v34 = vld [vmem:[%s18796_s13 + $0x2d0] sm:$0xff]  ;;  %v326_v38 = vld [vmem:[%s18796_s13 + $0x2c8] sm:$0xff]  ;;  %v325_v42 = vld [vmem:[%s18796_s13 + $0x2c0] sm:$0xff] }
  0x29   :  { %12823 = vmatprep.subr.mxu0 %v255_v55  ;;  %12861 = vmatprep.subr.mxu1 %v287_v56  ;;  %v359_v35 = vld [vmem:[%s18796_s13 + $0x3d0] sm:$0xff]  ;;  %v358_v39 = vld [vmem:[%s18796_s13 + $0x3c8] sm:$0xff]  ;;  %v357_v43 = vld [vmem:[%s18796_s13 + $0x3c0] sm:$0xff] }
  0x2a   :  { %12824 = vmatpush3.msra.mxu0 %v239_v57  ;;  %12862 = vmatpush3.msra.mxu1 %v271_v58  ;;  %v311_v36 = vld [vmem:[%s18796_s13 + $0x250] sm:$0xff]  ;;  %v310_v40 = vld [vmem:[%s18796_s13 + $0x248] sm:$0xff]  ;;  %v309_v44 = vld [vmem:[%s18796_s13 + $0x240] sm:$0xff] }
  0x2b   :  { %12825 = vmatprep.subr.mxu0 %v254_v59  ;;  %12863 = vmatprep.subr.mxu1 %v286_v60  ;;  %v343_v37 = vld [vmem:[%s18796_s13 + $0x350] sm:$0xff]  ;;  %v342_v41 = vld [vmem:[%s18796_s13 + $0x348] sm:$0xff]  ;;  %v341_v45 = vld [vmem:[%s18796_s13 + $0x340] sm:$0xff] }
  0x2c   :  { %12826 = vmatpush3.msra.mxu0 %v238_v61  ;;  %12864 = vmatpush3.msra.mxu1 %v270_v62  ;;  %v324_v46 = vld [vmem:[%s18796_s13 + $0x2b8] sm:$0xff]  ;;  %v323_v50 = vld [vmem:[%s18796_s13 + $0x2b0] sm:$0xff]  ;;  %v322_v54 = vld [vmem:[%s18796_s13 + $0x2a8] sm:$0xff] }
  0x2d   :  { %12827 = vmatprep.subr.mxu0 %v253_v63  ;;  %12865 = vmatprep.subr.mxu1 %v285_v0  ;;  %v356_v47 = vld [vmem:[%s18796_s13 + $0x3b8] sm:$0xff]  ;;  %v355_v51 = vld [vmem:[%s18796_s13 + $0x3b0] sm:$0xff]  ;;  %v354_v55 = vld [vmem:[%s18796_s13 + $0x3a8] sm:$0xff] }
  0x2e   :  { %12828 = vmatpush3.msra.mxu0 %v237_v1  ;;  %12866 = vmatpush3.msra.mxu1 %v269_v3  ;;  %v308_v48 = vld [vmem:[%s18796_s13 + $0x238] sm:$0xff]  ;;  %v307_v52 = vld [vmem:[%s18796_s13 + $0x230] sm:$0xff]  ;;  %v306_v56 = vld [vmem:[%s18796_s13 + $0x228] sm:$0xff] }
  0x2f   :  { %12873 = vmatprep.subr.mxu0 %v332_v4  ;;  %12911 = vmatprep.subr.mxu1 %v364_v5  ;;  %v340_v49 = vld [vmem:[%s18796_s13 + $0x338] sm:$0xff]  ;;  %v339_v53 = vld [vmem:[%s18796_s13 + $0x330] sm:$0xff]  ;;  %v338_v57 = vld [vmem:[%s18796_s13 + $0x328] sm:$0xff] }
  0x30   :  { %v321_v58 = vld [vmem:[%s18796_s13 + $0x2a0] sm:$0xff]  ;;  %v320_v62 = vld [vmem:[%s18796_s13 + $0x298] sm:$0xff]  ;;  %v319_v3 = vld [vmem:[%s18796_s13 + $0x290] sm:$0xff] }
  0x31   :  { %v353_v59 = vld [vmem:[%s18796_s13 + $0x3a0] sm:$0xff]  ;;  %v352_v63 = vld [vmem:[%s18796_s13 + $0x398] sm:$0xff]  ;;  %v351_v4 = vld [vmem:[%s18796_s13 + $0x390] sm:$0xff] }
  0x32   :  { %v305_v60 = vld [vmem:[%s18796_s13 + $0x220] sm:$0xff]  ;;  %v304_v0 = vld [vmem:[%s18796_s13 + $0x218] sm:$0xff]  ;;  %v303_v5 = vld [vmem:[%s18796_s13 + $0x210] sm:$0xff] }
  0x33   :  { %v337_v61 = vld [vmem:[%s18796_s13 + $0x320] sm:$0xff]  ;;  %v336_v1 = vld [vmem:[%s18796_s13 + $0x318] sm:$0xff] }
  0x87   :  { %v15150_v13 = vpop.permute.xlu0 %136 }
  0x88   :  { %vm142_vm0 = vcmp.eq.s32.totalorder %v118_v8, %v15150_v13  ;;  %vm144_vm1 = vcmp.eq.s32.totalorder %v120_v9, %v15150_v13  ;;  %vm141_vm2 = vcmp.eq.s32.totalorder %v15139_v7, %v15150_v13  ;;  %vm143_vm3 = vcmp.eq.s32.totalorder %v119_v10, %v15150_v13 }
  0x89   :  { %11950 = vmatprep.mubr.msk.f32.mxu0 %vm142_vm0, %v14832_v18  ;;  %11954 = vmatprep.mubr.msk.f32.mxu1 %vm144_vm1, %v14832_v18  ;;  %vm146_vm8 = vcmp.eq.s32.totalorder %v15172_v19, %v15150_v13  ;;  %vm148_vm9 = vcmp.eq.s32.totalorder %v15175_v20, %v15150_v13 }
  0x8a   :  { %11951 = vmatmul.mubr.msk.f32.vlgmr.msra.gmra.mxu0 %vm141_vm2, %v14832_v18  ;;  %11955 = vmatmul.mubr.msk.f32.vlgmr.msra.gmra.mxu1 %vm143_vm3, %v14832_v18 }
  0x8b   :  { %12874 = vmatpush3.msra.mxu0 %v316_v11  ;;  %12912 = vmatpush3.msra.mxu1 %v348_v12  ;;  %v302_v11 = vld [vmem:[%s18796_s13 + $0x208] sm:$0xff] }
  0x8c   :  { %12875 = vmatprep.subr.mxu0 %v331_v14  ;;  %12913 = vmatprep.subr.mxu1 %v363_v15  ;;  %v334_v12 = vld [vmem:[%s18796_s13 + $0x308] sm:$0xff]  ;;  %v317_v14 = vld [vmem:[%s18796_s13 + $0x280] sm:$0xff] }
  0x8d   :  { %v15185_v23 = vpop.permute.xlu0 %139  ;;  %12876 = vmatpush3.msra.mxu0 %v315_v16  ;;  %12914 = vmatpush3.msra.mxu1 %v347_v17  ;;  %v349_v15 = vld [vmem:[%s18796_s13 + $0x380] sm:$0xff] }
  0x8e   :  { %vm158_vm4 = vcmp.eq.s32.totalorder %v118_v8, %v15185_v23  ;;  %vm160_vm5 = vcmp.eq.s32.totalorder %v120_v9, %v15185_v23  ;;  %vm157_vm6 = vcmp.eq.s32.totalorder %v15139_v7, %v15185_v23  ;;  %vm159_vm7 = vcmp.eq.s32.totalorder %v119_v10, %v15185_v23  ;;  %12877 = vmatprep.subr.mxu0 %v330_v21  ;;  %v335_v8 = vld [vmem:[%s18796_s13 + $0x310] sm:$0xff]  ;;  %v318_v9 = vld [vmem:[%s18796_s13 + $0x288] sm:$0xff]  ;;  %v301_v16 = vld [vmem:[%s18796_s13 + $0x200] sm:$0xff] }
  0x8f   :  { %11952 = vmatprep.mubr.msk.f32.mxu0 %vm158_vm4, %v14832_v18  ;;  %11956 = vmatprep.mubr.msk.f32.mxu1 %vm160_vm5, %v14832_v18  ;;  %v350_v10 = vld [vmem:[%s18796_s13 + $0x388] sm:$0xff]  ;;  %v333_v17 = vld [vmem:[%s18796_s13 + $0x300] sm:$0xff]  ;;  %v121_v21 = vadd.s32 512, %v15139_v7  ;;  %vm162_vm12 = vcmp.eq.s32.totalorder %v15172_v19, %v15185_v23  ;;  %vm164_vm13 = vcmp.eq.s32.totalorder %v15175_v20, %v15185_v23  ;;  %v15410_v20 = vadd.s32 1152, %v15139_v7 }
  0x90   :  { %12915 = vmatprep.subr.mxu1 %v362_v22  ;;  %11953 = vmatmul.mubr.msk.f32.gmra.mxu0 %vm157_vm6, %v14832_v18  ;;  %v123_v22 = vadd.s32 768, %v15139_v7  ;;  %v378_v19 = vld [vmem:[%s18796_s13 + $0x468] sm:$0xff] }
  0x91   :  { %11957 = vmatmul.mubr.msk.f32.gmra.mxu1 %vm159_vm7, %v14832_v18  ;;  %12878 = vmatpush3.msra.mxu0 %v314_v24  ;;  %v396_v24 = vld [vmem:[%s18796_s13 + $0x4f8] sm:$0xff]  ;;  %vm145_vm10 = vcmp.eq.s32.totalorder %v121_v21, %v15150_v13  ;;  %vm161_vm14 = vcmp.eq.s32.totalorder %v121_v21, %v15185_v23  ;;  %vm150_vm0 = vcmp.eq.s32.totalorder %v15410_v20, %v15150_v13  ;;  %v367_v21 = vld [vmem:[%s18796_s13 + $0x410] sm:$0xff] }
  0x92   :  { %12916 = vmatpush3.msra.mxu1 %v346_v25  ;;  %12879 = vmatprep.subr.mxu0 %v329_v26  ;;  %v428_v25 = vld [vmem:[%s18796_s13 + $0x5f8] sm:$0xff]  ;;  %vm147_vm11 = vcmp.eq.s32.totalorder %v123_v22, %v15150_v13  ;;  %vm163_vm15 = vcmp.eq.s32.totalorder %v123_v22, %v15185_v23  ;;  %v399_v22 = vld [vmem:[%s18796_s13 + $0x510] sm:$0xff]  ;;  %vm166_vm4 = vcmp.eq.s32.totalorder %v15410_v20, %v15185_v23  ;;  %v442_v20 = vld [vmem:[%s18796_s13 + $0x668] sm:$0xff] }
  0x93   :  { %11958 = vmatprep.mubr.msk.f32.mxu0 %vm146_vm8, %v14832_v18  ;;  %12917 = vmatprep.subr.mxu1 %v361_v27  ;;  %v380_v26 = vld [vmem:[%s18796_s13 + $0x478] sm:$0xff] }
  0x94   :  { %11962 = vmatprep.mubr.msk.f32.mxu1 %vm148_vm9, %v14832_v18  ;;  %12880 = vmatpush3.msra.mxu0 %v313_v28  ;;  %v412_v27 = vld [vmem:[%s18796_s13 + $0x578] sm:$0xff]  ;;  %v395_v28 = vld [vmem:[%s18796_s13 + $0x4f0] sm:$0xff] }
  0x95   :  { %12918 = vmatpush3.msra.mxu1 %v345_v29  ;;  %12881 = vmatprep.subr.mxu0 %v328_v30  ;;  %v427_v29 = vld [vmem:[%s18796_s13 + $0x5f0] sm:$0xff] }
  0x96   :  { %12919 = vmatprep.subr.mxu1 %v360_v31  ;;  %12882 = vmatpush3.msra.mxu0 %v312_v32  ;;  %v379_v30 = vld [vmem:[%s18796_s13 + $0x470] sm:$0xff]  ;;  %v394_v32 = vld [vmem:[%s18796_s13 + $0x4e8] sm:$0xff] }
  0x97   :  { %12920 = vmatpush3.msra.mxu1 %v344_v33  ;;  %12883 = vmatprep.subr.mxu0 %v327_v34  ;;  %v411_v31 = vld [vmem:[%s18796_s13 + $0x570] sm:$0xff]  ;;  %v426_v33 = vld [vmem:[%s18796_s13 + $0x5e8] sm:$0xff] }
  0x98   :  { %12921 = vmatprep.subr.mxu1 %v359_v35  ;;  %12884 = vmatpush3.msra.mxu0 %v311_v36  ;;  %v410_v34 = vld [vmem:[%s18796_s13 + $0x568] sm:$0xff]  ;;  %v15416_v35 = vadd.s32 1408, %v15139_v7  ;;  %v393_v36 = vld [vmem:[%s18796_s13 + $0x4e0] sm:$0xff] }
  0x99   :  { %12922 = vmatpush3.msra.mxu1 %v343_v37  ;;  %12885 = vmatprep.subr.mxu0 %v326_v38  ;;  %v425_v37 = vld [vmem:[%s18796_s13 + $0x5e0] sm:$0xff] }
  0x9a   :  { %12923 = vmatprep.subr.mxu1 %v358_v39  ;;  %12886 = vmatpush3.msra.mxu0 %v310_v40  ;;  %v377_v38 = vld [vmem:[%s18796_s13 + $0x460] sm:$0xff]  ;;  %v392_v40 = vld [vmem:[%s18796_s13 + $0x4d8] sm:$0xff]  ;;  %vm152_vm1 = vcmp.eq.s32.totalorder %v15416_v35, %v15150_v13  ;;  %vm168_vm5 = vcmp.eq.s32.totalorder %v15416_v35, %v15185_v23  ;;  %v15630_v35 = vadd.s32 1664, %v15139_v7 }
  0x9b   :  { %12924 = vmatpush3.msra.mxu1 %v342_v41  ;;  %12887 = vmatprep.subr.mxu0 %v325_v42  ;;  %v409_v39 = vld [vmem:[%s18796_s13 + $0x560] sm:$0xff]  ;;  %v424_v41 = vld [vmem:[%s18796_s13 + $0x5d8] sm:$0xff] }
  0x9c   :  { %12925 = vmatprep.subr.mxu1 %v357_v43  ;;  %12888 = vmatpush3.msra.mxu0 %v309_v44  ;;  %v376_v42 = vld [vmem:[%s18796_s13 + $0x458] sm:$0xff]  ;;  %v391_v44 = vld [vmem:[%s18796_s13 + $0x4d0] sm:$0xff]  ;;  %vm154_vm8 = vcmp.eq.s32.totalorder %v15630_v35, %v15150_v13 }
  0x9d   :  { %12926 = vmatpush3.msra.mxu1 %v341_v45  ;;  %12889 = vmatprep.subr.mxu0 %v324_v46  ;;  %v408_v43 = vld [vmem:[%s18796_s13 + $0x558] sm:$0xff]  ;;  %v423_v45 = vld [vmem:[%s18796_s13 + $0x5d0] sm:$0xff] }
  0x9e   :  { %12927 = vmatprep.subr.mxu1 %v356_v47  ;;  %12890 = vmatpush3.msra.mxu0 %v308_v48  ;;  %v375_v46 = vld [vmem:[%s18796_s13 + $0x450] sm:$0xff]  ;;  %v390_v48 = vld [vmem:[%s18796_s13 + $0x4c8] sm:$0xff] }
  0x9f   :  { %12928 = vmatpush3.msra.mxu1 %v340_v49  ;;  %12891 = vmatprep.subr.mxu0 %v323_v50  ;;  %v407_v47 = vld [vmem:[%s18796_s13 + $0x550] sm:$0xff]  ;;  %v422_v49 = vld [vmem:[%s18796_s13 + $0x5c8] sm:$0xff] }
  0xa0   :  { %12929 = vmatprep.subr.mxu1 %v355_v51  ;;  %12892 = vmatpush3.msra.mxu0 %v307_v52  ;;  %v374_v50 = vld [vmem:[%s18796_s13 + $0x448] sm:$0xff]  ;;  %v389_v52 = vld [vmem:[%s18796_s13 + $0x4c0] sm:$0xff] }
  0xa1   :  { %12930 = vmatpush3.msra.mxu1 %v339_v53  ;;  %12893 = vmatprep.subr.mxu0 %v322_v54  ;;  %v406_v51 = vld [vmem:[%s18796_s13 + $0x548] sm:$0xff]  ;;  %v421_v53 = vld [vmem:[%s18796_s13 + $0x5c0] sm:$0xff] }
  0xa2   :  { %12931 = vmatprep.subr.mxu1 %v354_v55  ;;  %12894 = vmatpush3.msra.mxu0 %v306_v56  ;;  %v373_v54 = vld [vmem:[%s18796_s13 + $0x440] sm:$0xff]  ;;  %v388_v56 = vld [vmem:[%s18796_s13 + $0x4b8] sm:$0xff] }
  0xa3   :  { %12932 = vmatpush3.msra.mxu1 %v338_v57  ;;  %12895 = vmatprep.subr.mxu0 %v321_v58  ;;  %v405_v55 = vld [vmem:[%s18796_s13 + $0x540] sm:$0xff]  ;;  %v420_v57 = vld [vmem:[%s18796_s13 + $0x5b8] sm:$0xff] }
  0xa4   :  { %12933 = vmatprep.subr.mxu1 %v353_v59  ;;  %12896 = vmatpush3.msra.mxu0 %v305_v60  ;;  %v372_v58 = vld [vmem:[%s18796_s13 + $0x438] sm:$0xff]  ;;  %v387_v60 = vld [vmem:[%s18796_s13 + $0x4b0] sm:$0xff] }
  0xa5   :  { %12934 = vmatpush3.msra.mxu1 %v337_v61  ;;  %12897 = vmatprep.subr.mxu0 %v320_v62  ;;  %v404_v59 = vld [vmem:[%s18796_s13 + $0x538] sm:$0xff]  ;;  %v419_v61 = vld [vmem:[%s18796_s13 + $0x5b0] sm:$0xff] }
  0xa6   :  { %12935 = vmatprep.subr.mxu1 %v352_v63  ;;  %12898 = vmatpush3.msra.mxu0 %v304_v0  ;;  %v371_v62 = vld [vmem:[%s18796_s13 + $0x430] sm:$0xff]  ;;  %v386_v0 = vld [vmem:[%s18796_s13 + $0x4a8] sm:$0xff] }
  0xa7   :  { %12936 = vmatpush3.msra.mxu1 %v336_v1  ;;  %12899 = vmatprep.subr.mxu0 %v319_v3  ;;  %v403_v63 = vld [vmem:[%s18796_s13 + $0x530] sm:$0xff]  ;;  %v418_v1 = vld [vmem:[%s18796_s13 + $0x5a8] sm:$0xff] }
  0xa8   :  { %12937 = vmatprep.subr.mxu1 %v351_v4  ;;  %12900 = vmatpush3.msra.mxu0 %v303_v5  ;;  %v370_v3 = vld [vmem:[%s18796_s13 + $0x428] sm:$0xff]  ;;  %v385_v5 = vld [vmem:[%s18796_s13 + $0x4a0] sm:$0xff] }
  0xa9   :  { %12938 = vmatpush3.msra.mxu1 %v335_v8  ;;  %12901 = vmatprep.subr.mxu0 %v318_v9  ;;  %v402_v4 = vld [vmem:[%s18796_s13 + $0x528] sm:$0xff]  ;;  %v417_v8 = vld [vmem:[%s18796_s13 + $0x5a0] sm:$0xff] }
  0xaa   :  { %12939 = vmatprep.subr.mxu1 %v350_v10  ;;  %12902 = vmatpush3.msra.mxu0 %v302_v11  ;;  %v369_v9 = vld [vmem:[%s18796_s13 + $0x420] sm:$0xff]  ;;  %v384_v11 = vld [vmem:[%s18796_s13 + $0x498] sm:$0xff] }
  0xab   :  { %12940 = vmatpush3.msra.mxu1 %v334_v12  ;;  %12903 = vmatprep.subr.mxu0 %v317_v14  ;;  %v401_v10 = vld [vmem:[%s18796_s13 + $0x520] sm:$0xff]  ;;  %v416_v12 = vld [vmem:[%s18796_s13 + $0x598] sm:$0xff] }
  0xac   :  { %12941 = vmatprep.subr.mxu1 %v349_v15  ;;  %12904 = vmatpush3.msra.mxu0 %v301_v16  ;;  %v368_v14 = vld [vmem:[%s18796_s13 + $0x418] sm:$0xff]  ;;  %v383_v16 = vld [vmem:[%s18796_s13 + $0x490] sm:$0xff] }
  0xad   :  { %12942 = vmatpush3.msra.mxu1 %v333_v17  ;;  %11959 = vmatmul.mubr.msk.f32.vlgmr.msra.gmra.mxu0 %vm145_vm10, %v14832_v18  ;;  %v400_v15 = vld [vmem:[%s18796_s13 + $0x518] sm:$0xff]  ;;  %v415_v17 = vld [vmem:[%s18796_s13 + $0x590] sm:$0xff] }
  0xae   :  { %11963 = vmatmul.mubr.msk.f32.vlgmr.msra.gmra.mxu1 %vm147_vm11, %v14832_v18  ;;  %12949 = vmatprep.subr.mxu0 %v396_v24  ;;  %v382_v24 = vld [vmem:[%s18796_s13 + $0x488] sm:$0xff] }
  0xaf   :  { %12987 = vmatprep.subr.mxu1 %v428_v25  ;;  %11960 = vmatprep.mubr.msk.f32.mxu0 %vm162_vm12, %v14832_v18  ;;  %v414_v25 = vld [vmem:[%s18796_s13 + $0x588] sm:$0xff] }
  0xb0   :  { %11964 = vmatprep.mubr.msk.f32.mxu1 %vm164_vm13, %v14832_v18  ;;  %12950 = vmatpush3.msra.mxu0 %v380_v26  ;;  %v366_v26 = vld [vmem:[%s18796_s13 + $0x408] sm:$0xff] }
  0xb1   :  { %12988 = vmatpush3.msra.mxu1 %v412_v27  ;;  %12951 = vmatprep.subr.mxu0 %v395_v28  ;;  %v398_v27 = vld [vmem:[%s18796_s13 + $0x508] sm:$0xff]  ;;  %v125_v28 = vadd.s32 1024, %v15139_v7 }
  0xb2   :  { %12989 = vmatprep.subr.mxu1 %v427_v29  ;;  %12952 = vmatpush3.msra.mxu0 %v379_v30  ;;  %v381_v29 = vld [vmem:[%s18796_s13 + $0x480] sm:$0xff] }
  0xb3   :  { %12990 = vmatpush3.msra.mxu1 %v411_v31  ;;  %11961 = vmatmul.mubr.msk.f32.gmra.mxu0 %vm161_vm14, %v14832_v18  ;;  %v413_v30 = vld [vmem:[%s18796_s13 + $0x580] sm:$0xff]  ;;  %v127_v31 = vadd.s32 1280, %v15139_v7  ;;  %vm149_vm2 = vcmp.eq.s32.totalorder %v125_v28, %v15150_v13  ;;  %vm165_vm6 = vcmp.eq.s32.totalorder %v125_v28, %v15185_v23 }
  0xb4   :  { %11965 = vmatmul.mubr.msk.f32.gmra.mxu1 %vm163_vm15, %v14832_v18  ;;  %12953 = vmatprep.subr.mxu0 %v394_v32  ;;  %v365_v32 = vld [vmem:[%s18796_s13 + $0x400] sm:$0xff] }
  0xb5   :  { %12991 = vmatprep.subr.mxu1 %v426_v33  ;;  %12954 = vmatpush3.msra.mxu0 %v378_v19  ;;  %v397_v33 = vld [vmem:[%s18796_s13 + $0x500] sm:$0xff]  ;;  %v460_v19 = vld [vmem:[%s18796_s13 + $0x6f8] sm:$0xff]  ;;  %vm151_vm3 = vcmp.eq.s32.totalorder %v127_v31, %v15150_v13  ;;  %vm167_vm7 = vcmp.eq.s32.totalorder %v127_v31, %v15185_v23 }
  0xb6   :  { %11966 = vmatprep.mubr.msk.f32.mxu0 %vm150_vm0, %v14832_v18  ;;  %12992 = vmatpush3.msra.mxu1 %v410_v34  ;;  %v492_v34 = vld [vmem:[%s18796_s13 + $0x7f8] sm:$0xff] }
  0xb7   :  { %11970 = vmatprep.mubr.msk.f32.mxu1 %vm152_vm1, %v14832_v18  ;;  %12955 = vmatprep.subr.mxu0 %v393_v36  ;;  %v444_v36 = vld [vmem:[%s18796_s13 + $0x678] sm:$0xff] }
  0xb8   :  { %12993 = vmatprep.subr.mxu1 %v425_v37  ;;  %12956 = vmatpush3.msra.mxu0 %v377_v38  ;;  %v476_v37 = vld [vmem:[%s18796_s13 + $0x778] sm:$0xff]  ;;  %v459_v38 = vld [vmem:[%s18796_s13 + $0x6f0] sm:$0xff] }
  0xb9   :  { %12994 = vmatpush3.msra.mxu1 %v409_v39  ;;  %12957 = vmatprep.subr.mxu0 %v392_v40  ;;  %v491_v39 = vld [vmem:[%s18796_s13 + $0x7f0] sm:$0xff] }
  0xba   :  { %12995 = vmatprep.subr.mxu1 %v424_v41  ;;  %12958 = vmatpush3.msra.mxu0 %v376_v42  ;;  %v443_v40 = vld [vmem:[%s18796_s13 + $0x670] sm:$0xff]  ;;  %v458_v42 = vld [vmem:[%s18796_s13 + $0x6e8] sm:$0xff] }
  0xbb   :  { %12996 = vmatpush3.msra.mxu1 %v408_v43  ;;  %12959 = vmatprep.subr.mxu0 %v391_v44  ;;  %v475_v41 = vld [vmem:[%s18796_s13 + $0x770] sm:$0xff]  ;;  %v490_v43 = vld [vmem:[%s18796_s13 + $0x7e8] sm:$0xff] }
  0xbc   :  { %12997 = vmatprep.subr.mxu1 %v423_v45  ;;  %12960 = vmatpush3.msra.mxu0 %v375_v46  ;;  %v474_v44 = vld [vmem:[%s18796_s13 + $0x768] sm:$0xff]  ;;  %v15636_v45 = vadd.s32 1920, %v15139_v7  ;;  %v457_v46 = vld [vmem:[%s18796_s13 + $0x6e0] sm:$0xff] }
  0xbd   :  { %12998 = vmatpush3.msra.mxu1 %v407_v47  ;;  %12961 = vmatprep.subr.mxu0 %v390_v48  ;;  %v489_v47 = vld [vmem:[%s18796_s13 + $0x7e0] sm:$0xff] }
  0xbe   :  { %12999 = vmatprep.subr.mxu1 %v422_v49  ;;  %12962 = vmatpush3.msra.mxu0 %v374_v50  ;;  %v441_v48 = vld [vmem:[%s18796_s13 + $0x660] sm:$0xff]  ;;  %v456_v50 = vld [vmem:[%s18796_s13 + $0x6d8] sm:$0xff]  ;;  %vm156_vm9 = vcmp.eq.s32.totalorder %v15636_v45, %v15150_v13 }
  0xbf   :  { %13000 = vmatpush3.msra.mxu1 %v406_v51  ;;  %12963 = vmatprep.subr.mxu0 %v389_v52  ;;  %v473_v49 = vld [vmem:[%s18796_s13 + $0x760] sm:$0xff]  ;;  %v488_v51 = vld [vmem:[%s18796_s13 + $0x7d8] sm:$0xff] }
  0xc0   :  { %13001 = vmatprep.subr.mxu1 %v421_v53  ;;  %12964 = vmatpush3.msra.mxu0 %v373_v54  ;;  %v440_v52 = vld [vmem:[%s18796_s13 + $0x658] sm:$0xff]  ;;  %v455_v54 = vld [vmem:[%s18796_s13 + $0x6d0] sm:$0xff] }
  0xc1   :  { %13002 = vmatpush3.msra.mxu1 %v405_v55  ;;  %12965 = vmatprep.subr.mxu0 %v388_v56  ;;  %v472_v53 = vld [vmem:[%s18796_s13 + $0x758] sm:$0xff]  ;;  %v487_v55 = vld [vmem:[%s18796_s13 + $0x7d0] sm:$0xff] }
  0xc2   :  { %13003 = vmatprep.subr.mxu1 %v420_v57  ;;  %12966 = vmatpush3.msra.mxu0 %v372_v58  ;;  %v439_v56 = vld [vmem:[%s18796_s13 + $0x650] sm:$0xff]  ;;  %v454_v58 = vld [vmem:[%s18796_s13 + $0x6c8] sm:$0xff] }
  0xc3   :  { %13004 = vmatpush3.msra.mxu1 %v404_v59  ;;  %12967 = vmatprep.subr.mxu0 %v387_v60  ;;  %v471_v57 = vld [vmem:[%s18796_s13 + $0x750] sm:$0xff]  ;;  %v486_v59 = vld [vmem:[%s18796_s13 + $0x7c8] sm:$0xff] }
  0xc4   :  { %13005 = vmatprep.subr.mxu1 %v419_v61  ;;  %12968 = vmatpush3.msra.mxu0 %v371_v62  ;;  %v438_v60 = vld [vmem:[%s18796_s13 + $0x648] sm:$0xff]  ;;  %v453_v62 = vld [vmem:[%s18796_s13 + $0x6c0] sm:$0xff] }
  0xc5   :  { %13006 = vmatpush3.msra.mxu1 %v403_v63  ;;  %12969 = vmatprep.subr.mxu0 %v386_v0  ;;  %v470_v61 = vld [vmem:[%s18796_s13 + $0x748] sm:$0xff]  ;;  %v485_v63 = vld [vmem:[%s18796_s13 + $0x7c0] sm:$0xff] }
  0xc6   :  { %13007 = vmatprep.subr.mxu1 %v418_v1  ;;  %12970 = vmatpush3.msra.mxu0 %v370_v3 }
  0xc7   :  { %13008 = vmatpush3.msra.mxu1 %v402_v4  ;;  %12971 = vmatprep.subr.mxu0 %v385_v5 }
  0xc8   :  { %13009 = vmatprep.subr.mxu1 %v417_v8  ;;  %12972 = vmatpush3.msra.mxu0 %v369_v9 }
  0xc9   :  { %13010 = vmatpush3.msra.mxu1 %v401_v10  ;;  %12973 = vmatprep.subr.mxu0 %v384_v11 }
  0xca   :  { %13011 = vmatprep.subr.mxu1 %v416_v12  ;;  %12974 = vmatpush3.msra.mxu0 %v368_v14 }
  0xcb   :  { %13012 = vmatpush3.msra.mxu1 %v400_v15  ;;  %12975 = vmatprep.subr.mxu0 %v383_v16 }
  0xcc   :  { %13013 = vmatprep.subr.mxu1 %v415_v17  ;;  %12976 = vmatpush3.msra.mxu0 %v367_v21 }
  0xcd   :  { %13014 = vmatpush3.msra.mxu1 %v399_v22  ;;  %12977 = vmatprep.subr.mxu0 %v382_v24 }
  0xce   :  { %13015 = vmatprep.subr.mxu1 %v414_v25  ;;  %12978 = vmatpush3.msra.mxu0 %v366_v26 }
  0xcf   :  { %13016 = vmatpush3.msra.mxu1 %v398_v27  ;;  %12979 = vmatprep.subr.mxu0 %v381_v29 }
  0xd0   :  { %13017 = vmatprep.subr.mxu1 %v413_v30  ;;  %12980 = vmatpush3.msra.mxu0 %v365_v32 }
  0xd1   :  { %13018 = vmatpush3.msra.mxu1 %v397_v33  ;;  %11967 = vmatmul.mubr.msk.f32.vlgmr.msra.gmra.mxu0 %vm149_vm2, %v14832_v18 }
  0xd2   :  { %11971 = vmatmul.mubr.msk.f32.vlgmr.msra.gmra.mxu1 %vm151_vm3, %v14832_v18  ;;  %13025 = vmatprep.subr.mxu0 %v460_v19 }
  0xd3   :  { %13063 = vmatprep.subr.mxu1 %v492_v34  ;;  %11968 = vmatprep.mubr.msk.f32.mxu0 %vm166_vm4, %v14832_v18 }
  0xd4   :  { %11972 = vmatprep.mubr.msk.f32.mxu1 %vm168_vm5, %v14832_v18  ;;  %13026 = vmatpush3.msra.mxu0 %v444_v36 }
  0xd5   :  { %13064 = vmatpush3.msra.mxu1 %v476_v37  ;;  %13027 = vmatprep.subr.mxu0 %v459_v38 }
  0xd6   :  { %13065 = vmatprep.subr.mxu1 %v491_v39  ;;  %13028 = vmatpush3.msra.mxu0 %v443_v40 }
  0xd7   :  { %13066 = vmatpush3.msra.mxu1 %v475_v41  ;;  %11969 = vmatmul.mubr.msk.f32.gmra.mxu0 %vm165_vm6, %v14832_v18 }
  0xd8   :  { %11973 = vmatmul.mubr.msk.f32.gmra.mxu1 %vm167_vm7, %v14832_v18  ;;  %13029 = vmatprep.subr.mxu0 %v458_v42 }
  0xd9   :  { %13067 = vmatprep.subr.mxu1 %v490_v43  ;;  %13030 = vmatpush3.msra.mxu0 %v442_v20 }
  0xda   :  { %11974 = vmatprep.mubr.msk.f32.mxu0 %vm154_vm8, %v14832_v18  ;;  %13068 = vmatpush3.msra.mxu1 %v474_v44 }
  0xdb   :  { %11978 = vmatprep.mubr.msk.f32.mxu1 %vm156_vm9, %v14832_v18  ;;  %13031 = vmatprep.subr.mxu0 %v457_v46 }
  0xdc   :  { %13069 = vmatprep.subr.mxu1 %v489_v47  ;;  %13032 = vmatpush3.msra.mxu0 %v441_v48 }
  0xdd   :  { %13070 = vmatpush3.msra.mxu1 %v473_v49  ;;  %13033 = vmatprep.subr.mxu0 %v456_v50 }
  0xde   :  { %13071 = vmatprep.subr.mxu1 %v488_v51  ;;  %13034 = vmatpush3.msra.mxu0 %v440_v52 }
  0xdf   :  { %13072 = vmatpush3.msra.mxu1 %v472_v53  ;;  %13035 = vmatprep.subr.mxu0 %v455_v54 }
  0xe0   :  { %13073 = vmatprep.subr.mxu1 %v487_v55  ;;  %13036 = vmatpush3.msra.mxu0 %v439_v56 }
  0xe1   :  { %13074 = vmatpush3.msra.mxu1 %v471_v57 }
  0xe2   :  { %23 = vsyncpa [#allocation3], 0  ;;  %13037 = vmatprep.subr.mxu0 %v454_v58  ;;  %13075 = vmatprep.subr.mxu1 %v486_v59  ;;  %v437_v0 = vld [vmem:[%s18796_s13 + $0x640] sm:$0xff]  ;;  %v452_v3 = vld [vmem:[%s18796_s13 + $0x6b8] sm:$0xff]  ;;  %v129_v40 = vadd.s32 1536, %v15139_v7  ;;  %v131_v41 = vadd.s32 1792, %v15139_v7  ;;  %vm170_vm12 = vcmp.eq.s32.totalorder %v15630_v35, %v15185_v23  ;;  %vm172_vm13 = vcmp.eq.s32.totalorder %v15636_v45, %v15185_v23 }
  0xe3   :  { %v469_v1 = vld [vmem:[%s18796_s13 + $0x740] sm:$0xff]  ;;  %13038 = vmatpush3.msra.mxu0 %v438_v60  ;;  %13076 = vmatpush3.msra.mxu1 %v470_v61  ;;  %v484_v4 = vld [vmem:[%s18796_s13 + $0x7b8] sm:$0xff]  ;;  %v451_v9 = vld [vmem:[%s18796_s13 + $0x6b0] sm:$0xff]  ;;  %s18797_s22 = sld [smem:[#allocation7_spill]]  ;;  %vm63_vm0 = vcmp.lt.s32.totalorder %v15139_v7, 64  ;;  %vm14834_vm1 = vmmov 0  }
  0xe4   :  { %13039 = vmatprep.subr.mxu0 %v453_v62  ;;  %13077 = vmatprep.subr.mxu1 %v485_v63  ;;  %v436_v5 = vld [vmem:[%s18796_s13 + $0x638] sm:$0xff]  ;;  %v483_v10 = vld [vmem:[%s18796_s13 + $0x7b0] sm:$0xff]  ;;  %v450_v14 = vld [vmem:[%s18796_s13 + $0x6a8] sm:$0xff]  ;;  %vm153_vm10 = vcmp.eq.s32.totalorder %v129_v40, %v15150_v13  ;;  %vm155_vm11 = vcmp.eq.s32.totalorder %v131_v41, %v15150_v13  ;;  %vm169_vm14 = vcmp.eq.s32.totalorder %v129_v40, %v15185_v23  ;;  %vm68_vm2 = vcmp.ge.s32.totalorder %v15139_v7, 32  ;;  %s18802_s2 = sld [smem:[#allocation8_spill]] }
  0xe5   :  { %v468_v8 = vld [vmem:[%s18796_s13 + $0x738] sm:$0xff]  ;;  %13040 = vmatpush3.msra.mxu0 %v437_v0  ;;  %13078 = vmatpush3.msra.mxu1 %v469_v1  ;;  %v435_v11 = vld [vmem:[%s18796_s13 + $0x630] sm:$0xff]  ;;  %v482_v15 = vld [vmem:[%s18796_s13 + $0x7a8] sm:$0xff]  ;;  %vm171_vm15 = vcmp.eq.s32.totalorder %v131_v41, %v15185_v23  ;;  %vm76_vm3 = vcmp.lt.s32.totalorder %v15139_v7, 40  ;;  %vm72_vm4 = vcmp.lt.s32.totalorder %v15139_v7, 8  ;;  %vm65_vm6 = vcmp.ge.s32.totalorder %v15139_v7, 8 }
  0xe6   :  { %13041 = vmatprep.subr.mxu0 %v452_v3  ;;  %13079 = vmatprep.subr.mxu1 %v484_v4  ;;  %v467_v12 = vld [vmem:[%s18796_s13 + $0x730] sm:$0xff]  ;;  %v434_v16 = vld [vmem:[%s18796_s13 + $0x628] sm:$0xff]  ;;  %v449_v21 = vld [vmem:[%s18796_s13 + $0x6a0] sm:$0xff]  ;;  %vm73_vm7 = vcmp.lt.s32.totalorder %v15139_v7, 16  ;;  %vm70_vm8 = vcmp.ge.s32.totalorder %v15139_v7, 48  ;;  %vm78_vm9 = vcmp.lt.s32.totalorder %v15139_v7, 56 }
  0xe7   :  { %13042 = vmatpush3.msra.mxu0 %v436_v5  ;;  %13080 = vmatpush3.msra.mxu1 %v468_v8  ;;  %v466_v17 = vld [vmem:[%s18796_s13 + $0x728] sm:$0xff]  ;;  %v481_v22 = vld [vmem:[%s18796_s13 + $0x7a0] sm:$0xff]  ;;  %v448_v26 = vld [vmem:[%s18796_s13 + $0x698] sm:$0xff] }
  0xe8   :  { %13043 = vmatprep.subr.mxu0 %v451_v9  ;;  %13081 = vmatprep.subr.mxu1 %v483_v10  ;;  %v433_v24 = vld [vmem:[%s18796_s13 + $0x620] sm:$0xff]  ;;  %v480_v27 = vld [vmem:[%s18796_s13 + $0x798] sm:$0xff]  ;;  %v447_v30 = vld [vmem:[%s18796_s13 + $0x690] sm:$0xff] }
  0xe9   :  { %13044 = vmatpush3.msra.mxu0 %v435_v11  ;;  %13082 = vmatpush3.msra.mxu1 %v467_v12  ;;  %v465_v25 = vld [vmem:[%s18796_s13 + $0x720] sm:$0xff]  ;;  %v432_v28 = vld [vmem:[%s18796_s13 + $0x618] sm:$0xff]  ;;  %v479_v31 = vld [vmem:[%s18796_s13 + $0x790] sm:$0xff] }
  0xea   :  { %13045 = vmatprep.subr.mxu0 %v450_v14  ;;  %13083 = vmatprep.subr.mxu1 %v482_v15  ;;  %v464_v29 = vld [vmem:[%s18796_s13 + $0x718] sm:$0xff]  ;;  %v431_v32 = vld [vmem:[%s18796_s13 + $0x610] sm:$0xff]  ;;  %v446_v19 = vld [vmem:[%s18796_s13 + $0x688] sm:$0xff] }
  0xeb   :  { %13046 = vmatpush3.msra.mxu0 %v434_v16  ;;  %13084 = vmatpush3.msra.mxu1 %v466_v17  ;;  %v463_v33 = vld [vmem:[%s18796_s13 + $0x710] sm:$0xff]  ;;  %v478_v34 = vld [vmem:[%s18796_s13 + $0x788] sm:$0xff]  ;;  %v445_v38 = vld [vmem:[%s18796_s13 + $0x680] sm:$0xff] }
  0xec   :  { %13047 = vmatprep.subr.mxu0 %v449_v21  ;;  %13085 = vmatprep.subr.mxu1 %v481_v22  ;;  %v430_v36 = vld [vmem:[%s18796_s13 + $0x608] sm:$0xff]  ;;  %v477_v39 = vld [vmem:[%s18796_s13 + $0x780] sm:$0xff]  ;;  %vm83_vm5 = vmand %vm68_vm2, %vm76_vm3  ;;  %vm75_vm2 = vcmp.lt.s32.totalorder %v15139_v7, 32 }
  0xed   :  { %13048 = vmatpush3.msra.mxu0 %v433_v24  ;;  %13086 = vmatpush3.msra.mxu1 %v465_v25  ;;  %v462_v37 = vld [vmem:[%s18796_s13 + $0x708] sm:$0xff]  ;;  %v429_v42 = vld [vmem:[%s18796_s13 + $0x600] sm:$0xff] }
  0xee   :  { %13049 = vmatprep.subr.mxu0 %v448_v26  ;;  %13087 = vmatprep.subr.mxu1 %v480_v27  ;;  %v461_v43 = vld [vmem:[%s18796_s13 + $0x700] sm:$0xff]  ;;  %v494_v61 = vld [vmem:[%s18797_s22 + $0x8] sm:$0xff] }
  0xef   :  { %13050 = vmatpush3.msra.mxu0 %v432_v28  ;;  %13088 = vmatpush3.msra.mxu1 %v464_v29 }
  0xf0   :  { %13051 = vmatprep.subr.mxu0 %v447_v30  ;;  %13089 = vmatprep.subr.mxu1 %v479_v31 }
  0xf1   :  { %13052 = vmatpush3.msra.mxu0 %v431_v32  ;;  %13090 = vmatpush3.msra.mxu1 %v463_v33 }
  0xf2   :  { %13053 = vmatprep.subr.mxu0 %v446_v19  ;;  %13091 = vmatprep.subr.mxu1 %v478_v34 }
  0xf3   :  { %13054 = vmatpush3.msra.mxu0 %v430_v36  ;;  %13092 = vmatpush3.msra.mxu1 %v462_v37 }
  0xf4   :  { %13055 = vmatprep.subr.mxu0 %v445_v38  ;;  %13093 = vmatprep.subr.mxu1 %v477_v39 }
  0xf5   :  { %13056 = vmatpush3.msra.mxu0 %v429_v42  ;;  %13094 = vmatpush3.msra.mxu1 %v461_v43 }
  0xf6   :  { %11975 = vmatmul.mubr.msk.f32.vlgmr.msra.gmra.mxu0 %vm153_vm10, %v14832_v18  ;;  %11979 = vmatmul.mubr.msk.f32.vlgmr.msra.gmra.mxu1 %vm155_vm11, %v14832_v18  ;;  %vm80_vm10 = vmand %vm65_vm6, %vm73_vm7  ;;  %vm71_vm7 = vcmp.ge.s32.totalorder %v15139_v7, 56 }
  0xf7   :  { %11976 = vmatprep.mubr.msk.f32.mxu0 %vm170_vm12, %v14832_v18  ;;  %11980 = vmatprep.mubr.msk.f32.mxu1 %vm172_vm13, %v14832_v18  ;;  %vm85_vm11 = vmand %vm70_vm8, %vm78_vm9  ;;  %vm66_vm12 = vcmp.ge.s32.totalorder %v15139_v7, 16  ;;  %vm74_vm13 = vcmp.lt.s32.totalorder %v15139_v7, 24 }
  0xf8   :  { %vm86_vm8 = vmand %vm71_vm7, %vm63_vm0 }
  0xfa   :  { %11977 = vmatmul.mubr.msk.f32.gmra.mxu0 %vm169_vm14, %v14832_v18  ;;  %11981 = vmatmul.mubr.msk.f32.gmra.mxu1 %vm171_vm15, %v14832_v18  ;;  %v493_v18 = vld [vmem:[%s18797_s22] sm:$0xff]  ;;  %vm81_vm14 = vmand %vm66_vm12, %vm74_vm13  ;;  %vm67_vm15 = vcmp.ge.s32.totalorder %v15139_v7, 24 }
  0xfb   :  { %1332 = vmatprep.mubr.bf16.mxu0 %v14831_v2  ;;  %vm82_vm3 = vmand %vm67_vm15, %vm75_vm2 }
 0x14a   :  { %v12829_v13 = vpop.f32.mrf.mxu0  ;;  %v12867_v20 = vpop.f32.mrf.mxu1 }
 0x14c   :  { %v12830_v35 = vpop.f32.mrf.mxu0  ;;  %v12868_v44 = vpop.f32.mrf.mxu1 }
 0x14d   :  { %v12831_v55 = vadd.f32 %v12830_v35, %v12829_v13  ;;  %v12869_v63 = vadd.f32 %v12868_v44, %v12867_v20 }
 0x14f   :  { %v562_v59 = vadd.f32 %v12831_v55, %v493_v18 }
 0x150   :  { %v12832_v46 = vpop.f32.mrf.mxu0 }
 0x151   :  { %v12870_v45 = vpop.f32.mrf.mxu1  ;;  %v637_v3 = vadd.f32 %v12869_v63, %v562_v59  ;;  %v14137_v59 = vld [vmem:[%s18773_s5 + $0x90] ss:$12 sps:$4 sm:$0xff]   ;;  %v14144_v63 = vld [vmem:[%s18773_s5 + $0x80] ss:$12 sps:$4 sm:$0xff]  }
 0x152   :  { %v12833_v47 = vpop.f32.mrf.mxu0 }
 0x153   :  { %v12871_v48 = vpop.f32.mrf.mxu1  ;;  %v12834_v60 = vadd.f32 %v12833_v47, %v12832_v46  ;;  %v14135_v47 = vld [vmem:[%s18773_s5 + $0xac] ss:$12 sps:$4 sm:$0xff]  }
 0x154   :  { %v12872_v8 = vadd.f32 %v12871_v48, %v12870_v45  ;;  %v14133_v45 = vld [vmem:[%s18773_s5 + $0xa8] ss:$12 sps:$4 sm:$0xff]   ;;  %v14833_v48 = vmov 0.0   ;;  %1300 = vmatprep.subr.bf16.mxu0 %v14135_v47 }
 0x155   :  { %v567_v4 = vadd.f32 %v12834_v60, %v494_v61  ;;  %13517 = vmatprep.subr.bf16.mxu1 %v14833_v48  ;;  %1301 = vmatpush1.bf16.msra.mxu0 %v14133_v45  ;;  %v14140_v60 = vld [vmem:[%s18773_s5 + $0x98] ss:$12 sps:$4 sm:$0xff]   ;;  %v14143_v61 = vld [vmem:[%s18773_s5 + $0x7c] ss:$12 sps:$4 sm:$0xff]   ;;  %v15958_v47 = vsel %vm72_vm4, 1.0, %v14833_v48  ;;  %vm69_vm4 = vcmp.ge.s32.totalorder %v15139_v7, 40 }
 0x156   :  { %13533 = vmatprep.mubr.msk.bf16.mxu1 %vm14834_vm1, %v14833_v48 }
 0x157   :  { %v642_v12 = vadd.f32 %v12872_v8, %v567_v4  ;;  %v14151_v4 = vld [vmem:[%s18773_s5 + $0x4c] ss:$12 sps:$4 sm:$0xff]   ;;  %v14152_v8 = vld [vmem:[%s18773_s5 + $0x50] ss:$12 sps:$4 sm:$0xff]  }
 0x16d   :  { %v12905_v49 = vpop.f32.mrf.mxu0 }
 0x16e   :  { %v12943_v50 = vpop.f32.mrf.mxu1 }
 0x16f   :  { %v12906_v51 = vpop.f32.mrf.mxu0 }
 0x170   :  { %v12944_v52 = vpop.f32.mrf.mxu1  ;;  %v12907_v0 = vadd.f32 %v12906_v51, %v12905_v49  ;;  %v14136_v49 = vld [vmem:[%s18773_s5 + $0xb0] ss:$12 sps:$4 sm:$0xff]  }
 0x171   :  { %v12945_v14 = vadd.f32 %v12944_v52, %v12943_v50  ;;  %13518 = vmatpush3.bf16.msra.mxu1 %v14136_v49  ;;  %v15961_v49 = vsel %vm83_vm5, 1.0, %v14833_v48  ;;  %vm77_vm5 = vcmp.lt.s32.totalorder %v15139_v7, 48 }
 0x172   :  { %v712_v9 = vadd.f32 %v12907_v0, %v637_v3  ;;  %13519 = vmatprep.subr.bf16.mxu1 %v14833_v48  ;;  %v14147_v0 = vld [vmem:[%s18773_s5 + $0x64] ss:$12 sps:$4 sm:$0xff]   ;;  %v14148_v3 = vld [vmem:[%s18773_s5 + $0x68] ss:$12 sps:$4 sm:$0xff]   ;;  %vm84_vm6 = vmand %vm69_vm4, %vm77_vm5 }
 0x173   :  { %v12908_v53 = vpop.f32.mrf.mxu0 }
 0x174   :  { %v12946_v23 = vpop.f32.mrf.mxu1  ;;  %v787_v17 = vadd.f32 %v12945_v14, %v712_v9  ;;  %v14155_v9 = vld [vmem:[%s18773_s5 + $0x34] ss:$12 sps:$4 sm:$0xff]   ;;  %v14157_v14 = vld [vmem:[%s18773_s5 + $0x18] ss:$12 sps:$4 sm:$0xff]  }
 0x175   :  { %v12909_v54 = vpop.f32.mrf.mxu0  ;;  %13520 = vmatpush3.bf16.msra.mxu1 %v14140_v60 }
 0x176   :  { %v12947_v56 = vpop.f32.mrf.mxu1  ;;  %v12910_v10 = vadd.f32 %v12909_v54, %v12908_v53  ;;  %13521 = vmatprep.subr.bf16.mxu1 %v14833_v48 }
 0x177   :  { %v12948_v24 = vadd.f32 %v12947_v56, %v12946_v23 }
 0x178   :  { %v717_v21 = vadd.f32 %v12910_v10, %v642_v12  ;;  %v14153_v10 = vld [vmem:[%s18773_s5 + $0x30] ss:$12 sps:$4 sm:$0xff]  }
 0x179   :  { %13522 = vmatpush3.bf16.msra.mxu1 %v14144_v63  ;;  %v14159_v12 = vld [vmem:[%s18773_s5 + $0x1c] ss:$12 sps:$4 sm:$0xff]  }
 0x17a   :  { %v792_v29 = vadd.f32 %v12948_v24, %v717_v21  ;;  %13523 = vmatprep.subr.bf16.mxu1 %v14833_v48  ;;  %v14164_v21 = vld [vmem:[%s18773_s5 + $0x8] ss:$12 sps:$4 sm:$0xff]  }
 0x17d   :  { %13524 = vmatpush3.bf16.msra.mxu1 %v14148_v3 }
 0x17e   :  { %13525 = vmatprep.subr.bf16.mxu1 %v14833_v48 }
 0x181   :  { %13526 = vmatpush3.bf16.msra.mxu1 %v14152_v8 }
 0x182   :  { %13527 = vmatprep.subr.bf16.mxu1 %v14833_v48 }
 0x191   :  { %v12981_v57 = vpop.f32.mrf.mxu0 }
 0x192   :  { %v13019_v58 = vpop.f32.mrf.mxu1 }
 0x193   :  { %v12982_v62 = vpop.f32.mrf.mxu0 }
 0x194   :  { %v13020_v1 = vpop.f32.mrf.mxu1  ;;  %v12983_v15 = vadd.f32 %v12982_v62, %v12981_v57  ;;  %v14141_v62 = vld [vmem:[%s18773_s5 + $0x78] ss:$12 sps:$4 sm:$0xff]  }
 0x195   :  { %v13021_v30 = vadd.f32 %v13020_v1, %v13019_v58  ;;  %v14139_v58 = vld [vmem:[%s18773_s5 + $0x94] ss:$12 sps:$4 sm:$0xff]  }
 0x196   :  { %v862_v25 = vadd.f32 %v12983_v15, %v787_v17  ;;  %1302 = vmatprep.subr.bf16.mxu0 %v14139_v58  ;;  %v14145_v1 = vld [vmem:[%s18773_s5 + $0x60] ss:$12 sps:$4 sm:$0xff]   ;;  %v15994_v58 = vsel %vm81_vm14, 1.0, %v14833_v48  ;;  %vm2036_vm14 = vcmask 130048  }
 0x197   :  { %v12984_v5 = vpop.f32.mrf.mxu0  ;;  %1303 = vmatpush1.bf16.msra.mxu0 %v14137_v59  ;;  %v14160_v15 = vld [vmem:[%s18773_s5 + $0x20] ss:$12 sps:$4 sm:$0xff]  }
 0x198   :  { %v13022_v11 = vpop.f32.mrf.mxu1  ;;  %v937_v33 = vadd.f32 %v13021_v30, %v862_v25  ;;  %1304 = vmatprep.subr.bf16.mxu0 %v14143_v61  ;;  %v14161_v17 = vld [vmem:[%s18773_s5] ss:$12 sps:$4 sm:$0xff]  }
 0x199   :  { %v12985_v16 = vpop.f32.mrf.mxu0 }
 0x19a   :  { %v13023_v22 = vpop.f32.mrf.mxu1  ;;  %v12986_v26 = vadd.f32 %v12985_v16, %v12984_v5  ;;  %v14149_v5 = vld [vmem:[%s18773_s5 + $0x48] ss:$12 sps:$4 sm:$0xff]   ;;  %v14163_v16 = vld [vmem:[%s18773_s5 + $0x4] ss:$12 sps:$4 sm:$0xff]  }
 0x19b   :  { %v13024_v38 = vadd.f32 %v13023_v22, %v13022_v11  ;;  %1305 = vmatpush1.bf16.msra.mxu0 %v14141_v62  ;;  %v14156_v11 = vld [vmem:[%s18773_s5 + $0x38] ss:$12 sps:$4 sm:$0xff]  }
 0x19c   :  { %v867_v19 = vadd.f32 %v12986_v26, %v792_v29  ;;  %1306 = vmatprep.subr.bf16.mxu0 %v14147_v0  ;;  %13528 = vmatpush3.bf16.msra.mxu1 %v14156_v11  ;;  %v16014_v0 = vsel %vm82_vm3, 1.0, %v14833_v48 }
 0x19d   :  { %13529 = vmatprep.subr.bf16.mxu1 %v14833_v48 }
 0x19e   :  { %v942_v43 = vadd.f32 %v13024_v38, %v867_v19 }
 0x19f   :  { %1307 = vmatpush1.bf16.msra.mxu0 %v14145_v1 }
 0x1a0   :  { %1308 = vmatprep.subr.bf16.mxu0 %v14151_v4  ;;  %13530 = vmatpush3.bf16.msra.mxu1 %v14160_v15  ;;  %v16026_v4 = vsel %vm84_vm6, 1.0, %v14833_v48 }
 0x1a1   :  { %13531 = vmatprep.subr.bf16.mxu1 %v14833_v48 }
 0x1a3   :  { %1309 = vmatpush1.bf16.msra.mxu0 %v14149_v5 }
 0x1a4   :  { %1310 = vmatprep.subr.bf16.mxu0 %v14155_v9  ;;  %13532 = vmatpush3.bf16.msra.mxu1 %v14164_v21  ;;  %v16038_v9 = vsel %vm86_vm8, 1.0, %v14833_v48 }
 0x1a7   :  { %1311 = vmatpush1.bf16.msra.mxu0 %v14153_v10 }
 0x1a8   :  { %1312 = vmatprep.subr.bf16.mxu0 %v14159_v12 }
 0x1ab   :  { %1313 = vmatpush1.bf16.msra.mxu0 %v14157_v14 }
 0x1ac   :  { %1314 = vmatprep.subr.bf16.mxu0 %v14163_v16  ;;  %v16057_v16 = vshrl.u32 %v61_v6, 7 }
 0x1af   :  { %1315 = vmatpush1.bf16.msra.mxu0 %v14161_v17  ;;  %v105_v17 = vadd.s32 8, %v16057_v16 }
 0x1b1   :  { %v107_v21 = vshra.s32 %v105_v17, 3 }
 0x1b6   :  { %v13057_v27 = vpop.f32.mrf.mxu0  ;;  %v13095_v28 = vpop.f32.mrf.mxu1 }
 0x1b8   :  { %v13058_v31 = vpop.f32.mrf.mxu0  ;;  %v13096_v32 = vpop.f32.mrf.mxu1 }
 0x1b9   :  { %v13059_v34 = vadd.f32 %v13058_v31, %v13057_v27  ;;  %v13097_v40 = vadd.f32 %v13096_v32, %v13095_v28  ;;  %v11982_v31 = vld [vmem:[%s18771_s3] ss:$0 sm:$0xff] }
 0x1ba   :  { %v13060_v36 = vpop.f32.mrf.mxu0  ;;  %v13098_v37 = vpop.f32.mrf.mxu1 }
 0x1bb   :  { %v1012_v39 = vadd.f32 %v13059_v34, %v937_v33  ;;  %v11983_v34 = vld [vmem:[%s18772_s4] ss:$0 sm:$0xff] }
 0x1bc   :  { %v13061_v41 = vpop.f32.mrf.mxu0  ;;  %v13099_v42 = vpop.f32.mrf.mxu1 }
 0x1bd   :  { %v15827_v13 = vadd.f32 %v13097_v40, %v1012_v39  ;;  %v13062_v20 = vadd.f32 %v13061_v41, %v13060_v36  ;;  %v13100_v44 = vadd.f32 %v13099_v42, %v13098_v37 }
 0x1bf   :  { %v1017_v35 = vadd.f32 %v13062_v20, %v942_v43  ;;  %1097 = vadd.xlane.f32.xlu1 %v15827_v13 }
 0x1c1   :  { %v15830_v46 = vadd.f32 %v13100_v44, %v1017_v35 }
 0x1c3   :  { %1099 = vadd.xlane.f32.xlu1 %v15830_v46 }
 0x248   :  { %v1098_v50 = vpop.xlane.xlu1 %1097 }
 0x249   :  { %v1101_v51 = vmul.f32 0.015625, %v1098_v50 }
 0x24b   :  { %v1103_v52 = vsub.f32 %v15827_v13, %v1101_v51 }
 0x24c   :  { %v1100_v53 = vpop.xlane.xlu1 %1099 }
 0x24d   :  { %v1102_v23 = vmul.f32 0.015625, %v1100_v53  ;;  %v15848_v54 = vsel %vm63_vm0, %v1103_v52, 0.0 }
 0x24e   :  { %v1109_v55 = vmul.f32 %v15848_v54, %v15848_v54 }
 0x24f   :  { %v1104_v18 = vsub.f32 %v15830_v46, %v1102_v23  ;;  %v15974_v23 = vsel %vm80_vm10, 1.0, %v14833_v48 }
 0x250   :  { %1111 = vadd.xlane.f32.xlu0 %v1109_v55 }
 0x251   :  { %v15855_v56 = vsel %vm63_vm0, %v1104_v18, 0.0 }
 0x252   :  { %v1110_v57 = vmul.f32 %v15855_v56, %v15855_v56 }
 0x254   :  { %1113 = vadd.xlane.f32.xlu1 %v1110_v57 }
 0x2d9   :  { %v1112_v22 = vpop.xlane.xlu0 %1111 }
 0x2da   :  { %v1115_v24 = vmul.f32 0.015625, %v1112_v22  ;;  %v108_v22 = vshra.s32 %v15139_v7, 3 }
 0x2dc   :  { %v1117_v25 = vadd.f32 1e-05, %v1115_v24  ;;  %v111_v24 = vand.u32 7, %v15139_v7  ;;  %vm110_vm9 = vcmp.eq.s32.totalorder %v107_v21, %v108_v22  ;;  %v10771_v7 = vld [vmem:[%s18784_s16 + $0x348] sm:$0xff] }
 0x2dd   :  { %v1114_v26 = vpop.xlane.xlu1 %1113 }
 0x2de   :  { %14453 = vrsqrt.f32 %v1117_v25  ;;  %v1116_v27 = vmul.f32 0.015625, %v1114_v26  ;;  %v113_v25 = vand.u32 7, %v105_v17  ;;  %v106_v26 = vshra.s32 %v16057_v16, 3 }
 0x2e0   :  { %v1118_v28 = vadd.f32 1e-05, %v1116_v27  ;;  %v112_v27 = vand.u32 7, %v16057_v16  ;;  %vm115_vm10 = vcmp.le.s32.totalorder %v111_v24, %v113_v25 }
 0x2e1   :  { %vm16064_vm13 = vmand %vm110_vm9, %vm115_vm10 }
 0x2e2   :  { %14455 = vrsqrt.f32 %v1118_v28  ;;  %vm114_vm12 = vcmp.le.s32.totalorder %v111_v24, %v112_v27 }
 0x2eb   :  { %v14454_v29 = vpop.eup %14453 }
 0x2ec   :  { %v1121_v30 = vmul.f32 %v14454_v29, %v15848_v54  ;;  %v15977_v54 = vsel %vm85_vm11, 1.0, %v14833_v48  ;;  %vm109_vm11 = vcmp.eq.s32.totalorder %v106_v26, %v108_v22 }
 0x2ed   :  { %vm16068_vm15 = vmand %vm109_vm11, %vm114_vm12 }
 0x2ee   :  { %v1129_v19 = vmul.f32 %v11982_v31, %v1121_v30 }
 0x2ef   :  { %v14456_v32 = vpop.eup %14455 }
 0x2f0   :  { %v1122_v33 = vmul.f32 %v14456_v32, %v15855_v56  ;;  %v1137_v37 = vadd.f32 %v11983_v34, %v1129_v19 }
 0x2f2   :  { %v1130_v36 = vmul.f32 %v11982_v31, %v1122_v33 }
 0x2f4   :  { %v1138_v38 = vadd.f32 %v11983_v34, %v1130_v36 }
 0x2f6   :  { %v1139_v39 = vpack.c.bf16 %v1138_v38, %v1137_v37 }
 0x2f8   :  { %1333 = vmatmul.mubr.bf16.vlgmr.msra.gmra.mxu0 %v1139_v39  ;;  %13534 = vmatmul.mubr.bf16.vlgmr.msra.gmra.mxu1 %v1139_v39 }
 0x3b8   :  { %v15938_v40 = vpop.f32.mrf.mxu0  ;;  %v15940_v41 = vpop.f32.mrf.mxu1 }
 0x3b9   :  { %13541 = vmatprep.mubr.f32.mxu1 %v15938_v40  ;;  %13569 = vmatprep.mubr.f32.mxu0 %v15938_v40  ;;  %v1400_v62 = vmul.f32 %v15958_v47, %v15940_v41  ;;  %v1402_v14 = vmul.f32 %v15974_v23, %v15940_v41 }
 0x3ba   :  { %v15946_v42 = vpop.f32.mrf.mxu0  ;;  %v13535_v43 = vpop.f32.mrf.mxu1 }
 0x3bb   :  { %v1384_v52 = vmul.f32 %v15958_v47, %v15946_v42  ;;  %v1392_v53 = vmul.f32 %v15961_v49, %v15946_v42  ;;  %v1386_v56 = vmul.f32 %v15974_v23, %v15946_v42  ;;  %v1396_v57 = vmul.f32 %v15977_v54, %v15946_v42 }
 0x3bc   :  { %v15949_v20 = vpop.f32.mrf.mxu0  ;;  %v15951_v35 = vpop.f32.mrf.mxu1  ;;  %v1388_v61 = vmul.f32 %v15994_v58, %v15946_v42  ;;  %v1390_v3 = vmul.f32 %v16014_v0, %v15946_v42  ;;  %v1394_v8 = vmul.f32 %v16026_v4, %v15946_v42  ;;  %v1398_v11 = vmul.f32 %v16038_v9, %v15946_v42 }
 0x3bd   :  { %v1401_v60 = vmul.f32 %v15958_v47, %v15951_v35  ;;  %v16011_v63 = vmul.f32 %v15994_v58, %v15951_v35  ;;  %v1403_v12 = vmul.f32 %v15974_v23, %v15951_v35  ;;  %v16053_v15 = vmul.f32 %v16014_v0, %v15951_v35 }
 0x3be   :  { %v15955_v44 = vpop.f32.mrf.mxu0  ;;  %v13536_v45 = vpop.f32.mrf.mxu1 }
 0x3bf   :  { %v1385_v50 = vmul.f32 %v15958_v47, %v15955_v44  ;;  %v1393_v51 = vmul.f32 %v15961_v49, %v15955_v44  ;;  %v1387_v55 = vmul.f32 %v15974_v23, %v15955_v44  ;;  %v1397_v18 = vmul.f32 %v15977_v54, %v15955_v44 }
 0x3c0   :  { %v1389_v59 = vmul.f32 %v15994_v58, %v15955_v44  ;;  %v1391_v1 = vmul.f32 %v16014_v0, %v15955_v44  ;;  %v1395_v5 = vmul.f32 %v16026_v4, %v15955_v44  ;;  %v1399_v10 = vmul.f32 %v16038_v9, %v15955_v44 }
 0x3c1   :  { %13537 = vmatprep.subr.mxu1 %v1385_v50  ;;  %13565 = vmatprep.subr.mxu0 %v1393_v51 }
 0x3c2   :  { %13538 = vmatpush3.xpose.msra.mxu1 %v1385_v50  ;;  %13566 = vmatpush3.xpose.msra.mxu0 %v1393_v51 }
 0x3c3   :  { %13539 = vmatprep.subr.mxu1 %v1384_v52  ;;  %13567 = vmatprep.subr.mxu0 %v1392_v53 }
 0x3c6   :  { %13540 = vmatpush3.xpose.msra.mxu1 %v1384_v52  ;;  %13568 = vmatpush3.xpose.msra.mxu0 %v1392_v53 }
 0x3c7   :  { %13544 = vmatprep.subr.mxu1 %v1387_v55  ;;  %13579 = vmatprep.subr.mxu0 %v1397_v18 }
 0x3c9   :  { %13542 = vmatmul.mubr.f32.vlgmr.msra.gmra.mxu1 %v15949_v20  ;;  %13570 = vmatmul.mubr.f32.vlgmr.msra.gmra.mxu0 %v15949_v20 }
 0x3ca   :  { %13545 = vmatpush3.xpose.msra.mxu1 %v1387_v55  ;;  %13548 = vmatprep.mubr.f32.mxu1 %v15938_v40 }
 0x3cb   :  { %13580 = vmatpush3.xpose.msra.mxu0 %v1397_v18  ;;  %13583 = vmatprep.mubr.f32.mxu0 %v15938_v40 }
 0x3cc   :  { %13546 = vmatprep.subr.mxu1 %v1386_v56  ;;  %13581 = vmatprep.subr.mxu0 %v1396_v57 }
 0x3ce   :  { %13547 = vmatpush3.xpose.msra.mxu1 %v1386_v56 }
 0x3cf   :  { %13582 = vmatpush3.xpose.msra.mxu0 %v1396_v57  ;;  %13551 = vmatprep.subr.mxu1 %v1389_v59 }
 0x3d0   :  { %13593 = vmatprep.subr.mxu0 %v1401_v60 }
 0x3d1   :  { %13549 = vmatmul.mubr.f32.vlgmr.msra.gmra.mxu1 %v15949_v20 }
 0x3d2   :  { %13584 = vmatmul.mubr.f32.vlgmr.msra.gmra.mxu0 %v15949_v20  ;;  %13552 = vmatpush3.xpose.msra.mxu1 %v1389_v59 }
 0x3d3   :  { %13555 = vmatprep.mubr.f32.mxu1 %v15938_v40  ;;  %13594 = vmatpush3.msra.mxu0 %v1401_v60 }
 0x3d4   :  { %13553 = vmatprep.subr.mxu1 %v1388_v61  ;;  %13595 = vmatprep.subr.mxu0 %v1400_v62 }
 0x3d5   :  { %13596 = vmatpush3.msra.mxu0 %v1400_v62 }
 0x3d6   :  { %13607 = vmatprep.subr.mxu0 %v16011_v63  ;;  %13554 = vmatpush3.xpose.msra.mxu1 %v1388_v61 }
 0x3d7   :  { %13558 = vmatprep.subr.mxu1 %v1391_v1 }
 0x3d9   :  { %13556 = vmatmul.mubr.f32.vlgmr.msra.gmra.mxu1 %v15949_v20 }
 0x3da   :  { %13559 = vmatpush3.xpose.msra.mxu1 %v1391_v1  ;;  %13562 = vmatprep.mubr.f32.mxu1 %v15938_v40 }
 0x3db   :  { %13560 = vmatprep.subr.mxu1 %v1390_v3 }
 0x3de   :  { %13561 = vmatpush3.xpose.msra.mxu1 %v1390_v3 }
 0x3df   :  { %13572 = vmatprep.subr.mxu1 %v1395_v5 }
 0x3e1   :  { %13563 = vmatmul.mubr.f32.vlgmr.msra.gmra.mxu1 %v15949_v20 }
 0x3e2   :  { %13573 = vmatpush3.xpose.msra.mxu1 %v1395_v5  ;;  %13576 = vmatprep.mubr.f32.mxu1 %v15938_v40 }
 0x3e3   :  { %13574 = vmatprep.subr.mxu1 %v1394_v8 }
 0x3e6   :  { %13575 = vmatpush3.xpose.msra.mxu1 %v1394_v8 }
 0x3e7   :  { %13586 = vmatprep.subr.mxu1 %v1399_v10 }
 0x3e9   :  { %13577 = vmatmul.mubr.f32.vlgmr.msra.gmra.mxu1 %v15949_v20 }
 0x3ea   :  { %13587 = vmatpush3.xpose.msra.mxu1 %v1399_v10  ;;  %13590 = vmatprep.mubr.f32.mxu1 %v15938_v40 }
 0x3eb   :  { %13588 = vmatprep.subr.mxu1 %v1398_v11 }
 0x3ee   :  { %13589 = vmatpush3.xpose.msra.mxu1 %v1398_v11 }
 0x3ef   :  { %13600 = vmatprep.subr.mxu1 %v1403_v12 }
 0x3f1   :  { %13591 = vmatmul.mubr.f32.vlgmr.msra.gmra.mxu1 %v15949_v20 }
 0x3f2   :  { %13601 = vmatpush3.msra.mxu1 %v1403_v12 }
 0x3f3   :  { %13602 = vmatprep.subr.mxu1 %v1402_v14 }
 0x3f4   :  { %13603 = vmatpush3.msra.mxu1 %v1402_v14 }
 0x3f5   :  { %13614 = vmatprep.subr.mxu1 %v16053_v15 }
 0x489   :  { %v13543_v6 = vpop.f32.mrf.mxu1  ;;  %v13571_v29 = vpop.f32.mrf.mxu0 }
 0x48a   :  { %v16074_v31 = vsel %vm16064_vm13, %v13543_v6, -inf  ;;  %v16078_v32 = vsel %vm16064_vm13, %v13571_v29, -inf }
 0x48b   :  { %v1482_v33 = vpop.f32.mrf.mxu1  ;;  %v2064_v19 = vsel %vm2036_vm14, %v16078_v32, -inf  ;;  %v2040_v34 = vsel %vm2036_vm14, %v16074_v31, -inf  ;;  %v1782_v37 = vpop.f32.mrf.mxu0 }
 0x48c   :  { %v16086_v36 = vsel %vm16068_vm15, %v1482_v33, -inf  ;;  %2065 = vmax.xlane.f32.xlu0 %v2064_v19  ;;  %2041 = vmax.xlane.f32.xlu1 %v2040_v34  ;;  %v16092_v39 = vsel %vm16068_vm15, %v1782_v37, -inf }
 0x48d   :  { %v2037_v38 = vsel %vm2036_vm14, %v16086_v36, -inf  ;;  %v2061_v20 = vsel %vm2036_vm14, %v16092_v39, -inf }
 0x490   :  { %2038 = vmax.xlane.f32.xlu1 %v2037_v38 }
 0x491   :  { %v13550_v40 = vpop.f32.mrf.mxu1 }
 0x492   :  { %v13585_v42 = vpop.f32.mrf.mxu0  ;;  %v16102_v44 = vsel %vm16064_vm13, %v13550_v40, -inf }
 0x493   :  { %v16096_v43 = vsel %vm16064_vm13, %v13585_v42, -inf  ;;  %v1557_v50 = vpop.f32.mrf.mxu1  ;;  %v2046_v51 = vsel %vm2036_vm14, %v16102_v44, -inf }
 0x494   :  { %v2076_v45 = vsel %vm2036_vm14, %v16096_v43, -inf  ;;  %2062 = vmax.xlane.f32.xlu1 %v2061_v20  ;;  %v16110_v52 = vsel %vm16068_vm15, %v1557_v50, -inf  ;;  %v1932_v53 = vpop.f32.mrf.mxu0 }
 0x495   :  { %2077 = vmax.xlane.f32.xlu0 %v2076_v45  ;;  %v2043_v18 = vsel %vm2036_vm14, %v16110_v52, -inf  ;;  %v16116_v56 = vsel %vm16068_vm15, %v1932_v53, -inf }
 0x496   :  { %v2073_v59 = vsel %vm2036_vm14, %v16116_v56, -inf }
 0x498   :  { %2047 = vmax.xlane.f32.xlu1 %v2046_v51 }
 0x499   :  { %v13557_v55 = vpop.f32.mrf.mxu1 }
 0x49a   :  { %v16122_v60 = vsel %vm16064_vm13, %v13557_v55, -inf }
 0x49b   :  { %v1632_v57 = vpop.f32.mrf.mxu1  ;;  %v2052_v1 = vsel %vm2036_vm14, %v16122_v60, -inf }
 0x49c   :  { %2044 = vmax.xlane.f32.xlu1 %v2043_v18  ;;  %v16134_v5 = vsel %vm16068_vm15, %v1632_v57, -inf }
 0x49d   :  { %v2049_v10 = vsel %vm2036_vm14, %v16134_v5, -inf }
 0x4a0   :  { %2074 = vmax.xlane.f32.xlu1 %v2073_v59 }
 0x4a1   :  { %v13564_v61 = vpop.f32.mrf.mxu1 }
 0x4a2   :  { %v16126_v62 = vsel %vm16064_vm13, %v13564_v61, -inf }
 0x4a3   :  { %v2058_v3 = vsel %vm2036_vm14, %v16126_v62, -inf  ;;  %v1707_v8 = vpop.f32.mrf.mxu1 }
 0x4a4   :  { %2053 = vmax.xlane.f32.xlu1 %v2052_v1  ;;  %2059 = vmax.xlane.f32.xlu0 %v2058_v3  ;;  %v16140_v11 = vsel %vm16068_vm15, %v1707_v8, -inf }
 0x4a5   :  { %v2055_v21 = vsel %vm2036_vm14, %v16140_v11, -inf }
 0x4a8   :  { %2050 = vmax.xlane.f32.xlu1 %v2049_v10 }
 0x4a9   :  { %v13578_v12 = vpop.f32.mrf.mxu1 }
 0x4aa   :  { %v16144_v14 = vsel %vm16064_vm13, %v13578_v12, -inf }
 0x4ab   :  { %v1857_v17 = vpop.f32.mrf.mxu1  ;;  %v2070_v22 = vsel %vm2036_vm14, %v16144_v14, -inf }
 0x4ac   :  { %v16152_v24 = vsel %vm16068_vm15, %v1857_v17, -inf  ;;  %2056 = vmax.xlane.f32.xlu1 %v2055_v21  ;;  %2071 = vmax.xlane.f32.xlu0 %v2070_v22 }
 0x4ad   :  { %v2067_v25 = vsel %vm2036_vm14, %v16152_v24, -inf }
 0x4b0   :  { %2068 = vmax.xlane.f32.xlu1 %v2067_v25 }
 0x4b1   :  { %v13592_v26 = vpop.f32.mrf.mxu1 }
 0x4b2   :  { %v16158_v27 = vsel %vm16064_vm13, %v13592_v26, -inf }
 0x4b3   :  { %v2007_v6 = vpop.f32.mrf.mxu1  ;;  %v2082_v29 = vsel %vm2036_vm14, %v16158_v27, -inf }
 0x4b4   :  { %2083 = vmax.xlane.f32.xlu0 %v2082_v29  ;;  %v16164_v33 = vsel %vm16068_vm15, %v2007_v6, -inf }
 0x4b5   :  { %v2079_v19 = vsel %vm2036_vm14, %v16164_v33, -inf }
 0x4b6   :  { %2080 = vmax.xlane.f32.xlu1 %v2079_v19 }
 0x515   :  { %v2066_v34 = vpop.xlane.xlu0 %2065  ;;  %v2042_v37 = vpop.xlane.xlu1 %2041 }
 0x516   :  { %v2094_v38 = vsub.f32 %v16078_v32, %v2066_v34  ;;  %v2086_v40 = vsub.f32 %v16074_v31, %v2042_v37 }
 0x518   :  { %v2103_v42 = vmul.f32 1.442695, %v2086_v40  ;;  %v2119_v20 = vmul.f32 1.442695, %v2094_v38 }
 0x519   :  { %v2039_v45 = vpop.xlane.xlu1 %2038 }
 0x51a   :  { %v2085_v50 = vsub.f32 %v16086_v36, %v2039_v45  ;;  %14457 = vpow2.f32 %v2103_v42 }
 0x51b   :  { %14459 = vpow2.f32 %v2119_v20 }
 0x51c   :  { %v2101_v51 = vmul.f32 1.442695, %v2085_v50 }
 0x51d   :  { %v2063_v53 = vpop.xlane.xlu1 %2062 }
 0x51e   :  { %14461 = vpow2.f32 %v2101_v51  ;;  %v2078_v55 = vpop.xlane.xlu0 %2077  ;;  %v2093_v18 = vsub.f32 %v16092_v39, %v2063_v53 }
 0x51f   :  { %v2098_v57 = vsub.f32 %v16096_v43, %v2078_v55 }
 0x520   :  { %v2117_v59 = vmul.f32 1.442695, %v2093_v18 }
 0x521   :  { %v2048_v61 = vpop.xlane.xlu1 %2047  ;;  %v2127_v32 = vmul.f32 1.442695, %v2098_v57 }
 0x522   :  { %14463 = vpow2.f32 %v2117_v59  ;;  %v2088_v31 = vsub.f32 %v16102_v44, %v2048_v61 }
 0x524   :  { %v2107_v1 = vmul.f32 1.442695, %v2088_v31 }
 0x525   :  { %v2045_v3 = vpop.xlane.xlu1 %2044 }
 0x526   :  { %14465 = vpow2.f32 %v2107_v1  ;;  %v2087_v36 = vsub.f32 %v16110_v52, %v2045_v3 }
 0x527   :  { %v16175_v8 = vpop.eup %14457  ;;  %14467 = vpow2.f32 %v2127_v32 }
 0x528   :  { %v2105_v10 = vmul.f32 1.442695, %v2087_v36  ;;  %v2136_v39 = vsel %vm2036_vm14, %v16175_v8, 0.0  ;;  %v16179_v43 = vpop.eup %14459 }
 0x529   :  { %v2075_v12 = vpop.xlane.xlu1 %2074  ;;  %2137 = vadd.xlane.f32.xlu0 %v2136_v39  ;;  %v2160_v26 = vsel %vm2036_vm14, %v16179_v43, 0.0 }
 0x52a   :  { %14469 = vpow2.f32 %v2105_v10  ;;  %v2097_v17 = vsub.f32 %v16116_v56, %v2075_v12 }
 0x52b   :  { %v16182_v44 = vpop.eup %14461 }
 0x52c   :  { %v2125_v21 = vmul.f32 1.442695, %v2097_v17  ;;  %v2133_v52 = vsel %vm2036_vm14, %v16182_v44, 0.0 }
 0x52d   :  { %v2054_v22 = vpop.xlane.xlu1 %2053  ;;  %v2060_v25 = vpop.xlane.xlu0 %2059  ;;  %2134 = vadd.xlane.f32.xlu1 %v2133_v52  ;;  %2161 = vadd.xlane.f32.xlu0 %v2160_v26 }
 0x52e   :  { %14471 = vpow2.f32 %v2125_v21  ;;  %v2090_v6 = vsub.f32 %v16122_v60, %v2054_v22  ;;  %v2092_v29 = vsub.f32 %v16126_v62, %v2060_v25 }
 0x52f   :  { %v16190_v56 = vpop.eup %14463 }
 0x530   :  { %v2111_v19 = vmul.f32 1.442695, %v2090_v6  ;;  %v2115_v34 = vmul.f32 1.442695, %v2092_v29  ;;  %v2157_v37 = vsel %vm2036_vm14, %v16190_v56, 0.0 }
 0x531   :  { %v2051_v38 = vpop.xlane.xlu1 %2050  ;;  %2158 = vadd.xlane.f32.xlu1 %v2157_v37 }
 0x532   :  { %14473 = vpow2.f32 %v2111_v19  ;;  %v2089_v40 = vsub.f32 %v16134_v5, %v2051_v38 }
 0x533   :  { %v16195_v42 = vpop.eup %14465  ;;  %14475 = vpow2.f32 %v2115_v34 }
 0x534   :  { %v2109_v20 = vmul.f32 1.442695, %v2089_v40  ;;  %v2142_v60 = vsel %vm2036_vm14, %v16195_v42, 0.0  ;;  %v16199_v62 = vpop.eup %14467 }
 0x535   :  { %v2057_v45 = vpop.xlane.xlu1 %2056  ;;  %v2072_v50 = vpop.xlane.xlu0 %2071  ;;  %2143 = vadd.xlane.f32.xlu0 %v2142_v60  ;;  %v2172_v57 = vsel %vm2036_vm14, %v16199_v62, 0.0 }
 0x536   :  { %14477 = vpow2.f32 %v2109_v20  ;;  %v2091_v51 = vsub.f32 %v16140_v11, %v2057_v45  ;;  %v2096_v53 = vsub.f32 %v16144_v14, %v2072_v50 }
 0x537   :  { %v16203_v55 = vpop.eup %14469 }
 0x538   :  { %v2113_v5 = vmul.f32 1.442695, %v2091_v51  ;;  %v2123_v18 = vmul.f32 1.442695, %v2096_v53  ;;  %v2139_v59 = vsel %vm2036_vm14, %v16203_v55, 0.0 }
 0x539   :  { %v2069_v61 = vpop.xlane.xlu1 %2068  ;;  %2173 = vadd.xlane.f32.xlu0 %v2172_v57  ;;  %2140 = vadd.xlane.f32.xlu1 %v2139_v59 }
 0x53a   :  { %14479 = vpow2.f32 %v2113_v5  ;;  %v2095_v31 = vsub.f32 %v16152_v24, %v2069_v61 }
 0x53b   :  { %v16210_v32 = vpop.eup %14471  ;;  %14481 = vpow2.f32 %v2123_v18 }
 0x53c   :  { %v2121_v11 = vmul.f32 1.442695, %v2095_v31  ;;  %v2169_v14 = vsel %vm2036_vm14, %v16210_v32, 0.0  ;;  %v1404_v31 = vmul.f32 %v15994_v58, %v15940_v41 }
 0x53d   :  { %v2084_v1 = vpop.xlane.xlu0 %2083  ;;  %2170 = vadd.xlane.f32.xlu1 %v2169_v14 }
 0x53e   :  { %14483 = vpow2.f32 %v2121_v11  ;;  %v2100_v3 = vsub.f32 %v16158_v27, %v2084_v1  ;;  %v1409_v1 = vmul.f32 %v15961_v49, %v15951_v35 }
 0x53f   :  { %v16215_v36 = vpop.eup %14473  ;;  %v2081_v10 = vpop.xlane.xlu1 %2080 }
 0x540   :  { %v2131_v12 = vmul.f32 1.442695, %v2100_v3  ;;  %v2099_v39 = vsub.f32 %v16164_v33, %v2081_v10  ;;  %v2148_v24 = vsel %vm2036_vm14, %v16215_v36, 0.0  ;;  %v16220_v17 = vpop.eup %14475 }
 0x541   :  { %2149 = vadd.xlane.f32.xlu0 %v2148_v24  ;;  %v2154_v27 = vsel %vm2036_vm14, %v16220_v17, 0.0 }
 0x542   :  { %14485 = vpow2.f32 %v2131_v12  ;;  %v2129_v21 = vmul.f32 1.442695, %v2099_v39 }
 0x543   :  { %v16222_v52 = vpop.eup %14477 }
 0x544   :  { %14487 = vpow2.f32 %v2129_v21  ;;  %v2145_v22 = vsel %vm2036_vm14, %v16222_v52, 0.0  ;;  %v1406_v21 = vmul.f32 %v16014_v0, %v15940_v41 }
 0x545   :  { %2155 = vadd.xlane.f32.xlu0 %v2154_v27  ;;  %2146 = vadd.xlane.f32.xlu1 %v2145_v22 }
 0x547   :  { %v16228_v33 = vpop.eup %14479 }
 0x548   :  { %v16230_v25 = vpop.eup %14481  ;;  %v2151_v26 = vsel %vm2036_vm14, %v16228_v33, 0.0 }
 0x549   :  { %v2166_v6 = vsel %vm2036_vm14, %v16230_v25, 0.0  ;;  %2152 = vadd.xlane.f32.xlu1 %v2151_v26 }
 0x54a   :  { %2167 = vadd.xlane.f32.xlu0 %v2166_v6 }
 0x54b   :  { %v16236_v29 = vpop.eup %14483 }
 0x54c   :  { %v2163_v19 = vsel %vm2036_vm14, %v16236_v29, 0.0 }
 0x54d   :  { %2164 = vadd.xlane.f32.xlu1 %v2163_v19 }
 0x54f   :  { %v16240_v34 = vpop.eup %14485 }
 0x550   :  { %v2178_v37 = vsel %vm2036_vm14, %v16240_v34, 0.0 }
 0x551   :  { %v16244_v38 = vpop.eup %14487  ;;  %2179 = vadd.xlane.f32.xlu0 %v2178_v37 }
 0x552   :  { %v2175_v40 = vsel %vm2036_vm14, %v16244_v38, 0.0 }
 0x553   :  { %2176 = vadd.xlane.f32.xlu1 %v2175_v40 }
 0x5b2   :  { %v2138_v20 = vpop.xlane.xlu0 %2137 }
 0x5b3   :  { %14489 = vrcp.f32 %v2138_v20 }
 0x5b6   :  { %v2135_v60 = vpop.xlane.xlu1 %2134  ;;  %v2162_v45 = vpop.xlane.xlu0 %2161 }
 0x5b7   :  { %14491 = vrcp.f32 %v2135_v60 }
 0x5ba   :  { %v2159_v50 = vpop.xlane.xlu1 %2158 }
 0x5be   :  { %v2144_v51 = vpop.xlane.xlu0 %2143 }
 0x5bf   :  { %14493 = vrcp.f32 %v2144_v51 }
 0x5c0   :  { %v14490_v5 = vpop.eup %14489 }
 0x5c1   :  { %v2198_v61 = vmul.f32 %v14490_v5, %v16175_v8 }
 0x5c2   :  { %v2141_v53 = vpop.xlane.xlu1 %2140  ;;  %v2174_v59 = vpop.xlane.xlu0 %2173 }
 0x5c3   :  { %14495 = vrcp.f32 %v2141_v53 }
 0x5c4   :  { %v14492_v18 = vpop.eup %14491  ;;  %14497 = vrcp.f32 %v2159_v50  ;;  %v1408_v50 = vmul.f32 %v15961_v49, %v15940_v41 }
 0x5c5   :  { %v2197_v57 = vmul.f32 %v14492_v18, %v16182_v44 }
 0x5c6   :  { %v2171_v11 = vpop.xlane.xlu1 %2170 }
 0x5c7   :  { %13597 = vmatprep.mubr.msk.f32.mxu0 %vm2036_vm14, %v2197_v57 }
 0x5c8   :  { %13598 = vmatmul.mubr.msk.f32.vlgmr.msra.gmra.mxu0 %vm2036_vm14, %v2198_v61  ;;  %v1415_v61 = vmul.f32 %v16038_v9, %v15951_v35 }
 0x5c9   :  { %13608 = vmatpush3.msra.mxu0 %v16011_v63 }
 0x5ca   :  { %13609 = vmatprep.subr.mxu0 %v1404_v31  ;;  %v2150_v14 = vpop.xlane.xlu0 %2149 }
 0x5cb   :  { %13610 = vmatpush3.msra.mxu0 %v1404_v31  ;;  %14499 = vrcp.f32 %v2150_v14 }
 0x5cc   :  { %13621 = vmatprep.subr.mxu0 %v1409_v1  ;;  %v14494_v3 = vpop.eup %14493 }
 0x5cd   :  { %v2200_v39 = vmul.f32 %v14494_v3, %v16195_v42  ;;  %v14172_v3 = vld [vmem:[%s18774_s6] sm:$0xff]  }
 0x5ce   :  { %v2147_v44 = vpop.xlane.xlu1 %2146  ;;  %v2156_v8 = vpop.xlane.xlu0 %2155 }
 0x5cf   :  { %14501 = vrcp.f32 %v2147_v44  ;;  %v14170_v44 = vld [vmem:[%s18774_s6 + $0x10] sm:$0xff]  }
 0x5d0   :  { %v14496_v10 = vpop.eup %14495  ;;  %14503 = vrcp.f32 %v2162_v45 }
 0x5d1   :  { %14505 = vrcp.f32 %v2156_v8  ;;  %v2199_v63 = vmul.f32 %v14496_v10, %v16203_v55  ;;  %v1411_v55 = vmul.f32 %v16026_v4, %v15951_v35  ;;  %v14498_v22 = vpop.eup %14497  ;;  %v14171_v8 = vld [vmem:[%s18774_s6 + $0x8] sm:$0xff]  }
 0x5d2   :  { %v2153_v12 = vpop.xlane.xlu1 %2152  ;;  %v2205_v45 = vmul.f32 %v14498_v22, %v16190_v56 }
 0x5d3   :  { %14507 = vrcp.f32 %v2153_v12  ;;  %13604 = vmatprep.mubr.msk.f32.mxu1 %vm2036_vm14, %v2199_v63  ;;  %v2168_v24 = vpop.xlane.xlu0 %2167 }
 0x5d4   :  { %13605 = vmatmul.mubr.msk.f32.vlgmr.msra.gmra.mxu1 %vm2036_vm14, %v2200_v39  ;;  %14509 = vrcp.f32 %v2171_v11 }
 0x5d5   :  { %13615 = vmatpush3.msra.mxu1 %v16053_v15 }
 0x5d6   :  { %v2165_v27 = vpop.xlane.xlu1 %2164  ;;  %13616 = vmatprep.subr.mxu1 %v1406_v21 }
 0x5d7   :  { %14511 = vrcp.f32 %v2165_v27  ;;  %13617 = vmatpush3.msra.mxu1 %v1406_v21 }
 0x5d8   :  { %14513 = vrcp.f32 %v2168_v24  ;;  %13628 = vmatprep.subr.mxu1 %v1411_v55  ;;  %v14500_v26 = vpop.eup %14499 }
 0x5d9   :  { %14515 = vrcp.f32 %v2174_v59  ;;  %v2202_v20 = vmul.f32 %v14500_v26, %v16215_v36  ;;  %v1413_v36 = vmul.f32 %v15977_v54, %v15951_v35 }
 0x5da   :  { %v2180_v42 = vpop.xlane.xlu0 %2179 }
 0x5db   :  { %14517 = vrcp.f32 %v2180_v42 }
 0x5dc   :  { %v2177_v6 = vpop.xlane.xlu1 %2176  ;;  %v14502_v19 = vpop.eup %14501 }
 0x5dd   :  { %14519 = vrcp.f32 %v2177_v6  ;;  %v14504_v37 = vpop.eup %14503  ;;  %v2201_v15 = vmul.f32 %v14502_v19, %v16222_v52 }
 0x5de   :  { %v14506_v40 = vpop.eup %14505  ;;  %v2206_v56 = vmul.f32 %v14504_v37, %v16179_v43 }
 0x5df   :  { %13611 = vmatprep.mubr.msk.f32.mxu0 %vm2036_vm14, %v2201_v15  ;;  %v2204_v52 = vmul.f32 %v14506_v40, %v16220_v17  ;;  %v1410_v17 = vmul.f32 %v16026_v4, %v15940_v41 }
 0x5e0   :  { %v14508_v60 = vpop.eup %14507  ;;  %13612 = vmatmul.mubr.msk.f32.vlgmr.msra.gmra.mxu0 %vm2036_vm14, %v2202_v20 }
 0x5e1   :  { %v2203_v51 = vmul.f32 %v14508_v60, %v16228_v33  ;;  %13622 = vmatpush3.msra.mxu0 %v1409_v1  ;;  %13625 = vmatprep.mubr.msk.f32.mxu0 %vm2036_vm14, %v2205_v45  ;;  %v14510_v53 = vpop.eup %14509  ;;  %v1412_v33 = vmul.f32 %v15977_v54, %v15940_v41  ;;  %v14169_v1 = vld [vmem:[%s18774_s6 + $0x18] sm:$0xff]  }
 0x5e2   :  { %13623 = vmatprep.subr.mxu0 %v1408_v50  ;;  %v2209_v43 = vmul.f32 %v14510_v53, %v16210_v32  ;;  %v1414_v32 = vmul.f32 %v16038_v9, %v15940_v41  ;;  %v14165_v41 = vld [vmem:[%s18774_s6 + $0x38] sm:$0xff]  }
 0x5e3   :  { %13618 = vmatprep.mubr.msk.f32.mxu1 %vm2036_vm14, %v2203_v51  ;;  %13624 = vmatpush3.msra.mxu0 %v1408_v50 }
 0x5e4   :  { %v14512_v5 = vpop.eup %14511  ;;  %13619 = vmatmul.mubr.msk.f32.vlgmr.msra.gmra.mxu1 %vm2036_vm14, %v2204_v52  ;;  %13635 = vmatprep.subr.mxu0 %v1413_v36 }
 0x5e5   :  { %v14514_v18 = vpop.eup %14513  ;;  %13626 = vmatmul.mubr.msk.f32.vlgmr.msra.gmra.mxu0 %vm2036_vm14, %v2206_v56  ;;  %v2207_v57 = vmul.f32 %v14512_v5, %v16236_v29  ;;  %13629 = vmatpush3.msra.mxu1 %v1411_v55 }
 0x5e6   :  { %v14516_v59 = vpop.eup %14515  ;;  %13636 = vmatpush3.msra.mxu0 %v1413_v36  ;;  %13630 = vmatprep.subr.mxu1 %v1410_v17  ;;  %v2208_v31 = vmul.f32 %v14514_v18, %v16230_v25 }
 0x5e7   :  { %13637 = vmatprep.subr.mxu0 %v1412_v33  ;;  %13639 = vmatprep.mubr.msk.f32.mxu0 %vm2036_vm14, %v2209_v43  ;;  %v2210_v29 = vmul.f32 %v14516_v59, %v16199_v62  ;;  %v14166_v62 = vld [vmem:[%s18774_s6 + $0x30] sm:$0xff]   ;;  %v12024_v43 = vld [vmem:[%s18775_s7] ss:$0 sm:$0xff] }
 0x5e8   :  { %13631 = vmatpush3.msra.mxu1 %v1410_v17  ;;  %v14518_v11 = vpop.eup %14517  ;;  %13638 = vmatpush3.msra.mxu0 %v1412_v33 }
 0x5e9   :  { %13632 = vmatprep.mubr.msk.f32.mxu1 %vm2036_vm14, %v2207_v57  ;;  %13642 = vmatprep.subr.mxu1 %v1415_v61  ;;  %v2212_v25 = vmul.f32 %v14518_v11, %v16240_v34  ;;  %v14167_v34 = vld [vmem:[%s18774_s6 + $0x28] sm:$0xff]  }
 0x5ea   :  { %v14520_v14 = vpop.eup %14519  ;;  %13633 = vmatmul.mubr.msk.f32.vlgmr.msra.gmra.mxu1 %vm2036_vm14, %v2208_v31  ;;  %13640 = vmatmul.mubr.msk.f32.vlgmr.msra.gmra.mxu0 %vm2036_vm14, %v2210_v29 }
 0x5eb   :  { %13643 = vmatpush3.msra.mxu1 %v1415_v61  ;;  %v2211_v35 = vmul.f32 %v14520_v14, %v16244_v38  ;;  %13649 = vmatprep.subr.bf16.mxu0 %v14833_v48  ;;  %v14168_v38 = vld [vmem:[%s18774_s6 + $0x20] sm:$0xff]  }
 0x5ec   :  { %13644 = vmatprep.subr.mxu1 %v1414_v32  ;;  %13665 = vmatprep.mubr.msk.bf16.mxu0 %vm14834_vm1, %v14833_v48 }
 0x5ed   :  { %13645 = vmatpush3.msra.mxu1 %v1414_v32  ;;  %13646 = vmatprep.mubr.msk.f32.mxu1 %vm2036_vm14, %v2211_v35 }
 0x5ee   :  { %13647 = vmatmul.mubr.msk.f32.vlgmr.msra.gmra.mxu1 %vm2036_vm14, %v2212_v25  ;;  %13650 = vmatpush3.bf16.msra.mxu0 %v14165_v41  ;;  %v14173_v41 = vld [vmem:[%s18778_s10 + $0x70] ss:$8 sps:$4 sm:$0xff]  }
 0x5ef   :  { %3173 = vmatprep.mubr.bf16.mxu1 %v14831_v2  ;;  %13651 = vmatprep.subr.bf16.mxu0 %v14833_v48 }
 0x5f2   :  { %13652 = vmatpush3.bf16.msra.mxu0 %v14166_v62  ;;  %v14175_v62 = vld [vmem:[%s18778_s10 + $0x74] ss:$8 sps:$4 sm:$0xff]  }
 0x5f3   :  { %13653 = vmatprep.subr.bf16.mxu0 %v14833_v48  ;;  %3141 = vmatprep.subr.bf16.mxu1 %v14175_v62  ;;  %v14203_v62 = vld [vmem:[%s18780_s12 + $0x60] sm:$0xff]  }
 0x5f4   :  { %3142 = vmatpush1.bf16.msra.mxu1 %v14173_v41  ;;  %v14202_v41 = vld [vmem:[%s18780_s12 + $0x28] sm:$0xff]  }
 0x5f6   :  { %13654 = vmatpush3.bf16.msra.mxu0 %v14167_v34 }
 0x5f7   :  { %13655 = vmatprep.subr.bf16.mxu0 %v14833_v48 }
 0x5fa   :  { %13656 = vmatpush3.bf16.msra.mxu0 %v14168_v38 }
 0x5fb   :  { %13657 = vmatprep.subr.bf16.mxu0 %v14833_v48 }
 0x5fe   :  { %13658 = vmatpush3.bf16.msra.mxu0 %v14169_v1 }
 0x5ff   :  { %13659 = vmatprep.subr.bf16.mxu0 %v14833_v48 }
 0x602   :  { %13660 = vmatpush3.bf16.msra.mxu0 %v14170_v44 }
 0x603   :  { %13661 = vmatprep.subr.bf16.mxu0 %v14833_v48 }
 0x606   :  { %13662 = vmatpush3.bf16.msra.mxu0 %v14171_v8 }
 0x607   :  { %13663 = vmatprep.subr.bf16.mxu0 %v14833_v48 }
 0x60a   :  { %13664 = vmatpush3.bf16.msra.mxu0 %v14172_v3 }
 0x688   :  { %v13599_v10 = vpop.f32.mrf.mxu0 }
 0x68a   :  { %v2285_v63 = vpop.f32.mrf.mxu0 }
 0x694   :  { %v13606_v12 = vpop.f32.mrf.mxu1 }
 0x695   :  { %v2868_v24 = vadd.f32 %v13606_v12, %v13599_v10 }
 0x696   :  { %v2366_v39 = vpop.f32.mrf.mxu1 }
 0x697   :  { %v2861_v27 = vadd.f32 %v2366_v39, %v2285_v63  ;;  %v14176_v63 = vld [vmem:[%s18778_s10 + $0x60] ss:$8 sps:$4 sm:$0xff]   ;;  %v14178_v39 = vld [vmem:[%s18778_s10 + $0x64] ss:$8 sps:$4 sm:$0xff]  }
 0x698   :  { %3143 = vmatprep.subr.bf16.mxu1 %v14178_v39  ;;  %v16465_v39 = vsub.s32 1, %v16057_v16 }
 0x699   :  { %3144 = vmatpush1.bf16.msra.mxu1 %v14176_v63  ;;  %v3049_v63 = vld [vmem:[%s18779_s11] sm:$0x3] }
 0x6a0   :  { %v13613_v21 = vpop.f32.mrf.mxu0 }
 0x6a1   :  { %v2869_v55 = vadd.f32 %v13613_v21, %v2868_v24  ;;  %v14179_v24 = vld [vmem:[%s18778_s10 + $0x50] ss:$8 sps:$4 sm:$0xff]   ;;  %v14181_v21 = vld [vmem:[%s18778_s10 + $0x54] ss:$8 sps:$4 sm:$0xff]  }
 0x6a2   :  { %v2447_v42 = vpop.f32.mrf.mxu0  ;;  %3145 = vmatprep.subr.bf16.mxu1 %v14181_v21  ;;  %v3058_v21 = vrot.slane %v3049_v63, %v16465_v39 }
 0x6a3   :  { %v2862_v26 = vadd.f32 %v2861_v27, %v2447_v42  ;;  %v14184_v27 = vld [vmem:[%s18778_s10 + $0x44] ss:$8 sps:$4 sm:$0xff]   ;;  %3146 = vmatpush1.bf16.msra.mxu1 %v14179_v24  ;;  %v14187_v42 = vld [vmem:[%s18778_s10 + $0x34] ss:$8 sps:$4 sm:$0xff]  }
 0x6a4   :  { %v13620_v22 = vpop.f32.mrf.mxu1  ;;  %3147 = vmatprep.subr.bf16.mxu1 %v14184_v27 }
 0x6a5   :  { %v2870_v6 = vadd.f32 %v13620_v22, %v2869_v55  ;;  %v13627_v19 = vpop.f32.mrf.mxu0  ;;  %v14182_v55 = vld [vmem:[%s18778_s10 + $0x40] ss:$8 sps:$4 sm:$0xff]   ;;  %v14185_v22 = vld [vmem:[%s18778_s10 + $0x30] ss:$8 sps:$4 sm:$0xff]  }
 0x6a6   :  { %v2528_v37 = vpop.f32.mrf.mxu1 }
 0x6a7   :  { %v2871_v15 = vadd.f32 %v13627_v19, %v2870_v6  ;;  %v2863_v40 = vadd.f32 %v2862_v26, %v2528_v37  ;;  %v2609_v20 = vpop.f32.mrf.mxu0  ;;  %3148 = vmatpush1.bf16.msra.mxu1 %v14182_v55  ;;  %v14190_v26 = vld [vmem:[%s18778_s10 + $0x24] ss:$8 sps:$4 sm:$0xff]   ;;  %v14188_v6 = vld [vmem:[%s18778_s10 + $0x20] ss:$8 sps:$4 sm:$0xff]   ;;  %v14193_v19 = vld [vmem:[%s18778_s10 + $0x14] ss:$8 sps:$4 sm:$0xff]  }
 0x6a8   :  { %3149 = vmatprep.subr.bf16.mxu1 %v14187_v42  ;;  %v14191_v37 = vld [vmem:[%s18778_s10 + $0x10] ss:$8 sps:$4 sm:$0xff]  }
 0x6a9   :  { %v2864_v60 = vadd.f32 %v2863_v40, %v2609_v20  ;;  %v14194_v40 = vld [vmem:[%s18778_s10] ss:$8 sps:$4 sm:$0xff]  }
 0x6aa   :  { %v13634_v45 = vpop.f32.mrf.mxu1  ;;  %v13641_v51 = vpop.f32.mrf.mxu0 }
 0x6ab   :  { %v2872_v50 = vadd.f32 %v13634_v45, %v2871_v15  ;;  %3150 = vmatpush1.bf16.msra.mxu1 %v14185_v22  ;;  %v14196_v15 = vld [vmem:[%s18778_s10 + $0x4] ss:$8 sps:$4 sm:$0xff]  }
 0x6ac   :  { %v2690_v52 = vpop.f32.mrf.mxu1  ;;  %v2771_v36 = vpop.f32.mrf.mxu0  ;;  %3151 = vmatprep.subr.bf16.mxu1 %v14190_v26 }
 0x6ad   :  { %v2865_v53 = vadd.f32 %v2864_v60, %v2690_v52  ;;  %v2873_v5 = vadd.f32 %v13641_v51, %v2872_v50 }
 0x6ae   :  { %v13648_v56 = vpop.f32.mrf.mxu1 }
 0x6af   :  { %v2866_v18 = vadd.f32 %v2865_v53, %v2771_v36  ;;  %v2874_v33 = vadd.f32 %v13648_v56, %v2873_v5  ;;  %3152 = vmatpush1.bf16.msra.mxu1 %v14188_v6  ;;  %v12033_v56 = vld [vmem:[%s18776_s8] ss:$0 sm:$0xff] }
 0x6b0   :  { %v2852_v17 = vpop.f32.mrf.mxu1  ;;  %3153 = vmatprep.subr.bf16.mxu1 %v14193_v19 }
 0x6b1   :  { %v2867_v57 = vadd.f32 %v2866_v18, %v2852_v17 }
 0x6b3   :  { %v2875_v59 = vpack.c.bf16 %v2874_v33, %v2867_v57  ;;  %3154 = vmatpush1.bf16.msra.mxu1 %v14191_v37  ;;  %v12034_v33 = vld [vmem:[%s18777_s9] ss:$0 sm:$0xff] }
 0x6b4   :  { %3155 = vmatprep.subr.bf16.mxu1 %v14196_v15 }
 0x6b5   :  { %13666 = vmatmul.mubr.bf16.vlgmr.msra.gmra.mxu0 %v2875_v59 }
 0x6b7   :  { %3156 = vmatpush1.bf16.msra.mxu1 %v14194_v40 }
 0x775   :  { %v2981_v61 = vpop.f32.mrf.mxu0 }
 0x776   :  { %v2982_v31 = vadd.f32 %v12024_v43, %v2981_v61 }
 0x777   :  { %v13667_v11 = vpop.f32.mrf.mxu0 }
 0x778   :  { %v16341_v29 = vadd.f32 %v2982_v31, %v15827_v13  ;;  %v14197_v31 = vld [vmem:[%s18780_s12 + $0x78] sm:$0xff]  }
 0x779   :  { %v2984_v14 = vpop.f32.mrf.mxu0  ;;  %v14198_v11 = vld [vmem:[%s18780_s12 + $0x38] sm:$0xff]   ;;  %13183 = vmatprep.subr.bf16.mxu0 %v14197_v31 }
 0x77a   :  { %v2985_v32 = vadd.f32 %v12024_v43, %v2984_v14  ;;  %2992 = vadd.xlane.f32.xlu1 %v16341_v29  ;;  %13184 = vmatpush3.bf16.msra.mxu0 %v14198_v11  ;;  %v14199_v14 = vld [vmem:[%s18780_s12 + $0x70] sm:$0xff]  }
 0x77b   :  { %v13668_v35 = vpop.f32.mrf.mxu0  ;;  %13185 = vmatprep.subr.bf16.mxu0 %v14199_v14 }
 0x77c   :  { %v16345_v25 = vadd.f32 %v2985_v32, %v15830_v46  ;;  %v14200_v32 = vld [vmem:[%s18780_s12 + $0x30] sm:$0xff]   ;;  %v14201_v35 = vld [vmem:[%s18780_s12 + $0x68] sm:$0xff]  }
 0x77e   :  { %2994 = vadd.xlane.f32.xlu0 %v16345_v25  ;;  %13186 = vmatpush3.bf16.msra.mxu0 %v14200_v32 }
 0x77f   :  { %13187 = vmatprep.subr.bf16.mxu0 %v14201_v35 }
 0x782   :  { %13188 = vmatpush3.bf16.msra.mxu0 %v14202_v41 }
 0x783   :  { %13189 = vmatprep.subr.bf16.mxu0 %v14203_v62 }
 0x803   :  { %v2993_v13 = vpop.xlane.xlu1 %2992 }
 0x804   :  { %v2996_v34 = vmul.f32 0.015625, %v2993_v13  ;;  %v14204_v13 = vld [vmem:[%s18780_s12 + $0x20] sm:$0xff]  }
 0x805   :  { %13190 = vmatpush3.bf16.msra.mxu0 %v14204_v13 }
 0x806   :  { %v2998_v38 = vsub.f32 %v16341_v29, %v2996_v34  ;;  %v14205_v34 = vld [vmem:[%s18780_s12 + $0x58] sm:$0xff]  }
 0x807   :  { %v2995_v1 = vpop.xlane.xlu0 %2994  ;;  %13191 = vmatprep.subr.bf16.mxu0 %v14205_v34 }
 0x808   :  { %v2997_v44 = vmul.f32 0.015625, %v2995_v1  ;;  %v3000_v46 = vsel %vm63_vm0, %v2998_v38, 0.0  ;;  %v14206_v38 = vld [vmem:[%s18780_s12 + $0x18] sm:$0xff]   ;;  %v14207_v1 = vld [vmem:[%s18780_s12 + $0x50] sm:$0xff]  }
 0x809   :  { %v3002_v8 = vmul.f32 %v3000_v46, %v3000_v46  ;;  %13192 = vmatpush3.bf16.msra.mxu0 %v14206_v38 }
 0x80a   :  { %v2999_v3 = vsub.f32 %v16345_v25, %v2997_v44  ;;  %v14208_v44 = vld [vmem:[%s18780_s12 + $0x10] sm:$0xff]   ;;  %13193 = vmatprep.subr.bf16.mxu0 %v14207_v1 }
 0x80b   :  { %3004 = vadd.xlane.f32.xlu1 %v3002_v8  ;;  %v14210_v8 = vld [vmem:[%s18780_s12 + $0x8] sm:$0xff]  }
 0x80c   :  { %v3001_v10 = vsel %vm63_vm0, %v2999_v3, 0.0  ;;  %v14211_v3 = vld [vmem:[%s18780_s12 + $0x40] sm:$0xff]  }
 0x80d   :  { %v3003_v12 = vmul.f32 %v3001_v10, %v3001_v10  ;;  %13194 = vmatpush3.bf16.msra.mxu0 %v14208_v44 }
 0x80f   :  { %3006 = vadd.xlane.f32.xlu0 %v3003_v12  ;;  %v16459_v12 = vsub.s32 0, %v16057_v16 }
 0x811   :  { %v3054_v24 = vrot.slane %v3049_v63, %v16459_v12 }
 0x894   :  { %v3005_v20 = vpop.xlane.xlu1 %3004 }
 0x895   :  { %v3008_v60 = vmul.f32 0.015625, %v3005_v20 }
 0x897   :  { %v3010_v45 = vadd.f32 1e-05, %v3008_v60 }
 0x898   :  { %v3007_v50 = vpop.xlane.xlu0 %3006 }
 0x899   :  { %14521 = vrsqrt.f32 %v3010_v45  ;;  %v3009_v51 = vmul.f32 0.015625, %v3007_v50 }
 0x89b   :  { %v3011_v52 = vadd.f32 1e-05, %v3009_v51 }
 0x89d   :  { %14523 = vrsqrt.f32 %v3011_v52 }
 0x8a6   :  { %v14522_v53 = vpop.eup %14521 }
 0x8a7   :  { %v3014_v36 = vmul.f32 %v14522_v53, %v3000_v46  ;;  %v14209_v46 = vld [vmem:[%s18780_s12 + $0x48] sm:$0xff]  }
 0x8a8   :  { %13195 = vmatprep.subr.bf16.mxu0 %v14209_v46 }
 0x8a9   :  { %v3022_v17 = vmul.f32 %v12033_v56, %v3014_v36  ;;  %13196 = vmatpush3.bf16.msra.mxu0 %v14210_v8 }
 0x8aa   :  { %v14524_v5 = vpop.eup %14523  ;;  %13197 = vmatprep.subr.bf16.mxu0 %v14211_v3 }
 0x8ab   :  { %v3015_v18 = vmul.f32 %v14524_v5, %v3001_v10  ;;  %v3030_v59 = vadd.f32 %v12034_v33, %v3022_v17  ;;  %v14212_v10 = vld [vmem:[%s18780_s12] sm:$0xff]  }
 0x8ad   :  { %v3023_v57 = vmul.f32 %v12033_v56, %v3015_v18  ;;  %13198 = vmatpush3.bf16.msra.mxu0 %v14212_v10 }
 0x8ae   :  { %13669 = vmatprep.subr.bf16.mxu0 %v14833_v48 }
 0x8af   :  { %v3031_v43 = vadd.f32 %v12034_v33, %v3023_v57 }
 0x8b1   :  { %v3032_v61 = vpack.c.bf16 %v3031_v43, %v3030_v59 }
 0x8b3   :  { %3174 = vmatmul.mubr.bf16.vlgmr.msra.gmra.mxu1 %v3032_v61 }
 0x8b4   :  { %3712 = vmatprep.mubr.bf16.mxu1 %v14831_v2 }
 0x973   :  { %v3175_v27 = vpop.f32.mrf.mxu1 }
 0x974   :  { %v16469_v55 = vadd.f32 %v3175_v27, %v3054_v24 }
 0x975   :  { %v3177_v42 = vpop.f32.mrf.mxu1 }
 0x976   :  { %v16472_v22 = vmul.f32 0.70710677, %v16469_v55  ;;  %v16474_v26 = vadd.f32 %v3177_v42, %v3058_v21 }
 0x977   :  { %v3179_v6 = vpop.f32.mrf.mxu1 }
 0x978   :  { %v3188_v19 = vand.u32 2147483647, %v16472_v22  ;;  %v16478_v37 = vmul.f32 0.70710677, %v16474_v26  ;;  %v16480_v15 = vadd.f32 %v3179_v6, %v3054_v24  ;;  %vm3268_vm3 = vcmp.ge.f32.partialorder %v16472_v22, 0.0 }
 0x979   :  { %v3181_v40 = vpop.f32.mrf.mxu1 }
 0x97a   :  { %v3192_v20 = vmul.f32 0.3275911, %v3188_v19  ;;  %v3189_v60 = vand.u32 2147483647, %v16478_v37  ;;  %v16484_v45 = vmul.f32 0.70710677, %v16480_v15  ;;  %v16486_v50 = vadd.f32 %v3181_v40, %v3058_v21 }
 0x97b   :  { %v3244_v59 = vsub.f32 0.0, %v3188_v19  ;;  %vm3269_vm2 = vcmp.ge.f32.partialorder %v16478_v37, 0.0  ;;  %v3281_v37 = vmul.f32 0.5, %v16474_v26 }
 0x97c   :  { %v3196_v51 = vadd.f32 1.0, %v3192_v20  ;;  %v3193_v52 = vmul.f32 0.3275911, %v3189_v60  ;;  %v3190_v53 = vand.u32 2147483647, %v16484_v45  ;;  %v3245_v43 = vsub.f32 0.0, %v3189_v60 }
 0x97d   :  { %v16490_v36 = vmul.f32 0.70710677, %v16486_v50  ;;  %v3248_v61 = vmul.f32 %v3244_v59, %v3188_v19  ;;  %vm3270_vm4 = vcmp.ge.f32.partialorder %v16484_v45, 0.0 }
 0x97e   :  { %14525 = vrcp.f32 %v3196_v51  ;;  %v3197_v56 = vadd.f32 1.0, %v3193_v52  ;;  %v3194_v5 = vmul.f32 0.3275911, %v3190_v53  ;;  %v3246_v31 = vsub.f32 0.0, %v3190_v53 }
 0x97f   :  { %v3191_v18 = vand.u32 2147483647, %v16490_v36  ;;  %v3249_v14 = vmul.f32 %v3245_v43, %v3189_v60  ;;  %v3252_v35 = vmul.f32 1.442695, %v3248_v61  ;;  %vm3271_vm5 = vcmp.ge.f32.partialorder %v16490_v36, 0.0 }
 0x980   :  { %14527 = vrcp.f32 %v3197_v56  ;;  %v3198_v17 = vadd.f32 1.0, %v3194_v5  ;;  %v3250_v62 = vmul.f32 %v3246_v31, %v3190_v53 }
 0x981   :  { %v3195_v33 = vmul.f32 0.3275911, %v3191_v18  ;;  %v3247_v41 = vsub.f32 0.0, %v3191_v18  ;;  %v3254_v1 = vmul.f32 1.442695, %v3249_v14 }
 0x982   :  { %14529 = vrcp.f32 %v3198_v17  ;;  %v3256_v63 = vmul.f32 1.442695, %v3250_v62 }
 0x983   :  { %v3199_v57 = vadd.f32 1.0, %v3195_v33  ;;  %v3251_v8 = vmul.f32 %v3247_v41, %v3191_v18 }
 0x985   :  { %14531 = vrcp.f32 %v3199_v57  ;;  %v3258_v40 = vmul.f32 1.442695, %v3251_v8 }
 0x986   :  { %14533 = vpow2.f32 %v3252_v35 }
 0x987   :  { %14535 = vpow2.f32 %v3254_v1 }
 0x988   :  { %14537 = vpow2.f32 %v3256_v63 }
 0x989   :  { %14539 = vpow2.f32 %v3258_v40 }
 0x98b   :  { %v14526_v11 = vpop.eup %14525 }
 0x98c   :  { %v3208_v32 = vmul.f32 1.0614054, %v14526_v11 }
 0x98d   :  { %v14528_v13 = vpop.eup %14527 }
 0x98e   :  { %v12051_v34 = vadd.f32 -1.4531521, %v3208_v32  ;;  %v3209_v38 = vmul.f32 1.0614054, %v14528_v13 }
 0x98f   :  { %v14530_v44 = vpop.eup %14529 }
 0x990   :  { %v3216_v46 = vmul.f32 %v14526_v11, %v12051_v34  ;;  %v12052_v3 = vadd.f32 -1.4531521, %v3209_v38  ;;  %v3210_v10 = vmul.f32 1.0614054, %v14530_v44 }
 0x992   :  { %v3220_v24 = vadd.f32 1.4214138, %v3216_v46  ;;  %v14532_v21 = vpop.eup %14531  ;;  %v3217_v27 = vmul.f32 %v14528_v13, %v12052_v3  ;;  %v12053_v42 = vadd.f32 -1.4531521, %v3210_v10 }
 0x993   :  { %v3211_v19 = vmul.f32 1.0614054, %v14532_v21  ;;  %v14534_v32 = vpop.eup %14533 }
 0x994   :  { %v3224_v6 = vmul.f32 %v14526_v11, %v3220_v24  ;;  %v3221_v20 = vadd.f32 1.4214138, %v3217_v27  ;;  %v3218_v60 = vmul.f32 %v14530_v44, %v12053_v42  ;;  %v14536_v46 = vpop.eup %14535 }
 0x995   :  { %v12054_v52 = vadd.f32 -1.4531521, %v3211_v19  ;;  %v14538_v24 = vpop.eup %14537 }
 0x996   :  { %v12055_v51 = vadd.f32 -0.28449672, %v3224_v6  ;;  %v3225_v53 = vmul.f32 %v14528_v13, %v3221_v20  ;;  %v3222_v56 = vadd.f32 1.4214138, %v3218_v60  ;;  %v14540_v40 = vpop.eup %14539 }
 0x997   :  { %v3219_v18 = vmul.f32 %v14532_v21, %v12054_v52 }
 0x998   :  { %v3232_v5 = vmul.f32 %v14526_v11, %v12055_v51  ;;  %v12056_v17 = vadd.f32 -0.28449672, %v3225_v53  ;;  %v3226_v33 = vmul.f32 %v14530_v44, %v3222_v56 }
 0x999   :  { %v3223_v59 = vadd.f32 1.4214138, %v3219_v18 }
 0x99a   :  { %v3236_v57 = vadd.f32 0.2548296, %v3232_v5  ;;  %v3233_v43 = vmul.f32 %v14528_v13, %v12056_v17  ;;  %v12057_v61 = vadd.f32 -0.28449672, %v3226_v33  ;;  %v3282_v33 = vmul.f32 0.5, %v16480_v15 }
 0x99b   :  { %v3227_v14 = vmul.f32 %v14532_v21, %v3223_v59  ;;  %v3283_v59 = vmul.f32 0.5, %v16486_v50  ;;  %v12075_v50 = vld [vmem:[%s18802_s2] ss:$0 sm:$0xff] }
 0x99c   :  { %v3240_v31 = vmul.f32 %v14526_v11, %v3236_v57  ;;  %v3237_v35 = vadd.f32 0.2548296, %v3233_v43  ;;  %v3234_v41 = vmul.f32 %v14530_v44, %v12057_v61  ;;  %v3280_v43 = vmul.f32 0.5, %v16469_v55 }
 0x99d   :  { %v12058_v34 = vadd.f32 -0.28449672, %v3227_v14 }
 0x99e   :  { %v3260_v62 = vmul.f32 %v14534_v32, %v3240_v31  ;;  %v3241_v38 = vmul.f32 %v14528_v13, %v3237_v35  ;;  %v3238_v1 = vadd.f32 0.2548296, %v3234_v41 }
 0x99f   :  { %v3235_v8 = vmul.f32 %v14532_v21, %v12058_v34 }
 0x9a0   :  { %v3264_v3 = vsub.f32 1.0, %v3260_v62  ;;  %v3261_v10 = vmul.f32 %v14536_v46, %v3241_v38  ;;  %v3242_v63 = vmul.f32 %v14530_v44, %v3238_v1 }
 0x9a1   :  { %v3239_v27 = vadd.f32 0.2548296, %v3235_v8  ;;  %v14213_v8 = vld [vmem:[%s18773_s5 + $0x168] ss:$12 sps:$4 sm:$0xff]  }
 0x9a2   :  { %v3265_v42 = vsub.f32 1.0, %v3261_v10  ;;  %v3262_v6 = vmul.f32 %v14538_v24, %v3242_v63  ;;  %v3272_v11 = vsub.f32 0.0, %v3264_v3 }
 0x9a3   :  { %v3243_v19 = vmul.f32 %v14532_v21, %v3239_v27 }
 0x9a4   :  { %v3273_v20 = vsub.f32 0.0, %v3265_v42  ;;  %v3266_v60 = vsub.f32 1.0, %v3262_v6  ;;  %v3276_v44 = vsel %vm3268_vm3, %v3264_v3, %v3272_v11  ;;  %v14216_v3 = vld [vmem:[%s18773_s5 + $0x170] ss:$12 sps:$4 sm:$0xff]  }
 0x9a5   :  { %v3263_v51 = vmul.f32 %v14540_v40, %v3243_v19  ;;  %v3284_v21 = vadd.f32 1.0, %v3276_v44  ;;  %v14227_v44 = vld [vmem:[%s18773_s5 + $0x124] ss:$12 sps:$4 sm:$0xff]  }
 0x9a6   :  { %v3274_v52 = vsub.f32 0.0, %v3266_v60  ;;  %v3277_v13 = vsel %vm3269_vm2, %v3265_v42, %v3273_v20  ;;  %v14217_v20 = vld [vmem:[%s18773_s5 + $0x150] ss:$12 sps:$4 sm:$0xff]  }
 0x9a7   :  { %v3267_v53 = vsub.f32 1.0, %v3263_v51  ;;  %v3285_v17 = vadd.f32 1.0, %v3277_v13  ;;  %v3288_v14 = vmul.f32 %v3284_v21, %v3280_v43  ;;  %v14220_v51 = vld [vmem:[%s18773_s5 + $0x158] ss:$12 sps:$4 sm:$0xff]   ;;  %v14223_v13 = vld [vmem:[%s18773_s5 + $0x13c] ss:$12 sps:$4 sm:$0xff]  }
 0x9a8   :  { %v3278_v56 = vsel %vm3270_vm4, %v3266_v60, %v3274_v52  ;;  %v14219_v60 = vld [vmem:[%s18773_s5 + $0x154] ss:$12 sps:$4 sm:$0xff]   ;;  %v14221_v52 = vld [vmem:[%s18773_s5 + $0x138] ss:$12 sps:$4 sm:$0xff]  }
 0x9a9   :  { %v3286_v5 = vadd.f32 1.0, %v3278_v56  ;;  %v3275_v18 = vsub.f32 0.0, %v3267_v53  ;;  %v3289_v61 = vmul.f32 %v3285_v17, %v3281_v37  ;;  %v14228_v56 = vld [vmem:[%s18773_s5 + $0x128] ss:$12 sps:$4 sm:$0xff]   ;;  %v14232_v17 = vld [vmem:[%s18773_s5 + $0x110] ss:$12 sps:$4 sm:$0xff]  }
 0x9aa   :  { %v14229_v21 = vld [vmem:[%s18773_s5 + $0x108] ss:$12 sps:$4 sm:$0xff]   ;;  %v14233_v37 = vld [vmem:[%s18773_s5 + $0xf0] ss:$12 sps:$4 sm:$0xff]   ;;  %v14237_v43 = vld [vmem:[%s18773_s5 + $0xd8] ss:$12 sps:$4 sm:$0xff]  }
 0x9ab   :  { %v3279_v57 = vsel %vm3271_vm5, %v3267_v53, %v3275_v18  ;;  %v3290_v45 = vmul.f32 %v3286_v5, %v3282_v33  ;;  %v14224_v53 = vld [vmem:[%s18773_s5 + $0x140] ss:$12 sps:$4 sm:$0xff]  }
 0x9ac   :  { %v3287_v22 = vadd.f32 1.0, %v3279_v57  ;;  %v14225_v5 = vld [vmem:[%s18773_s5 + $0x120] ss:$12 sps:$4 sm:$0xff]   ;;  %v14236_v57 = vld [vmem:[%s18773_s5 + $0xf8] ss:$12 sps:$4 sm:$0xff]  }
 0x9ad   :  { %v3292_v35 = vpack.c.bf16 %v3290_v45, %v3288_v14  ;;  %v14231_v18 = vld [vmem:[%s18773_s5 + $0x10c] ss:$12 sps:$4 sm:$0xff]   ;;  %v14235_v33 = vld [vmem:[%s18773_s5 + $0xf4] ss:$12 sps:$4 sm:$0xff]   ;;  %v14243_v45 = vld [vmem:[%s18773_s5 + $0xc4] ss:$12 sps:$4 sm:$0xff]  }
 0x9ae   :  { %v3291_v31 = vmul.f32 %v3287_v22, %v3283_v59  ;;  %v14239_v59 = vld [vmem:[%s18773_s5 + $0xdc] ss:$12 sps:$4 sm:$0xff]   ;;  %v14240_v22 = vld [vmem:[%s18773_s5 + $0xe0] ss:$12 sps:$4 sm:$0xff]  }
 0x9b0   :  { %v3293_v32 = vpack.c.bf16 %v3291_v31, %v3289_v61  ;;  %v14244_v61 = vld [vmem:[%s18773_s5 + $0xc8] ss:$12 sps:$4 sm:$0xff]   ;;  %v14241_v31 = vld [vmem:[%s18773_s5 + $0xc0] ss:$12 sps:$4 sm:$0xff]  }
 0x9b2   :  { %3454 = vmatprep.mubr.bf16.mxu0 %v3293_v32 }
 0x9b3   :  { %3455 = vmatmul.mubr.bf16.vlgmr.msra.gmra.mxu0 %v3292_v35 }
 0x9b4   :  { %13685 = vmatprep.mubr.msk.bf16.mxu0 %vm14834_vm1, %v14833_v48  ;;  %13670 = vmatpush3.bf16.msra.mxu0 %v14216_v3 }
 0x9b5   :  { %13671 = vmatprep.subr.bf16.mxu0 %v14833_v48 }
 0x9b8   :  { %13672 = vmatpush3.bf16.msra.mxu0 %v14220_v51 }
 0x9b9   :  { %13673 = vmatprep.subr.bf16.mxu0 %v14833_v48 }
 0x9bc   :  { %13674 = vmatpush3.bf16.msra.mxu0 %v14224_v53 }
 0x9bd   :  { %13675 = vmatprep.subr.bf16.mxu0 %v14833_v48 }
 0x9c0   :  { %13676 = vmatpush3.bf16.msra.mxu0 %v14228_v56 }
 0x9c1   :  { %13677 = vmatprep.subr.bf16.mxu0 %v14833_v48 }
 0x9c4   :  { %13678 = vmatpush3.bf16.msra.mxu0 %v14232_v17 }
 0x9c5   :  { %13679 = vmatprep.subr.bf16.mxu0 %v14833_v48 }
 0x9c8   :  { %13680 = vmatpush3.bf16.msra.mxu0 %v14236_v57 }
 0x9c9   :  { %13681 = vmatprep.subr.bf16.mxu0 %v14833_v48 }
 0x9cc   :  { %13682 = vmatpush3.bf16.msra.mxu0 %v14240_v22 }
 0x9cd   :  { %13683 = vmatprep.subr.bf16.mxu0 %v14833_v48 }
 0x9d0   :  { %13684 = vmatpush3.bf16.msra.mxu0 %v14244_v61 }
 0xa73   :  { %v13199_v15 = vpop.f32.mrf.mxu0 }
 0xa75   :  { %v13200_v36 = vpop.f32.mrf.mxu0 }
 0xa76   :  { %v13201_v41 = vadd.f32 %v13200_v36, %v13199_v15 }
 0xa77   :  { %v13202_v26 = vpop.f32.mrf.mxu0 }
 0xa78   :  { %v3463_v55 = vadd.f32 %v13201_v41, %v16341_v29  ;;  %v14215_v29 = vld [vmem:[%s18773_s5 + $0x16c] ss:$12 sps:$4 sm:$0xff]  }
 0xa79   :  { %v13203_v62 = vpop.f32.mrf.mxu0  ;;  %3680 = vmatprep.subr.bf16.mxu1 %v14215_v29 }
 0xa7a   :  { %v13204_v34 = vadd.f32 %v13203_v62, %v13202_v26  ;;  %v16507_v38 = vadd.f32 %v12075_v50, %v3463_v55  ;;  %3681 = vmatpush1.bf16.msra.mxu1 %v14213_v8  ;;  %v12078_v55 = vld [vmem:[%s18771_s3 + $0x1] ss:$0 sm:$0xff] }
 0xa7b   :  { %3682 = vmatprep.subr.bf16.mxu1 %v14219_v60  ;;  %v12079_v8 = vld [vmem:[%s18772_s4 + $0x1] ss:$0 sm:$0xff] }
 0xa7c   :  { %v3464_v1 = vadd.f32 %v13204_v34, %v16345_v25  ;;  %3478 = vadd.xlane.f32.xlu1 %v16507_v38 }
 0xa7e   :  { %v16511_v46 = vadd.f32 %v12075_v50, %v3464_v1  ;;  %3683 = vmatpush1.bf16.msra.mxu1 %v14217_v20 }
 0xa7f   :  { %3684 = vmatprep.subr.bf16.mxu1 %v14223_v13 }
 0xa80   :  { %3480 = vadd.xlane.f32.xlu0 %v16511_v46 }
 0xa82   :  { %3685 = vmatpush1.bf16.msra.mxu1 %v14221_v52 }
 0xa83   :  { %3686 = vmatprep.subr.bf16.mxu1 %v14227_v44 }
 0xa86   :  { %3687 = vmatpush1.bf16.msra.mxu1 %v14225_v5 }
 0xa87   :  { %3688 = vmatprep.subr.bf16.mxu1 %v14231_v18 }
 0xa8a   :  { %3689 = vmatpush1.bf16.msra.mxu1 %v14229_v21 }
 0xa8b   :  { %3690 = vmatprep.subr.bf16.mxu1 %v14235_v33 }
 0xa8e   :  { %3691 = vmatpush1.bf16.msra.mxu1 %v14233_v37 }
 0xa8f   :  { %3692 = vmatprep.subr.bf16.mxu1 %v14239_v59 }
 0xa92   :  { %3693 = vmatpush1.bf16.msra.mxu1 %v14237_v43 }
 0xa93   :  { %3694 = vmatprep.subr.bf16.mxu1 %v14243_v45 }
 0xa96   :  { %3695 = vmatpush1.bf16.msra.mxu1 %v14241_v31 }
 0xb05   :  { %v3479_v25 = vpop.xlane.xlu1 %3478 }
 0xb06   :  { %v3482_v10 = vmul.f32 0.015625, %v3479_v25 }
 0xb08   :  { %v3484_v63 = vsub.f32 %v16507_v38, %v3482_v10 }
 0xb09   :  { %v3481_v24 = vpop.xlane.xlu0 %3480 }
 0xb0a   :  { %v3483_v27 = vmul.f32 0.015625, %v3481_v24  ;;  %v16527_v42 = vsel %vm63_vm0, %v3484_v63, 0.0 }
 0xb0b   :  { %v3488_v6 = vmul.f32 %v16527_v42, %v16527_v42 }
 0xb0c   :  { %v3485_v19 = vsub.f32 %v16511_v46, %v3483_v27 }
 0xb0d   :  { %3490 = vadd.xlane.f32.xlu1 %v3488_v6 }
 0xb0e   :  { %v16534_v40 = vsel %vm63_vm0, %v3485_v19, 0.0 }
 0xb0f   :  { %v3489_v11 = vmul.f32 %v16534_v40, %v16534_v40 }
 0xb11   :  { %3492 = vadd.xlane.f32.xlu0 %v3489_v11 }
 0xb96   :  { %v3491_v14 = vpop.xlane.xlu1 %3490 }
 0xb97   :  { %v3494_v32 = vmul.f32 0.015625, %v3491_v14 }
 0xb99   :  { %v3496_v35 = vadd.f32 1e-05, %v3494_v32 }
 0xb9a   :  { %v3493_v15 = vpop.xlane.xlu0 %3492 }
 0xb9b   :  { %14541 = vrsqrt.f32 %v3496_v35  ;;  %v3495_v36 = vmul.f32 0.015625, %v3493_v15 }
 0xb9d   :  { %v3497_v41 = vadd.f32 1e-05, %v3495_v36 }
 0xb9f   :  { %14543 = vrsqrt.f32 %v3497_v41 }
 0xba8   :  { %v14542_v26 = vpop.eup %14541 }
 0xba9   :  { %v3500_v50 = vmul.f32 %v14542_v26, %v16527_v42 }
 0xbab   :  { %v3508_v1 = vmul.f32 %v12078_v55, %v3500_v50 }
 0xbac   :  { %v14544_v62 = vpop.eup %14543 }
 0xbad   :  { %v3501_v34 = vmul.f32 %v14544_v62, %v16534_v40  ;;  %v3516_v3 = vadd.f32 %v12079_v8, %v3508_v1 }
 0xbaf   :  { %v3509_v29 = vmul.f32 %v12078_v55, %v3501_v34 }
 0xbb1   :  { %v3517_v25 = vadd.f32 %v12079_v8, %v3509_v29 }
 0xbb3   :  { %v3518_v10 = vpack.c.bf16 %v3517_v25, %v3516_v3 }
 0xbb5   :  { %3713 = vmatmul.mubr.bf16.vlgmr.msra.gmra.mxu1 %v3518_v10  ;;  %13686 = vmatmul.mubr.bf16.vlgmr.msra.gmra.mxu0 %v3518_v10 }
 0xc75   :  { %v16615_v63 = vpop.f32.mrf.mxu1  ;;  %v16617_v24 = vpop.f32.mrf.mxu0 }
 0xc76   :  { %13693 = vmatprep.mubr.f32.mxu1 %v16615_v63  ;;  %13721 = vmatprep.mubr.f32.mxu0 %v16615_v63  ;;  %v3780_v21 = vmul.f32 %v15958_v47, %v16617_v24  ;;  %v3782_v31 = vmul.f32 %v15974_v23, %v16617_v24 }
 0xc77   :  { %v16621_v27 = vpop.f32.mrf.mxu1  ;;  %v13687_v42 = vpop.f32.mrf.mxu0 }
 0xc78   :  { %v3764_v51 = vmul.f32 %v15958_v47, %v16621_v27  ;;  %v3772_v52 = vmul.f32 %v15961_v49, %v16621_v27  ;;  %v3766_v44 = vmul.f32 %v15974_v23, %v16621_v27  ;;  %v3776_v56 = vmul.f32 %v15977_v54, %v16621_v27 }
 0xc79   :  { %v16623_v6 = vpop.f32.mrf.mxu1  ;;  %v16625_v19 = vpop.f32.mrf.mxu0  ;;  %v3768_v17 = vmul.f32 %v15994_v58, %v16621_v27  ;;  %v3770_v37 = vmul.f32 %v16014_v0, %v16621_v27  ;;  %v3774_v22 = vmul.f32 %v16026_v4, %v16621_v27  ;;  %v3778_v45 = vmul.f32 %v16038_v9, %v16621_v27 }
 0xc7a   :  { %v3781_v18 = vmul.f32 %v15958_v47, %v16625_v19  ;;  %v16655_v33 = vmul.f32 %v15994_v58, %v16625_v19  ;;  %v3783_v61 = vmul.f32 %v15974_v23, %v16625_v19  ;;  %v16680_v14 = vmul.f32 %v16014_v0, %v16625_v19 }
 0xc7b   :  { %v3720_v40 = vpop.f32.mrf.mxu1  ;;  %v13688_v11 = vpop.f32.mrf.mxu0 }
 0xc7c   :  { %v3765_v20 = vmul.f32 %v15958_v47, %v3720_v40  ;;  %v3773_v60 = vmul.f32 %v15961_v49, %v3720_v40  ;;  %v3767_v13 = vmul.f32 %v15974_v23, %v3720_v40  ;;  %v3777_v53 = vmul.f32 %v15977_v54, %v3720_v40 }
 0xc7d   :  { %v3769_v5 = vmul.f32 %v15994_v58, %v3720_v40  ;;  %v3771_v57 = vmul.f32 %v16014_v0, %v3720_v40  ;;  %v3775_v59 = vmul.f32 %v16026_v4, %v3720_v40  ;;  %v3779_v43 = vmul.f32 %v16038_v9, %v3720_v40 }
 0xc7e   :  { %13689 = vmatprep.subr.mxu1 %v3765_v20  ;;  %13717 = vmatprep.subr.mxu0 %v3773_v60 }
 0xc7f   :  { %13690 = vmatpush3.xpose.msra.mxu1 %v3765_v20  ;;  %13718 = vmatpush3.xpose.msra.mxu0 %v3773_v60 }
 0xc80   :  { %13691 = vmatprep.subr.mxu1 %v3764_v51  ;;  %13719 = vmatprep.subr.mxu0 %v3772_v52 }
 0xc83   :  { %13692 = vmatpush3.xpose.msra.mxu1 %v3764_v51  ;;  %13720 = vmatpush3.xpose.msra.mxu0 %v3772_v52 }
 0xc84   :  { %13696 = vmatprep.subr.mxu1 %v3767_v13  ;;  %13731 = vmatprep.subr.mxu0 %v3777_v53 }
 0xc86   :  { %13694 = vmatmul.mubr.f32.vlgmr.msra.gmra.mxu1 %v16623_v6  ;;  %13722 = vmatmul.mubr.f32.vlgmr.msra.gmra.mxu0 %v16623_v6 }
 0xc87   :  { %13697 = vmatpush3.xpose.msra.mxu1 %v3767_v13  ;;  %13700 = vmatprep.mubr.f32.mxu1 %v16615_v63 }
 0xc88   :  { %13732 = vmatpush3.xpose.msra.mxu0 %v3777_v53  ;;  %13735 = vmatprep.mubr.f32.mxu0 %v16615_v63 }
 0xc89   :  { %13698 = vmatprep.subr.mxu1 %v3766_v44  ;;  %13733 = vmatprep.subr.mxu0 %v3776_v56 }
 0xc8b   :  { %13699 = vmatpush3.xpose.msra.mxu1 %v3766_v44 }
 0xc8c   :  { %13734 = vmatpush3.xpose.msra.mxu0 %v3776_v56  ;;  %13703 = vmatprep.subr.mxu1 %v3769_v5 }
 0xc8d   :  { %13745 = vmatprep.subr.mxu0 %v3781_v18 }
 0xc8e   :  { %13701 = vmatmul.mubr.f32.vlgmr.msra.gmra.mxu1 %v16623_v6 }
 0xc8f   :  { %13736 = vmatmul.mubr.f32.vlgmr.msra.gmra.mxu0 %v16623_v6  ;;  %13704 = vmatpush3.xpose.msra.mxu1 %v3769_v5 }
 0xc90   :  { %13707 = vmatprep.mubr.f32.mxu1 %v16615_v63  ;;  %13746 = vmatpush3.msra.mxu0 %v3781_v18 }
 0xc91   :  { %13705 = vmatprep.subr.mxu1 %v3768_v17  ;;  %13747 = vmatprep.subr.mxu0 %v3780_v21 }
 0xc92   :  { %13748 = vmatpush3.msra.mxu0 %v3780_v21 }
 0xc93   :  { %13759 = vmatprep.subr.mxu0 %v16655_v33  ;;  %13706 = vmatpush3.xpose.msra.mxu1 %v3768_v17 }
 0xc94   :  { %13710 = vmatprep.subr.mxu1 %v3771_v57 }
 0xc96   :  { %13708 = vmatmul.mubr.f32.vlgmr.msra.gmra.mxu1 %v16623_v6 }
 0xc97   :  { %13711 = vmatpush3.xpose.msra.mxu1 %v3771_v57  ;;  %13714 = vmatprep.mubr.f32.mxu1 %v16615_v63 }
 0xc98   :  { %13712 = vmatprep.subr.mxu1 %v3770_v37 }
 0xc9b   :  { %13713 = vmatpush3.xpose.msra.mxu1 %v3770_v37 }
 0xc9c   :  { %13724 = vmatprep.subr.mxu1 %v3775_v59 }
 0xc9e   :  { %13715 = vmatmul.mubr.f32.vlgmr.msra.gmra.mxu1 %v16623_v6 }
 0xc9f   :  { %13725 = vmatpush3.xpose.msra.mxu1 %v3775_v59  ;;  %13728 = vmatprep.mubr.f32.mxu1 %v16615_v63 }
 0xca0   :  { %13726 = vmatprep.subr.mxu1 %v3774_v22 }
 0xca3   :  { %13727 = vmatpush3.xpose.msra.mxu1 %v3774_v22 }
 0xca4   :  { %13738 = vmatprep.subr.mxu1 %v3779_v43 }
 0xca6   :  { %13729 = vmatmul.mubr.f32.vlgmr.msra.gmra.mxu1 %v16623_v6 }
 0xca7   :  { %13739 = vmatpush3.xpose.msra.mxu1 %v3779_v43  ;;  %13742 = vmatprep.mubr.f32.mxu1 %v16615_v63 }
 0xca8   :  { %13740 = vmatprep.subr.mxu1 %v3778_v45 }
 0xcab   :  { %13741 = vmatpush3.xpose.msra.mxu1 %v3778_v45 }
 0xcac   :  { %13752 = vmatprep.subr.mxu1 %v3783_v61 }
 0xcae   :  { %13743 = vmatmul.mubr.f32.vlgmr.msra.gmra.mxu1 %v16623_v6 }
 0xcaf   :  { %13753 = vmatpush3.msra.mxu1 %v3783_v61 }
 0xcb0   :  { %13754 = vmatprep.subr.mxu1 %v3782_v31 }
 0xcb1   :  { %13755 = vmatpush3.msra.mxu1 %v3782_v31 }
 0xcb2   :  { %13766 = vmatprep.subr.mxu1 %v16680_v14 }
 0xd46   :  { %v13695_v32 = vpop.f32.mrf.mxu1  ;;  %v13723_v35 = vpop.f32.mrf.mxu0 }
 0xd47   :  { %v16685_v15 = vsel %vm16064_vm13, %v13695_v32, -inf  ;;  %v16691_v50 = vsel %vm16064_vm13, %v13723_v35, -inf }
 0xd48   :  { %v3862_v36 = vpop.f32.mrf.mxu1  ;;  %v4162_v41 = vpop.f32.mrf.mxu0  ;;  %v4415_v26 = vsel %vm2036_vm14, %v16685_v15, -inf  ;;  %v4439_v1 = vsel %vm2036_vm14, %v16691_v50, -inf }
 0xd49   :  { %v16695_v55 = vsel %vm16068_vm15, %v3862_v36, -inf  ;;  %4416 = vmax.xlane.f32.xlu0 %v4415_v26  ;;  %v16701_v34 = vsel %vm16068_vm15, %v4162_v41, -inf }
 0xd4a   :  { %v4412_v62 = vsel %vm2036_vm14, %v16695_v55, -inf  ;;  %v4436_v29 = vsel %vm2036_vm14, %v16701_v34, -inf }
 0xd4b   :  { %4413 = vmax.xlane.f32.xlu1 %v4412_v62 }
 0xd4d   :  { %4440 = vmax.xlane.f32.xlu0 %v4439_v1 }
 0xd4e   :  { %v13702_v8 = vpop.f32.mrf.mxu1 }
 0xd4f   :  { %v16709_v3 = vsel %vm16064_vm13, %v13702_v8, -inf  ;;  %v13737_v25 = vpop.f32.mrf.mxu0  ;;  %4437 = vmax.xlane.f32.xlu1 %v4436_v29 }
 0xd50   :  { %v3937_v10 = vpop.f32.mrf.mxu1  ;;  %v4421_v63 = vsel %vm2036_vm14, %v16709_v3, -inf  ;;  %v16715_v27 = vsel %vm16064_vm13, %v13737_v25, -inf }
 0xd51   :  { %v16719_v42 = vsel %vm16068_vm15, %v3937_v10, -inf  ;;  %v4312_v6 = vpop.f32.mrf.mxu0  ;;  %4422 = vmax.xlane.f32.xlu0 %v4421_v63  ;;  %v4451_v20 = vsel %vm2036_vm14, %v16715_v27, -inf }
 0xd52   :  { %v4418_v40 = vsel %vm2036_vm14, %v16719_v42, -inf  ;;  %v16725_v11 = vsel %vm16068_vm15, %v4312_v6, -inf }
 0xd53   :  { %4419 = vmax.xlane.f32.xlu1 %v4418_v40  ;;  %v4448_v51 = vsel %vm2036_vm14, %v16725_v11, -inf }
 0xd55   :  { %4452 = vmax.xlane.f32.xlu0 %v4451_v20 }
 0xd56   :  { %v13709_v60 = vpop.f32.mrf.mxu1 }
 0xd57   :  { %v16733_v52 = vsel %vm16064_vm13, %v13709_v60, -inf  ;;  %4449 = vmax.xlane.f32.xlu1 %v4448_v51 }
 0xd58   :  { %v4012_v13 = vpop.f32.mrf.mxu1  ;;  %v4427_v53 = vsel %vm2036_vm14, %v16733_v52, -inf }
 0xd59   :  { %v16739_v44 = vsel %vm16068_vm15, %v4012_v13, -inf  ;;  %4428 = vmax.xlane.f32.xlu0 %v4427_v53 }
 0xd5a   :  { %v4424_v56 = vsel %vm2036_vm14, %v16739_v44, -inf }
 0xd5b   :  { %4425 = vmax.xlane.f32.xlu1 %v4424_v56 }
 0xd5e   :  { %v13716_v5 = vpop.f32.mrf.mxu1 }
 0xd5f   :  { %v16745_v18 = vsel %vm16064_vm13, %v13716_v5, -inf }
 0xd60   :  { %v4087_v17 = vpop.f32.mrf.mxu1  ;;  %v4433_v21 = vsel %vm2036_vm14, %v16745_v18, -inf }
 0xd61   :  { %v16751_v57 = vsel %vm16068_vm15, %v4087_v17, -inf  ;;  %4434 = vmax.xlane.f32.xlu0 %v4433_v21 }
 0xd62   :  { %v4430_v37 = vsel %vm2036_vm14, %v16751_v57, -inf }
 0xd63   :  { %4431 = vmax.xlane.f32.xlu1 %v4430_v37 }
 0xd66   :  { %v13730_v59 = vpop.f32.mrf.mxu1 }
 0xd67   :  { %v16757_v22 = vsel %vm16064_vm13, %v13730_v59, -inf }
 0xd68   :  { %v4237_v43 = vpop.f32.mrf.mxu1  ;;  %v4445_v45 = vsel %vm2036_vm14, %v16757_v22, -inf }
 0xd69   :  { %v16763_v61 = vsel %vm16068_vm15, %v4237_v43, -inf  ;;  %4446 = vmax.xlane.f32.xlu0 %v4445_v45 }
 0xd6a   :  { %v4442_v31 = vsel %vm2036_vm14, %v16763_v61, -inf }
 0xd6b   :  { %4443 = vmax.xlane.f32.xlu1 %v4442_v31 }
 0xd6e   :  { %v13744_v32 = vpop.f32.mrf.mxu1 }
 0xd6f   :  { %v16769_v35 = vsel %vm16064_vm13, %v13744_v32, -inf }
 0xd70   :  { %v4387_v36 = vpop.f32.mrf.mxu1  ;;  %v4457_v41 = vsel %vm2036_vm14, %v16769_v35, -inf }
 0xd71   :  { %v16775_v26 = vsel %vm16068_vm15, %v4387_v36, -inf  ;;  %4458 = vmax.xlane.f32.xlu0 %v4457_v41 }
 0xd72   :  { %v4454_v62 = vsel %vm2036_vm14, %v16775_v26, -inf }
 0xd73   :  { %4455 = vmax.xlane.f32.xlu1 %v4454_v62 }
 0xdd2   :  { %v4417_v1 = vpop.xlane.xlu0 %4416 }
 0xdd3   :  { %v4461_v8 = vsub.f32 %v16685_v15, %v4417_v1 }
 0xdd4   :  { %v4414_v29 = vpop.xlane.xlu1 %4413 }
 0xdd5   :  { %v4478_v25 = vmul.f32 1.442695, %v4461_v8  ;;  %v4460_v10 = vsub.f32 %v16695_v55, %v4414_v29 }
 0xdd6   :  { %v4441_v63 = vpop.xlane.xlu0 %4440 }
 0xdd7   :  { %14545 = vpow2.f32 %v4478_v25  ;;  %v4476_v6 = vmul.f32 1.442695, %v4460_v10  ;;  %v4469_v40 = vsub.f32 %v16691_v50, %v4441_v63 }
 0xdd8   :  { %v4438_v20 = vpop.xlane.xlu1 %4437 }
 0xdd9   :  { %14547 = vpow2.f32 %v4476_v6  ;;  %v4494_v60 = vmul.f32 1.442695, %v4469_v40  ;;  %v4468_v51 = vsub.f32 %v16701_v34, %v4438_v20 }
 0xdda   :  { %v4423_v13 = vpop.xlane.xlu0 %4422 }
 0xddb   :  { %14549 = vpow2.f32 %v4494_v60  ;;  %v4492_v53 = vmul.f32 1.442695, %v4468_v51  ;;  %v4463_v56 = vsub.f32 %v16709_v3, %v4423_v13 }
 0xddc   :  { %v4420_v15 = vpop.xlane.xlu1 %4419 }
 0xddd   :  { %14551 = vpow2.f32 %v4492_v53  ;;  %v4482_v5 = vmul.f32 1.442695, %v4463_v56  ;;  %v4462_v55 = vsub.f32 %v16719_v42, %v4420_v15 }
 0xdde   :  { %v4453_v17 = vpop.xlane.xlu0 %4452 }
 0xddf   :  { %14553 = vpow2.f32 %v4482_v5  ;;  %v4480_v21 = vmul.f32 1.442695, %v4462_v55  ;;  %v4473_v50 = vsub.f32 %v16715_v27, %v4453_v17 }
 0xde0   :  { %v4450_v37 = vpop.xlane.xlu1 %4449 }
 0xde1   :  { %14555 = vpow2.f32 %v4480_v21  ;;  %v4502_v59 = vmul.f32 1.442695, %v4473_v50  ;;  %v4472_v34 = vsub.f32 %v16725_v11, %v4450_v37 }
 0xde2   :  { %v4429_v43 = vpop.xlane.xlu0 %4428 }
 0xde3   :  { %14557 = vpow2.f32 %v4502_v59  ;;  %v4500_v45 = vmul.f32 1.442695, %v4472_v34  ;;  %v4465_v3 = vsub.f32 %v16733_v52, %v4429_v43 }
 0xde4   :  { %v16788_v31 = vpop.eup %14545  ;;  %v4426_v32 = vpop.xlane.xlu1 %4425 }
 0xde5   :  { %14559 = vpow2.f32 %v4500_v45  ;;  %v4486_v42 = vmul.f32 1.442695, %v4465_v3  ;;  %v4464_v36 = vsub.f32 %v16739_v44, %v4426_v32  ;;  %v4511_v27 = vsel %vm2036_vm14, %v16788_v31, 0.0 }
 0xde6   :  { %v16793_v41 = vpop.eup %14547  ;;  %4512 = vadd.xlane.f32.xlu0 %v4511_v27 }
 0xde7   :  { %14561 = vpow2.f32 %v4486_v42  ;;  %v4484_v11 = vmul.f32 1.442695, %v4464_v36  ;;  %v4508_v62 = vsel %vm2036_vm14, %v16793_v41, 0.0 }
 0xde8   :  { %v16797_v1 = vpop.eup %14549  ;;  %4509 = vadd.xlane.f32.xlu1 %v4508_v62 }
 0xde9   :  { %14563 = vpow2.f32 %v4484_v11  ;;  %v4535_v52 = vsel %vm2036_vm14, %v16797_v1, 0.0 }
 0xdea   :  { %v16801_v8 = vpop.eup %14551  ;;  %v4435_v44 = vpop.xlane.xlu0 %4434  ;;  %4536 = vadd.xlane.f32.xlu0 %v4535_v52 }
 0xdeb   :  { %v4467_v29 = vsub.f32 %v16745_v18, %v4435_v44  ;;  %v4532_v25 = vsel %vm2036_vm14, %v16801_v8, 0.0 }
 0xdec   :  { %v16806_v10 = vpop.eup %14553  ;;  %v4432_v63 = vpop.xlane.xlu1 %4431  ;;  %4533 = vadd.xlane.f32.xlu1 %v4532_v25 }
 0xded   :  { %v4490_v6 = vmul.f32 1.442695, %v4467_v29  ;;  %v4466_v40 = vsub.f32 %v16751_v57, %v4432_v63  ;;  %v4517_v20 = vsel %vm2036_vm14, %v16806_v10, 0.0 }
 0xdee   :  { %v16811_v60 = vpop.eup %14555  ;;  %4518 = vadd.xlane.f32.xlu0 %v4517_v20 }
 0xdef   :  { %14565 = vpow2.f32 %v4490_v6  ;;  %v4488_v51 = vmul.f32 1.442695, %v4466_v40  ;;  %v4514_v18 = vsel %vm2036_vm14, %v16811_v60, 0.0 }
 0xdf0   :  { %v16815_v13 = vpop.eup %14557  ;;  %4515 = vadd.xlane.f32.xlu1 %v4514_v18 }
 0xdf1   :  { %14567 = vpow2.f32 %v4488_v51  ;;  %v4547_v53 = vsel %vm2036_vm14, %v16815_v13, 0.0 }
 0xdf2   :  { %v16819_v56 = vpop.eup %14559  ;;  %v4447_v57 = vpop.xlane.xlu0 %4446  ;;  %4548 = vadd.xlane.f32.xlu0 %v4547_v53 }
 0xdf3   :  { %v4471_v15 = vsub.f32 %v16757_v22, %v4447_v57  ;;  %v4544_v5 = vsel %vm2036_vm14, %v16819_v56, 0.0 }
 0xdf4   :  { %v16824_v55 = vpop.eup %14561  ;;  %v4444_v17 = vpop.xlane.xlu1 %4443  ;;  %4545 = vadd.xlane.f32.xlu1 %v4544_v5 }
 0xdf5   :  { %v4498_v21 = vmul.f32 1.442695, %v4471_v15  ;;  %v4470_v50 = vsub.f32 %v16763_v61, %v4444_v17  ;;  %v4523_v37 = vsel %vm2036_vm14, %v16824_v55, 0.0 }
 0xdf6   :  { %v16829_v59 = vpop.eup %14563  ;;  %4524 = vadd.xlane.f32.xlu0 %v4523_v37 }
 0xdf7   :  { %14569 = vpow2.f32 %v4498_v21  ;;  %v4496_v34 = vmul.f32 1.442695, %v4470_v50  ;;  %v4520_v22 = vsel %vm2036_vm14, %v16829_v59, 0.0 }
 0xdf8   :  { %4521 = vadd.xlane.f32.xlu1 %v4520_v22 }
 0xdf9   :  { %14571 = vpow2.f32 %v4496_v34 }
 0xdfa   :  { %v4459_v43 = vpop.xlane.xlu0 %4458 }
 0xdfb   :  { %v4475_v45 = vsub.f32 %v16769_v35, %v4459_v43  ;;  %v3784_v43 = vmul.f32 %v15994_v58, %v16617_v24 }
 0xdfc   :  { %v16834_v3 = vpop.eup %14565  ;;  %v4456_v32 = vpop.xlane.xlu1 %4455 }
 0xdfd   :  { %v4506_v61 = vmul.f32 1.442695, %v4475_v45  ;;  %v4474_v42 = vsub.f32 %v16775_v26, %v4456_v32  ;;  %v4529_v36 = vsel %vm2036_vm14, %v16834_v3, 0.0  ;;  %v3789_v45 = vmul.f32 %v15961_v49, %v16625_v19 }
 0xdfe   :  { %v16839_v27 = vpop.eup %14567  ;;  %4530 = vadd.xlane.f32.xlu0 %v4529_v36 }
 0xdff   :  { %14573 = vpow2.f32 %v4506_v61  ;;  %v4504_v11 = vmul.f32 1.442695, %v4474_v42  ;;  %v4526_v62 = vsel %vm2036_vm14, %v16839_v27, 0.0 }
 0xe00   :  { %4527 = vadd.xlane.f32.xlu1 %v4526_v62  ;;  %v3791_v62 = vmul.f32 %v16026_v4, %v16625_v19 }
 0xe01   :  { %14575 = vpow2.f32 %v4504_v11 }
 0xe04   :  { %v16843_v35 = vpop.eup %14569 }
 0xe05   :  { %v4541_v52 = vsel %vm2036_vm14, %v16843_v35, 0.0 }
 0xe06   :  { %v16847_v44 = vpop.eup %14571  ;;  %4542 = vadd.xlane.f32.xlu0 %v4541_v52 }
 0xe07   :  { %v4538_v26 = vsel %vm2036_vm14, %v16847_v44, 0.0 }
 0xe08   :  { %4539 = vadd.xlane.f32.xlu1 %v4538_v26 }
 0xe0c   :  { %v16851_v29 = vpop.eup %14573 }
 0xe0d   :  { %v4553_v25 = vsel %vm2036_vm14, %v16851_v29, 0.0 }
 0xe0e   :  { %v16855_v63 = vpop.eup %14575  ;;  %4554 = vadd.xlane.f32.xlu0 %v4553_v25 }
 0xe0f   :  { %v4550_v6 = vsel %vm2036_vm14, %v16855_v63, 0.0 }
 0xe10   :  { %4551 = vadd.xlane.f32.xlu1 %v4550_v6 }
 0xe6f   :  { %v4513_v40 = vpop.xlane.xlu0 %4512 }
 0xe70   :  { %14577 = vrcp.f32 %v4513_v40 }
 0xe71   :  { %v4510_v20 = vpop.xlane.xlu1 %4509 }
 0xe72   :  { %14579 = vrcp.f32 %v4510_v20 }
 0xe73   :  { %v4537_v51 = vpop.xlane.xlu0 %4536 }
 0xe75   :  { %v4534_v18 = vpop.xlane.xlu1 %4533 }
 0xe77   :  { %v4519_v53 = vpop.xlane.xlu0 %4518 }
 0xe78   :  { %14581 = vrcp.f32 %v4519_v53 }
 0xe79   :  { %v4516_v57 = vpop.xlane.xlu1 %4515 }
 0xe7a   :  { %14583 = vrcp.f32 %v4516_v57 }
 0xe7b   :  { %v4549_v15 = vpop.xlane.xlu0 %4548  ;;  %14585 = vrcp.f32 %v4534_v18 }
 0xe7d   :  { %v4546_v5 = vpop.xlane.xlu1 %4545  ;;  %v14578_v17 = vpop.eup %14577 }
 0xe7e   :  { %v4573_v22 = vmul.f32 %v14578_v17, %v16788_v31 }
 0xe7f   :  { %v14580_v21 = vpop.eup %14579  ;;  %v4525_v50 = vpop.xlane.xlu0 %4524 }
 0xe80   :  { %v4572_v37 = vmul.f32 %v14580_v21, %v16793_v41  ;;  %14587 = vrcp.f32 %v4525_v50  ;;  %v3790_v50 = vmul.f32 %v16026_v4, %v16617_v24 }
 0xe81   :  { %v4522_v34 = vpop.xlane.xlu1 %4521 }
 0xe82   :  { %14589 = vrcp.f32 %v4522_v34  ;;  %13749 = vmatprep.mubr.msk.f32.mxu0 %vm2036_vm14, %v4572_v37 }
 0xe83   :  { %13750 = vmatmul.mubr.msk.f32.vlgmr.msra.gmra.mxu0 %vm2036_vm14, %v4573_v22  ;;  %14591 = vrcp.f32 %v4537_v51  ;;  %v3788_v51 = vmul.f32 %v15961_v49, %v16617_v24  ;;  %v3794_v22 = vmul.f32 %v16038_v9, %v16617_v24 }
 0xe84   :  { %13760 = vmatpush3.msra.mxu0 %v16655_v33  ;;  %14593 = vrcp.f32 %v4546_v5  ;;  %v3786_v33 = vmul.f32 %v16014_v0, %v16617_v24  ;;  %v3792_v5 = vmul.f32 %v15977_v54, %v16617_v24  ;;  %v14246_v24 = vld [vmem:[%s18774_s6 + $0x70] sm:$0xff]  }
 0xe85   :  { %13761 = vmatprep.subr.mxu0 %v3784_v43  ;;  %v14582_v41 = vpop.eup %14581  ;;  %14595 = vrcp.f32 %v4549_v15 }
 0xe86   :  { %13762 = vmatpush3.msra.mxu0 %v3784_v43  ;;  %v4575_v36 = vmul.f32 %v14582_v41, %v16806_v10 }
 0xe87   :  { %v14584_v32 = vpop.eup %14583  ;;  %13773 = vmatprep.subr.mxu0 %v3789_v45  ;;  %v4531_v31 = vpop.xlane.xlu0 %4530 }
 0xe88   :  { %v4574_v61 = vmul.f32 %v14584_v32, %v16811_v60  ;;  %14597 = vrcp.f32 %v4531_v31  ;;  %v14586_v11 = vpop.eup %14585  ;;  %v14250_v32 = vld [vmem:[%s18774_s6 + $0x50] sm:$0xff]   ;;  %v14251_v31 = vld [vmem:[%s18774_s6 + $0x48] sm:$0xff]  }
 0xe89   :  { %v4528_v42 = vpop.xlane.xlu1 %4527 }
 0xe8a   :  { %14599 = vrcp.f32 %v4528_v42  ;;  %13756 = vmatprep.mubr.msk.f32.mxu1 %vm2036_vm14, %v4574_v61  ;;  %v14252_v61 = vld [vmem:[%s18774_s6 + $0x40] sm:$0xff]  }
 0xe8b   :  { %13757 = vmatmul.mubr.msk.f32.vlgmr.msra.gmra.mxu1 %vm2036_vm14, %v4575_v36 }
 0xe8c   :  { %13767 = vmatpush3.msra.mxu1 %v16680_v14  ;;  %v4580_v14 = vmul.f32 %v14586_v11, %v16801_v8 }
 0xe8d   :  { %13768 = vmatprep.subr.mxu1 %v3786_v33  ;;  %v14588_v60 = vpop.eup %14587 }
 0xe8e   :  { %13769 = vmatpush3.msra.mxu1 %v3786_v33  ;;  %v4577_v6 = vmul.f32 %v14588_v60, %v16824_v55  ;;  %v3793_v55 = vmul.f32 %v15977_v54, %v16625_v19 }
 0xe8f   :  { %v14590_v52 = vpop.eup %14589  ;;  %13780 = vmatprep.subr.mxu1 %v3791_v62  ;;  %v4543_v10 = vpop.xlane.xlu0 %4542 }
 0xe90   :  { %v4576_v26 = vmul.f32 %v14590_v52, %v16829_v59  ;;  %14601 = vrcp.f32 %v4543_v10  ;;  %v14592_v40 = vpop.eup %14591 }
 0xe91   :  { %v4540_v25 = vpop.xlane.xlu1 %4539  ;;  %v14594_v20 = vpop.eup %14593  ;;  %v4581_v18 = vmul.f32 %v14592_v40, %v16797_v1 }
 0xe92   :  { %14603 = vrcp.f32 %v4540_v25  ;;  %13763 = vmatprep.mubr.msk.f32.mxu0 %vm2036_vm14, %v4576_v26  ;;  %v14596_v59 = vpop.eup %14595  ;;  %v4584_v8 = vmul.f32 %v14594_v20, %v16819_v56 }
 0xe93   :  { %13764 = vmatmul.mubr.msk.f32.vlgmr.msra.gmra.mxu0 %vm2036_vm14, %v4577_v6  ;;  %v4585_v56 = vmul.f32 %v14596_v59, %v16815_v13 }
 0xe94   :  { %13774 = vmatpush3.msra.mxu0 %v3789_v45  ;;  %13777 = vmatprep.mubr.msk.f32.mxu0 %vm2036_vm14, %v4580_v14 }
 0xe95   :  { %13775 = vmatprep.subr.mxu0 %v3788_v51  ;;  %v14598_v53 = vpop.eup %14597 }
 0xe96   :  { %13776 = vmatpush3.msra.mxu0 %v3788_v51  ;;  %v4579_v21 = vmul.f32 %v14598_v53, %v16834_v3  ;;  %v3795_v3 = vmul.f32 %v16038_v9, %v16625_v19 }
 0xe97   :  { %v14600_v57 = vpop.eup %14599  ;;  %13787 = vmatprep.subr.mxu0 %v3793_v55  ;;  %v4555_v15 = vpop.xlane.xlu0 %4554  ;;  %13778 = vmatmul.mubr.msk.f32.vlgmr.msra.gmra.mxu0 %vm2036_vm14, %v4581_v18 }
 0xe98   :  { %13788 = vmatpush3.msra.mxu0 %v3793_v55  ;;  %13791 = vmatprep.mubr.msk.f32.mxu0 %vm2036_vm14, %v4584_v8  ;;  %v4578_v17 = vmul.f32 %v14600_v57, %v16839_v27  ;;  %14605 = vrcp.f32 %v4555_v15 }
 0xe99   :  { %13789 = vmatprep.subr.mxu0 %v3792_v5  ;;  %v4552_v1 = vpop.xlane.xlu1 %4551 }
 0xe9a   :  { %13790 = vmatpush3.msra.mxu0 %v3792_v5  ;;  %14607 = vrcp.f32 %v4552_v1  ;;  %13770 = vmatprep.mubr.msk.f32.mxu1 %vm2036_vm14, %v4578_v17 }
 0xe9b   :  { %13771 = vmatmul.mubr.msk.f32.vlgmr.msra.gmra.mxu1 %vm2036_vm14, %v4579_v21  ;;  %13792 = vmatmul.mubr.msk.f32.vlgmr.msra.gmra.mxu0 %vm2036_vm14, %v4585_v56 }
 0xe9c   :  { %13781 = vmatpush3.msra.mxu1 %v3791_v62  ;;  %13801 = vmatprep.subr.bf16.mxu0 %v14833_v48 }
 0xe9d   :  { %13782 = vmatprep.subr.mxu1 %v3790_v50  ;;  %13817 = vmatprep.mubr.msk.bf16.mxu0 %vm14834_vm1, %v14833_v48  ;;  %v14602_v13 = vpop.eup %14601 }
 0xe9e   :  { %13783 = vmatpush3.msra.mxu1 %v3790_v50  ;;  %v4583_v34 = vmul.f32 %v14602_v13, %v16843_v35  ;;  %v14245_v35 = vld [vmem:[%s18774_s6 + $0x78] sm:$0xff]  }
 0xe9f   :  { %v14604_v27 = vpop.eup %14603  ;;  %13794 = vmatprep.subr.mxu1 %v3795_v3  ;;  %13802 = vmatpush3.bf16.msra.mxu0 %v14245_v35 }
 0xea0   :  { %v4582_v37 = vmul.f32 %v14604_v27, %v16847_v44  ;;  %13803 = vmatprep.subr.bf16.mxu0 %v14833_v48  ;;  %v14247_v44 = vld [vmem:[%s18774_s6 + $0x68] sm:$0xff]  }
 0xea2   :  { %13784 = vmatprep.mubr.msk.f32.mxu1 %vm2036_vm14, %v4582_v37  ;;  %v12169_v37 = vld [vmem:[%s18775_s7 + $0x1] ss:$0 sm:$0xff] }
 0xea3   :  { %13785 = vmatmul.mubr.msk.f32.vlgmr.msra.gmra.mxu1 %vm2036_vm14, %v4583_v34  ;;  %13804 = vmatpush3.bf16.msra.mxu0 %v14246_v24 }
 0xea4   :  { %13795 = vmatpush3.msra.mxu1 %v3795_v3  ;;  %13805 = vmatprep.subr.bf16.mxu0 %v14833_v48 }
 0xea5   :  { %13796 = vmatprep.subr.mxu1 %v3794_v22  ;;  %v14606_v19 = vpop.eup %14605 }
 0xea6   :  { %13797 = vmatpush3.msra.mxu1 %v3794_v22  ;;  %v4587_v41 = vmul.f32 %v14606_v19, %v16851_v29  ;;  %v14248_v29 = vld [vmem:[%s18774_s6 + $0x60] sm:$0xff]  }
 0xea7   :  { %v14608_v43 = vpop.eup %14607  ;;  %13806 = vmatpush3.bf16.msra.mxu0 %v14247_v44  ;;  %v14253_v44 = vld [vmem:[%s18778_s10 + $0xf0] ss:$8 sps:$4 sm:$0xff]  }
 0xea8   :  { %v4586_v45 = vmul.f32 %v14608_v43, %v16855_v63  ;;  %13807 = vmatprep.subr.bf16.mxu0 %v14833_v48  ;;  %v14249_v63 = vld [vmem:[%s18774_s6 + $0x58] sm:$0xff]  }
 0xeaa   :  { %13798 = vmatprep.mubr.msk.f32.mxu1 %vm2036_vm14, %v4586_v45 }
 0xeab   :  { %13799 = vmatmul.mubr.msk.f32.vlgmr.msra.gmra.mxu1 %vm2036_vm14, %v4587_v41  ;;  %13808 = vmatpush3.bf16.msra.mxu0 %v14248_v29  ;;  %v14255_v29 = vld [vmem:[%s18778_s10 + $0xf4] ss:$8 sps:$4 sm:$0xff]  }
 0xeac   :  { %5554 = vmatprep.mubr.bf16.mxu1 %v14831_v2  ;;  %13809 = vmatprep.subr.bf16.mxu0 %v14833_v48 }
 0xead   :  { %5522 = vmatprep.subr.bf16.mxu1 %v14255_v29  ;;  %v14281_v29 = vld [vmem:[%s18780_s12 + $0xe8] sm:$0xff]  }
 0xeae   :  { %5523 = vmatpush1.bf16.msra.mxu1 %v14253_v44  ;;  %v14280_v44 = vld [vmem:[%s18780_s12 + $0xb0] sm:$0xff]  }
 0xeaf   :  { %13810 = vmatpush3.bf16.msra.mxu0 %v14249_v63 }
 0xeb0   :  { %13811 = vmatprep.subr.bf16.mxu0 %v14833_v48 }
 0xeb3   :  { %13812 = vmatpush3.bf16.msra.mxu0 %v14250_v32 }
 0xeb4   :  { %13813 = vmatprep.subr.bf16.mxu0 %v14833_v48 }
 0xeb7   :  { %13814 = vmatpush3.bf16.msra.mxu0 %v14251_v31 }
 0xeb8   :  { %13815 = vmatprep.subr.bf16.mxu0 %v14833_v48 }
 0xebb   :  { %13816 = vmatpush3.bf16.msra.mxu0 %v14252_v61 }
 0xf43   :  { %v13751_v42 = vpop.f32.mrf.mxu0 }
 0xf45   :  { %v4660_v36 = vpop.f32.mrf.mxu0 }
 0xf4b   :  { %v13758_v33 = vpop.f32.mrf.mxu1 }
 0xf4c   :  { %v5243_v10 = vadd.f32 %v13758_v33, %v13751_v42 }
 0xf4d   :  { %v4741_v62 = vpop.f32.mrf.mxu1 }
 0xf4e   :  { %v5236_v26 = vadd.f32 %v4741_v62, %v4660_v36  ;;  %v14256_v62 = vld [vmem:[%s18778_s10 + $0xe0] ss:$8 sps:$4 sm:$0xff]  }
 0xf53   :  { %v13765_v11 = vpop.f32.mrf.mxu0 }
 0xf54   :  { %v5244_v40 = vadd.f32 %v13765_v11, %v5243_v10  ;;  %v14261_v10 = vld [vmem:[%s18778_s10 + $0xd4] ss:$8 sps:$4 sm:$0xff]  }
 0xf55   :  { %v4822_v60 = vpop.f32.mrf.mxu0 }
 0xf56   :  { %v5237_v14 = vadd.f32 %v5236_v26, %v4822_v60  ;;  %v14258_v60 = vld [vmem:[%s18778_s10 + $0xe4] ss:$8 sps:$4 sm:$0xff]  }
 0xf57   :  { %v13779_v25 = vpop.f32.mrf.mxu0  ;;  %5524 = vmatprep.subr.bf16.mxu1 %v14258_v60  ;;  %v14264_v26 = vld [vmem:[%s18778_s10 + $0xc4] ss:$8 sps:$4 sm:$0xff]   ;;  %v12198_v60 = vld [vmem:[%s18779_s11 + $0x2] sm:$0x3] }
 0xf58   :  { %5525 = vmatpush1.bf16.msra.mxu1 %v14256_v62  ;;  %v14292_v62 = vld [vmem:[%s18780_s12 + $0x80] sm:$0xff]  }
 0xf59   :  { %v4984_v59 = vpop.f32.mrf.mxu0  ;;  %5526 = vmatprep.subr.bf16.mxu1 %v14261_v10  ;;  %v5439_v10 = vrot.slane %v12198_v60, %v16465_v39 }
 0xf5b   :  { %v13772_v52 = vpop.f32.mrf.mxu1  ;;  %v13793_v57 = vpop.f32.mrf.mxu0 }
 0xf5c   :  { %v5245_v20 = vadd.f32 %v13772_v52, %v5244_v40  ;;  %v14259_v52 = vld [vmem:[%s18778_s10 + $0xd0] ss:$8 sps:$4 sm:$0xff]  }
 0xf5d   :  { %v4903_v6 = vpop.f32.mrf.mxu1  ;;  %v5146_v17 = vpop.f32.mrf.mxu0  ;;  %5527 = vmatpush1.bf16.msra.mxu1 %v14259_v52  ;;  %v14265_v40 = vld [vmem:[%s18778_s10 + $0xb0] ss:$8 sps:$4 sm:$0xff]   ;;  %v5435_v52 = vrot.slane %v12198_v60, %v16459_v12 }
 0xf5e   :  { %v5238_v51 = vadd.f32 %v5237_v14, %v4903_v6  ;;  %v5246_v53 = vadd.f32 %v13779_v25, %v5245_v20  ;;  %v14262_v25 = vld [vmem:[%s18778_s10 + $0xc0] ss:$8 sps:$4 sm:$0xff]   ;;  %5528 = vmatprep.subr.bf16.mxu1 %v14264_v26  ;;  %v14267_v6 = vld [vmem:[%s18778_s10 + $0xb4] ss:$8 sps:$4 sm:$0xff]   ;;  %v14270_v14 = vld [vmem:[%s18778_s10 + $0xa4] ss:$8 sps:$4 sm:$0xff]  }
 0xf5f   :  { %v14268_v20 = vld [vmem:[%s18778_s10 + $0xa0] ss:$8 sps:$4 sm:$0xff]  }
 0xf60   :  { %v5239_v8 = vadd.f32 %v5238_v51, %v4984_v59  ;;  %v14273_v51 = vld [vmem:[%s18778_s10 + $0x94] ss:$8 sps:$4 sm:$0xff]   ;;  %v14271_v59 = vld [vmem:[%s18778_s10 + $0x90] ss:$8 sps:$4 sm:$0xff]  }
 0xf61   :  { %5529 = vmatpush1.bf16.msra.mxu1 %v14262_v25 }
 0xf62   :  { %5530 = vmatprep.subr.bf16.mxu1 %v14267_v6 }
 0xf63   :  { %v13786_v55 = vpop.f32.mrf.mxu1 }
 0xf64   :  { %v5247_v15 = vadd.f32 %v13786_v55, %v5246_v53  ;;  %v14276_v55 = vld [vmem:[%s18778_s10 + $0x84] ss:$8 sps:$4 sm:$0xff]  }
 0xf65   :  { %v5065_v18 = vpop.f32.mrf.mxu1  ;;  %5531 = vmatpush1.bf16.msra.mxu1 %v14265_v40 }
 0xf66   :  { %v5240_v5 = vadd.f32 %v5239_v8, %v5065_v18  ;;  %v5248_v21 = vadd.f32 %v13793_v57, %v5247_v15  ;;  %5532 = vmatprep.subr.bf16.mxu1 %v14270_v14  ;;  %v14274_v18 = vld [vmem:[%s18778_s10 + $0x80] ss:$8 sps:$4 sm:$0xff]  }
 0xf68   :  { %v5241_v56 = vadd.f32 %v5240_v5, %v5146_v17 }
 0xf69   :  { %5533 = vmatpush1.bf16.msra.mxu1 %v14268_v20 }
 0xf6a   :  { %5534 = vmatprep.subr.bf16.mxu1 %v14273_v51 }
 0xf6b   :  { %v13800_v1 = vpop.f32.mrf.mxu1 }
 0xf6c   :  { %v5249_v3 = vadd.f32 %v13800_v1, %v5248_v21 }
 0xf6d   :  { %v5227_v50 = vpop.f32.mrf.mxu1  ;;  %5535 = vmatpush1.bf16.msra.mxu1 %v14271_v59 }
 0xf6e   :  { %v5242_v13 = vadd.f32 %v5241_v56, %v5227_v50  ;;  %5536 = vmatprep.subr.bf16.mxu1 %v14276_v55  ;;  %v12180_v56 = vld [vmem:[%s18776_s8 + $0x1] ss:$0 sm:$0xff] }
 0xf70   :  { %v5250_v27 = vpack.c.bf16 %v5249_v3, %v5242_v13 }
 0xf71   :  { %5537 = vmatpush1.bf16.msra.mxu1 %v14274_v18 }
 0xf72   :  { %13818 = vmatmul.mubr.bf16.vlgmr.msra.gmra.mxu0 %v5250_v27  ;;  %v12181_v27 = vld [vmem:[%s18777_s9 + $0x1] ss:$0 sm:$0xff] }
0x1032   :  { %v5358_v34 = vpop.f32.mrf.mxu0 }
0x1033   :  { %v5359_v22 = vadd.f32 %v12169_v37, %v5358_v34 }
0x1034   :  { %v13819_v19 = vpop.f32.mrf.mxu0 }
0x1035   :  { %v16952_v43 = vadd.f32 %v5359_v22, %v16507_v38 }
0x1036   :  { %v5361_v45 = vpop.f32.mrf.mxu0 }
0x1037   :  { %v5362_v41 = vadd.f32 %v12169_v37, %v5361_v45  ;;  %5371 = vadd.xlane.f32.xlu1 %v16952_v43  ;;  %v14277_v45 = vld [vmem:[%s18780_s12 + $0xf8] sm:$0xff]  }
0x1038   :  { %v13820_v35 = vpop.f32.mrf.mxu0  ;;  %13287 = vmatprep.subr.bf16.mxu0 %v14277_v45 }
0x1039   :  { %v16956_v24 = vadd.f32 %v5362_v41, %v16511_v46  ;;  %v14278_v41 = vld [vmem:[%s18780_s12 + $0xb8] sm:$0xff]   ;;  %v14279_v35 = vld [vmem:[%s18780_s12 + $0xf0] sm:$0xff]  }
0x103a   :  { %13288 = vmatpush3.bf16.msra.mxu0 %v14278_v41 }
0x103b   :  { %5373 = vadd.xlane.f32.xlu0 %v16956_v24  ;;  %13289 = vmatprep.subr.bf16.mxu0 %v14279_v35 }
0x103e   :  { %13290 = vmatpush3.bf16.msra.mxu0 %v14280_v44 }
0x103f   :  { %13291 = vmatprep.subr.bf16.mxu0 %v14281_v29 }
0x10c0   :  { %v5372_v38 = vpop.xlane.xlu1 %5371 }
0x10c1   :  { %v5375_v63 = vmul.f32 0.015625, %v5372_v38  ;;  %v14282_v38 = vld [vmem:[%s18780_s12 + $0xa8] sm:$0xff]  }
0x10c2   :  { %13292 = vmatpush3.bf16.msra.mxu0 %v14282_v38 }
0x10c3   :  { %v5377_v32 = vsub.f32 %v16952_v43, %v5375_v63  ;;  %v14283_v63 = vld [vmem:[%s18780_s12 + $0xe0] sm:$0xff]  }
0x10c4   :  { %v5374_v31 = vpop.xlane.xlu0 %5373  ;;  %13293 = vmatprep.subr.bf16.mxu0 %v14283_v63 }
0x10c5   :  { %v5376_v61 = vmul.f32 0.015625, %v5374_v31  ;;  %v5379_v46 = vsel %vm63_vm0, %v5377_v32, 0.0  ;;  %v14284_v32 = vld [vmem:[%s18780_s12 + $0xa0] sm:$0xff]   ;;  %v14285_v31 = vld [vmem:[%s18780_s12 + $0xd8] sm:$0xff]  }
0x10c6   :  { %v5381_v42 = vmul.f32 %v5379_v46, %v5379_v46  ;;  %13294 = vmatpush3.bf16.msra.mxu0 %v14284_v32 }
0x10c7   :  { %v5378_v36 = vsub.f32 %v16956_v24, %v5376_v61  ;;  %v14286_v61 = vld [vmem:[%s18780_s12 + $0x98] sm:$0xff]   ;;  %13295 = vmatprep.subr.bf16.mxu0 %v14285_v31 }
0x10c8   :  { %5383 = vadd.xlane.f32.xlu1 %v5381_v42  ;;  %v14288_v42 = vld [vmem:[%s18780_s12 + $0x90] sm:$0xff]  }
0x10c9   :  { %v5380_v33 = vsel %vm63_vm0, %v5378_v36, 0.0  ;;  %v14289_v36 = vld [vmem:[%s18780_s12 + $0xc8] sm:$0xff]  }
0x10ca   :  { %v5382_v11 = vmul.f32 %v5380_v33, %v5380_v33  ;;  %13296 = vmatpush3.bf16.msra.mxu0 %v14286_v61 }
0x10cc   :  { %5385 = vadd.xlane.f32.xlu0 %v5382_v11  ;;  %v14291_v11 = vld [vmem:[%s18780_s12 + $0xc0] sm:$0xff]  }
0x1151   :  { %v5384_v53 = vpop.xlane.xlu1 %5383 }
0x1152   :  { %v5387_v8 = vmul.f32 0.015625, %v5384_v53 }
0x1154   :  { %v5389_v57 = vadd.f32 1e-05, %v5387_v8 }
0x1155   :  { %v5386_v15 = vpop.xlane.xlu0 %5385 }
0x1156   :  { %14609 = vrsqrt.f32 %v5389_v57  ;;  %v5388_v5 = vmul.f32 0.015625, %v5386_v15 }
0x1158   :  { %v5390_v17 = vadd.f32 1e-05, %v5388_v5 }
0x115a   :  { %14611 = vrsqrt.f32 %v5390_v17 }
0x1163   :  { %v14610_v1 = vpop.eup %14609 }
0x1164   :  { %v5393_v21 = vmul.f32 %v14610_v1, %v5379_v46  ;;  %v14287_v46 = vld [vmem:[%s18780_s12 + $0xd0] sm:$0xff]  }
0x1165   :  { %13297 = vmatprep.subr.bf16.mxu0 %v14287_v46 }
0x1166   :  { %v5401_v13 = vmul.f32 %v12180_v56, %v5393_v21  ;;  %13298 = vmatpush3.bf16.msra.mxu0 %v14288_v42 }
0x1167   :  { %v14612_v50 = vpop.eup %14611  ;;  %13299 = vmatprep.subr.bf16.mxu0 %v14289_v36 }
0x1168   :  { %v5394_v3 = vmul.f32 %v14612_v50, %v5380_v33  ;;  %v5409_v34 = vadd.f32 %v12181_v27, %v5401_v13  ;;  %v14290_v33 = vld [vmem:[%s18780_s12 + $0x88] sm:$0xff]  }
0x116a   :  { %v5402_v37 = vmul.f32 %v12180_v56, %v5394_v3  ;;  %13300 = vmatpush3.bf16.msra.mxu0 %v14290_v33 }
0x116b   :  { %13301 = vmatprep.subr.bf16.mxu0 %v14291_v11 }
0x116c   :  { %v5410_v22 = vadd.f32 %v12181_v27, %v5402_v37 }
0x116e   :  { %v5411_v19 = vpack.c.bf16 %v5410_v22, %v5409_v34  ;;  %13302 = vmatpush3.bf16.msra.mxu0 %v14292_v62 }
0x116f   :  { %13821 = vmatprep.subr.bf16.mxu0 %v14833_v48 }
0x1170   :  { %5555 = vmatmul.mubr.bf16.vlgmr.msra.gmra.mxu1 %v5411_v19 }
0x1171   :  { %6095 = vmatprep.mubr.bf16.mxu1 %v14831_v2 }
0x1230   :  { %v5556_v26 = vpop.f32.mrf.mxu1 }
0x1231   :  { %v17074_v25 = vadd.f32 %v5556_v26, %v5435_v52 }
0x1232   :  { %v5558_v6 = vpop.f32.mrf.mxu1 }
0x1233   :  { %v17077_v40 = vmul.f32 0.70710677, %v17074_v25  ;;  %v17079_v14 = vadd.f32 %v5558_v6, %v5439_v10 }
0x1234   :  { %v5560_v20 = vpop.f32.mrf.mxu1 }
0x1235   :  { %v5569_v51 = vand.u32 2147483647, %v17077_v40  ;;  %v17083_v59 = vmul.f32 0.70710677, %v17079_v14  ;;  %v17085_v55 = vadd.f32 %v5560_v20, %v5435_v52  ;;  %vm5649_vm7 = vcmp.ge.f32.partialorder %v17077_v40, 0.0 }
0x1236   :  { %v5562_v18 = vpop.f32.mrf.mxu1 }
0x1237   :  { %v5573_v53 = vmul.f32 0.3275911, %v5569_v51  ;;  %v5570_v8 = vand.u32 2147483647, %v17083_v59  ;;  %v17089_v57 = vmul.f32 0.70710677, %v17085_v55  ;;  %v17091_v15 = vadd.f32 %v5562_v18, %v5439_v10 }
0x1238   :  { %v5625_v34 = vsub.f32 0.0, %v5569_v51  ;;  %vm5650_vm6 = vcmp.ge.f32.partialorder %v17083_v59, 0.0  ;;  %v5662_v59 = vmul.f32 0.5, %v17079_v14 }
0x1239   :  { %v5577_v5 = vadd.f32 1.0, %v5573_v53  ;;  %v5574_v17 = vmul.f32 0.3275911, %v5570_v8  ;;  %v5571_v1 = vand.u32 2147483647, %v17089_v57  ;;  %v5626_v22 = vsub.f32 0.0, %v5570_v8 }
0x123a   :  { %v17095_v21 = vmul.f32 0.70710677, %v17091_v15  ;;  %v5629_v19 = vmul.f32 %v5625_v34, %v5569_v51  ;;  %vm5651_vm8 = vcmp.ge.f32.partialorder %v17089_v57, 0.0 }
0x123b   :  { %14613 = vrcp.f32 %v5577_v5  ;;  %v5578_v56 = vadd.f32 1.0, %v5574_v17  ;;  %v5575_v50 = vmul.f32 0.3275911, %v5571_v1  ;;  %v5627_v45 = vsub.f32 0.0, %v5571_v1 }
0x123c   :  { %v5572_v3 = vand.u32 2147483647, %v17095_v21  ;;  %v5630_v35 = vmul.f32 %v5626_v22, %v5570_v8  ;;  %v5633_v29 = vmul.f32 1.442695, %v5629_v19  ;;  %vm5652_vm9 = vcmp.ge.f32.partialorder %v17095_v21, 0.0 }
0x123d   :  { %14615 = vrcp.f32 %v5578_v56  ;;  %v5579_v13 = vadd.f32 1.0, %v5575_v50  ;;  %v5631_v63 = vmul.f32 %v5627_v45, %v5571_v1 }
0x123e   :  { %v5576_v27 = vmul.f32 0.3275911, %v5572_v3  ;;  %v5628_v38 = vsub.f32 0.0, %v5572_v3  ;;  %v5635_v46 = vmul.f32 1.442695, %v5630_v35 }
0x123f   :  { %14617 = vrcp.f32 %v5579_v13  ;;  %v5637_v60 = vmul.f32 1.442695, %v5631_v63 }
0x1240   :  { %v5580_v37 = vadd.f32 1.0, %v5576_v27  ;;  %v5632_v33 = vmul.f32 %v5628_v38, %v5572_v3 }
0x1242   :  { %14619 = vrcp.f32 %v5580_v37  ;;  %v5639_v18 = vmul.f32 1.442695, %v5632_v33 }
0x1243   :  { %14621 = vpow2.f32 %v5633_v29 }
0x1244   :  { %14623 = vpow2.f32 %v5635_v46 }
0x1245   :  { %14625 = vpow2.f32 %v5637_v60 }
0x1246   :  { %14627 = vpow2.f32 %v5639_v18 }
0x1248   :  { %v14614_v41 = vpop.eup %14613 }
0x1249   :  { %v5589_v44 = vmul.f32 1.0614054, %v14614_v41 }
0x124a   :  { %v14616_v32 = vpop.eup %14615 }
0x124b   :  { %v12215_v31 = vadd.f32 -1.4531521, %v5589_v44  ;;  %v5590_v61 = vmul.f32 1.0614054, %v14616_v32 }
0x124c   :  { %v14618_v42 = vpop.eup %14617 }
0x124d   :  { %v5597_v36 = vmul.f32 %v14614_v41, %v12215_v31  ;;  %v12216_v11 = vadd.f32 -1.4531521, %v5590_v61  ;;  %v5591_v62 = vmul.f32 1.0614054, %v14618_v42 }
0x124f   :  { %v5601_v52 = vadd.f32 1.4214138, %v5597_v36  ;;  %v14620_v10 = vpop.eup %14619  ;;  %v5598_v26 = vmul.f32 %v14616_v32, %v12216_v11  ;;  %v12217_v6 = vadd.f32 -1.4531521, %v5591_v62 }
0x1250   :  { %v5592_v51 = vmul.f32 1.0614054, %v14620_v10  ;;  %v14622_v44 = vpop.eup %14621 }
0x1251   :  { %v5605_v20 = vmul.f32 %v14614_v41, %v5601_v52  ;;  %v5602_v53 = vadd.f32 1.4214138, %v5598_v26  ;;  %v5599_v8 = vmul.f32 %v14618_v42, %v12217_v6  ;;  %v14624_v36 = vpop.eup %14623 }
0x1252   :  { %v12218_v17 = vadd.f32 -1.4531521, %v5592_v51  ;;  %v14626_v52 = vpop.eup %14625 }
0x1253   :  { %v12219_v5 = vadd.f32 -0.28449672, %v5605_v20  ;;  %v5606_v1 = vmul.f32 %v14616_v32, %v5602_v53  ;;  %v5603_v56 = vadd.f32 1.4214138, %v5599_v8  ;;  %v14628_v18 = vpop.eup %14627 }
0x1254   :  { %v5600_v3 = vmul.f32 %v14620_v10, %v12218_v17 }
0x1255   :  { %v5613_v50 = vmul.f32 %v14614_v41, %v12219_v5  ;;  %v12220_v13 = vadd.f32 -0.28449672, %v5606_v1  ;;  %v5607_v27 = vmul.f32 %v14618_v42, %v5603_v56 }
0x1256   :  { %v5604_v34 = vadd.f32 1.4214138, %v5600_v3 }
0x1257   :  { %v5617_v37 = vadd.f32 0.2548296, %v5613_v50  ;;  %v5614_v22 = vmul.f32 %v14616_v32, %v12220_v13  ;;  %v12221_v19 = vadd.f32 -0.28449672, %v5607_v27  ;;  %v5663_v27 = vmul.f32 0.5, %v17085_v55 }
0x1258   :  { %v5608_v35 = vmul.f32 %v14620_v10, %v5604_v34  ;;  %v5664_v34 = vmul.f32 0.5, %v17091_v15  ;;  %v12272_v15 = vld [vmem:[%s18802_s2 + $0x1] ss:$0 sm:$0xff] }
0x1259   :  { %v5621_v45 = vmul.f32 %v14614_v41, %v5617_v37  ;;  %v5618_v29 = vadd.f32 0.2548296, %v5614_v22  ;;  %v5615_v38 = vmul.f32 %v14618_v42, %v12221_v19  ;;  %v5661_v22 = vmul.f32 0.5, %v17074_v25 }
0x125a   :  { %v12222_v31 = vadd.f32 -0.28449672, %v5608_v35 }
0x125b   :  { %v5641_v63 = vmul.f32 %v14622_v44, %v5621_v45  ;;  %v5622_v61 = vmul.f32 %v14616_v32, %v5618_v29  ;;  %v5619_v46 = vadd.f32 0.2548296, %v5615_v38 }
0x125c   :  { %v5616_v33 = vmul.f32 %v14620_v10, %v12222_v31 }
0x125d   :  { %v5645_v11 = vsub.f32 1.0, %v5641_v63  ;;  %v5642_v62 = vmul.f32 %v14624_v36, %v5622_v61  ;;  %v5623_v60 = vmul.f32 %v14618_v42, %v5619_v46 }
0x125e   :  { %v5620_v26 = vadd.f32 0.2548296, %v5616_v33  ;;  %v14293_v33 = vld [vmem:[%s18773_s5 + $0x228] ss:$12 sps:$4 sm:$0xff]  }
0x125f   :  { %v5646_v6 = vsub.f32 1.0, %v5642_v62  ;;  %v5643_v20 = vmul.f32 %v14626_v52, %v5623_v60  ;;  %v5653_v41 = vsub.f32 0.0, %v5645_v11 }
0x1260   :  { %v5624_v51 = vmul.f32 %v14620_v10, %v5620_v26 }
0x1261   :  { %v5654_v53 = vsub.f32 0.0, %v5646_v6  ;;  %v5647_v8 = vsub.f32 1.0, %v5643_v20  ;;  %v5657_v42 = vsel %vm5649_vm7, %v5645_v11, %v5653_v41  ;;  %v14296_v11 = vld [vmem:[%s18773_s5 + $0x230] ss:$12 sps:$4 sm:$0xff]  }
0x1262   :  { %v5644_v5 = vmul.f32 %v14628_v18, %v5624_v51  ;;  %v5665_v10 = vadd.f32 1.0, %v5657_v42  ;;  %v14307_v42 = vld [vmem:[%s18773_s5 + $0x1e4] ss:$12 sps:$4 sm:$0xff]  }
0x1263   :  { %v5655_v17 = vsub.f32 0.0, %v5647_v8  ;;  %v5658_v32 = vsel %vm5650_vm6, %v5646_v6, %v5654_v53  ;;  %v14297_v53 = vld [vmem:[%s18773_s5 + $0x210] ss:$12 sps:$4 sm:$0xff]  }
0x1264   :  { %v5648_v1 = vsub.f32 1.0, %v5644_v5  ;;  %v5666_v13 = vadd.f32 1.0, %v5658_v32  ;;  %v5669_v35 = vmul.f32 %v5665_v10, %v5661_v22  ;;  %v14300_v5 = vld [vmem:[%s18773_s5 + $0x218] ss:$12 sps:$4 sm:$0xff]   ;;  %v14303_v32 = vld [vmem:[%s18773_s5 + $0x1fc] ss:$12 sps:$4 sm:$0xff]  }
0x1265   :  { %v5659_v56 = vsel %vm5651_vm8, %v5647_v8, %v5655_v17  ;;  %v14299_v8 = vld [vmem:[%s18773_s5 + $0x214] ss:$12 sps:$4 sm:$0xff]   ;;  %v14301_v17 = vld [vmem:[%s18773_s5 + $0x1f8] ss:$12 sps:$4 sm:$0xff]  }
0x1266   :  { %v5667_v50 = vadd.f32 1.0, %v5659_v56  ;;  %v5656_v3 = vsub.f32 0.0, %v5648_v1  ;;  %v5670_v19 = vmul.f32 %v5666_v13, %v5662_v59  ;;  %v14308_v56 = vld [vmem:[%s18773_s5 + $0x1e8] ss:$12 sps:$4 sm:$0xff]   ;;  %v14312_v13 = vld [vmem:[%s18773_s5 + $0x1d0] ss:$12 sps:$4 sm:$0xff]  }
0x1267   :  { %v14309_v10 = vld [vmem:[%s18773_s5 + $0x1c8] ss:$12 sps:$4 sm:$0xff]   ;;  %v14313_v59 = vld [vmem:[%s18773_s5 + $0x1b0] ss:$12 sps:$4 sm:$0xff]   ;;  %v14317_v22 = vld [vmem:[%s18773_s5 + $0x198] ss:$12 sps:$4 sm:$0xff]  }
0x1268   :  { %v5660_v37 = vsel %vm5652_vm9, %v5648_v1, %v5656_v3  ;;  %v5671_v57 = vmul.f32 %v5667_v50, %v5663_v27  ;;  %v14304_v1 = vld [vmem:[%s18773_s5 + $0x200] ss:$12 sps:$4 sm:$0xff]  }
0x1269   :  { %v5668_v40 = vadd.f32 1.0, %v5660_v37  ;;  %v14305_v50 = vld [vmem:[%s18773_s5 + $0x1e0] ss:$12 sps:$4 sm:$0xff]   ;;  %v14316_v37 = vld [vmem:[%s18773_s5 + $0x1b8] ss:$12 sps:$4 sm:$0xff]  }
0x126a   :  { %v5673_v29 = vpack.c.bf16 %v5671_v57, %v5669_v35  ;;  %v14311_v3 = vld [vmem:[%s18773_s5 + $0x1cc] ss:$12 sps:$4 sm:$0xff]   ;;  %v14315_v27 = vld [vmem:[%s18773_s5 + $0x1b4] ss:$12 sps:$4 sm:$0xff]   ;;  %v14323_v57 = vld [vmem:[%s18773_s5 + $0x184] ss:$12 sps:$4 sm:$0xff]  }
0x126b   :  { %v5672_v45 = vmul.f32 %v5668_v40, %v5664_v34  ;;  %v14319_v34 = vld [vmem:[%s18773_s5 + $0x19c] ss:$12 sps:$4 sm:$0xff]   ;;  %v14320_v40 = vld [vmem:[%s18773_s5 + $0x1a0] ss:$12 sps:$4 sm:$0xff]  }
0x126d   :  { %v5674_v44 = vpack.c.bf16 %v5672_v45, %v5670_v19  ;;  %v14324_v19 = vld [vmem:[%s18773_s5 + $0x188] ss:$12 sps:$4 sm:$0xff]   ;;  %v14321_v45 = vld [vmem:[%s18773_s5 + $0x180] ss:$12 sps:$4 sm:$0xff]  }
0x126f   :  { %5836 = vmatprep.mubr.bf16.mxu0 %v5674_v44 }
0x1270   :  { %5837 = vmatmul.mubr.bf16.vlgmr.msra.gmra.mxu0 %v5673_v29 }
0x1271   :  { %13837 = vmatprep.mubr.msk.bf16.mxu0 %vm14834_vm1, %v14833_v48  ;;  %13822 = vmatpush3.bf16.msra.mxu0 %v14296_v11 }
0x1272   :  { %13823 = vmatprep.subr.bf16.mxu0 %v14833_v48 }
0x1275   :  { %13824 = vmatpush3.bf16.msra.mxu0 %v14300_v5 }
0x1276   :  { %13825 = vmatprep.subr.bf16.mxu0 %v14833_v48 }
0x1279   :  { %13826 = vmatpush3.bf16.msra.mxu0 %v14304_v1 }
0x127a   :  { %13827 = vmatprep.subr.bf16.mxu0 %v14833_v48 }
0x127d   :  { %13828 = vmatpush3.bf16.msra.mxu0 %v14308_v56 }
0x127e   :  { %13829 = vmatprep.subr.bf16.mxu0 %v14833_v48 }
0x1281   :  { %13830 = vmatpush3.bf16.msra.mxu0 %v14312_v13 }
0x1282   :  { %13831 = vmatprep.subr.bf16.mxu0 %v14833_v48 }
0x1285   :  { %13832 = vmatpush3.bf16.msra.mxu0 %v14316_v37 }
0x1286   :  { %13833 = vmatprep.subr.bf16.mxu0 %v14833_v48 }
0x1289   :  { %13834 = vmatpush3.bf16.msra.mxu0 %v14320_v40 }
0x128a   :  { %13835 = vmatprep.subr.bf16.mxu0 %v14833_v48 }
0x128d   :  { %13836 = vmatpush3.bf16.msra.mxu0 %v14324_v19 }
0x1330   :  { %v13303_v55 = vpop.f32.mrf.mxu0 }
0x1332   :  { %v13304_v21 = vpop.f32.mrf.mxu0 }
0x1333   :  { %v13305_v38 = vadd.f32 %v13304_v21, %v13303_v55 }
0x1334   :  { %v13306_v14 = vpop.f32.mrf.mxu0 }
0x1335   :  { %v5845_v25 = vadd.f32 %v13305_v38, %v16952_v43  ;;  %v14295_v43 = vld [vmem:[%s18773_s5 + $0x22c] ss:$12 sps:$4 sm:$0xff]  }
0x1336   :  { %v13307_v63 = vpop.f32.mrf.mxu0  ;;  %6063 = vmatprep.subr.bf16.mxu1 %v14295_v43 }
0x1337   :  { %v13308_v31 = vadd.f32 %v13307_v63, %v13306_v14  ;;  %v17112_v61 = vadd.f32 %v12272_v15, %v5845_v25  ;;  %6064 = vmatpush1.bf16.msra.mxu1 %v14293_v33  ;;  %v12275_v25 = vld [vmem:[%s18771_s3 + $0x2] ss:$0 sm:$0xff] }
0x1338   :  { %6065 = vmatprep.subr.bf16.mxu1 %v14299_v8  ;;  %v12276_v33 = vld [vmem:[%s18772_s4 + $0x2] ss:$0 sm:$0xff] }
0x1339   :  { %v5846_v46 = vadd.f32 %v13308_v31, %v16956_v24  ;;  %5861 = vadd.xlane.f32.xlu1 %v17112_v61 }
0x133b   :  { %v17116_v36 = vadd.f32 %v12272_v15, %v5846_v46  ;;  %6066 = vmatpush1.bf16.msra.mxu1 %v14297_v53 }
0x133c   :  { %6067 = vmatprep.subr.bf16.mxu1 %v14303_v32 }
0x133d   :  { %5863 = vadd.xlane.f32.xlu0 %v17116_v36 }
0x133f   :  { %6068 = vmatpush1.bf16.msra.mxu1 %v14301_v17 }
0x1340   :  { %6069 = vmatprep.subr.bf16.mxu1 %v14307_v42 }
0x1343   :  { %6070 = vmatpush1.bf16.msra.mxu1 %v14305_v50 }
0x1344   :  { %6071 = vmatprep.subr.bf16.mxu1 %v14311_v3 }
0x1347   :  { %6072 = vmatpush1.bf16.msra.mxu1 %v14309_v10 }
0x1348   :  { %6073 = vmatprep.subr.bf16.mxu1 %v14315_v27 }
0x134b   :  { %6074 = vmatpush1.bf16.msra.mxu1 %v14313_v59 }
0x134c   :  { %6075 = vmatprep.subr.bf16.mxu1 %v14319_v34 }
0x134f   :  { %6076 = vmatpush1.bf16.msra.mxu1 %v14317_v22 }
0x1350   :  { %6077 = vmatprep.subr.bf16.mxu1 %v14323_v57 }
0x1353   :  { %6078 = vmatpush1.bf16.msra.mxu1 %v14321_v45 }
0x13c2   :  { %v5862_v24 = vpop.xlane.xlu1 %5861 }
0x13c3   :  { %v5865_v62 = vmul.f32 0.015625, %v5862_v24 }
0x13c5   :  { %v5867_v60 = vsub.f32 %v17112_v61, %v5865_v62 }
0x13c6   :  { %v5864_v52 = vpop.xlane.xlu0 %5863 }
0x13c7   :  { %v5866_v26 = vmul.f32 0.015625, %v5864_v52  ;;  %v17132_v6 = vsel %vm63_vm0, %v5867_v60, 0.0 }
0x13c8   :  { %v5871_v20 = vmul.f32 %v17132_v6, %v17132_v6 }
0x13c9   :  { %v5868_v51 = vsub.f32 %v17116_v36, %v5866_v26 }
0x13ca   :  { %5873 = vadd.xlane.f32.xlu1 %v5871_v20 }
0x13cb   :  { %v17139_v18 = vsel %vm63_vm0, %v5868_v51, 0.0 }
0x13cc   :  { %v5872_v41 = vmul.f32 %v17139_v18, %v17139_v18 }
0x13ce   :  { %5875 = vadd.xlane.f32.xlu0 %v5872_v41 }
0x1453   :  { %v5874_v35 = vpop.xlane.xlu1 %5873 }
0x1454   :  { %v5877_v44 = vmul.f32 0.015625, %v5874_v35 }
0x1456   :  { %v5879_v29 = vadd.f32 1e-05, %v5877_v44 }
0x1457   :  { %v5876_v55 = vpop.xlane.xlu0 %5875 }
0x1458   :  { %14629 = vrsqrt.f32 %v5879_v29  ;;  %v5878_v21 = vmul.f32 0.015625, %v5876_v55 }
0x145a   :  { %v5880_v38 = vadd.f32 1e-05, %v5878_v21 }
0x145c   :  { %14631 = vrsqrt.f32 %v5880_v38 }
0x1465   :  { %v14630_v14 = vpop.eup %14629 }
0x1466   :  { %v5883_v15 = vmul.f32 %v14630_v14, %v17132_v6 }
0x1468   :  { %v5891_v46 = vmul.f32 %v12275_v25, %v5883_v15 }
0x1469   :  { %v14632_v63 = vpop.eup %14631 }
0x146a   :  { %v5884_v31 = vmul.f32 %v14632_v63, %v17139_v18  ;;  %v5899_v11 = vadd.f32 %v12276_v33, %v5891_v46 }
0x146c   :  { %v5892_v43 = vmul.f32 %v12275_v25, %v5884_v31 }
0x146e   :  { %v5900_v24 = vadd.f32 %v12276_v33, %v5892_v43 }
0x1470   :  { %v5901_v62 = vpack.c.bf16 %v5900_v24, %v5899_v11 }
0x1472   :  { %6096 = vmatmul.mubr.bf16.vlgmr.msra.gmra.mxu1 %v5901_v62  ;;  %13838 = vmatmul.mubr.bf16.vlgmr.msra.gmra.mxu0 %v5901_v62 }
0x1532   :  { %v17220_v60 = vpop.f32.mrf.mxu1  ;;  %v17222_v52 = vpop.f32.mrf.mxu0 }
0x1533   :  { %13845 = vmatprep.mubr.f32.mxu1 %v17220_v60  ;;  %13873 = vmatprep.mubr.f32.mxu0 %v17220_v60  ;;  %v6163_v10 = vmul.f32 %v15958_v47, %v17222_v52  ;;  %v6165_v45 = vmul.f32 %v15974_v23, %v17222_v52 }
0x1534   :  { %v17226_v26 = vpop.f32.mrf.mxu1  ;;  %v13839_v6 = vpop.f32.mrf.mxu0 }
0x1535   :  { %v6147_v5 = vmul.f32 %v15958_v47, %v17226_v26  ;;  %v6155_v17 = vmul.f32 %v15961_v49, %v17226_v26  ;;  %v6149_v42 = vmul.f32 %v15974_v23, %v17226_v26  ;;  %v6159_v56 = vmul.f32 %v15977_v54, %v17226_v26 }
0x1536   :  { %v17228_v20 = vpop.f32.mrf.mxu1  ;;  %v17230_v51 = vpop.f32.mrf.mxu0  ;;  %v6151_v13 = vmul.f32 %v15994_v58, %v17226_v26  ;;  %v6153_v59 = vmul.f32 %v16014_v0, %v17226_v26  ;;  %v6157_v40 = vmul.f32 %v16026_v4, %v17226_v26  ;;  %v6161_v57 = vmul.f32 %v16038_v9, %v17226_v26 }
0x1537   :  { %v6164_v3 = vmul.f32 %v15958_v47, %v17230_v51  ;;  %v17260_v27 = vmul.f32 %v15994_v58, %v17230_v51  ;;  %v6166_v19 = vmul.f32 %v15974_v23, %v17230_v51  ;;  %v17285_v35 = vmul.f32 %v16014_v0, %v17230_v51 }
0x1538   :  { %v6103_v18 = vpop.f32.mrf.mxu1  ;;  %v13840_v41 = vpop.f32.mrf.mxu0 }
0x1539   :  { %v6148_v53 = vmul.f32 %v15958_v47, %v6103_v18  ;;  %v6156_v8 = vmul.f32 %v15961_v49, %v6103_v18  ;;  %v6150_v32 = vmul.f32 %v15974_v23, %v6103_v18  ;;  %v6160_v1 = vmul.f32 %v15977_v54, %v6103_v18 }
0x153a   :  { %v6152_v50 = vmul.f32 %v15994_v58, %v6103_v18  ;;  %v6154_v37 = vmul.f32 %v16014_v0, %v6103_v18  ;;  %v6158_v34 = vmul.f32 %v16026_v4, %v6103_v18  ;;  %v6162_v22 = vmul.f32 %v16038_v9, %v6103_v18 }
0x153b   :  { %13841 = vmatprep.subr.mxu1 %v6148_v53  ;;  %13869 = vmatprep.subr.mxu0 %v6156_v8 }
0x153c   :  { %13842 = vmatpush3.xpose.msra.mxu1 %v6148_v53  ;;  %13870 = vmatpush3.xpose.msra.mxu0 %v6156_v8 }
0x153d   :  { %13843 = vmatprep.subr.mxu1 %v6147_v5  ;;  %13871 = vmatprep.subr.mxu0 %v6155_v17 }
0x1540   :  { %13844 = vmatpush3.xpose.msra.mxu1 %v6147_v5  ;;  %13872 = vmatpush3.xpose.msra.mxu0 %v6155_v17 }
0x1541   :  { %13848 = vmatprep.subr.mxu1 %v6150_v32  ;;  %13883 = vmatprep.subr.mxu0 %v6160_v1 }
0x1543   :  { %13846 = vmatmul.mubr.f32.vlgmr.msra.gmra.mxu1 %v17228_v20  ;;  %13874 = vmatmul.mubr.f32.vlgmr.msra.gmra.mxu0 %v17228_v20 }
0x1544   :  { %13849 = vmatpush3.xpose.msra.mxu1 %v6150_v32  ;;  %13852 = vmatprep.mubr.f32.mxu1 %v17220_v60 }
0x1545   :  { %13884 = vmatpush3.xpose.msra.mxu0 %v6160_v1  ;;  %13887 = vmatprep.mubr.f32.mxu0 %v17220_v60 }
0x1546   :  { %13850 = vmatprep.subr.mxu1 %v6149_v42  ;;  %13885 = vmatprep.subr.mxu0 %v6159_v56 }
0x1548   :  { %13851 = vmatpush3.xpose.msra.mxu1 %v6149_v42 }
0x1549   :  { %13886 = vmatpush3.xpose.msra.mxu0 %v6159_v56  ;;  %13855 = vmatprep.subr.mxu1 %v6152_v50 }
0x154a   :  { %13897 = vmatprep.subr.mxu0 %v6164_v3 }
0x154b   :  { %13853 = vmatmul.mubr.f32.vlgmr.msra.gmra.mxu1 %v17228_v20 }
0x154c   :  { %13888 = vmatmul.mubr.f32.vlgmr.msra.gmra.mxu0 %v17228_v20  ;;  %13856 = vmatpush3.xpose.msra.mxu1 %v6152_v50 }
0x154d   :  { %13859 = vmatprep.mubr.f32.mxu1 %v17220_v60  ;;  %13898 = vmatpush3.msra.mxu0 %v6164_v3 }
0x154e   :  { %13857 = vmatprep.subr.mxu1 %v6151_v13  ;;  %13899 = vmatprep.subr.mxu0 %v6163_v10 }
0x154f   :  { %13900 = vmatpush3.msra.mxu0 %v6163_v10 }
0x1550   :  { %13911 = vmatprep.subr.mxu0 %v17260_v27  ;;  %13858 = vmatpush3.xpose.msra.mxu1 %v6151_v13 }
0x1551   :  { %13862 = vmatprep.subr.mxu1 %v6154_v37 }
0x1553   :  { %13860 = vmatmul.mubr.f32.vlgmr.msra.gmra.mxu1 %v17228_v20 }
0x1554   :  { %13863 = vmatpush3.xpose.msra.mxu1 %v6154_v37  ;;  %13866 = vmatprep.mubr.f32.mxu1 %v17220_v60 }
0x1555   :  { %13864 = vmatprep.subr.mxu1 %v6153_v59 }
0x1558   :  { %13865 = vmatpush3.xpose.msra.mxu1 %v6153_v59 }
0x1559   :  { %13876 = vmatprep.subr.mxu1 %v6158_v34 }
0x155b   :  { %13867 = vmatmul.mubr.f32.vlgmr.msra.gmra.mxu1 %v17228_v20 }
0x155c   :  { %13877 = vmatpush3.xpose.msra.mxu1 %v6158_v34  ;;  %13880 = vmatprep.mubr.f32.mxu1 %v17220_v60 }
0x155d   :  { %13878 = vmatprep.subr.mxu1 %v6157_v40 }
0x1560   :  { %13879 = vmatpush3.xpose.msra.mxu1 %v6157_v40 }
0x1561   :  { %13890 = vmatprep.subr.mxu1 %v6162_v22 }
0x1563   :  { %13881 = vmatmul.mubr.f32.vlgmr.msra.gmra.mxu1 %v17228_v20 }
0x1564   :  { %13891 = vmatpush3.xpose.msra.mxu1 %v6162_v22  ;;  %13894 = vmatprep.mubr.f32.mxu1 %v17220_v60 }
0x1565   :  { %13892 = vmatprep.subr.mxu1 %v6161_v57 }
0x1568   :  { %13893 = vmatpush3.xpose.msra.mxu1 %v6161_v57 }
0x1569   :  { %13904 = vmatprep.subr.mxu1 %v6166_v19 }
0x156b   :  { %13895 = vmatmul.mubr.f32.vlgmr.msra.gmra.mxu1 %v17228_v20 }
0x156c   :  { %13905 = vmatpush3.msra.mxu1 %v6166_v19 }
0x156d   :  { %13906 = vmatprep.subr.mxu1 %v6165_v45 }
0x156e   :  { %13907 = vmatpush3.msra.mxu1 %v6165_v45 }
0x156f   :  { %13918 = vmatprep.subr.mxu1 %v17285_v35 }
0x1603   :  { %v13847_v44 = vpop.f32.mrf.mxu1  ;;  %v13875_v29 = vpop.f32.mrf.mxu0 }
0x1604   :  { %v17290_v55 = vsel %vm16064_vm13, %v13847_v44, -inf  ;;  %v17296_v15 = vsel %vm16064_vm13, %v13875_v29, -inf }
0x1605   :  { %v6245_v21 = vpop.f32.mrf.mxu1  ;;  %v6545_v38 = vpop.f32.mrf.mxu0  ;;  %v6798_v14 = vsel %vm2036_vm14, %v17290_v55, -inf  ;;  %v6822_v46 = vsel %vm2036_vm14, %v17296_v15, -inf }
0x1606   :  { %v17300_v25 = vsel %vm16068_vm15, %v6245_v21, -inf  ;;  %6799 = vmax.xlane.f32.xlu0 %v6798_v14  ;;  %v17306_v31 = vsel %vm16068_vm15, %v6545_v38, -inf }
0x1607   :  { %v6795_v63 = vsel %vm2036_vm14, %v17300_v25, -inf  ;;  %v6819_v43 = vsel %vm2036_vm14, %v17306_v31, -inf }
0x1608   :  { %6796 = vmax.xlane.f32.xlu1 %v6795_v63 }
0x160a   :  { %6823 = vmax.xlane.f32.xlu0 %v6822_v46 }
0x160b   :  { %v13854_v33 = vpop.f32.mrf.mxu1 }
0x160c   :  { %v17314_v11 = vsel %vm16064_vm13, %v13854_v33, -inf  ;;  %v13889_v24 = vpop.f32.mrf.mxu0  ;;  %6820 = vmax.xlane.f32.xlu1 %v6819_v43 }
0x160d   :  { %v6320_v62 = vpop.f32.mrf.mxu1  ;;  %v6804_v60 = vsel %vm2036_vm14, %v17314_v11, -inf  ;;  %v17320_v26 = vsel %vm16064_vm13, %v13889_v24, -inf }
0x160e   :  { %v17324_v6 = vsel %vm16068_vm15, %v6320_v62, -inf  ;;  %v6695_v20 = vpop.f32.mrf.mxu0  ;;  %6805 = vmax.xlane.f32.xlu0 %v6804_v60  ;;  %v6834_v53 = vsel %vm2036_vm14, %v17320_v26, -inf }
0x160f   :  { %v6801_v18 = vsel %vm2036_vm14, %v17324_v6, -inf  ;;  %v17330_v41 = vsel %vm16068_vm15, %v6695_v20, -inf }
0x1610   :  { %6802 = vmax.xlane.f32.xlu1 %v6801_v18  ;;  %v6831_v8 = vsel %vm2036_vm14, %v17330_v41, -inf }
0x1612   :  { %6835 = vmax.xlane.f32.xlu0 %v6834_v53 }
0x1613   :  { %v13861_v5 = vpop.f32.mrf.mxu1 }
0x1614   :  { %v17338_v17 = vsel %vm16064_vm13, %v13861_v5, -inf  ;;  %6832 = vmax.xlane.f32.xlu1 %v6831_v8 }
0x1615   :  { %v6395_v32 = vpop.f32.mrf.mxu1  ;;  %v6810_v1 = vsel %vm2036_vm14, %v17338_v17, -inf }
0x1616   :  { %v17344_v42 = vsel %vm16068_vm15, %v6395_v32, -inf  ;;  %6811 = vmax.xlane.f32.xlu0 %v6810_v1 }
0x1617   :  { %v6807_v56 = vsel %vm2036_vm14, %v17344_v42, -inf }
0x1618   :  { %6808 = vmax.xlane.f32.xlu1 %v6807_v56 }
0x161b   :  { %v13868_v50 = vpop.f32.mrf.mxu1 }
0x161c   :  { %v17350_v3 = vsel %vm16064_vm13, %v13868_v50, -inf }
0x161d   :  { %v6470_v13 = vpop.f32.mrf.mxu1  ;;  %v6816_v10 = vsel %vm2036_vm14, %v17350_v3, -inf }
0x161e   :  { %v17356_v37 = vsel %vm16068_vm15, %v6470_v13, -inf  ;;  %6817 = vmax.xlane.f32.xlu0 %v6816_v10 }
0x161f   :  { %v6813_v59 = vsel %vm2036_vm14, %v17356_v37, -inf }
0x1620   :  { %6814 = vmax.xlane.f32.xlu1 %v6813_v59 }
0x1623   :  { %v13882_v34 = vpop.f32.mrf.mxu1 }
0x1624   :  { %v17362_v40 = vsel %vm16064_vm13, %v13882_v34, -inf }
0x1625   :  { %v6620_v22 = vpop.f32.mrf.mxu1  ;;  %v6828_v57 = vsel %vm2036_vm14, %v17362_v40, -inf }
0x1626   :  { %v17368_v19 = vsel %vm16068_vm15, %v6620_v22, -inf  ;;  %6829 = vmax.xlane.f32.xlu0 %v6828_v57 }
0x1627   :  { %v6825_v45 = vsel %vm2036_vm14, %v17368_v19, -inf }
0x1628   :  { %6826 = vmax.xlane.f32.xlu1 %v6825_v45 }
0x162b   :  { %v13896_v44 = vpop.f32.mrf.mxu1 }
0x162c   :  { %v17374_v29 = vsel %vm16064_vm13, %v13896_v44, -inf }
0x162d   :  { %v6770_v21 = vpop.f32.mrf.mxu1  ;;  %v6840_v38 = vsel %vm2036_vm14, %v17374_v29, -inf }
0x162e   :  { %v17380_v14 = vsel %vm16068_vm15, %v6770_v21, -inf  ;;  %6841 = vmax.xlane.f32.xlu0 %v6840_v38 }
0x162f   :  { %v6837_v63 = vsel %vm2036_vm14, %v17380_v14, -inf }
0x1630   :  { %6838 = vmax.xlane.f32.xlu1 %v6837_v63 }
0x168f   :  { %v6800_v46 = vpop.xlane.xlu0 %6799 }
0x1690   :  { %v6844_v33 = vsub.f32 %v17290_v55, %v6800_v46 }
0x1691   :  { %v6797_v43 = vpop.xlane.xlu1 %6796 }
0x1692   :  { %v6861_v24 = vmul.f32 1.442695, %v6844_v33  ;;  %v6843_v62 = vsub.f32 %v17300_v25, %v6797_v43 }
0x1693   :  { %v6824_v60 = vpop.xlane.xlu0 %6823 }
0x1694   :  { %14633 = vpow2.f32 %v6861_v24  ;;  %v6859_v20 = vmul.f32 1.442695, %v6843_v62  ;;  %v6852_v18 = vsub.f32 %v17296_v15, %v6824_v60 }
0x1695   :  { %v6821_v53 = vpop.xlane.xlu1 %6820 }
0x1696   :  { %14635 = vpow2.f32 %v6859_v20  ;;  %v6877_v8 = vmul.f32 1.442695, %v6852_v18  ;;  %v6851_v5 = vsub.f32 %v17306_v31, %v6821_v53 }
0x1697   :  { %v6806_v32 = vpop.xlane.xlu0 %6805 }
0x1698   :  { %14637 = vpow2.f32 %v6877_v8  ;;  %v6875_v1 = vmul.f32 1.442695, %v6851_v5  ;;  %v6846_v56 = vsub.f32 %v17314_v11, %v6806_v32 }
0x1699   :  { %v6803_v55 = vpop.xlane.xlu1 %6802 }
0x169a   :  { %14639 = vpow2.f32 %v6875_v1  ;;  %v6865_v50 = vmul.f32 1.442695, %v6846_v56  ;;  %v6845_v25 = vsub.f32 %v17324_v6, %v6803_v55 }
0x169b   :  { %v6836_v13 = vpop.xlane.xlu0 %6835 }
0x169c   :  { %14641 = vpow2.f32 %v6865_v50  ;;  %v6863_v10 = vmul.f32 1.442695, %v6845_v25  ;;  %v6856_v15 = vsub.f32 %v17320_v26, %v6836_v13 }
0x169d   :  { %v6833_v59 = vpop.xlane.xlu1 %6832 }
0x169e   :  { %14643 = vpow2.f32 %v6863_v10  ;;  %v6885_v34 = vmul.f32 1.442695, %v6856_v15  ;;  %v6855_v31 = vsub.f32 %v17330_v41, %v6833_v59 }
0x169f   :  { %v6812_v22 = vpop.xlane.xlu0 %6811 }
0x16a0   :  { %14645 = vpow2.f32 %v6885_v34  ;;  %v6883_v57 = vmul.f32 1.442695, %v6855_v31  ;;  %v6848_v11 = vsub.f32 %v17338_v17, %v6812_v22 }
0x16a1   :  { %v17393_v45 = vpop.eup %14633  ;;  %v6809_v44 = vpop.xlane.xlu1 %6808 }
0x16a2   :  { %14647 = vpow2.f32 %v6883_v57  ;;  %v6869_v6 = vmul.f32 1.442695, %v6848_v11  ;;  %v6847_v21 = vsub.f32 %v17344_v42, %v6809_v44  ;;  %v6894_v26 = vsel %vm2036_vm14, %v17393_v45, 0.0 }
0x16a3   :  { %v17398_v38 = vpop.eup %14635  ;;  %6895 = vadd.xlane.f32.xlu0 %v6894_v26 }
0x16a4   :  { %14649 = vpow2.f32 %v6869_v6  ;;  %v6867_v41 = vmul.f32 1.442695, %v6847_v21  ;;  %v6891_v63 = vsel %vm2036_vm14, %v17398_v38, 0.0 }
0x16a5   :  { %v17402_v46 = vpop.eup %14637  ;;  %6892 = vadd.xlane.f32.xlu1 %v6891_v63 }
0x16a6   :  { %14651 = vpow2.f32 %v6867_v41  ;;  %v6918_v17 = vsel %vm2036_vm14, %v17402_v46, 0.0 }
0x16a7   :  { %v17406_v33 = vpop.eup %14639  ;;  %v6818_v42 = vpop.xlane.xlu0 %6817  ;;  %6919 = vadd.xlane.f32.xlu0 %v6918_v17 }
0x16a8   :  { %v6850_v43 = vsub.f32 %v17350_v3, %v6818_v42  ;;  %v6915_v24 = vsel %vm2036_vm14, %v17406_v33, 0.0 }
0x16a9   :  { %v17411_v62 = vpop.eup %14641  ;;  %v6815_v60 = vpop.xlane.xlu1 %6814  ;;  %6916 = vadd.xlane.f32.xlu1 %v6915_v24 }
0x16aa   :  { %v6873_v20 = vmul.f32 1.442695, %v6850_v43  ;;  %v6849_v18 = vsub.f32 %v17356_v37, %v6815_v60  ;;  %v6900_v53 = vsel %vm2036_vm14, %v17411_v62, 0.0 }
0x16ab   :  { %v17416_v8 = vpop.eup %14643  ;;  %6901 = vadd.xlane.f32.xlu0 %v6900_v53 }
0x16ac   :  { %14653 = vpow2.f32 %v6873_v20  ;;  %v6871_v5 = vmul.f32 1.442695, %v6849_v18  ;;  %v6897_v3 = vsel %vm2036_vm14, %v17416_v8, 0.0 }
0x16ad   :  { %v17420_v32 = vpop.eup %14645  ;;  %6898 = vadd.xlane.f32.xlu1 %v6897_v3 }
0x16ae   :  { %14655 = vpow2.f32 %v6871_v5  ;;  %v6930_v1 = vsel %vm2036_vm14, %v17420_v32, 0.0 }
0x16af   :  { %v17424_v56 = vpop.eup %14647  ;;  %v6830_v37 = vpop.xlane.xlu0 %6829  ;;  %6931 = vadd.xlane.f32.xlu0 %v6930_v1 }
0x16b0   :  { %v6854_v55 = vsub.f32 %v17362_v40, %v6830_v37  ;;  %v6927_v50 = vsel %vm2036_vm14, %v17424_v56, 0.0 }
0x16b1   :  { %v17429_v25 = vpop.eup %14649  ;;  %v6827_v13 = vpop.xlane.xlu1 %6826  ;;  %6928 = vadd.xlane.f32.xlu1 %v6927_v50 }
0x16b2   :  { %v6881_v10 = vmul.f32 1.442695, %v6854_v55  ;;  %v6853_v15 = vsub.f32 %v17368_v19, %v6827_v13  ;;  %v6906_v59 = vsel %vm2036_vm14, %v17429_v25, 0.0 }
0x16b3   :  { %v17434_v34 = vpop.eup %14651  ;;  %6907 = vadd.xlane.f32.xlu0 %v6906_v59 }
0x16b4   :  { %14657 = vpow2.f32 %v6881_v10  ;;  %v6879_v31 = vmul.f32 1.442695, %v6853_v15  ;;  %v6903_v40 = vsel %vm2036_vm14, %v17434_v34, 0.0 }
0x16b5   :  { %6904 = vadd.xlane.f32.xlu1 %v6903_v40 }
0x16b6   :  { %14659 = vpow2.f32 %v6879_v31 }
0x16b7   :  { %v6842_v22 = vpop.xlane.xlu0 %6841 }
0x16b8   :  { %v6858_v57 = vsub.f32 %v17374_v29, %v6842_v22  ;;  %v6167_v22 = vmul.f32 %v15994_v58, %v17222_v52 }
0x16b9   :  { %v17439_v11 = vpop.eup %14653  ;;  %v6839_v44 = vpop.xlane.xlu1 %6838 }
0x16ba   :  { %v6889_v19 = vmul.f32 1.442695, %v6858_v57  ;;  %v6857_v6 = vsub.f32 %v17380_v14, %v6839_v44  ;;  %v6912_v21 = vsel %vm2036_vm14, %v17439_v11, 0.0  ;;  %v6172_v57 = vmul.f32 %v15961_v49, %v17230_v51 }
0x16bb   :  { %v17444_v26 = vpop.eup %14655  ;;  %6913 = vadd.xlane.f32.xlu0 %v6912_v21 }
0x16bc   :  { %14661 = vpow2.f32 %v6889_v19  ;;  %v6887_v41 = vmul.f32 1.442695, %v6857_v6  ;;  %v6909_v63 = vsel %vm2036_vm14, %v17444_v26, 0.0 }
0x16bd   :  { %6910 = vadd.xlane.f32.xlu1 %v6909_v63  ;;  %v6174_v63 = vmul.f32 %v16026_v4, %v17230_v51 }
0x16be   :  { %14663 = vpow2.f32 %v6887_v41 }
0x16c1   :  { %v17448_v29 = vpop.eup %14657 }
0x16c2   :  { %v6924_v17 = vsel %vm2036_vm14, %v17448_v29, 0.0 }
0x16c3   :  { %v17452_v42 = vpop.eup %14659  ;;  %6925 = vadd.xlane.f32.xlu0 %v6924_v17 }
0x16c4   :  { %v6921_v14 = vsel %vm2036_vm14, %v17452_v42, 0.0 }
0x16c5   :  { %6922 = vadd.xlane.f32.xlu1 %v6921_v14 }
0x16c9   :  { %v17456_v43 = vpop.eup %14661 }
0x16ca   :  { %v6936_v24 = vsel %vm2036_vm14, %v17456_v43, 0.0 }
0x16cb   :  { %v17460_v60 = vpop.eup %14663  ;;  %6937 = vadd.xlane.f32.xlu0 %v6936_v24 }
0x16cc   :  { %v6933_v20 = vsel %vm2036_vm14, %v17460_v60, 0.0 }
0x16cd   :  { %6934 = vadd.xlane.f32.xlu1 %v6933_v20 }
0x172c   :  { %v6896_v18 = vpop.xlane.xlu0 %6895 }
0x172d   :  { %14665 = vrcp.f32 %v6896_v18 }
0x172e   :  { %v6893_v53 = vpop.xlane.xlu1 %6892 }
0x172f   :  { %14667 = vrcp.f32 %v6893_v53 }
0x1730   :  { %v6920_v5 = vpop.xlane.xlu0 %6919 }
0x1732   :  { %v6917_v3 = vpop.xlane.xlu1 %6916 }
0x1734   :  { %v6902_v1 = vpop.xlane.xlu0 %6901 }
0x1735   :  { %14669 = vrcp.f32 %v6902_v1 }
0x1736   :  { %v6899_v37 = vpop.xlane.xlu1 %6898 }
0x1737   :  { %14671 = vrcp.f32 %v6899_v37 }
0x1738   :  { %v6932_v55 = vpop.xlane.xlu0 %6931  ;;  %14673 = vrcp.f32 %v6917_v3 }
0x173a   :  { %v6929_v50 = vpop.xlane.xlu1 %6928  ;;  %v14666_v13 = vpop.eup %14665 }
0x173b   :  { %v6956_v40 = vmul.f32 %v14666_v13, %v17393_v45 }
0x173c   :  { %v14668_v10 = vpop.eup %14667  ;;  %v6908_v15 = vpop.xlane.xlu0 %6907 }
0x173d   :  { %v6955_v59 = vmul.f32 %v14668_v10, %v17398_v38  ;;  %14675 = vrcp.f32 %v6908_v15  ;;  %v6173_v15 = vmul.f32 %v16026_v4, %v17222_v52 }
0x173e   :  { %v6905_v31 = vpop.xlane.xlu1 %6904 }
0x173f   :  { %14677 = vrcp.f32 %v6905_v31  ;;  %13901 = vmatprep.mubr.msk.f32.mxu0 %vm2036_vm14, %v6955_v59 }
0x1740   :  { %13902 = vmatmul.mubr.msk.f32.vlgmr.msra.gmra.mxu0 %vm2036_vm14, %v6956_v40  ;;  %14679 = vrcp.f32 %v6920_v5  ;;  %v6171_v5 = vmul.f32 %v15961_v49, %v17222_v52  ;;  %v6177_v40 = vmul.f32 %v16038_v9, %v17222_v52 }
0x1741   :  { %13912 = vmatpush3.msra.mxu0 %v17260_v27  ;;  %14681 = vrcp.f32 %v6929_v50  ;;  %v6169_v27 = vmul.f32 %v16014_v0, %v17222_v52  ;;  %v6175_v50 = vmul.f32 %v15977_v54, %v17222_v52  ;;  %v14326_v52 = vld [vmem:[%s18774_s6 + $0xb0] sm:$0xff]  }
0x1742   :  { %13913 = vmatprep.subr.mxu0 %v6167_v22  ;;  %v14670_v38 = vpop.eup %14669  ;;  %14683 = vrcp.f32 %v6932_v55 }
0x1743   :  { %13914 = vmatpush3.msra.mxu0 %v6167_v22  ;;  %v6958_v21 = vmul.f32 %v14670_v38, %v17411_v62 }
0x1744   :  { %v14672_v44 = vpop.eup %14671  ;;  %13925 = vmatprep.subr.mxu0 %v6172_v57  ;;  %v6914_v45 = vpop.xlane.xlu0 %6913 }
0x1745   :  { %v6957_v19 = vmul.f32 %v14672_v44, %v17416_v8  ;;  %14685 = vrcp.f32 %v6914_v45  ;;  %v14674_v41 = vpop.eup %14673  ;;  %v14330_v44 = vld [vmem:[%s18774_s6 + $0x90] sm:$0xff]   ;;  %v14331_v45 = vld [vmem:[%s18774_s6 + $0x88] sm:$0xff]  }
0x1746   :  { %v6911_v6 = vpop.xlane.xlu1 %6910 }
0x1747   :  { %14687 = vrcp.f32 %v6911_v6  ;;  %13908 = vmatprep.mubr.msk.f32.mxu1 %vm2036_vm14, %v6957_v19  ;;  %v14332_v19 = vld [vmem:[%s18774_s6 + $0x80] sm:$0xff]  }
0x1748   :  { %13909 = vmatmul.mubr.msk.f32.vlgmr.msra.gmra.mxu1 %vm2036_vm14, %v6958_v21 }
0x1749   :  { %13919 = vmatpush3.msra.mxu1 %v17285_v35  ;;  %v6963_v35 = vmul.f32 %v14674_v41, %v17406_v33 }
0x174a   :  { %13920 = vmatprep.subr.mxu1 %v6169_v27  ;;  %v14676_v8 = vpop.eup %14675 }
0x174b   :  { %13921 = vmatpush3.msra.mxu1 %v6169_v27  ;;  %v6960_v20 = vmul.f32 %v14676_v8, %v17429_v25  ;;  %v6176_v25 = vmul.f32 %v15977_v54, %v17230_v51 }
0x174c   :  { %v14678_v17 = vpop.eup %14677  ;;  %13932 = vmatprep.subr.mxu1 %v6174_v63  ;;  %v6926_v62 = vpop.xlane.xlu0 %6925 }
0x174d   :  { %v6959_v14 = vmul.f32 %v14678_v17, %v17434_v34  ;;  %14689 = vrcp.f32 %v6926_v62  ;;  %v14680_v18 = vpop.eup %14679 }
0x174e   :  { %v6923_v24 = vpop.xlane.xlu1 %6922  ;;  %v14682_v53 = vpop.eup %14681  ;;  %v6964_v3 = vmul.f32 %v14680_v18, %v17402_v46 }
0x174f   :  { %14691 = vrcp.f32 %v6923_v24  ;;  %13915 = vmatprep.mubr.msk.f32.mxu0 %vm2036_vm14, %v6959_v14  ;;  %v14684_v34 = vpop.eup %14683  ;;  %v6967_v33 = vmul.f32 %v14682_v53, %v17424_v56 }
0x1750   :  { %13916 = vmatmul.mubr.msk.f32.vlgmr.msra.gmra.mxu0 %vm2036_vm14, %v6960_v20  ;;  %v6968_v56 = vmul.f32 %v14684_v34, %v17420_v32 }
0x1751   :  { %13926 = vmatpush3.msra.mxu0 %v6172_v57  ;;  %13929 = vmatprep.mubr.msk.f32.mxu0 %vm2036_vm14, %v6963_v35 }
0x1752   :  { %13927 = vmatprep.subr.mxu0 %v6171_v5  ;;  %v14686_v1 = vpop.eup %14685 }
0x1753   :  { %13928 = vmatpush3.msra.mxu0 %v6171_v5  ;;  %v6962_v10 = vmul.f32 %v14686_v1, %v17439_v11  ;;  %v6178_v11 = vmul.f32 %v16038_v9, %v17230_v51 }
0x1754   :  { %v14688_v37 = vpop.eup %14687  ;;  %13939 = vmatprep.subr.mxu0 %v6176_v25  ;;  %v6938_v55 = vpop.xlane.xlu0 %6937  ;;  %13930 = vmatmul.mubr.msk.f32.vlgmr.msra.gmra.mxu0 %vm2036_vm14, %v6964_v3 }
0x1755   :  { %13940 = vmatpush3.msra.mxu0 %v6176_v25  ;;  %13943 = vmatprep.mubr.msk.f32.mxu0 %vm2036_vm14, %v6967_v33  ;;  %v6961_v13 = vmul.f32 %v14688_v37, %v17444_v26  ;;  %14693 = vrcp.f32 %v6938_v55 }
0x1756   :  { %13941 = vmatprep.subr.mxu0 %v6175_v50  ;;  %v6935_v46 = vpop.xlane.xlu1 %6934 }
0x1757   :  { %13942 = vmatpush3.msra.mxu0 %v6175_v50  ;;  %14695 = vrcp.f32 %v6935_v46  ;;  %13922 = vmatprep.mubr.msk.f32.mxu1 %vm2036_vm14, %v6961_v13 }
0x1758   :  { %13923 = vmatmul.mubr.msk.f32.vlgmr.msra.gmra.mxu1 %vm2036_vm14, %v6962_v10  ;;  %13944 = vmatmul.mubr.msk.f32.vlgmr.msra.gmra.mxu0 %vm2036_vm14, %v6968_v56 }
0x1759   :  { %13933 = vmatpush3.msra.mxu1 %v6174_v63  ;;  %13953 = vmatprep.subr.bf16.mxu0 %v14833_v48 }
0x175a   :  { %13934 = vmatprep.subr.mxu1 %v6173_v15  ;;  %13969 = vmatprep.mubr.msk.bf16.mxu0 %vm14834_vm1, %v14833_v48  ;;  %v14690_v32 = vpop.eup %14689 }
0x175b   :  { %13935 = vmatpush3.msra.mxu1 %v6173_v15  ;;  %v6966_v31 = vmul.f32 %v14690_v32, %v17448_v29  ;;  %v14325_v29 = vld [vmem:[%s18774_s6 + $0xb8] sm:$0xff]  }
0x175c   :  { %v14692_v26 = vpop.eup %14691  ;;  %13946 = vmatprep.subr.mxu1 %v6178_v11  ;;  %13954 = vmatpush3.bf16.msra.mxu0 %v14325_v29 }
0x175d   :  { %v6965_v59 = vmul.f32 %v14692_v26, %v17452_v42  ;;  %13955 = vmatprep.subr.bf16.mxu0 %v14833_v48  ;;  %v14327_v42 = vld [vmem:[%s18774_s6 + $0xa8] sm:$0xff]  }
0x175f   :  { %13936 = vmatprep.mubr.msk.f32.mxu1 %vm2036_vm14, %v6965_v59  ;;  %v12366_v59 = vld [vmem:[%s18775_s7 + $0x2] ss:$0 sm:$0xff] }
0x1760   :  { %13937 = vmatmul.mubr.msk.f32.vlgmr.msra.gmra.mxu1 %vm2036_vm14, %v6966_v31  ;;  %13956 = vmatpush3.bf16.msra.mxu0 %v14326_v52 }
0x1761   :  { %13947 = vmatpush3.msra.mxu1 %v6178_v11  ;;  %13957 = vmatprep.subr.bf16.mxu0 %v14833_v48 }
0x1762   :  { %13948 = vmatprep.subr.mxu1 %v6177_v40  ;;  %v14694_v51 = vpop.eup %14693 }
0x1763   :  { %13949 = vmatpush3.msra.mxu1 %v6177_v40  ;;  %v6970_v38 = vmul.f32 %v14694_v51, %v17456_v43  ;;  %v14328_v43 = vld [vmem:[%s18774_s6 + $0xa0] sm:$0xff]  }
0x1764   :  { %v14696_v22 = vpop.eup %14695  ;;  %13958 = vmatpush3.bf16.msra.mxu0 %v14327_v42  ;;  %v14333_v42 = vld [vmem:[%s18778_s10 + $0x170] ss:$8 sps:$4 sm:$0xff]  }
0x1765   :  { %v6969_v57 = vmul.f32 %v14696_v22, %v17460_v60  ;;  %13959 = vmatprep.subr.bf16.mxu0 %v14833_v48  ;;  %v14329_v60 = vld [vmem:[%s18774_s6 + $0x98] sm:$0xff]  }
0x1767   :  { %13950 = vmatprep.mubr.msk.f32.mxu1 %vm2036_vm14, %v6969_v57 }
0x1768   :  { %13951 = vmatmul.mubr.msk.f32.vlgmr.msra.gmra.mxu1 %vm2036_vm14, %v6970_v38  ;;  %13960 = vmatpush3.bf16.msra.mxu0 %v14328_v43  ;;  %v14335_v43 = vld [vmem:[%s18778_s10 + $0x174] ss:$8 sps:$4 sm:$0xff]  }
0x1769   :  { %7937 = vmatprep.mubr.bf16.mxu1 %v14831_v2  ;;  %13961 = vmatprep.subr.bf16.mxu0 %v14833_v48 }
0x176a   :  { %7905 = vmatprep.subr.bf16.mxu1 %v14335_v43  ;;  %v14361_v43 = vld [vmem:[%s18780_s12 + $0x168] sm:$0xff]  }
0x176b   :  { %7906 = vmatpush1.bf16.msra.mxu1 %v14333_v42  ;;  %v14360_v42 = vld [vmem:[%s18780_s12 + $0x130] sm:$0xff]  }
0x176c   :  { %13962 = vmatpush3.bf16.msra.mxu0 %v14329_v60 }
0x176d   :  { %13963 = vmatprep.subr.bf16.mxu0 %v14833_v48 }
0x1770   :  { %13964 = vmatpush3.bf16.msra.mxu0 %v14330_v44 }
0x1771   :  { %13965 = vmatprep.subr.bf16.mxu0 %v14833_v48 }
0x1774   :  { %13966 = vmatpush3.bf16.msra.mxu0 %v14331_v45 }
0x1775   :  { %13967 = vmatprep.subr.bf16.mxu0 %v14833_v48 }
0x1778   :  { %13968 = vmatpush3.bf16.msra.mxu0 %v14332_v19 }
0x1800   :  { %v13903_v6 = vpop.f32.mrf.mxu0 }
0x1802   :  { %v7043_v21 = vpop.f32.mrf.mxu0 }
0x1808   :  { %v13910_v27 = vpop.f32.mrf.mxu1 }
0x1809   :  { %v7626_v62 = vadd.f32 %v13910_v27, %v13903_v6 }
0x180a   :  { %v7124_v63 = vpop.f32.mrf.mxu1 }
0x180b   :  { %v7619_v14 = vadd.f32 %v7124_v63, %v7043_v21  ;;  %v14336_v63 = vld [vmem:[%s18778_s10 + $0x160] ss:$8 sps:$4 sm:$0xff]  }
0x1810   :  { %v13917_v41 = vpop.f32.mrf.mxu0 }
0x1811   :  { %v7627_v18 = vadd.f32 %v13917_v41, %v7626_v62  ;;  %v14341_v62 = vld [vmem:[%s18778_s10 + $0x154] ss:$8 sps:$4 sm:$0xff]  }
0x1812   :  { %v7205_v8 = vpop.f32.mrf.mxu0 }
0x1813   :  { %v7620_v35 = vadd.f32 %v7619_v14, %v7205_v8  ;;  %v14338_v8 = vld [vmem:[%s18778_s10 + $0x164] ss:$8 sps:$4 sm:$0xff]  }
0x1814   :  { %v13931_v24 = vpop.f32.mrf.mxu0  ;;  %7907 = vmatprep.subr.bf16.mxu1 %v14338_v8  ;;  %v14344_v14 = vld [vmem:[%s18778_s10 + $0x144] ss:$8 sps:$4 sm:$0xff]  }
0x1815   :  { %7908 = vmatpush1.bf16.msra.mxu1 %v14336_v63  ;;  %v14372_v63 = vld [vmem:[%s18780_s12 + $0x100] sm:$0xff]  }
0x1816   :  { %v7367_v34 = vpop.f32.mrf.mxu0  ;;  %7909 = vmatprep.subr.bf16.mxu1 %v14341_v62  ;;  %v12395_v8 = vld [vmem:[%s18779_s11 + $0x4] sm:$0x3] }
0x1817   :  { %v7822_v62 = vrot.slane %v12395_v8, %v16465_v39 }
0x1818   :  { %v13924_v17 = vpop.f32.mrf.mxu1  ;;  %v13945_v37 = vpop.f32.mrf.mxu0 }
0x1819   :  { %v7628_v53 = vadd.f32 %v13924_v17, %v7627_v18  ;;  %v14339_v17 = vld [vmem:[%s18778_s10 + $0x150] ss:$8 sps:$4 sm:$0xff]  }
0x181a   :  { %v7286_v20 = vpop.f32.mrf.mxu1  ;;  %v7529_v13 = vpop.f32.mrf.mxu0  ;;  %7910 = vmatpush1.bf16.msra.mxu1 %v14339_v17  ;;  %v14345_v18 = vld [vmem:[%s18778_s10 + $0x130] ss:$8 sps:$4 sm:$0xff]   ;;  %v7818_v17 = vrot.slane %v12395_v8, %v16459_v12 }
0x181b   :  { %v7621_v5 = vadd.f32 %v7620_v35, %v7286_v20  ;;  %v7629_v1 = vadd.f32 %v13931_v24, %v7628_v53  ;;  %v14342_v24 = vld [vmem:[%s18778_s10 + $0x140] ss:$8 sps:$4 sm:$0xff]   ;;  %7911 = vmatprep.subr.bf16.mxu1 %v14344_v14  ;;  %v14347_v20 = vld [vmem:[%s18778_s10 + $0x134] ss:$8 sps:$4 sm:$0xff]   ;;  %v14350_v35 = vld [vmem:[%s18778_s10 + $0x124] ss:$8 sps:$4 sm:$0xff]  }
0x181c   :  { %v14348_v53 = vld [vmem:[%s18778_s10 + $0x120] ss:$8 sps:$4 sm:$0xff]  }
0x181d   :  { %v7622_v33 = vadd.f32 %v7621_v5, %v7367_v34  ;;  %v14353_v5 = vld [vmem:[%s18778_s10 + $0x114] ss:$8 sps:$4 sm:$0xff]   ;;  %v14351_v34 = vld [vmem:[%s18778_s10 + $0x110] ss:$8 sps:$4 sm:$0xff]  }
0x181e   :  { %7912 = vmatpush1.bf16.msra.mxu1 %v14342_v24 }
0x181f   :  { %7913 = vmatprep.subr.bf16.mxu1 %v14347_v20 }
0x1820   :  { %v13938_v25 = vpop.f32.mrf.mxu1 }
0x1821   :  { %v7630_v55 = vadd.f32 %v13938_v25, %v7629_v1  ;;  %v14356_v25 = vld [vmem:[%s18778_s10 + $0x104] ss:$8 sps:$4 sm:$0xff]  }
0x1822   :  { %v7448_v3 = vpop.f32.mrf.mxu1  ;;  %7914 = vmatpush1.bf16.msra.mxu1 %v14345_v18 }
0x1823   :  { %v7623_v50 = vadd.f32 %v7622_v33, %v7448_v3  ;;  %v7631_v10 = vadd.f32 %v13945_v37, %v7630_v55  ;;  %7915 = vmatprep.subr.bf16.mxu1 %v14350_v35  ;;  %v14354_v3 = vld [vmem:[%s18778_s10 + $0x100] ss:$8 sps:$4 sm:$0xff]  }
0x1825   :  { %v7624_v56 = vadd.f32 %v7623_v50, %v7529_v13 }
0x1826   :  { %7916 = vmatpush1.bf16.msra.mxu1 %v14348_v53 }
0x1827   :  { %7917 = vmatprep.subr.bf16.mxu1 %v14353_v5 }
0x1828   :  { %v13952_v46 = vpop.f32.mrf.mxu1 }
0x1829   :  { %v7632_v11 = vadd.f32 %v13952_v46, %v7631_v10 }
0x182a   :  { %v7610_v15 = vpop.f32.mrf.mxu1  ;;  %7918 = vmatpush1.bf16.msra.mxu1 %v14351_v34 }
0x182b   :  { %v7625_v32 = vadd.f32 %v7624_v56, %v7610_v15  ;;  %7919 = vmatprep.subr.bf16.mxu1 %v14356_v25  ;;  %v12377_v56 = vld [vmem:[%s18776_s8 + $0x2] ss:$0 sm:$0xff] }
0x182d   :  { %v7633_v26 = vpack.c.bf16 %v7632_v11, %v7625_v32 }
0x182e   :  { %7920 = vmatpush1.bf16.msra.mxu1 %v14354_v3 }
0x182f   :  { %13970 = vmatmul.mubr.bf16.vlgmr.msra.gmra.mxu0 %v7633_v26  ;;  %v12378_v26 = vld [vmem:[%s18777_s9 + $0x2] ss:$0 sm:$0xff] }
0x18ef   :  { %v7741_v31 = vpop.f32.mrf.mxu0 }
0x18f0   :  { %v7742_v40 = vadd.f32 %v12366_v59, %v7741_v31 }
0x18f1   :  { %v13971_v51 = vpop.f32.mrf.mxu0 }
0x18f2   :  { %v17557_v22 = vadd.f32 %v7742_v40, %v17112_v61 }
0x18f3   :  { %v7744_v57 = vpop.f32.mrf.mxu0 }
0x18f4   :  { %v7745_v38 = vadd.f32 %v12366_v59, %v7744_v57  ;;  %7754 = vadd.xlane.f32.xlu1 %v17557_v22  ;;  %v14357_v57 = vld [vmem:[%s18780_s12 + $0x178] sm:$0xff]  }
0x18f5   :  { %v13972_v29 = vpop.f32.mrf.mxu0  ;;  %13391 = vmatprep.subr.bf16.mxu0 %v14357_v57 }
0x18f6   :  { %v17561_v52 = vadd.f32 %v7745_v38, %v17116_v36  ;;  %v14358_v38 = vld [vmem:[%s18780_s12 + $0x138] sm:$0xff]   ;;  %v14359_v29 = vld [vmem:[%s18780_s12 + $0x170] sm:$0xff]  }
0x18f7   :  { %13392 = vmatpush3.bf16.msra.mxu0 %v14358_v38 }
0x18f8   :  { %7756 = vadd.xlane.f32.xlu0 %v17561_v52  ;;  %13393 = vmatprep.subr.bf16.mxu0 %v14359_v29 }
0x18fb   :  { %13394 = vmatpush3.bf16.msra.mxu0 %v14360_v42 }
0x18fc   :  { %13395 = vmatprep.subr.bf16.mxu0 %v14361_v43 }
0x197d   :  { %v7755_v61 = vpop.xlane.xlu1 %7754 }
0x197e   :  { %v7758_v60 = vmul.f32 0.015625, %v7755_v61  ;;  %v14362_v61 = vld [vmem:[%s18780_s12 + $0x128] sm:$0xff]  }
0x197f   :  { %13396 = vmatpush3.bf16.msra.mxu0 %v14362_v61 }
0x1980   :  { %v7760_v44 = vsub.f32 %v17557_v22, %v7758_v60  ;;  %v14363_v60 = vld [vmem:[%s18780_s12 + $0x160] sm:$0xff]  }
0x1981   :  { %v7757_v45 = vpop.xlane.xlu0 %7756  ;;  %13397 = vmatprep.subr.bf16.mxu0 %v14363_v60 }
0x1982   :  { %v7762_v36 = vsel %vm63_vm0, %v7760_v44, 0.0  ;;  %v7759_v19 = vmul.f32 0.015625, %v7757_v45  ;;  %v14364_v44 = vld [vmem:[%s18780_s12 + $0x120] sm:$0xff]   ;;  %v14365_v45 = vld [vmem:[%s18780_s12 + $0x158] sm:$0xff]  }
0x1983   :  { %v7764_v6 = vmul.f32 %v7762_v36, %v7762_v36  ;;  %13398 = vmatpush3.bf16.msra.mxu0 %v14364_v44 }
0x1984   :  { %v7761_v21 = vsub.f32 %v17561_v52, %v7759_v19  ;;  %13399 = vmatprep.subr.bf16.mxu0 %v14365_v45  ;;  %v14367_v19 = vld [vmem:[%s18780_s12 + $0x150] sm:$0xff]  }
0x1985   :  { %7766 = vadd.xlane.f32.xlu1 %v7764_v6  ;;  %v14368_v6 = vld [vmem:[%s18780_s12 + $0x110] sm:$0xff]  }
0x1986   :  { %v7763_v27 = vsel %vm63_vm0, %v7761_v21, 0.0  ;;  %v14369_v21 = vld [vmem:[%s18780_s12 + $0x148] sm:$0xff]  }
0x1987   :  { %v7765_v41 = vmul.f32 %v7763_v27, %v7763_v27 }
0x1989   :  { %7768 = vadd.xlane.f32.xlu0 %v7765_v41  ;;  %v14371_v41 = vld [vmem:[%s18780_s12 + $0x140] sm:$0xff]  }
0x1a0e   :  { %v7767_v1 = vpop.xlane.xlu1 %7766 }
0x1a0f   :  { %v7770_v33 = vmul.f32 0.015625, %v7767_v1 }
0x1a11   :  { %v7772_v37 = vadd.f32 1e-05, %v7770_v33 }
0x1a12   :  { %v7769_v55 = vpop.xlane.xlu0 %7768 }
0x1a13   :  { %14697 = vrsqrt.f32 %v7772_v37  ;;  %v7771_v50 = vmul.f32 0.015625, %v7769_v55 }
0x1a15   :  { %v7773_v13 = vadd.f32 1e-05, %v7771_v50 }
0x1a17   :  { %14699 = vrsqrt.f32 %v7773_v13 }
0x1a20   :  { %v14698_v46 = vpop.eup %14697 }
0x1a21   :  { %v7776_v10 = vmul.f32 %v14698_v46, %v7762_v36  ;;  %v14366_v36 = vld [vmem:[%s18780_s12 + $0x118] sm:$0xff]  }
0x1a22   :  { %13400 = vmatpush3.bf16.msra.mxu0 %v14366_v36 }
0x1a23   :  { %v7784_v32 = vmul.f32 %v12377_v56, %v7776_v10  ;;  %13401 = vmatprep.subr.bf16.mxu0 %v14367_v19 }
0x1a24   :  { %v14700_v15 = vpop.eup %14699 }
0x1a25   :  { %v7777_v11 = vmul.f32 %v14700_v15, %v7763_v27  ;;  %v7792_v31 = vadd.f32 %v12378_v26, %v7784_v32  ;;  %v14370_v27 = vld [vmem:[%s18780_s12 + $0x108] sm:$0xff]  }
0x1a26   :  { %13402 = vmatpush3.bf16.msra.mxu0 %v14368_v6 }
0x1a27   :  { %v7785_v59 = vmul.f32 %v12377_v56, %v7777_v11  ;;  %13403 = vmatprep.subr.bf16.mxu0 %v14369_v21 }
0x1a29   :  { %v7793_v40 = vadd.f32 %v12378_v26, %v7785_v59 }
0x1a2a   :  { %13404 = vmatpush3.bf16.msra.mxu0 %v14370_v27 }
0x1a2b   :  { %v7794_v51 = vpack.c.bf16 %v7793_v40, %v7792_v31  ;;  %13405 = vmatprep.subr.bf16.mxu0 %v14371_v41 }
0x1a2d   :  { %7938 = vmatmul.mubr.bf16.vlgmr.msra.gmra.mxu1 %v7794_v51 }
0x1a2e   :  { %8478 = vmatprep.mubr.bf16.mxu1 %v14831_v2  ;;  %13406 = vmatpush3.bf16.msra.mxu0 %v14372_v63 }
0x1a2f   :  { %13973 = vmatprep.subr.bf16.mxu0 %v14833_v48 }
0x1aed   :  { %v7939_v14 = vpop.f32.mrf.mxu1 }
0x1aee   :  { %v17679_v24 = vadd.f32 %v7939_v14, %v7818_v17 }
0x1aef   :  { %v7941_v20 = vpop.f32.mrf.mxu1 }
0x1af0   :  { %v17682_v18 = vmul.f32 0.70710677, %v17679_v24  ;;  %v17684_v35 = vadd.f32 %v7941_v20, %v7822_v62 }
0x1af1   :  { %v7943_v53 = vpop.f32.mrf.mxu1 }
0x1af2   :  { %v7952_v5 = vand.u32 2147483647, %v17682_v18  ;;  %v17688_v34 = vmul.f32 0.70710677, %v17684_v35  ;;  %v17690_v25 = vadd.f32 %v7943_v53, %v7818_v17  ;;  %vm8032_vm11 = vcmp.ge.f32.partialorder %v17682_v18, 0.0 }
0x1af3   :  { %v7945_v3 = vpop.f32.mrf.mxu1 }
0x1af4   :  { %v7956_v1 = vmul.f32 0.3275911, %v7952_v5  ;;  %v7953_v33 = vand.u32 2147483647, %v17688_v34  ;;  %v17694_v37 = vmul.f32 0.70710677, %v17690_v25  ;;  %v17696_v55 = vadd.f32 %v7945_v3, %v7822_v62 }
0x1af5   :  { %v8008_v31 = vsub.f32 0.0, %v7952_v5  ;;  %vm8033_vm10 = vcmp.ge.f32.partialorder %v17688_v34, 0.0  ;;  %v8045_v34 = vmul.f32 0.5, %v17684_v35 }
0x1af6   :  { %v7960_v50 = vadd.f32 1.0, %v7956_v1  ;;  %v7957_v13 = vmul.f32 0.3275911, %v7953_v33  ;;  %v7954_v46 = vand.u32 2147483647, %v17694_v37  ;;  %v8009_v40 = vsub.f32 0.0, %v7953_v33 }
0x1af7   :  { %v17700_v10 = vmul.f32 0.70710677, %v17696_v55  ;;  %v8012_v51 = vmul.f32 %v8008_v31, %v7952_v5  ;;  %vm8034_vm12 = vcmp.ge.f32.partialorder %v17694_v37, 0.0 }
0x1af8   :  { %14701 = vrcp.f32 %v7960_v50  ;;  %v7961_v56 = vadd.f32 1.0, %v7957_v13  ;;  %v7958_v15 = vmul.f32 0.3275911, %v7954_v46  ;;  %v8010_v57 = vsub.f32 0.0, %v7954_v46 }
0x1af9   :  { %v7955_v11 = vand.u32 2147483647, %v17700_v10  ;;  %v8013_v29 = vmul.f32 %v8009_v40, %v7953_v33  ;;  %v8016_v43 = vmul.f32 1.442695, %v8012_v51  ;;  %vm8035_vm2 = vcmp.ge.f32.partialorder %v17700_v10, 0.0 }
0x1afa   :  { %14703 = vrcp.f32 %v7961_v56  ;;  %v7962_v32 = vadd.f32 1.0, %v7958_v15  ;;  %v8014_v60 = vmul.f32 %v8010_v57, %v7954_v46 }
0x1afb   :  { %v7959_v26 = vmul.f32 0.3275911, %v7955_v11  ;;  %v8011_v61 = vsub.f32 0.0, %v7955_v11  ;;  %v8018_v19 = vmul.f32 1.442695, %v8013_v29 }
0x1afc   :  { %14705 = vrcp.f32 %v7962_v32  ;;  %v8020_v8 = vmul.f32 1.442695, %v8014_v60 }
0x1afd   :  { %v7963_v59 = vadd.f32 1.0, %v7959_v26  ;;  %v8015_v27 = vmul.f32 %v8011_v61, %v7955_v11 }
0x1aff   :  { %14707 = vrcp.f32 %v7963_v59  ;;  %v8022_v3 = vmul.f32 1.442695, %v8015_v27 }
0x1b00   :  { %14709 = vpow2.f32 %v8016_v43 }
0x1b01   :  { %14711 = vpow2.f32 %v8018_v19 }
0x1b02   :  { %14713 = vpow2.f32 %v8020_v8 }
0x1b03   :  { %14715 = vpow2.f32 %v8022_v3 }
0x1b05   :  { %v14702_v38 = vpop.eup %14701 }
0x1b06   :  { %v7972_v42 = vmul.f32 1.0614054, %v14702_v38 }
0x1b07   :  { %v14704_v44 = vpop.eup %14703 }
0x1b08   :  { %v12412_v45 = vadd.f32 -1.4531521, %v7972_v42  ;;  %v7973_v36 = vmul.f32 1.0614054, %v14704_v44 }
0x1b09   :  { %v14706_v6 = vpop.eup %14705 }
0x1b0a   :  { %v7980_v21 = vmul.f32 %v14702_v38, %v12412_v45  ;;  %v12413_v41 = vadd.f32 -1.4531521, %v7973_v36  ;;  %v7974_v63 = vmul.f32 1.0614054, %v14706_v6 }
0x1b0c   :  { %v7984_v17 = vadd.f32 1.4214138, %v7980_v21  ;;  %v14708_v62 = vpop.eup %14707  ;;  %v7981_v14 = vmul.f32 %v14704_v44, %v12413_v41  ;;  %v12414_v20 = vadd.f32 -1.4531521, %v7974_v63 }
0x1b0d   :  { %v7975_v5 = vmul.f32 1.0614054, %v14708_v62  ;;  %v14710_v42 = vpop.eup %14709 }
0x1b0e   :  { %v7988_v53 = vmul.f32 %v14702_v38, %v7984_v17  ;;  %v7985_v1 = vadd.f32 1.4214138, %v7981_v14  ;;  %v7982_v33 = vmul.f32 %v14706_v6, %v12414_v20  ;;  %v14712_v21 = vpop.eup %14711 }
0x1b0f   :  { %v12415_v13 = vadd.f32 -1.4531521, %v7975_v5  ;;  %v14714_v17 = vpop.eup %14713 }
0x1b10   :  { %v12416_v50 = vadd.f32 -0.28449672, %v7988_v53  ;;  %v7989_v46 = vmul.f32 %v14704_v44, %v7985_v1  ;;  %v7986_v56 = vadd.f32 1.4214138, %v7982_v33  ;;  %v14716_v3 = vpop.eup %14715 }
0x1b11   :  { %v7983_v11 = vmul.f32 %v14708_v62, %v12415_v13 }
0x1b12   :  { %v7996_v15 = vmul.f32 %v14702_v38, %v12416_v50  ;;  %v12417_v32 = vadd.f32 -0.28449672, %v7989_v46  ;;  %v7990_v26 = vmul.f32 %v14706_v6, %v7986_v56 }
0x1b13   :  { %v7987_v31 = vadd.f32 1.4214138, %v7983_v11 }
0x1b14   :  { %v8000_v59 = vadd.f32 0.2548296, %v7996_v15  ;;  %v7997_v40 = vmul.f32 %v14704_v44, %v12417_v32  ;;  %v12418_v51 = vadd.f32 -0.28449672, %v7990_v26  ;;  %v8046_v26 = vmul.f32 0.5, %v17690_v25 }
0x1b15   :  { %v7991_v29 = vmul.f32 %v14708_v62, %v7987_v31  ;;  %v8047_v31 = vmul.f32 0.5, %v17696_v55  ;;  %v12469_v55 = vld [vmem:[%s18802_s2 + $0x2] ss:$0 sm:$0xff] }
0x1b16   :  { %v8004_v57 = vmul.f32 %v14702_v38, %v8000_v59  ;;  %v8001_v43 = vadd.f32 0.2548296, %v7997_v40  ;;  %v7998_v61 = vmul.f32 %v14706_v6, %v12418_v51  ;;  %v8044_v40 = vmul.f32 0.5, %v17679_v24 }
0x1b17   :  { %v12419_v45 = vadd.f32 -0.28449672, %v7991_v29 }
0x1b18   :  { %v8024_v60 = vmul.f32 %v14710_v42, %v8004_v57  ;;  %v8005_v36 = vmul.f32 %v14704_v44, %v8001_v43  ;;  %v8002_v19 = vadd.f32 0.2548296, %v7998_v61 }
0x1b19   :  { %v7999_v27 = vmul.f32 %v14708_v62, %v12419_v45 }
0x1b1a   :  { %v8028_v41 = vsub.f32 1.0, %v8024_v60  ;;  %v8025_v63 = vmul.f32 %v14712_v21, %v8005_v36  ;;  %v8006_v8 = vmul.f32 %v14706_v6, %v8002_v19 }
0x1b1b   :  { %v8003_v14 = vadd.f32 0.2548296, %v7999_v27  ;;  %v14373_v27 = vld [vmem:[%s18773_s5 + $0x2e8] ss:$12 sps:$4 sm:$0xff]  }
0x1b1c   :  { %v8029_v20 = vsub.f32 1.0, %v8025_v63  ;;  %v8026_v53 = vmul.f32 %v14714_v17, %v8006_v8  ;;  %v8036_v38 = vsub.f32 0.0, %v8028_v41 }
0x1b1d   :  { %v8007_v5 = vmul.f32 %v14708_v62, %v8003_v14 }
0x1b1e   :  { %v8037_v1 = vsub.f32 0.0, %v8029_v20  ;;  %v8030_v33 = vsub.f32 1.0, %v8026_v53  ;;  %v8040_v6 = vsel %vm8032_vm11, %v8028_v41, %v8036_v38  ;;  %v14376_v41 = vld [vmem:[%s18773_s5 + $0x2f0] ss:$12 sps:$4 sm:$0xff]  }
0x1b1f   :  { %v8027_v50 = vmul.f32 %v14716_v3, %v8007_v5  ;;  %v8048_v62 = vadd.f32 1.0, %v8040_v6  ;;  %v14387_v6 = vld [vmem:[%s18773_s5 + $0x2a4] ss:$12 sps:$4 sm:$0xff]  }
0x1b20   :  { %v8038_v13 = vsub.f32 0.0, %v8030_v33  ;;  %v8041_v44 = vsel %vm8033_vm10, %v8029_v20, %v8037_v1  ;;  %v14377_v1 = vld [vmem:[%s18773_s5 + $0x2d0] ss:$12 sps:$4 sm:$0xff]  }
0x1b21   :  { %v8031_v46 = vsub.f32 1.0, %v8027_v50  ;;  %v8049_v32 = vadd.f32 1.0, %v8041_v44  ;;  %v8052_v29 = vmul.f32 %v8048_v62, %v8044_v40  ;;  %v14380_v50 = vld [vmem:[%s18773_s5 + $0x2d8] ss:$12 sps:$4 sm:$0xff]   ;;  %v14383_v44 = vld [vmem:[%s18773_s5 + $0x2bc] ss:$12 sps:$4 sm:$0xff]  }
0x1b22   :  { %v8042_v56 = vsel %vm8034_vm12, %v8030_v33, %v8038_v13  ;;  %v14379_v33 = vld [vmem:[%s18773_s5 + $0x2d4] ss:$12 sps:$4 sm:$0xff]   ;;  %v14381_v13 = vld [vmem:[%s18773_s5 + $0x2b8] ss:$12 sps:$4 sm:$0xff]  }
0x1b23   :  { %v8050_v15 = vadd.f32 1.0, %v8042_v56  ;;  %v8039_v11 = vsub.f32 0.0, %v8031_v46  ;;  %v8053_v51 = vmul.f32 %v8049_v32, %v8045_v34  ;;  %v14388_v56 = vld [vmem:[%s18773_s5 + $0x2a8] ss:$12 sps:$4 sm:$0xff]   ;;  %v14392_v32 = vld [vmem:[%s18773_s5 + $0x290] ss:$12 sps:$4 sm:$0xff]  }
0x1b24   :  { %v14389_v62 = vld [vmem:[%s18773_s5 + $0x288] ss:$12 sps:$4 sm:$0xff]   ;;  %v14393_v34 = vld [vmem:[%s18773_s5 + $0x270] ss:$12 sps:$4 sm:$0xff]   ;;  %v14397_v40 = vld [vmem:[%s18773_s5 + $0x258] ss:$12 sps:$4 sm:$0xff]  }
0x1b25   :  { %v8043_v59 = vsel %vm8035_vm2, %v8031_v46, %v8039_v11  ;;  %v8054_v37 = vmul.f32 %v8050_v15, %v8046_v26  ;;  %v14384_v46 = vld [vmem:[%s18773_s5 + $0x2c0] ss:$12 sps:$4 sm:$0xff]  }
0x1b26   :  { %v8051_v18 = vadd.f32 1.0, %v8043_v59  ;;  %v14385_v15 = vld [vmem:[%s18773_s5 + $0x2a0] ss:$12 sps:$4 sm:$0xff]   ;;  %v14396_v59 = vld [vmem:[%s18773_s5 + $0x278] ss:$12 sps:$4 sm:$0xff]  }
0x1b27   :  { %v8056_v43 = vpack.c.bf16 %v8054_v37, %v8052_v29  ;;  %v14391_v11 = vld [vmem:[%s18773_s5 + $0x28c] ss:$12 sps:$4 sm:$0xff]   ;;  %v14395_v26 = vld [vmem:[%s18773_s5 + $0x274] ss:$12 sps:$4 sm:$0xff]   ;;  %v14403_v37 = vld [vmem:[%s18773_s5 + $0x244] ss:$12 sps:$4 sm:$0xff]  }
0x1b28   :  { %v8055_v57 = vmul.f32 %v8051_v18, %v8047_v31  ;;  %v14399_v31 = vld [vmem:[%s18773_s5 + $0x25c] ss:$12 sps:$4 sm:$0xff]   ;;  %v14400_v18 = vld [vmem:[%s18773_s5 + $0x260] ss:$12 sps:$4 sm:$0xff]  }
0x1b2a   :  { %v8057_v42 = vpack.c.bf16 %v8055_v57, %v8053_v51  ;;  %v14404_v51 = vld [vmem:[%s18773_s5 + $0x248] ss:$12 sps:$4 sm:$0xff]   ;;  %v14401_v57 = vld [vmem:[%s18773_s5 + $0x240] ss:$12 sps:$4 sm:$0xff]  }
0x1b2c   :  { %8219 = vmatprep.mubr.bf16.mxu0 %v8057_v42 }
0x1b2d   :  { %8220 = vmatmul.mubr.bf16.vlgmr.msra.gmra.mxu0 %v8056_v43 }
0x1b2e   :  { %13989 = vmatprep.mubr.msk.bf16.mxu0 %vm14834_vm1, %v14833_v48  ;;  %13974 = vmatpush3.bf16.msra.mxu0 %v14376_v41 }
0x1b2f   :  { %13975 = vmatprep.subr.bf16.mxu0 %v14833_v48 }
0x1b32   :  { %13976 = vmatpush3.bf16.msra.mxu0 %v14380_v50 }
0x1b33   :  { %13977 = vmatprep.subr.bf16.mxu0 %v14833_v48 }
0x1b36   :  { %13978 = vmatpush3.bf16.msra.mxu0 %v14384_v46 }
0x1b37   :  { %13979 = vmatprep.subr.bf16.mxu0 %v14833_v48 }
0x1b3a   :  { %13980 = vmatpush3.bf16.msra.mxu0 %v14388_v56 }
0x1b3b   :  { %13981 = vmatprep.subr.bf16.mxu0 %v14833_v48 }
0x1b3e   :  { %13982 = vmatpush3.bf16.msra.mxu0 %v14392_v32 }
0x1b3f   :  { %13983 = vmatprep.subr.bf16.mxu0 %v14833_v48 }
0x1b42   :  { %13984 = vmatpush3.bf16.msra.mxu0 %v14396_v59 }
0x1b43   :  { %13985 = vmatprep.subr.bf16.mxu0 %v14833_v48 }
0x1b46   :  { %13986 = vmatpush3.bf16.msra.mxu0 %v14400_v18 }
0x1b47   :  { %13987 = vmatprep.subr.bf16.mxu0 %v14833_v48 }
0x1b4a   :  { %13988 = vmatpush3.bf16.msra.mxu0 %v14404_v51 }
0x1bed   :  { %v13407_v25 = vpop.f32.mrf.mxu0 }
0x1bef   :  { %v13408_v10 = vpop.f32.mrf.mxu0 }
0x1bf0   :  { %v13409_v61 = vadd.f32 %v13408_v10, %v13407_v25 }
0x1bf1   :  { %v13410_v35 = vpop.f32.mrf.mxu0 }
0x1bf2   :  { %v8228_v24 = vadd.f32 %v13409_v61, %v17557_v22  ;;  %v14375_v22 = vld [vmem:[%s18773_s5 + $0x2ec] ss:$12 sps:$4 sm:$0xff]  }
0x1bf3   :  { %v13411_v60 = vpop.f32.mrf.mxu0  ;;  %8446 = vmatprep.subr.bf16.mxu1 %v14375_v22 }
0x1bf4   :  { %v13412_v45 = vadd.f32 %v13411_v60, %v13410_v35  ;;  %v17717_v36 = vadd.f32 %v12469_v55, %v8228_v24  ;;  %8447 = vmatpush1.bf16.msra.mxu1 %v14373_v27  ;;  %v12472_v24 = vld [vmem:[%s18771_s3 + $0x3] ss:$0 sm:$0xff] }
0x1bf5   :  { %8448 = vmatprep.subr.bf16.mxu1 %v14379_v33  ;;  %v12473_v27 = vld [vmem:[%s18772_s4 + $0x3] ss:$0 sm:$0xff] }
0x1bf6   :  { %v8229_v19 = vadd.f32 %v13412_v45, %v17561_v52  ;;  %8244 = vadd.xlane.f32.xlu1 %v17717_v36 }
0x1bf8   :  { %v17721_v21 = vadd.f32 %v12469_v55, %v8229_v19  ;;  %8449 = vmatpush1.bf16.msra.mxu1 %v14377_v1 }
0x1bf9   :  { %8450 = vmatprep.subr.bf16.mxu1 %v14383_v44 }
0x1bfa   :  { %8246 = vadd.xlane.f32.xlu0 %v17721_v21 }
0x1bfc   :  { %8451 = vmatpush1.bf16.msra.mxu1 %v14381_v13 }
0x1bfd   :  { %8452 = vmatprep.subr.bf16.mxu1 %v14387_v6 }
0x1c00   :  { %8453 = vmatpush1.bf16.msra.mxu1 %v14385_v15 }
0x1c01   :  { %8454 = vmatprep.subr.bf16.mxu1 %v14391_v11 }
0x1c04   :  { %8455 = vmatpush1.bf16.msra.mxu1 %v14389_v62 }
0x1c05   :  { %8456 = vmatprep.subr.bf16.mxu1 %v14395_v26 }
0x1c08   :  { %8457 = vmatpush1.bf16.msra.mxu1 %v14393_v34 }
0x1c09   :  { %8458 = vmatprep.subr.bf16.mxu1 %v14399_v31 }
0x1c0c   :  { %8459 = vmatpush1.bf16.msra.mxu1 %v14397_v40 }
0x1c0d   :  { %8460 = vmatprep.subr.bf16.mxu1 %v14403_v37 }
0x1c10   :  { %8461 = vmatpush1.bf16.msra.mxu1 %v14401_v57 }
0x1c7f   :  { %v8245_v52 = vpop.xlane.xlu1 %8244 }
0x1c80   :  { %v8248_v63 = vmul.f32 0.015625, %v8245_v52 }
0x1c82   :  { %v8250_v8 = vsub.f32 %v17717_v36, %v8248_v63 }
0x1c83   :  { %v8247_v17 = vpop.xlane.xlu0 %8246 }
0x1c84   :  { %v17737_v14 = vsel %vm63_vm0, %v8250_v8, 0.0  ;;  %v8249_v20 = vmul.f32 0.015625, %v8247_v17 }
0x1c85   :  { %v8254_v53 = vmul.f32 %v17737_v14, %v17737_v14 }
0x1c86   :  { %v8251_v5 = vsub.f32 %v17721_v21, %v8249_v20 }
0x1c87   :  { %8256 = vadd.xlane.f32.xlu1 %v8254_v53 }
0x1c88   :  { %v17744_v3 = vsel %vm63_vm0, %v8251_v5, 0.0 }
0x1c89   :  { %v8255_v38 = vmul.f32 %v17744_v3, %v17744_v3 }
0x1c8b   :  { %8258 = vadd.xlane.f32.xlu0 %v8255_v38 }
0x1d10   :  { %v8257_v29 = vpop.xlane.xlu1 %8256 }
0x1d11   :  { %v8260_v42 = vmul.f32 0.015625, %v8257_v29 }
0x1d13   :  { %v8262_v43 = vadd.f32 1e-05, %v8260_v42 }
0x1d14   :  { %v8259_v25 = vpop.xlane.xlu0 %8258 }
0x1d15   :  { %14717 = vrsqrt.f32 %v8262_v43  ;;  %v8261_v10 = vmul.f32 0.015625, %v8259_v25 }
0x1d17   :  { %v8263_v61 = vadd.f32 1e-05, %v8261_v10 }
0x1d19   :  { %14719 = vrsqrt.f32 %v8263_v61 }
0x1d22   :  { %v14718_v35 = vpop.eup %14717 }
0x1d23   :  { %v8266_v55 = vmul.f32 %v14718_v35, %v17737_v14 }
0x1d25   :  { %v8274_v19 = vmul.f32 %v12472_v24, %v8266_v55 }
0x1d26   :  { %v14720_v60 = vpop.eup %14719 }
0x1d27   :  { %v8267_v45 = vmul.f32 %v14720_v60, %v17744_v3  ;;  %v8282_v41 = vadd.f32 %v12473_v27, %v8274_v19 }
0x1d29   :  { %v8275_v22 = vmul.f32 %v12472_v24, %v8267_v45 }
0x1d2b   :  { %v8283_v52 = vadd.f32 %v12473_v27, %v8275_v22 }
0x1d2d   :  { %v8284_v63 = vpack.c.bf16 %v8283_v52, %v8282_v41 }
0x1d2f   :  { %8479 = vmatmul.mubr.bf16.vlgmr.msra.gmra.mxu1 %v8284_v63  ;;  %13990 = vmatmul.mubr.bf16.vlgmr.msra.gmra.mxu0 %v8284_v63 }
0x1def   :  { %v17825_v8 = vpop.f32.mrf.mxu1  ;;  %v17827_v17 = vpop.f32.mrf.mxu0 }
0x1df0   :  { %13997 = vmatprep.mubr.f32.mxu1 %v17825_v8  ;;  %14025 = vmatprep.mubr.f32.mxu0 %v17825_v8  ;;  %v8546_v62 = vmul.f32 %v15958_v47, %v17827_v17  ;;  %v8548_v51 = vmul.f32 %v15974_v23, %v17827_v17 }
0x1df1   :  { %v17831_v14 = vpop.f32.mrf.mxu1  ;;  %v13991_v20 = vpop.f32.mrf.mxu0 }
0x1df2   :  { %v8530_v50 = vmul.f32 %v15958_v47, %v17831_v14  ;;  %v8538_v13 = vmul.f32 %v15961_v49, %v17831_v14  ;;  %v8532_v6 = vmul.f32 %v15974_v23, %v17831_v14  ;;  %v8542_v56 = vmul.f32 %v15977_v54, %v17831_v14 }
0x1df3   :  { %v17833_v53 = vpop.f32.mrf.mxu1  ;;  %v17835_v5 = vpop.f32.mrf.mxu0  ;;  %v8534_v32 = vmul.f32 %v15994_v58, %v17831_v14  ;;  %v8540_v31 = vmul.f32 %v16026_v4, %v17831_v14  ;;  %v8544_v40 = vmul.f32 %v16038_v9, %v17831_v14 }
0x1df4   :  { %v8547_v11 = vmul.f32 %v15958_v47, %v17835_v5  ;;  %v17865_v26 = vmul.f32 %v15994_v58, %v17835_v5  ;;  %v8549_v37 = vmul.f32 %v15974_v23, %v17835_v5  ;;  %v17890_v57 = vmul.f32 %v16014_v0, %v17835_v5 }
0x1df5   :  { %v8486_v3 = vpop.f32.mrf.mxu1  ;;  %v13992_v38 = vpop.f32.mrf.mxu0 }
0x1df6   :  { %v8531_v1 = vmul.f32 %v15958_v47, %v8486_v3  ;;  %v8539_v33 = vmul.f32 %v15961_v49, %v8486_v3  ;;  %v8533_v44 = vmul.f32 %v15974_v23, %v8486_v3  ;;  %v8543_v46 = vmul.f32 %v15977_v54, %v8486_v3 }
0x1df7   :  { %v8535_v15 = vmul.f32 %v15994_v58, %v8486_v3  ;;  %v8537_v59 = vmul.f32 %v16014_v0, %v8486_v3  ;;  %v8536_v47 = vmul.f32 %v16014_v0, %v17831_v14  ;;  %v8541_v34 = vmul.f32 %v16026_v4, %v8486_v3 }
0x1df8   :  { %13993 = vmatprep.subr.mxu1 %v8531_v1  ;;  %14021 = vmatprep.subr.mxu0 %v8539_v33  ;;  %v8545_v18 = vmul.f32 %v16038_v9, %v8486_v3 }
0x1df9   :  { %13994 = vmatpush3.xpose.msra.mxu1 %v8531_v1  ;;  %14022 = vmatpush3.xpose.msra.mxu0 %v8539_v33 }
0x1dfa   :  { %13995 = vmatprep.subr.mxu1 %v8530_v50  ;;  %14023 = vmatprep.subr.mxu0 %v8538_v13 }
0x1dfd   :  { %13996 = vmatpush3.xpose.msra.mxu1 %v8530_v50  ;;  %14024 = vmatpush3.xpose.msra.mxu0 %v8538_v13 }
0x1dfe   :  { %14000 = vmatprep.subr.mxu1 %v8533_v44  ;;  %14035 = vmatprep.subr.mxu0 %v8543_v46 }
0x1e00   :  { %13998 = vmatmul.mubr.f32.vlgmr.msra.gmra.mxu1 %v17833_v53  ;;  %14026 = vmatmul.mubr.f32.vlgmr.msra.gmra.mxu0 %v17833_v53 }
0x1e01   :  { %14001 = vmatpush3.xpose.msra.mxu1 %v8533_v44  ;;  %14004 = vmatprep.mubr.f32.mxu1 %v17825_v8 }
0x1e02   :  { %14036 = vmatpush3.xpose.msra.mxu0 %v8543_v46  ;;  %14039 = vmatprep.mubr.f32.mxu0 %v17825_v8 }
0x1e03   :  { %14002 = vmatprep.subr.mxu1 %v8532_v6  ;;  %14037 = vmatprep.subr.mxu0 %v8542_v56 }
0x1e05   :  { %14003 = vmatpush3.xpose.msra.mxu1 %v8532_v6 }
0x1e06   :  { %14038 = vmatpush3.xpose.msra.mxu0 %v8542_v56  ;;  %14007 = vmatprep.subr.mxu1 %v8535_v15 }
0x1e07   :  { %14049 = vmatprep.subr.mxu0 %v8547_v11 }
0x1e08   :  { %14005 = vmatmul.mubr.f32.vlgmr.msra.gmra.mxu1 %v17833_v53 }
0x1e09   :  { %14040 = vmatmul.mubr.f32.vlgmr.msra.gmra.mxu0 %v17833_v53  ;;  %14008 = vmatpush3.xpose.msra.mxu1 %v8535_v15 }
0x1e0a   :  { %14011 = vmatprep.mubr.f32.mxu1 %v17825_v8  ;;  %14050 = vmatpush3.msra.mxu0 %v8547_v11 }
0x1e0b   :  { %14009 = vmatprep.subr.mxu1 %v8534_v32  ;;  %14051 = vmatprep.subr.mxu0 %v8546_v62 }
0x1e0c   :  { %14052 = vmatpush3.msra.mxu0 %v8546_v62 }
0x1e0d   :  { %14063 = vmatprep.subr.mxu0 %v17865_v26  ;;  %14010 = vmatpush3.xpose.msra.mxu1 %v8534_v32 }
0x1e0e   :  { %14014 = vmatprep.subr.mxu1 %v8537_v59 }
0x1e10   :  { %14012 = vmatmul.mubr.f32.vlgmr.msra.gmra.mxu1 %v17833_v53 }
0x1e11   :  { %14015 = vmatpush3.xpose.msra.mxu1 %v8537_v59  ;;  %14018 = vmatprep.mubr.f32.mxu1 %v17825_v8 }
0x1e12   :  { %14016 = vmatprep.subr.mxu1 %v8536_v47 }
0x1e15   :  { %14017 = vmatpush3.xpose.msra.mxu1 %v8536_v47 }
0x1e16   :  { %14028 = vmatprep.subr.mxu1 %v8541_v34 }
0x1e18   :  { %14019 = vmatmul.mubr.f32.vlgmr.msra.gmra.mxu1 %v17833_v53 }
0x1e19   :  { %14029 = vmatpush3.xpose.msra.mxu1 %v8541_v34  ;;  %14032 = vmatprep.mubr.f32.mxu1 %v17825_v8 }
0x1e1a   :  { %14030 = vmatprep.subr.mxu1 %v8540_v31 }
0x1e1d   :  { %14031 = vmatpush3.xpose.msra.mxu1 %v8540_v31 }
0x1e1e   :  { %14042 = vmatprep.subr.mxu1 %v8545_v18 }
0x1e20   :  { %14033 = vmatmul.mubr.f32.vlgmr.msra.gmra.mxu1 %v17833_v53 }
0x1e21   :  { %14043 = vmatpush3.xpose.msra.mxu1 %v8545_v18  ;;  %14046 = vmatprep.mubr.f32.mxu1 %v17825_v8 }
0x1e22   :  { %14044 = vmatprep.subr.mxu1 %v8544_v40 }
0x1e25   :  { %14045 = vmatpush3.xpose.msra.mxu1 %v8544_v40 }
0x1e26   :  { %14056 = vmatprep.subr.mxu1 %v8549_v37 }
0x1e28   :  { %14047 = vmatmul.mubr.f32.vlgmr.msra.gmra.mxu1 %v17833_v53 }
0x1e29   :  { %14057 = vmatpush3.msra.mxu1 %v8549_v37 }
0x1e2a   :  { %14058 = vmatprep.subr.mxu1 %v8548_v51 }
0x1e2b   :  { %14059 = vmatpush3.msra.mxu1 %v8548_v51 }
0x1e2c   :  { %14070 = vmatprep.subr.mxu1 %v17890_v57 }
0x1ec0   :  { %v13999_v29 = vpop.f32.mrf.mxu1  ;;  %v14027_v42 = vpop.f32.mrf.mxu0 }
0x1ec1   :  { %v17895_v43 = vsel %vm16064_vm13, %v13999_v29, -inf  ;;  %v17901_v61 = vsel %vm16064_vm13, %v14027_v42, -inf }
0x1ec2   :  { %v9181_v25 = vsel %vm2036_vm14, %v17895_v43, -inf  ;;  %v8628_v10 = vpop.f32.mrf.mxu1  ;;  %v8928_v23 = vpop.f32.mrf.mxu0  ;;  %v9205_v60 = vsel %vm2036_vm14, %v17901_v61, -inf }
0x1ec3   :  { %v17905_v35 = vsel %vm16068_vm15, %v8628_v10, -inf  ;;  %9182 = vmax.xlane.f32.xlu0 %v9181_v25  ;;  %v17911_v24 = vsel %vm16068_vm15, %v8928_v23, -inf }
0x1ec4   :  { %v9178_v55 = vsel %vm2036_vm14, %v17905_v35, -inf  ;;  %v9202_v45 = vsel %vm2036_vm14, %v17911_v24, -inf }
0x1ec5   :  { %9179 = vmax.xlane.f32.xlu1 %v9178_v55 }
0x1ec7   :  { %9206 = vmax.xlane.f32.xlu0 %v9205_v60 }
0x1ec8   :  { %v14006_v19 = vpop.f32.mrf.mxu1 }
0x1ec9   :  { %v17919_v27 = vsel %vm16064_vm13, %v14006_v19, -inf  ;;  %v14041_v22 = vpop.f32.mrf.mxu0  ;;  %9203 = vmax.xlane.f32.xlu1 %v9202_v45 }
0x1eca   :  { %v9187_v41 = vsel %vm2036_vm14, %v17919_v27, -inf  ;;  %v8703_v52 = vpop.f32.mrf.mxu1  ;;  %v17925_v63 = vsel %vm16064_vm13, %v14041_v22, -inf }
0x1ecb   :  { %v17929_v8 = vsel %vm16068_vm15, %v8703_v52, -inf  ;;  %v9078_v14 = vpop.f32.mrf.mxu0  ;;  %9188 = vmax.xlane.f32.xlu0 %v9187_v41  ;;  %v9217_v3 = vsel %vm2036_vm14, %v17925_v63, -inf }
0x1ecc   :  { %v9184_v20 = vsel %vm2036_vm14, %v17929_v8, -inf  ;;  %v17935_v53 = vsel %vm16068_vm15, %v9078_v14, -inf }
0x1ecd   :  { %9185 = vmax.xlane.f32.xlu1 %v9184_v20  ;;  %v9214_v38 = vsel %vm2036_vm14, %v17935_v53, -inf }
0x1ecf   :  { %9218 = vmax.xlane.f32.xlu0 %v9217_v3 }
0x1ed0   :  { %v14013_v1 = vpop.f32.mrf.mxu1 }
0x1ed1   :  { %v17943_v33 = vsel %vm16064_vm13, %v14013_v1, -inf  ;;  %9215 = vmax.xlane.f32.xlu1 %v9214_v38 }
0x1ed2   :  { %v9193_v50 = vsel %vm2036_vm14, %v17943_v33, -inf  ;;  %v8778_v13 = vpop.f32.mrf.mxu1 }
0x1ed3   :  { %v17949_v44 = vsel %vm16068_vm15, %v8778_v13, -inf  ;;  %9194 = vmax.xlane.f32.xlu0 %v9193_v50 }
0x1ed4   :  { %v9190_v46 = vsel %vm2036_vm14, %v17949_v44, -inf }
0x1ed5   :  { %9191 = vmax.xlane.f32.xlu1 %v9190_v46 }
0x1ed8   :  { %v14020_v6 = vpop.f32.mrf.mxu1 }
0x1ed9   :  { %v17955_v56 = vsel %vm16064_vm13, %v14020_v6, -inf }
0x1eda   :  { %v9199_v15 = vsel %vm2036_vm14, %v17955_v56, -inf  ;;  %v8853_v11 = vpop.f32.mrf.mxu1 }
0x1edb   :  { %v17961_v32 = vsel %vm16068_vm15, %v8853_v11, -inf  ;;  %9200 = vmax.xlane.f32.xlu0 %v9199_v15 }
0x1edc   :  { %v9196_v62 = vsel %vm2036_vm14, %v17961_v32, -inf }
0x1edd   :  { %9197 = vmax.xlane.f32.xlu1 %v9196_v62 }
0x1ee0   :  { %v14034_v59 = vpop.f32.mrf.mxu1 }
0x1ee1   :  { %v17967_v47 = vsel %vm16064_vm13, %v14034_v59, -inf }
0x1ee2   :  { %v9211_v34 = vsel %vm2036_vm14, %v17967_v47, -inf  ;;  %v9003_v31 = vpop.f32.mrf.mxu1 }
0x1ee3   :  { %v17973_v18 = vsel %vm16068_vm15, %v9003_v31, -inf  ;;  %9212 = vmax.xlane.f32.xlu0 %v9211_v34 }
0x1ee4   :  { %v9208_v40 = vsel %vm2036_vm14, %v17973_v18, -inf }
0x1ee5   :  { %9209 = vmax.xlane.f32.xlu1 %v9208_v40 }
0x1ee8   :  { %v14048_v37 = vpop.f32.mrf.mxu1 }
0x1ee9   :  { %v17979_v51 = vsel %vm16064_vm13, %v14048_v37, -inf }
0x1eea   :  { %v9223_v29 = vsel %vm2036_vm14, %v17979_v51, -inf  ;;  %v9153_v42 = vpop.f32.mrf.mxu1 }
0x1eeb   :  { %v17985_v25 = vsel %vm16068_vm15, %v9153_v42, -inf  ;;  %9224 = vmax.xlane.f32.xlu0 %v9223_v29 }
0x1eec   :  { %v9220_v10 = vsel %vm2036_vm14, %v17985_v25, -inf }
0x1eed   :  { %9221 = vmax.xlane.f32.xlu1 %v9220_v10 }
0x1f4c   :  { %v9183_v23 = vpop.xlane.xlu0 %9182 }
0x1f4d   :  { %v9227_v55 = vsub.f32 %v17895_v43, %v9183_v23 }
0x1f4e   :  { %v9180_v60 = vpop.xlane.xlu1 %9179 }
0x1f4f   :  { %v9244_v28 = vmul.f32 1.442695, %v9227_v55  ;;  %v9226_v45 = vsub.f32 %v17905_v35, %v9180_v60 }
0x1f50   :  { %v9207_v19 = vpop.xlane.xlu0 %9206 }
0x1f51   :  { %14721 = vpow2.f32 %v9244_v28  ;;  %v9242_v22 = vmul.f32 1.442695, %v9226_v45  ;;  %v9235_v41 = vsub.f32 %v17901_v61, %v9207_v19 }
0x1f52   :  { %v9204_v30 = vpop.xlane.xlu1 %9203 }
0x1f53   :  { %14723 = vpow2.f32 %v9242_v22  ;;  %v9260_v52 = vmul.f32 1.442695, %v9235_v41  ;;  %v9234_v14 = vsub.f32 %v17911_v24, %v9204_v30 }
0x1f54   :  { %v9189_v20 = vpop.xlane.xlu0 %9188 }
0x1f55   :  { %14725 = vpow2.f32 %v9260_v52  ;;  %v9258_v3 = vmul.f32 1.442695, %v9234_v14  ;;  %v9229_v38 = vsub.f32 %v17919_v27, %v9189_v20 }
0x1f56   :  { %v9186_v43 = vpop.xlane.xlu1 %9185 }
0x1f57   :  { %14727 = vpow2.f32 %v9258_v3  ;;  %v9248_v1 = vmul.f32 1.442695, %v9229_v38  ;;  %v9228_v35 = vsub.f32 %v17929_v8, %v9186_v43 }
0x1f58   :  { %v9219_v50 = vpop.xlane.xlu0 %9218 }
0x1f59   :  { %14729 = vpow2.f32 %v9248_v1  ;;  %v9246_v13 = vmul.f32 1.442695, %v9228_v35  ;;  %v9239_v61 = vsub.f32 %v17925_v63, %v9219_v50 }
0x1f5a   :  { %v9216_v46 = vpop.xlane.xlu1 %9215 }
0x1f5b   :  { %14731 = vpow2.f32 %v9246_v13  ;;  %v9268_v6 = vmul.f32 1.442695, %v9239_v61  ;;  %v9238_v24 = vsub.f32 %v17935_v53, %v9216_v46 }
0x1f5c   :  { %v9195_v15 = vpop.xlane.xlu0 %9194 }
0x1f5d   :  { %14733 = vpow2.f32 %v9268_v6  ;;  %v9266_v11 = vmul.f32 1.442695, %v9238_v24  ;;  %v9231_v27 = vsub.f32 %v17943_v33, %v9195_v15 }
0x1f5e   :  { %v17998_v62 = vpop.eup %14721  ;;  %v9192_v59 = vpop.xlane.xlu1 %9191 }
0x1f5f   :  { %14735 = vpow2.f32 %v9266_v11  ;;  %v9252_v8 = vmul.f32 1.442695, %v9231_v27  ;;  %v9230_v34 = vsub.f32 %v17949_v44, %v9192_v59  ;;  %v9277_v63 = vsel %vm2036_vm14, %v17998_v62, 0.0 }
0x1f60   :  { %v18003_v31 = vpop.eup %14723  ;;  %9278 = vadd.xlane.f32.xlu0 %v9277_v63 }
0x1f61   :  { %14737 = vpow2.f32 %v9252_v8  ;;  %v9250_v53 = vmul.f32 1.442695, %v9230_v34  ;;  %v9274_v40 = vsel %vm2036_vm14, %v18003_v31, 0.0 }
0x1f62   :  { %v18007_v37 = vpop.eup %14725  ;;  %9275 = vadd.xlane.f32.xlu1 %v9274_v40 }
0x1f63   :  { %14739 = vpow2.f32 %v9250_v53  ;;  %v9301_v33 = vsel %vm2036_vm14, %v18007_v37, 0.0 }
0x1f64   :  { %v18011_v29 = vpop.eup %14727  ;;  %v9201_v44 = vpop.xlane.xlu0 %9200  ;;  %9302 = vadd.xlane.f32.xlu0 %v9301_v33 }
0x1f65   :  { %v9233_v42 = vsub.f32 %v17955_v56, %v9201_v44  ;;  %v9298_v10 = vsel %vm2036_vm14, %v18011_v29, 0.0 }
0x1f66   :  { %v18016_v23 = vpop.eup %14729  ;;  %v9198_v55 = vpop.xlane.xlu1 %9197  ;;  %9299 = vadd.xlane.f32.xlu1 %v9298_v10 }
0x1f67   :  { %v9256_v60 = vmul.f32 1.442695, %v9233_v42  ;;  %v9232_v28 = vsub.f32 %v17961_v32, %v9198_v55  ;;  %v9283_v45 = vsel %vm2036_vm14, %v18016_v23, 0.0 }
0x1f68   :  { %v18021_v19 = vpop.eup %14731  ;;  %9284 = vadd.xlane.f32.xlu0 %v9283_v45 }
0x1f69   :  { %14741 = vpow2.f32 %v9256_v60  ;;  %v9254_v22 = vmul.f32 1.442695, %v9232_v28  ;;  %v9280_v56 = vsel %vm2036_vm14, %v18021_v19, 0.0 }
0x1f6a   :  { %v18025_v41 = vpop.eup %14733  ;;  %9281 = vadd.xlane.f32.xlu1 %v9280_v56 }
0x1f6b   :  { %14743 = vpow2.f32 %v9254_v22  ;;  %v9313_v30 = vsel %vm2036_vm14, %v18025_v41, 0.0 }
0x1f6c   :  { %v18029_v52 = vpop.eup %14735  ;;  %v9213_v32 = vpop.xlane.xlu0 %9212  ;;  %9314 = vadd.xlane.f32.xlu0 %v9313_v30 }
0x1f6d   :  { %v9237_v14 = vsub.f32 %v17967_v47, %v9213_v32  ;;  %v9310_v20 = vsel %vm2036_vm14, %v18029_v52, 0.0 }
0x1f6e   :  { %v18034_v3 = vpop.eup %14737  ;;  %v9210_v38 = vpop.xlane.xlu1 %9209  ;;  %9311 = vadd.xlane.f32.xlu1 %v9310_v20 }
0x1f6f   :  { %v9264_v43 = vmul.f32 1.442695, %v9237_v14  ;;  %v9236_v1 = vsub.f32 %v17973_v18, %v9210_v38  ;;  %v9289_v35 = vsel %vm2036_vm14, %v18034_v3, 0.0 }
0x1f70   :  { %v18039_v50 = vpop.eup %14739  ;;  %9290 = vadd.xlane.f32.xlu0 %v9289_v35  ;;  %v8555_v35 = vmul.f32 %v15961_v49, %v17835_v5 }
0x1f71   :  { %14745 = vpow2.f32 %v9264_v43  ;;  %v9262_v13 = vmul.f32 1.442695, %v9236_v1  ;;  %v9286_v47 = vsel %vm2036_vm14, %v18039_v50, 0.0  ;;  %v8550_v1 = vmul.f32 %v15994_v58, %v17827_v17 }
0x1f72   :  { %9287 = vadd.xlane.f32.xlu1 %v9286_v47 }
0x1f73   :  { %14747 = vpow2.f32 %v9262_v13 }
0x1f74   :  { %v9225_v61 = vpop.xlane.xlu0 %9224 }
0x1f75   :  { %v9241_v46 = vsub.f32 %v17979_v51, %v9225_v61 }
0x1f76   :  { %v18044_v6 = vpop.eup %14741  ;;  %v9222_v24 = vpop.xlane.xlu1 %9221 }
0x1f77   :  { %v9272_v18 = vmul.f32 1.442695, %v9241_v46  ;;  %v9240_v15 = vsub.f32 %v17985_v25, %v9222_v24  ;;  %v9295_v11 = vsel %vm2036_vm14, %v18044_v6, 0.0  ;;  %v8557_v24 = vmul.f32 %v16026_v4, %v17835_v5 }
0x1f78   :  { %v18049_v27 = vpop.eup %14743  ;;  %9296 = vadd.xlane.f32.xlu0 %v9295_v11 }
0x1f79   :  { %14749 = vpow2.f32 %v9272_v18  ;;  %v9270_v59 = vmul.f32 1.442695, %v9240_v15  ;;  %v9292_v8 = vsel %vm2036_vm14, %v18049_v27, 0.0 }
0x1f7a   :  { %9293 = vadd.xlane.f32.xlu1 %v9292_v8 }
0x1f7b   :  { %14751 = vpow2.f32 %v9270_v59 }
0x1f7e   :  { %v18053_v51 = vpop.eup %14745 }
0x1f7f   :  { %v9307_v34 = vsel %vm2036_vm14, %v18053_v51, 0.0 }
0x1f80   :  { %v18057_v63 = vpop.eup %14747  ;;  %9308 = vadd.xlane.f32.xlu0 %v9307_v34  ;;  %v8554_v34 = vmul.f32 %v15961_v49, %v17827_v17  ;;  %v8558_v49 = vmul.f32 %v15977_v54, %v17827_v17 }
0x1f81   :  { %v9304_v25 = vsel %vm2036_vm14, %v18057_v63, 0.0 }
0x1f82   :  { %9305 = vadd.xlane.f32.xlu1 %v9304_v25 }
0x1f86   :  { %v18061_v53 = vpop.eup %14749 }
0x1f87   :  { %v9319_v40 = vsel %vm2036_vm14, %v18061_v53, 0.0 }
0x1f88   :  { %v18065_v33 = vpop.eup %14751  ;;  %9320 = vadd.xlane.f32.xlu0 %v9319_v40 }
0x1f89   :  { %v9316_v44 = vsel %vm2036_vm14, %v18065_v33, 0.0 }
0x1f8a   :  { %9317 = vadd.xlane.f32.xlu1 %v9316_v44 }
0x1fe9   :  { %v9279_v42 = vpop.xlane.xlu0 %9278 }
0x1fea   :  { %14753 = vrcp.f32 %v9279_v42 }
0x1feb   :  { %v9276_v10 = vpop.xlane.xlu1 %9275 }
0x1fec   :  { %14755 = vrcp.f32 %v9276_v10 }
0x1fed   :  { %v9303_v55 = vpop.xlane.xlu0 %9302 }
0x1fef   :  { %v9300_v60 = vpop.xlane.xlu1 %9299 }
0x1ff1   :  { %v9285_v28 = vpop.xlane.xlu0 %9284 }
0x1ff2   :  { %14757 = vrcp.f32 %v9285_v28 }
0x1ff3   :  { %v9282_v45 = vpop.xlane.xlu1 %9281 }
0x1ff4   :  { %14759 = vrcp.f32 %v9282_v45 }
0x1ff5   :  { %v9315_v22 = vpop.xlane.xlu0 %9314  ;;  %14761 = vrcp.f32 %v9300_v60 }
0x1ff7   :  { %v9312_v56 = vpop.xlane.xlu1 %9311  ;;  %v14754_v30 = vpop.eup %14753 }
0x1ff8   :  { %v9339_v43 = vmul.f32 %v14754_v30, %v17998_v62  ;;  %v14411_v30 = vld [vmem:[%s18774_s6 + $0xc8] sm:$0xff]  }
0x1ff9   :  { %v14756_v32 = vpop.eup %14755  ;;  %v9291_v14 = vpop.xlane.xlu0 %9290 }
0x1ffa   :  { %v9338_v20 = vmul.f32 %v14756_v32, %v18003_v31  ;;  %14763 = vrcp.f32 %v9291_v14  ;;  %v14412_v32 = vld [vmem:[%s18774_s6 + $0xc0] sm:$0xff]  }
0x1ffb   :  { %v9288_v38 = vpop.xlane.xlu1 %9287 }
0x1ffc   :  { %14765 = vrcp.f32 %v9288_v38  ;;  %14053 = vmatprep.mubr.msk.f32.mxu0 %vm2036_vm14, %v9338_v20 }
0x1ffd   :  { %14054 = vmatmul.mubr.msk.f32.vlgmr.msra.gmra.mxu0 %vm2036_vm14, %v9339_v43  ;;  %14767 = vrcp.f32 %v9303_v55 }
0x1ffe   :  { %14064 = vmatpush3.msra.mxu0 %v17865_v26  ;;  %14769 = vrcp.f32 %v9312_v56  ;;  %v8552_v26 = vmul.f32 %v16014_v0, %v17827_v17 }
0x1fff   :  { %14065 = vmatprep.subr.mxu0 %v8550_v1  ;;  %v14758_v31 = vpop.eup %14757  ;;  %14771 = vrcp.f32 %v9315_v22 }
0x2000   :  { %14066 = vmatpush3.msra.mxu0 %v8550_v1  ;;  %v9341_v61 = vmul.f32 %v14758_v31, %v18016_v23 }
0x2001   :  { %v14760_v13 = vpop.eup %14759  ;;  %14077 = vmatprep.subr.mxu0 %v8555_v35  ;;  %v9297_v62 = vpop.xlane.xlu0 %9296 }
0x2002   :  { %v9340_v47 = vmul.f32 %v14760_v13, %v18021_v19  ;;  %14773 = vrcp.f32 %v9297_v62  ;;  %v14762_v46 = vpop.eup %14761 }
0x2003   :  { %v9294_v58 = vpop.xlane.xlu1 %9293  ;;  %v9346_v0 = vmul.f32 %v14762_v46, %v18011_v29 }
0x2004   :  { %14775 = vrcp.f32 %v9294_v58  ;;  %14060 = vmatprep.mubr.msk.f32.mxu1 %vm2036_vm14, %v9340_v47 }
0x2005   :  { %14061 = vmatmul.mubr.msk.f32.vlgmr.msra.gmra.mxu1 %vm2036_vm14, %v9341_v61 }
0x2006   :  { %14071 = vmatpush3.msra.mxu1 %v17890_v57 }
0x2007   :  { %14072 = vmatprep.subr.mxu1 %v8552_v26  ;;  %v14764_v19 = vpop.eup %14763 }
0x2008   :  { %14073 = vmatpush3.msra.mxu1 %v8552_v26  ;;  %v9343_v59 = vmul.f32 %v14764_v19, %v18034_v3  ;;  %v8559_v3 = vmul.f32 %v15977_v54, %v17835_v5  ;;  %v8556_v54 = vmul.f32 %v16026_v4, %v17827_v17  ;;  %v8560_v4 = vmul.f32 %v16038_v9, %v17827_v17  ;;  %v14407_v17 = vld [vmem:[%s18774_s6 + $0xe8] sm:$0xff]  }
0x2009   :  { %v14766_v23 = vpop.eup %14765  ;;  %14084 = vmatprep.subr.mxu1 %v8557_v24  ;;  %v9309_v18 = vpop.xlane.xlu0 %9308 }
0x200a   :  { %v9342_v15 = vmul.f32 %v14766_v23, %v18039_v50  ;;  %14777 = vrcp.f32 %v9309_v18  ;;  %v14768_v8 = vpop.eup %14767 }
0x200b   :  { %v9306_v11 = vpop.xlane.xlu1 %9305  ;;  %v14770_v57 = vpop.eup %14769  ;;  %v9347_v25 = vmul.f32 %v14768_v8, %v18007_v37 }
0x200c   :  { %14779 = vrcp.f32 %v9306_v11  ;;  %14067 = vmatprep.mubr.msk.f32.mxu0 %vm2036_vm14, %v9342_v15  ;;  %v14772_v50 = vpop.eup %14771  ;;  %v9350_v29 = vmul.f32 %v14770_v57, %v18029_v52 }
0x200d   :  { %14068 = vmatmul.mubr.msk.f32.vlgmr.msra.gmra.mxu0 %vm2036_vm14, %v9343_v59  ;;  %v9351_v52 = vmul.f32 %v14772_v50, %v18025_v41 }
0x200e   :  { %14078 = vmatpush3.msra.mxu0 %v8555_v35  ;;  %14081 = vmatprep.mubr.msk.f32.mxu0 %vm2036_vm14, %v9346_v0 }
0x200f   :  { %14079 = vmatprep.subr.mxu0 %v8554_v34  ;;  %v14774_v40 = vpop.eup %14773 }
0x2010   :  { %14080 = vmatpush3.msra.mxu0 %v8554_v34  ;;  %v9345_v55 = vmul.f32 %v14774_v40, %v18044_v6  ;;  %v8561_v6 = vmul.f32 %v16038_v9, %v17835_v5  ;;  %v14406_v9 = vld [vmem:[%s18774_s6 + $0xf0] sm:$0xff]  }
0x2011   :  { %v14776_v44 = vpop.eup %14775  ;;  %14091 = vmatprep.subr.mxu0 %v8559_v3  ;;  %v9321_v42 = vpop.xlane.xlu0 %9320  ;;  %14082 = vmatmul.mubr.msk.f32.vlgmr.msra.gmra.mxu0 %vm2036_vm14, %v9347_v25 }
0x2012   :  { %14092 = vmatpush3.msra.mxu0 %v8559_v3  ;;  %14095 = vmatprep.mubr.msk.f32.mxu0 %vm2036_vm14, %v9350_v29  ;;  %v9344_v10 = vmul.f32 %v14776_v44, %v18049_v27  ;;  %14781 = vrcp.f32 %v9321_v42  ;;  %v12563_v44 = vld [vmem:[%s18775_s7 + $0x3] ss:$0 sm:$0xff] }
0x2013   :  { %14093 = vmatprep.subr.mxu0 %v8558_v49  ;;  %v9318_v37 = vpop.xlane.xlu1 %9317 }
0x2014   :  { %14094 = vmatpush3.msra.mxu0 %v8558_v49  ;;  %14783 = vrcp.f32 %v9318_v37  ;;  %14074 = vmatprep.mubr.msk.f32.mxu1 %vm2036_vm14, %v9344_v10 }
0x2015   :  { %14075 = vmatmul.mubr.msk.f32.vlgmr.msra.gmra.mxu1 %vm2036_vm14, %v9345_v55  ;;  %14096 = vmatmul.mubr.msk.f32.vlgmr.msra.gmra.mxu0 %vm2036_vm14, %v9351_v52 }
0x2016   :  { %14085 = vmatpush3.msra.mxu1 %v8557_v24  ;;  %14105 = vmatprep.subr.bf16.mxu0 %v14833_v48 }
0x2017   :  { %14086 = vmatprep.subr.mxu1 %v8556_v54  ;;  %14121 = vmatprep.mubr.msk.bf16.mxu0 %vm14834_vm1, %v14833_v48  ;;  %v14778_v41 = vpop.eup %14777 }
0x2018   :  { %14087 = vmatpush3.msra.mxu1 %v8556_v54  ;;  %v9349_v28 = vmul.f32 %v14778_v41, %v18053_v51  ;;  %v14405_v51 = vld [vmem:[%s18774_s6 + $0xf8] sm:$0xff]  }
0x2019   :  { %v14780_v27 = vpop.eup %14779  ;;  %14098 = vmatprep.subr.mxu1 %v8561_v6  ;;  %14106 = vmatpush3.bf16.msra.mxu0 %v14405_v51  ;;  %v14413_v41 = vld [vmem:[%s18778_s10 + $0x1f0] ss:$8 sps:$4 sm:$0xff]  }
0x201a   :  { %v9348_v60 = vmul.f32 %v14780_v27, %v18057_v63  ;;  %14107 = vmatprep.subr.bf16.mxu0 %v14833_v48  ;;  %v14408_v63 = vld [vmem:[%s18774_s6 + $0xe0] sm:$0xff]   ;;  %v14415_v27 = vld [vmem:[%s18778_s10 + $0x1f4] ss:$8 sps:$4 sm:$0xff]  }
0x201c   :  { %14088 = vmatprep.mubr.msk.f32.mxu1 %vm2036_vm14, %v9348_v60 }
0x201d   :  { %14089 = vmatmul.mubr.msk.f32.vlgmr.msra.gmra.mxu1 %vm2036_vm14, %v9349_v28  ;;  %14108 = vmatpush3.bf16.msra.mxu0 %v14406_v9  ;;  %v14418_v9 = vld [vmem:[%s18778_s10 + $0x1e4] ss:$8 sps:$4 sm:$0xff]  }
0x201e   :  { %14099 = vmatpush3.msra.mxu1 %v8561_v6  ;;  %14109 = vmatprep.subr.bf16.mxu0 %v14833_v48 }
0x201f   :  { %14100 = vmatprep.subr.mxu1 %v8560_v4  ;;  %v14782_v5 = vpop.eup %14781 }
0x2020   :  { %14101 = vmatpush3.msra.mxu1 %v8560_v4  ;;  %v9353_v56 = vmul.f32 %v14782_v5, %v18061_v53  ;;  %v14409_v53 = vld [vmem:[%s18774_s6 + $0xd8] sm:$0xff]  }
0x2021   :  { %v14784_v45 = vpop.eup %14783  ;;  %14110 = vmatpush3.bf16.msra.mxu0 %v14407_v17  ;;  %10288 = vmatprep.subr.bf16.mxu1 %v14415_v27  ;;  %v14416_v17 = vld [vmem:[%s18778_s10 + $0x1e0] ss:$8 sps:$4 sm:$0xff]  }
0x2022   :  { %v9352_v22 = vmul.f32 %v14784_v45, %v18065_v33  ;;  %14111 = vmatprep.subr.bf16.mxu0 %v14833_v48  ;;  %v14410_v33 = vld [vmem:[%s18774_s6 + $0xd0] sm:$0xff]   ;;  %v14452_v27 = vld [vmem:[%s18780_s12 + $0x180] sm:$0xff]  }
0x2024   :  { %14102 = vmatprep.mubr.msk.f32.mxu1 %vm2036_vm14, %v9352_v22 }
0x2025   :  { %14103 = vmatmul.mubr.msk.f32.vlgmr.msra.gmra.mxu1 %vm2036_vm14, %v9353_v56  ;;  %14112 = vmatpush3.bf16.msra.mxu0 %v14408_v63  ;;  %v14421_v63 = vld [vmem:[%s18778_s10 + $0x1d4] ss:$8 sps:$4 sm:$0xff]  }
0x2026   :  { %10320 = vmatprep.mubr.bf16.mxu1 %v14831_v2  ;;  %14113 = vmatprep.subr.bf16.mxu0 %v14833_v48 }
0x2027   :  { %10289 = vmatpush1.bf16.msra.mxu1 %v14413_v41  ;;  %v14451_v41 = vld [vmem:[%s18780_s12 + $0x1c0] sm:$0xff]  }
0x2028   :  { %10290 = vmatprep.subr.bf16.mxu1 %v14418_v9 }
0x2029   :  { %14114 = vmatpush3.bf16.msra.mxu0 %v14409_v53  ;;  %v14419_v53 = vld [vmem:[%s18778_s10 + $0x1d0] ss:$8 sps:$4 sm:$0xff]  }
0x202a   :  { %14115 = vmatprep.subr.bf16.mxu0 %v14833_v48 }
0x202b   :  { %10291 = vmatpush1.bf16.msra.mxu1 %v14416_v17 }
0x202c   :  { %10292 = vmatprep.subr.bf16.mxu1 %v14421_v63 }
0x202d   :  { %14116 = vmatpush3.bf16.msra.mxu0 %v14410_v33  ;;  %v14424_v33 = vld [vmem:[%s18778_s10 + $0x1c4] ss:$8 sps:$4 sm:$0xff]  }
0x202e   :  { %14117 = vmatprep.subr.bf16.mxu0 %v14833_v48 }
0x202f   :  { %10293 = vmatpush1.bf16.msra.mxu1 %v14419_v53 }
0x2030   :  { %10294 = vmatprep.subr.bf16.mxu1 %v14424_v33 }
0x2031   :  { %14118 = vmatpush3.bf16.msra.mxu0 %v14411_v30  ;;  %v14422_v30 = vld [vmem:[%s18778_s10 + $0x1c0] ss:$8 sps:$4 sm:$0xff]  }
0x2032   :  { %14119 = vmatprep.subr.bf16.mxu0 %v14833_v48 }
0x2033   :  { %10295 = vmatpush1.bf16.msra.mxu1 %v14422_v30 }
0x2035   :  { %14120 = vmatpush3.bf16.msra.mxu0 %v14412_v32  ;;  %v14427_v32 = vld [vmem:[%s18778_s10 + $0x1b4] ss:$8 sps:$4 sm:$0xff]  }
0x2036   :  { %10296 = vmatprep.subr.bf16.mxu1 %v14427_v32 }
0x20bd   :  { %v14055_v14 = vpop.f32.mrf.mxu0 }
0x20bf   :  { %v9426_v20 = vpop.f32.mrf.mxu0 }
0x20c5   :  { %v14062_v38 = vpop.f32.mrf.mxu1 }
0x20c6   :  { %v10009_v13 = vadd.f32 %v14062_v38, %v14055_v14  ;;  %v14425_v14 = vld [vmem:[%s18778_s10 + $0x1b0] ss:$8 sps:$4 sm:$0xff]   ;;  %v14428_v38 = vld [vmem:[%s18778_s10 + $0x1a0] ss:$8 sps:$4 sm:$0xff]  }
0x20c7   :  { %v9507_v1 = vpop.f32.mrf.mxu1  ;;  %10297 = vmatpush1.bf16.msra.mxu1 %v14425_v14 }
0x20c8   :  { %v10002_v62 = vadd.f32 %v9507_v1, %v9426_v20  ;;  %v14430_v20 = vld [vmem:[%s18778_s10 + $0x1a4] ss:$8 sps:$4 sm:$0xff]   ;;  %v14431_v1 = vld [vmem:[%s18778_s10 + $0x190] ss:$8 sps:$4 sm:$0xff]  }
0x20c9   :  { %10298 = vmatprep.subr.bf16.mxu1 %v14430_v20 }
0x20cb   :  { %10299 = vmatpush1.bf16.msra.mxu1 %v14428_v38 }
0x20cd   :  { %v14069_v43 = vpop.f32.mrf.mxu0 }
0x20ce   :  { %v10010_v58 = vadd.f32 %v14069_v43, %v10009_v13  ;;  %v14433_v43 = vld [vmem:[%s18778_s10 + $0x194] ss:$8 sps:$4 sm:$0xff]  }
0x20cf   :  { %v9588_v35 = vpop.f32.mrf.mxu0  ;;  %10300 = vmatprep.subr.bf16.mxu1 %v14433_v43 }
0x20d0   :  { %v10003_v26 = vadd.f32 %v10002_v62, %v9588_v35  ;;  %v14436_v35 = vld [vmem:[%s18778_s10 + $0x184] ss:$8 sps:$4 sm:$0xff]   ;;  %10301 = vmatpush1.bf16.msra.mxu1 %v14431_v1 }
0x20d1   :  { %v14083_v47 = vpop.f32.mrf.mxu0  ;;  %10302 = vmatprep.subr.bf16.mxu1 %v14436_v35 }
0x20d3   :  { %v9750_v24 = vpop.f32.mrf.mxu0 }
0x20d5   :  { %v14076_v31 = vpop.f32.mrf.mxu1  ;;  %v14097_v11 = vpop.f32.mrf.mxu0 }
0x20d6   :  { %v10011_v46 = vadd.f32 %v14076_v31, %v10010_v58  ;;  %v14434_v31 = vld [vmem:[%s18778_s10 + $0x180] ss:$8 sps:$4 sm:$0xff]  }
0x20d7   :  { %v9669_v61 = vpop.f32.mrf.mxu1  ;;  %v9912_v0 = vpop.f32.mrf.mxu0  ;;  %10303 = vmatpush1.bf16.msra.mxu1 %v14434_v31 }
0x20d8   :  { %v10004_v48 = vadd.f32 %v10003_v26, %v9669_v61  ;;  %v10012_v18 = vadd.f32 %v14083_v47, %v10011_v46 }
0x20da   :  { %v10005_v15 = vadd.f32 %v10004_v48, %v9750_v24  ;;  %v12574_v24 = vld [vmem:[%s18776_s8 + $0x3] ss:$0 sm:$0xff] }
0x20dd   :  { %v14090_v19 = vpop.f32.mrf.mxu1 }
0x20de   :  { %v10013_v59 = vadd.f32 %v14090_v19, %v10012_v18 }
0x20df   :  { %v9831_v23 = vpop.f32.mrf.mxu1 }
0x20e0   :  { %v10006_v8 = vadd.f32 %v10005_v15, %v9831_v23  ;;  %v10014_v34 = vadd.f32 %v14097_v11, %v10013_v59  ;;  %v12575_v15 = vld [vmem:[%s18777_s9 + $0x3] ss:$0 sm:$0xff] }
0x20e2   :  { %v10007_v50 = vadd.f32 %v10006_v8, %v9912_v0 }
0x20e5   :  { %v14104_v57 = vpop.f32.mrf.mxu1 }
0x20e6   :  { %v10015_v25 = vadd.f32 %v14104_v57, %v10014_v34  ;;  %v14437_v57 = vld [vmem:[%s18780_s12 + $0x1f8] sm:$0xff]  }
0x20e7   :  { %v9993_v3 = vpop.f32.mrf.mxu1  ;;  %v14438_v34 = vld [vmem:[%s18780_s12 + $0x1b8] sm:$0xff]   ;;  %13495 = vmatprep.subr.bf16.mxu0 %v14437_v57 }
0x20e8   :  { %v10008_v40 = vadd.f32 %v10007_v50, %v9993_v3  ;;  %v14439_v50 = vld [vmem:[%s18780_s12 + $0x1f0] sm:$0xff]  }
0x20e9   :  { %v14440_v3 = vld [vmem:[%s18780_s12 + $0x1b0] sm:$0xff]  }
0x20ea   :  { %v10016_v29 = vpack.c.bf16 %v10015_v25, %v10008_v40  ;;  %v14441_v25 = vld [vmem:[%s18780_s12 + $0x1e8] sm:$0xff]  }
0x20eb   :  { %v14442_v40 = vld [vmem:[%s18780_s12 + $0x1a8] sm:$0xff]  }
0x20ec   :  { %14122 = vmatmul.mubr.bf16.vlgmr.msra.gmra.mxu0 %v10016_v29  ;;  %v14443_v29 = vld [vmem:[%s18780_s12 + $0x1e0] sm:$0xff]  }
0x20ed   :  { %13496 = vmatpush3.bf16.msra.mxu0 %v14438_v34 }
0x20ee   :  { %13497 = vmatprep.subr.bf16.mxu0 %v14439_v50 }
0x20f1   :  { %13498 = vmatpush3.bf16.msra.mxu0 %v14440_v3 }
0x20f2   :  { %13499 = vmatprep.subr.bf16.mxu0 %v14441_v25 }
0x20f5   :  { %13500 = vmatpush3.bf16.msra.mxu0 %v14442_v40 }
0x20f6   :  { %13501 = vmatprep.subr.bf16.mxu0 %v14443_v29 }
0x21ac   :  { %v10124_v42 = vpop.f32.mrf.mxu0 }
0x21ad   :  { %v10125_v49 = vadd.f32 %v12563_v44, %v10124_v42  ;;  %v14445_v42 = vld [vmem:[%s18780_s12 + $0x1d8] sm:$0xff]  }
0x21ae   :  { %v14123_v10 = vpop.f32.mrf.mxu0 }
0x21af   :  { %v18162_v55 = vadd.f32 %v10125_v49, %v17717_v36  ;;  %v14446_v49 = vld [vmem:[%s18780_s12 + $0x198] sm:$0xff]   ;;  %v14447_v10 = vld [vmem:[%s18780_s12 + $0x1d0] sm:$0xff]  }
0x21b0   :  { %v10127_v37 = vpop.f32.mrf.mxu0 }
0x21b1   :  { %v10128_v52 = vadd.f32 %v12563_v44, %v10127_v37  ;;  %10137 = vadd.xlane.f32.xlu1 %v18162_v55  ;;  %v14444_v44 = vld [vmem:[%s18780_s12 + $0x1a0] sm:$0xff]   ;;  %v14448_v37 = vld [vmem:[%s18780_s12 + $0x190] sm:$0xff]  }
0x21b2   :  { %v14124_v54 = vpop.f32.mrf.mxu0  ;;  %13502 = vmatpush3.bf16.msra.mxu0 %v14444_v44 }
0x21b3   :  { %v18166_v6 = vadd.f32 %v10128_v52, %v17721_v21  ;;  %13503 = vmatprep.subr.bf16.mxu0 %v14445_v42  ;;  %v14449_v52 = vld [vmem:[%s18780_s12 + $0x1c8] sm:$0xff]  }
0x21b4   :  { %v14450_v54 = vld [vmem:[%s18780_s12 + $0x188] sm:$0xff]  }
0x21b5   :  { %10139 = vadd.xlane.f32.xlu0 %v18166_v6 }
0x21b6   :  { %13504 = vmatpush3.bf16.msra.mxu0 %v14446_v49 }
0x21b7   :  { %13505 = vmatprep.subr.bf16.mxu0 %v14447_v10 }
0x21ba   :  { %13506 = vmatpush3.bf16.msra.mxu0 %v14448_v37 }
0x21bb   :  { %13507 = vmatprep.subr.bf16.mxu0 %v14449_v52 }
0x21be   :  { %13508 = vmatpush3.bf16.msra.mxu0 %v14450_v54 }
0x21bf   :  { %13509 = vmatprep.subr.bf16.mxu0 %v14451_v41 }
0x21c2   :  { %13510 = vmatpush3.bf16.msra.mxu0 %v14452_v27 }
0x223a   :  { %v10138_v36 = vpop.xlane.xlu1 %10137 }
0x223b   :  { %v10141_v60 = vmul.f32 0.015625, %v10138_v36  ;;  %v12592_v36 = vld [vmem:[%s18779_s11 + $0x6] sm:$0x3] }
0x223d   :  { %v10143_v28 = vsub.f32 %v18162_v55, %v10141_v60  ;;  %v10201_v60 = vrot.slane %v12592_v36, %v16459_v12 }
0x223e   :  { %v10140_v4 = vpop.xlane.xlu0 %10139 }
0x223f   :  { %v10145_v21 = vsel %vm63_vm0, %v10143_v28, 0.0  ;;  %v10142_v5 = vmul.f32 0.015625, %v10140_v4  ;;  %v10205_v28 = vrot.slane %v12592_v36, %v16465_v39 }
0x2240   :  { %v10147_v45 = vmul.f32 %v10145_v21, %v10145_v21 }
0x2241   :  { %v10144_v22 = vsub.f32 %v18166_v6, %v10142_v5 }
0x2242   :  { %10149 = vadd.xlane.f32.xlu1 %v10147_v45 }
0x2243   :  { %v10146_v56 = vsel %vm63_vm0, %v10144_v22, 0.0 }
0x2244   :  { %v10148_v51 = vmul.f32 %v10146_v56, %v10146_v56 }
0x2246   :  { %10151 = vadd.xlane.f32.xlu0 %v10148_v51 }
0x22cb   :  { %v10150_v13 = vpop.xlane.xlu1 %10149 }
0x22cc   :  { %v10153_v62 = vmul.f32 0.015625, %v10150_v13 }
0x22ce   :  { %v10155_v47 = vadd.f32 1e-05, %v10153_v62 }
0x22cf   :  { %v10152_v61 = vpop.xlane.xlu0 %10151 }
0x22d0   :  { %14785 = vrsqrt.f32 %v10155_v47  ;;  %v10154_v58 = vmul.f32 0.015625, %v10152_v61 }
0x22d2   :  { %v10156_v26 = vadd.f32 1e-05, %v10154_v58 }
0x22d4   :  { %14787 = vrsqrt.f32 %v10156_v26 }
0x22dd   :  { %v14786_v46 = vpop.eup %14785 }
0x22de   :  { %v10159_v48 = vmul.f32 %v14786_v46, %v10145_v21 }
0x22e0   :  { %v10167_v18 = vmul.f32 %v12574_v24, %v10159_v48 }
0x22e1   :  { %v14788_v19 = vpop.eup %14787 }
0x22e2   :  { %v10160_v23 = vmul.f32 %v14788_v19, %v10146_v56  ;;  %v10175_v59 = vadd.f32 %v12575_v15, %v10167_v18 }
0x22e4   :  { %v10168_v11 = vmul.f32 %v12574_v24, %v10160_v23 }
0x22e6   :  { %v10176_v8 = vadd.f32 %v12575_v15, %v10168_v11 }
0x22e8   :  { %v10177_v0 = vpack.c.bf16 %v10176_v8, %v10175_v59 }
0x22ea   :  { %10321 = vmatmul.mubr.bf16.vlgmr.msra.gmra.mxu1 %v10177_v0 }
0x22eb   :  { %11550 = vmatprep.mubr.bf16.mxu1 %v14831_v2 }
0x23aa   :  { %v10322_v4 = vpop.f32.mrf.mxu1 }
0x23ab   :  { %v18283_v21 = vadd.f32 %v10322_v4, %v10201_v60 }
0x23ac   :  { %v10324_v5 = vpop.f32.mrf.mxu1 }
0x23ad   :  { %v18286_v45 = vmul.f32 0.70710677, %v18283_v21  ;;  %v18288_v22 = vadd.f32 %v10324_v5, %v10205_v28 }
0x23ae   :  { %v10326_v56 = vpop.f32.mrf.mxu1 }
0x23af   :  { %v10335_v51 = vand.u32 2147483647, %v18286_v45  ;;  %v18292_v9 = vmul.f32 0.70710677, %v18288_v22  ;;  %v18294_v17 = vadd.f32 %v10326_v56, %v10201_v60  ;;  %vm10415_vm13 = vcmp.ge.f32.partialorder %v18286_v45, 0.0 }
0x23b0   :  { %v10328_v63 = vpop.f32.mrf.mxu1 }
0x23b1   :  { %v10339_v53 = vmul.f32 0.3275911, %v10335_v51  ;;  %v10336_v33 = vand.u32 2147483647, %v18292_v9  ;;  %v18298_v30 = vmul.f32 0.70710677, %v18294_v17  ;;  %v18300_v32 = vadd.f32 %v10328_v63, %v10205_v28 }
0x23b2   :  { %v10391_v61 = vsub.f32 0.0, %v10335_v51  ;;  %vm10416_vm1 = vcmp.ge.f32.partialorder %v18292_v9, 0.0  ;;  %v10428_v9 = vmul.f32 0.5, %v18288_v22  ;;  %v12666_v22 = vld [vmem:[%s18802_s2 + $0x3] ss:$0 sm:$0xff] }
0x23b3   :  { %v10343_v14 = vadd.f32 1.0, %v10339_v53  ;;  %v10340_v20 = vmul.f32 0.3275911, %v10336_v33  ;;  %v10337_v38 = vand.u32 2147483647, %v18298_v30  ;;  %v10392_v58 = vsub.f32 0.0, %v10336_v33 }
0x23b4   :  { %v18304_v43 = vmul.f32 0.70710677, %v18300_v32  ;;  %v10395_v26 = vmul.f32 %v10391_v61, %v10335_v51  ;;  %vm10417_vm14 = vcmp.ge.f32.partialorder %v18298_v30, 0.0 }
0x23b5   :  { %14789 = vrcp.f32 %v10343_v14  ;;  %v10344_v1 = vadd.f32 1.0, %v10340_v20  ;;  %v10341_v35 = vmul.f32 0.3275911, %v10337_v38  ;;  %v10393_v46 = vsub.f32 0.0, %v10337_v38 }
0x23b6   :  { %v10338_v31 = vand.u32 2147483647, %v18304_v43  ;;  %v10396_v24 = vmul.f32 %v10392_v58, %v10336_v33  ;;  %v10399_v23 = vmul.f32 1.442695, %v10395_v26  ;;  %vm10418_vm15 = vcmp.ge.f32.partialorder %v18304_v43, 0.0 }
0x23b7   :  { %14791 = vrcp.f32 %v10344_v1  ;;  %v10345_v13 = vadd.f32 1.0, %v10341_v35  ;;  %v10397_v15 = vmul.f32 %v10393_v46, %v10337_v38 }
0x23b8   :  { %v10342_v62 = vmul.f32 0.3275911, %v10338_v31  ;;  %v10394_v18 = vsub.f32 0.0, %v10338_v31  ;;  %v10401_v0 = vmul.f32 1.442695, %v10396_v24 }
0x23b9   :  { %14793 = vrcp.f32 %v10345_v13  ;;  %v10403_v40 = vmul.f32 1.442695, %v10397_v15 }
0x23ba   :  { %v10346_v47 = vadd.f32 1.0, %v10342_v62  ;;  %v10398_v50 = vmul.f32 %v10394_v18, %v10338_v31 }
0x23bc   :  { %14795 = vrcp.f32 %v10346_v47  ;;  %v10405_v52 = vmul.f32 1.442695, %v10398_v50 }
0x23bd   :  { %14797 = vpow2.f32 %v10399_v23 }
0x23be   :  { %14799 = vpow2.f32 %v10401_v0 }
0x23bf   :  { %14801 = vpow2.f32 %v10403_v40 }
0x23c0   :  { %14803 = vpow2.f32 %v10405_v52 }
0x23c2   :  { %v14790_v48 = vpop.eup %14789 }
0x23c3   :  { %v10355_v19 = vmul.f32 1.0614054, %v14790_v48 }
0x23c4   :  { %v14792_v11 = vpop.eup %14791 }
0x23c5   :  { %v12609_v59 = vadd.f32 -1.4531521, %v10355_v19  ;;  %v10356_v8 = vmul.f32 1.0614054, %v14792_v11 }
0x23c6   :  { %v14794_v57 = vpop.eup %14793 }
0x23c7   :  { %v10363_v34 = vmul.f32 %v14790_v48, %v12609_v59  ;;  %v12610_v3 = vadd.f32 -1.4531521, %v10356_v8  ;;  %v10357_v25 = vmul.f32 1.0614054, %v14794_v57 }
0x23c9   :  { %v10367_v29 = vadd.f32 1.4214138, %v10363_v34  ;;  %v14796_v44 = vpop.eup %14795  ;;  %v10364_v42 = vmul.f32 %v14792_v11, %v12610_v3  ;;  %v12611_v49 = vadd.f32 -1.4531521, %v10357_v25 }
0x23ca   :  { %v10358_v37 = vmul.f32 1.0614054, %v14796_v44  ;;  %v14798_v1 = vpop.eup %14797 }
0x23cb   :  { %v10371_v10 = vmul.f32 %v14790_v48, %v10367_v29  ;;  %v10368_v54 = vadd.f32 1.4214138, %v10364_v42  ;;  %v10365_v41 = vmul.f32 %v14794_v57, %v12611_v49  ;;  %v14800_v58 = vpop.eup %14799 }
0x23cc   :  { %v12612_v36 = vadd.f32 -1.4531521, %v10358_v37  ;;  %v14802_v23 = vpop.eup %14801  ;;  %v10429_v37 = vmul.f32 0.5, %v18294_v17 }
0x23cd   :  { %v12613_v27 = vadd.f32 -0.28449672, %v10371_v10  ;;  %v10372_v60 = vmul.f32 %v14792_v11, %v10368_v54  ;;  %v10369_v28 = vadd.f32 1.4214138, %v10365_v41  ;;  %v14804_v0 = vpop.eup %14803  ;;  %v10430_v54 = vmul.f32 0.5, %v18300_v32 }
0x23ce   :  { %v10366_v5 = vmul.f32 %v14796_v44, %v12612_v36  ;;  %v10427_v41 = vmul.f32 0.5, %v18283_v21 }
0x23cf   :  { %v10379_v4 = vmul.f32 %v14790_v48, %v12613_v27  ;;  %v12614_v56 = vadd.f32 -0.28449672, %v10372_v60  ;;  %v10373_v51 = vmul.f32 %v14794_v57, %v10369_v28 }
0x23d0   :  { %v10370_v53 = vadd.f32 1.4214138, %v10366_v5 }
0x23d1   :  { %v10383_v63 = vadd.f32 0.2548296, %v10379_v4  ;;  %v10380_v33 = vmul.f32 %v14792_v11, %v12614_v56  ;;  %v12615_v14 = vadd.f32 -0.28449672, %v10373_v51 }
0x23d2   :  { %v10374_v38 = vmul.f32 %v14796_v44, %v10370_v53 }
0x23d3   :  { %v10387_v20 = vmul.f32 %v14790_v48, %v10383_v63  ;;  %v10384_v35 = vadd.f32 0.2548296, %v10380_v33  ;;  %v10381_v31 = vmul.f32 %v14794_v57, %v12615_v14  ;;  %v10778_v14 = vld [vmem:[%s18784_s16 + $0x380] sm:$0xff] }
0x23d4   :  { %v12616_v62 = vadd.f32 -0.28449672, %v10374_v38 }
0x23d5   :  { %v10407_v13 = vmul.f32 %v14798_v1, %v10387_v20  ;;  %v10388_v47 = vmul.f32 %v14792_v11, %v10384_v35  ;;  %v10385_v61 = vadd.f32 0.2548296, %v10381_v31  ;;  %v10786_v20 = vld [vmem:[%s18784_s16 + $0x3c0] sm:$0xff] }
0x23d6   :  { %v10382_v26 = vmul.f32 %v14796_v44, %v12616_v62  ;;  %v12781_v38 = vcombine.low %v10778_v14, %v10786_v20  ;;  %v12782_v1 = vcombine.high %v10778_v14, %v10786_v20  ;;  %v10683_v14 = vld [vmem:[%s18784_s16 + $0x88] sm:$0xff] }
0x23d7   :  { %v10411_v46 = vsub.f32 1.0, %v10407_v13  ;;  %v10408_v24 = vmul.f32 %v14800_v58, %v10388_v47  ;;  %v10389_v19 = vmul.f32 %v14794_v57, %v10385_v61 }
0x23d8   :  { %v10386_v18 = vadd.f32 0.2548296, %v10382_v26  ;;  %11518 = vmatprep.subr.bf16.mxu1 %v12782_v1 }
0x23d9   :  { %v10412_v15 = vsub.f32 1.0, %v10408_v24  ;;  %v10409_v59 = vmul.f32 %v14802_v23, %v10389_v19  ;;  %v10419_v48 = vsub.f32 0.0, %v10411_v46  ;;  %11519 = vmatpush1.bf16.msra.mxu1 %v12781_v38 }
0x23da   :  { %v10390_v8 = vmul.f32 %v14796_v44, %v10386_v18  ;;  %v10762_v18 = vld [vmem:[%s18784_s16 + $0x300] sm:$0xff] }
0x23db   :  { %v10420_v34 = vsub.f32 0.0, %v10412_v15  ;;  %v10413_v50 = vsub.f32 1.0, %v10409_v59  ;;  %v10423_v57 = vsel %vm10415_vm13, %v10411_v46, %v10419_v48  ;;  %v10763_v59 = vld [vmem:[%s18784_s16 + $0x308] sm:$0xff] }
0x23dc   :  { %v10410_v3 = vmul.f32 %v14804_v0, %v10390_v8  ;;  %v10431_v44 = vadd.f32 1.0, %v10423_v57  ;;  %v12767_v48 = vcombine.low %v10763_v59, %v10771_v7 }
0x23dd   :  { %v10421_v25 = vsub.f32 0.0, %v10413_v50  ;;  %v10424_v11 = vsel %vm10416_vm1, %v10412_v15, %v10420_v34  ;;  %v10770_v15 = vld [vmem:[%s18784_s16 + $0x340] sm:$0xff]  ;;  %v12768_v34 = vcombine.high %v10763_v59, %v10771_v7  ;;  %v10781_v59 = vld [vmem:[%s18784_s16 + $0x398] sm:$0xff] }
0x23de   :  { %v10414_v40 = vsub.f32 1.0, %v10410_v3  ;;  %v10432_v10 = vadd.f32 1.0, %v10424_v11  ;;  %v10435_v60 = vmul.f32 %v10431_v44, %v10427_v41  ;;  %v12766_v8 = vcombine.high %v10762_v18, %v10770_v15  ;;  %v10754_v3 = vld [vmem:[%s18784_s16 + $0x2c0] sm:$0xff]  ;;  %v10731_v44 = vld [vmem:[%s18784_s16 + $0x208] sm:$0xff] }
0x23df   :  { %v10425_v29 = vsel %vm10417_vm14, %v10413_v50, %v10421_v25  ;;  %v12765_v0 = vcombine.low %v10762_v18, %v10770_v15  ;;  %v10746_v50 = vld [vmem:[%s18784_s16 + $0x280] sm:$0xff]  ;;  %v10747_v25 = vld [vmem:[%s18784_s16 + $0x288] sm:$0xff] }
0x23e0   :  { %v10433_v42 = vadd.f32 1.0, %v10425_v29  ;;  %v10422_v49 = vsub.f32 0.0, %v10414_v40  ;;  %v10436_v27 = vmul.f32 %v10432_v10, %v10428_v9  ;;  %11520 = vmatprep.subr.bf16.mxu1 %v12766_v8  ;;  %v12750_v11 = vcombine.high %v10746_v50, %v10754_v3  ;;  %v10738_v10 = vld [vmem:[%s18784_s16 + $0x240] sm:$0xff]  ;;  %v10789_v8 = vld [vmem:[%s18784_s16 + $0x3d8] sm:$0xff] }
0x23e1   :  { %11521 = vmatpush1.bf16.msra.mxu1 %v12765_v0  ;;  %v12749_v57 = vcombine.low %v10746_v50, %v10754_v3  ;;  %v10714_v41 = vld [vmem:[%s18784_s16 + $0x180] sm:$0xff]  ;;  %v12787_v7 = vcombine.low %v10781_v59, %v10789_v8  ;;  %v12788_v0 = vcombine.high %v10781_v59, %v10789_v8  ;;  %v10692_v59 = vld [vmem:[%s18784_s16 + $0xd0] sm:$0xff]  ;;  %v10685_v8 = vld [vmem:[%s18784_s16 + $0x98] sm:$0xff] }
0x23e2   :  { %v10426_v52 = vsel %vm10418_vm15, %v10414_v40, %v10422_v49  ;;  %v10437_v30 = vmul.f32 %v10433_v42, %v10429_v37  ;;  %v10755_v40 = vld [vmem:[%s18784_s16 + $0x2c8] sm:$0xff]  ;;  %11522 = vmatprep.subr.bf16.mxu1 %v12750_v11  ;;  %v10730_v49 = vld [vmem:[%s18784_s16 + $0x200] sm:$0xff] }
0x23e3   :  { %v10434_v45 = vadd.f32 1.0, %v10426_v52  ;;  %v12751_v29 = vcombine.low %v10747_v25, %v10755_v40  ;;  %v12752_v42 = vcombine.high %v10747_v25, %v10755_v40  ;;  %v12734_v37 = vcombine.high %v10730_v49, %v10738_v10  ;;  %v10739_v52 = vld [vmem:[%s18784_s16 + $0x248] sm:$0xff] }
0x23e4   :  { %v10439_v4 = vpack.c.bf16 %v10437_v30, %v10435_v60  ;;  %v12733_v9 = vcombine.low %v10730_v49, %v10738_v10  ;;  %v10722_v30 = vld [vmem:[%s18784_s16 + $0x1c0] sm:$0xff]  ;;  %v10723_v60 = vld [vmem:[%s18784_s16 + $0x1c8] sm:$0xff] }
0x23e5   :  { %v10438_v36 = vmul.f32 %v10434_v45, %v10430_v54  ;;  %11523 = vmatpush1.bf16.msra.mxu1 %v12749_v57  ;;  %v12735_v54 = vcombine.low %v10731_v44, %v10739_v52  ;;  %v12736_v45 = vcombine.high %v10731_v44, %v10739_v52  ;;  %v12668_v44 = vld [vmem:[%s18783_s15] ss:$0 sm:$0xff]  ;;  %v10764_v52 = vld [vmem:[%s18784_s16 + $0x310] sm:$0xff] }
0x23e6   :  { %11524 = vmatprep.subr.bf16.mxu1 %v12734_v37 }
0x23e7   :  { %v10440_v28 = vpack.c.bf16 %v10438_v36, %v10436_v27  ;;  %v10715_v27 = vld [vmem:[%s18784_s16 + $0x188] sm:$0xff]  ;;  %v12718_v36 = vcombine.high %v10714_v41, %v10722_v30 }
0x23e9   :  { %10602 = vmatprep.mubr.bf16.mxu0 %v10440_v28  ;;  %11525 = vmatpush1.bf16.msra.mxu1 %v12733_v9  ;;  %v12717_v28 = vcombine.low %v10714_v41, %v10722_v30  ;;  %v10765_v9 = vld [vmem:[%s18784_s16 + $0x318] sm:$0xff] }
0x23ea   :  { %10603 = vmatmul.mubr.bf16.vlgmr.msra.gmra.mxu0 %v10439_v4  ;;  %v12719_v4 = vcombine.low %v10715_v27, %v10723_v60  ;;  %11526 = vmatprep.subr.bf16.mxu1 %v12718_v36  ;;  %v10748_v36 = vld [vmem:[%s18784_s16 + $0x290] sm:$0xff] }
0x23eb   :  { %11593 = vmatprep.mubr.bf16.mxu0 %v14831_v2 }
0x23ed   :  { %11527 = vmatpush1.bf16.msra.mxu1 %v12717_v28  ;;  %v10749_v28 = vld [vmem:[%s18784_s16 + $0x298] sm:$0xff] }
0x24aa   :  { %v13511_v43 = vpop.f32.mrf.mxu0 }
0x24ac   :  { %v13512_v17 = vpop.f32.mrf.mxu0 }
0x24ad   :  { %v13513_v5 = vadd.f32 %v13512_v17, %v13511_v43  ;;  %v12720_v43 = vcombine.high %v10715_v27, %v10723_v60  ;;  %v10698_v17 = vld [vmem:[%s18784_s16 + $0x100] sm:$0xff]  ;;  %v10756_v60 = vld [vmem:[%s18784_s16 + $0x2d0] sm:$0xff] }
0x24ae   :  { %v13514_v56 = vpop.f32.mrf.mxu0 }
0x24af   :  { %v10611_v21 = vadd.f32 %v13513_v5, %v18162_v55  ;;  %v10779_v55 = vld [vmem:[%s18784_s16 + $0x388] sm:$0xff]  ;;  %v10706_v5 = vld [vmem:[%s18784_s16 + $0x140] sm:$0xff] }
0x24b0   :  { %v13515_v32 = vpop.f32.mrf.mxu0 }
0x24b1   :  { %v13516_v51 = vadd.f32 %v13515_v32, %v13514_v56  ;;  %v10621_v63 = vadd.f32 %v12666_v22, %v10611_v21  ;;  %v10699_v56 = vld [vmem:[%s18784_s16 + $0x108] sm:$0xff]  ;;  %v12701_v32 = vcombine.low %v10698_v17, %v10706_v5 }
0x24b2   :  { %v10707_v21 = vld [vmem:[%s18784_s16 + $0x148] sm:$0xff] }
0x24b3   :  { %v10612_v53 = vadd.f32 %v13516_v51, %v18166_v6  ;;  %10625 = vadd.xlane.f32.xlu1 %v10621_v63  ;;  %v10787_v6 = vld [vmem:[%s18784_s16 + $0x3c8] sm:$0xff]  ;;  %v12703_v51 = vcombine.low %v10699_v56, %v10707_v21 }
0x24b4   :  { %v12783_v35 = vcombine.low %v10779_v55, %v10787_v6  ;;  %v12784_v31 = vcombine.high %v10779_v55, %v10787_v6  ;;  %v10691_v55 = vld [vmem:[%s18784_s16 + $0xc8] sm:$0xff] }
0x24b5   :  { %v10622_v33 = vadd.f32 %v12666_v22, %v10612_v53  ;;  %v12702_v22 = vcombine.high %v10698_v17, %v10706_v5  ;;  %v10682_v53 = vld [vmem:[%s18784_s16 + $0x80] sm:$0xff]  ;;  %v12687_v1 = vcombine.low %v10683_v14, %v10691_v55  ;;  %v12688_v6 = vcombine.high %v10683_v14, %v10691_v55  ;;  %v10724_v55 = vld [vmem:[%s18784_s16 + $0x1d0] sm:$0xff] }
0x24b6   :  { %11561 = vmatprep.subr.bf16.mxu0 %v12784_v31  ;;  %v10674_v31 = vld [vmem:[%s18784_s16 + $0x40] sm:$0xff]  ;;  %v12754_v5 = vcombine.high %v10748_v36, %v10756_v60 }
0x24b7   :  { %10627 = vadd.xlane.f32.xlu0 %v10622_v33  ;;  %11562 = vmatpush1.bf16.msra.mxu0 %v12783_v35  ;;  %v10666_v35 = vld [vmem:[%s18784_s16] sm:$0xff] }
0x24b8   :  { %11563 = vmatprep.subr.bf16.mxu0 %v12768_v34  ;;  %11528 = vmatprep.subr.bf16.mxu1 %v12702_v22  ;;  %v10732_v22 = vld [vmem:[%s18784_s16 + $0x210] sm:$0xff] }
0x24b9   :  { %11529 = vmatpush1.bf16.msra.mxu1 %v12701_v32  ;;  %v10733_v32 = vld [vmem:[%s18784_s16 + $0x218] sm:$0xff] }
0x24bb   :  { %11564 = vmatpush1.bf16.msra.mxu0 %v12767_v48 }
0x24bc   :  { %11565 = vmatprep.subr.bf16.mxu0 %v12752_v42 }
0x24bf   :  { %11566 = vmatpush1.bf16.msra.mxu0 %v12751_v29  ;;  %v12667_v29 = vld [vmem:[%s18782_s14] ss:$0 sm:$0xff] }
0x24c0   :  { %11567 = vmatprep.subr.bf16.mxu0 %v12736_v45 }
0x24c3   :  { %11568 = vmatpush1.bf16.msra.mxu0 %v12735_v54 }
0x24c4   :  { %11569 = vmatprep.subr.bf16.mxu0 %v12720_v43 }
0x24c7   :  { %11570 = vmatpush1.bf16.msra.mxu0 %v12719_v4  ;;  %v10757_v4 = vld [vmem:[%s18784_s16 + $0x2d8] sm:$0xff] }
0x253c   :  { %v10626_v13 = vpop.xlane.xlu1 %10625 }
0x253d   :  { %v10629_v62 = vmul.f32 0.015625, %v10626_v13  ;;  %v10667_v13 = vld [vmem:[%s18784_s16 + $0x8] sm:$0xff] }
0x253f   :  { %v10631_v47 = vsub.f32 %v10621_v63, %v10629_v62  ;;  %v12704_v63 = vcombine.high %v10699_v56, %v10707_v21  ;;  %v12669_v62 = vcombine.low %v10666_v35, %v10674_v31  ;;  %v12756_v56 = vcombine.high %v10749_v28, %v10757_v4  ;;  %v10740_v21 = vld [vmem:[%s18784_s16 + $0x250] sm:$0xff] }
0x2540   :  { %v10628_v61 = vpop.xlane.xlu0 %10627 }
0x2541   :  { %v18335_v58 = vsel %vm63_vm0, %v10631_v47, 0.0  ;;  %v10630_v26 = vmul.f32 0.015625, %v10628_v61  ;;  %11571 = vmatprep.subr.bf16.mxu0 %v12704_v63  ;;  %v12670_v47 = vcombine.high %v10666_v35, %v10674_v31  ;;  %v10675_v61 = vld [vmem:[%s18784_s16 + $0x48] sm:$0xff]  ;;  %v12753_v63 = vcombine.low %v10748_v36, %v10756_v60 }
0x2542   :  { %v10635_v46 = vmul.f32 %v18335_v58, %v18335_v58  ;;  %11572 = vmatpush1.bf16.msra.mxu0 %v12703_v51  ;;  %v10741_v51 = vld [vmem:[%s18784_s16 + $0x258] sm:$0xff]  ;;  %v10775_v36 = vld [vmem:[%s18784_s16 + $0x368] sm:$0xff] }
0x2543   :  { %v10632_v24 = vsub.f32 %v10622_v33, %v10630_v26  ;;  %v10690_v33 = vld [vmem:[%s18784_s16 + $0xc0] sm:$0xff]  ;;  %11573 = vmatprep.subr.bf16.mxu0 %v12688_v6  ;;  %v10780_v26 = vld [vmem:[%s18784_s16 + $0x390] sm:$0xff]  ;;  %v12740_v14 = vcombine.high %v10733_v32, %v10741_v51  ;;  %v12737_v6 = vcombine.low %v10732_v22, %v10740_v21  ;;  %v12739_v35 = vcombine.low %v10733_v32, %v10741_v51 }
0x2544   :  { %10637 = vadd.xlane.f32.xlu1 %v10635_v46  ;;  %v12686_v20 = vcombine.high %v10682_v53, %v10690_v33  ;;  %v12685_v38 = vcombine.low %v10682_v53, %v10690_v33  ;;  %v10788_v46 = vld [vmem:[%s18784_s16 + $0x3d0] sm:$0xff]  ;;  %v12755_v53 = vcombine.low %v10749_v28, %v10757_v4  ;;  %v12738_v33 = vcombine.high %v10732_v22, %v10740_v21  ;;  %v10759_v22 = vld [vmem:[%s18784_s16 + $0x2e8] sm:$0xff] }
0x2545   :  { %v18341_v19 = vsel %vm63_vm0, %v10632_v24, 0.0  ;;  %v12671_v24 = vcombine.low %v10667_v13, %v10675_v61  ;;  %v12785_v18 = vcombine.low %v10780_v26, %v10788_v46  ;;  %v12786_v15 = vcombine.high %v10780_v26, %v10788_v46  ;;  %v10709_v26 = vld [vmem:[%s18784_s16 + $0x158] sm:$0xff] }
0x2546   :  { %v10636_v23 = vmul.f32 %v18341_v19, %v18341_v19  ;;  %11530 = vmatprep.subr.bf16.mxu1 %v12686_v20  ;;  %11574 = vmatpush1.bf16.msra.mxu0 %v12687_v1  ;;  %v10716_v20 = vld [vmem:[%s18784_s16 + $0x190] sm:$0xff]  ;;  %v10725_v1 = vld [vmem:[%s18784_s16 + $0x1d8] sm:$0xff] }
0x2547   :  { %11531 = vmatpush1.bf16.msra.mxu1 %v12685_v38  ;;  %v10717_v38 = vld [vmem:[%s18784_s16 + $0x198] sm:$0xff]  ;;  %v12722_v31 = vcombine.high %v10716_v20, %v10724_v55  ;;  %v12721_v46 = vcombine.low %v10716_v20, %v10724_v55  ;;  %v10743_v20 = vld [vmem:[%s18784_s16 + $0x268] sm:$0xff] }
0x2548   :  { %10639 = vadd.xlane.f32.xlu0 %v10636_v23  ;;  %v12672_v23 = vcombine.high %v10667_v13, %v10675_v61  ;;  %11532 = vmatprep.subr.bf16.mxu1 %v12670_v47  ;;  %v12724_v13 = vcombine.high %v10717_v38, %v10725_v1  ;;  %v10708_v47 = vld [vmem:[%s18784_s16 + $0x150] sm:$0xff]  ;;  %v10701_v61 = vld [vmem:[%s18784_s16 + $0x118] sm:$0xff] }
0x254a   :  { %11575 = vmatprep.subr.bf16.mxu0 %v12672_v23 }
0x254b   :  { %11533 = vmatpush1.bf16.msra.mxu1 %v12669_v62  ;;  %11576 = vmatpush1.bf16.msra.mxu0 %v12671_v24  ;;  %v10700_v62 = vld [vmem:[%s18784_s16 + $0x110] sm:$0xff]  ;;  %v12723_v24 = vcombine.low %v10717_v38, %v10725_v1 }
0x254c   :  { %11604 = vmatprep.subr.bf16.mxu1 %v12786_v15  ;;  %11647 = vmatprep.subr.bf16.mxu0 %v12788_v0  ;;  %v12706_v23 = vcombine.high %v10700_v62, %v10708_v47  ;;  %v10684_v15 = vld [vmem:[%s18784_s16 + $0x90] sm:$0xff]  ;;  %v12705_v0 = vcombine.low %v10700_v62, %v10708_v47  ;;  %v10727_v62 = vld [vmem:[%s18784_s16 + $0x1e8] sm:$0xff] }
0x25cd   :  { %v10638_v48 = vpop.xlane.xlu1 %10637 }
0x25ce   :  { %v10641_v34 = vmul.f32 0.015625, %v10638_v48  ;;  %v12707_v48 = vcombine.low %v10701_v61, %v10709_v26 }
0x25d0   :  { %v10643_v50 = vadd.f32 1e-05, %v10641_v34  ;;  %v12690_v34 = vcombine.high %v10684_v15, %v10692_v59 }
0x25d1   :  { %v10640_v3 = vpop.xlane.xlu0 %10639 }
0x25d2   :  { %14805 = vrsqrt.f32 %v10643_v50  ;;  %v10642_v25 = vmul.f32 0.015625, %v10640_v3  ;;  %v10668_v3 = vld [vmem:[%s18784_s16 + $0x10] sm:$0xff] }
0x25d4   :  { %v10644_v11 = vadd.f32 1e-05, %v10642_v25  ;;  %v10676_v25 = vld [vmem:[%s18784_s16 + $0x50] sm:$0xff] }
0x25d6   :  { %14807 = vrsqrt.f32 %v10644_v11  ;;  %v10669_v11 = vld [vmem:[%s18784_s16 + $0x18] sm:$0xff] }
0x25df   :  { %v14806_v40 = vpop.eup %14805 }
0x25e0   :  { %v10647_v57 = vmul.f32 %v14806_v40, %v18335_v58  ;;  %v10772_v58 = vld [vmem:[%s18784_s16 + $0x350] sm:$0xff]  ;;  %v10677_v40 = vld [vmem:[%s18784_s16 + $0x58] sm:$0xff] }
0x25e1   :  { %v12770_v30 = vcombine.high %v10764_v52, %v10772_v58  ;;  %v12769_v43 = vcombine.low %v10764_v52, %v10772_v58  ;;  %v10791_v52 = vld [vmem:[%s18784_s16 + $0x3e8] sm:$0xff]  ;;  %v12673_v58 = vcombine.low %v10668_v3, %v10676_v25 }
0x25e2   :  { %v10655_v49 = vmul.f32 %v12667_v29, %v10647_v57  ;;  %v12689_v57 = vcombine.low %v10684_v15, %v10692_v59  ;;  %v10711_v15 = vld [vmem:[%s18784_s16 + $0x168] sm:$0xff] }
0x25e3   :  { %v14808_v42 = vpop.eup %14807 }
0x25e4   :  { %v10648_v10 = vmul.f32 %v14808_v42, %v18341_v19  ;;  %v10773_v19 = vld [vmem:[%s18784_s16 + $0x358] sm:$0xff]  ;;  %v10663_v54 = vadd.f32 %v12668_v44, %v10655_v49  ;;  %v12674_v42 = vcombine.high %v10668_v3, %v10676_v25  ;;  %v12676_v49 = vcombine.high %v10669_v11, %v10677_v40  ;;  %v10695_v3 = vld [vmem:[%s18784_s16 + $0xe8] sm:$0xff] }
0x25e5   :  { %v12772_v27 = vcombine.high %v10765_v9, %v10773_v19  ;;  %v12771_v17 = vcombine.low %v10765_v9, %v10773_v19  ;;  %v12675_v9 = vcombine.low %v10669_v11, %v10677_v40 }
0x25e6   :  { %v10656_v37 = vmul.f32 %v12667_v29, %v10648_v10  ;;  %v10782_v10 = vld [vmem:[%s18784_s16 + $0x3a0] sm:$0xff] }
0x25e8   :  { %v10664_v45 = vadd.f32 %v12668_v44, %v10656_v37  ;;  %v10790_v44 = vld [vmem:[%s18784_s16 + $0x3e0] sm:$0xff]  ;;  %v10783_v37 = vld [vmem:[%s18784_s16 + $0x3a8] sm:$0xff] }
0x25e9   :  { %v12790_v19 = vcombine.high %v10782_v10, %v10790_v44  ;;  %v12789_v60 = vcombine.low %v10782_v10, %v10790_v44  ;;  %v12791_v28 = vcombine.low %v10783_v37, %v10791_v52  ;;  %v10679_v10 = vld [vmem:[%s18784_s16 + $0x68] sm:$0xff] }
0x25ea   :  { %v18461_v41 = vpack.c.bf16 %v10664_v45, %v10663_v54  ;;  %v12792_v54 = vcombine.high %v10783_v37, %v10791_v52  ;;  %v10766_v45 = vld [vmem:[%s18784_s16 + $0x320] sm:$0xff] }
0x25ec   :  { %11551 = vmatmul.mubr.bf16.vlgmr.msra.gmra.mxu1 %v18461_v41  ;;  %11594 = vmatmul.mubr.bf16.vlgmr.msra.gmra.mxu0 %v18461_v41 }
0x25ed   :  { %11605 = vmatpush1.bf16.msra.mxu1 %v12785_v18  ;;  %11648 = vmatpush1.bf16.msra.mxu0 %v12787_v7  ;;  %v12708_v18 = vcombine.high %v10701_v61, %v10709_v26  ;;  %v10693_v7 = vld [vmem:[%s18784_s16 + $0xd8] sm:$0xff] }
0x25ee   :  { %11606 = vmatprep.subr.bf16.mxu1 %v12770_v30  ;;  %11649 = vmatprep.subr.bf16.mxu0 %v12772_v27  ;;  %v12692_v50 = vcombine.high %v10685_v8, %v10693_v7  ;;  %v12691_v29 = vcombine.low %v10685_v8, %v10693_v7  ;;  %v10774_v30 = vld [vmem:[%s18784_s16 + $0x360] sm:$0xff]  ;;  %v10767_v27 = vld [vmem:[%s18784_s16 + $0x328] sm:$0xff] }
0x25ef   :  { %11636 = vmatprep.mubr.bf16.mxu1 %v14831_v2  ;;  %11679 = vmatprep.mubr.bf16.mxu0 %v14831_v2  ;;  %v12774_v4 = vcombine.high %v10766_v45, %v10774_v30  ;;  %v12773_v21 = vcombine.low %v10766_v45, %v10774_v30  ;;  %v12775_v32 = vcombine.low %v10767_v27, %v10775_v36  ;;  %v10793_v45 = vld [vmem:[%s18784_s16 + $0x3f8] sm:$0xff] }
0x25f1   :  { %11607 = vmatpush1.bf16.msra.mxu1 %v12769_v43  ;;  %11650 = vmatpush1.bf16.msra.mxu0 %v12771_v17  ;;  %v12776_v43 = vcombine.high %v10767_v27, %v10775_v36  ;;  %v10750_v17 = vld [vmem:[%s18784_s16 + $0x2a0] sm:$0xff] }
0x25f2   :  { %11608 = vmatprep.subr.bf16.mxu1 %v12754_v5  ;;  %11651 = vmatprep.subr.bf16.mxu0 %v12756_v56  ;;  %v10758_v5 = vld [vmem:[%s18784_s16 + $0x2e0] sm:$0xff]  ;;  %v10751_v56 = vld [vmem:[%s18784_s16 + $0x2a8] sm:$0xff] }
0x25f3   :  { %v12758_v51 = vcombine.high %v10750_v17, %v10758_v5  ;;  %v12757_v55 = vcombine.low %v10750_v17, %v10758_v5  ;;  %v12759_v38 = vcombine.low %v10751_v56, %v10759_v22  ;;  %v10777_v17 = vld [vmem:[%s18784_s16 + $0x378] sm:$0xff] }
0x25f5   :  { %11609 = vmatpush1.bf16.msra.mxu1 %v12753_v63  ;;  %11652 = vmatpush1.bf16.msra.mxu0 %v12755_v53  ;;  %v12760_v63 = vcombine.high %v10751_v56, %v10759_v22  ;;  %v10734_v53 = vld [vmem:[%s18784_s16 + $0x220] sm:$0xff] }
0x25f6   :  { %11610 = vmatprep.subr.bf16.mxu1 %v12738_v33  ;;  %11653 = vmatprep.subr.bf16.mxu0 %v12740_v14  ;;  %v10742_v33 = vld [vmem:[%s18784_s16 + $0x260] sm:$0xff]  ;;  %v10735_v14 = vld [vmem:[%s18784_s16 + $0x228] sm:$0xff] }
0x25f7   :  { %v12742_v1 = vcombine.high %v10734_v53, %v10742_v33  ;;  %v12741_v47 = vcombine.low %v10734_v53, %v10742_v33  ;;  %v12743_v61 = vcombine.low %v10735_v14, %v10743_v20  ;;  %v10761_v53 = vld [vmem:[%s18784_s16 + $0x2f8] sm:$0xff] }
0x25f9   :  { %11611 = vmatpush1.bf16.msra.mxu1 %v12737_v6  ;;  %11654 = vmatpush1.bf16.msra.mxu0 %v12739_v35  ;;  %v12744_v6 = vcombine.high %v10735_v14, %v10743_v20  ;;  %v10718_v35 = vld [vmem:[%s18784_s16 + $0x1a0] sm:$0xff] }
0x25fa   :  { %11612 = vmatprep.subr.bf16.mxu1 %v12722_v31  ;;  %11655 = vmatprep.subr.bf16.mxu0 %v12724_v13  ;;  %v10726_v31 = vld [vmem:[%s18784_s16 + $0x1e0] sm:$0xff]  ;;  %v10719_v13 = vld [vmem:[%s18784_s16 + $0x1a8] sm:$0xff] }
0x25fb   :  { %v12726_v26 = vcombine.high %v10718_v35, %v10726_v31  ;;  %v12725_v59 = vcombine.low %v10718_v35, %v10726_v31  ;;  %v12727_v8 = vcombine.low %v10719_v13, %v10727_v62  ;;  %v10745_v35 = vld [vmem:[%s18784_s16 + $0x278] sm:$0xff] }
0x25fd   :  { %11613 = vmatpush1.bf16.msra.mxu1 %v12721_v46  ;;  %11656 = vmatpush1.bf16.msra.mxu0 %v12723_v24  ;;  %v12728_v46 = vcombine.high %v10719_v13, %v10727_v62  ;;  %v10702_v24 = vld [vmem:[%s18784_s16 + $0x120] sm:$0xff] }
0x25fe   :  { %11614 = vmatprep.subr.bf16.mxu1 %v12706_v23  ;;  %11657 = vmatprep.subr.bf16.mxu0 %v12708_v18  ;;  %v10710_v23 = vld [vmem:[%s18784_s16 + $0x160] sm:$0xff]  ;;  %v10703_v18 = vld [vmem:[%s18784_s16 + $0x128] sm:$0xff] }
0x25ff   :  { %v12710_v7 = vcombine.high %v10702_v24, %v10710_v23  ;;  %v12709_v25 = vcombine.low %v10702_v24, %v10710_v23  ;;  %v12711_v11 = vcombine.low %v10703_v18, %v10711_v15 }
0x2601   :  { %11615 = vmatpush1.bf16.msra.mxu1 %v12705_v0  ;;  %11658 = vmatpush1.bf16.msra.mxu0 %v12707_v48  ;;  %v12712_v0 = vcombine.high %v10703_v18, %v10711_v15  ;;  %v10686_v48 = vld [vmem:[%s18784_s16 + $0xa0] sm:$0xff] }
0x2602   :  { %11616 = vmatprep.subr.bf16.mxu1 %v12690_v34  ;;  %11659 = vmatprep.subr.bf16.mxu0 %v12692_v50  ;;  %v10694_v34 = vld [vmem:[%s18784_s16 + $0xe0] sm:$0xff]  ;;  %v10687_v50 = vld [vmem:[%s18784_s16 + $0xa8] sm:$0xff] }
0x2603   :  { %v12694_v40 = vcombine.high %v10686_v48, %v10694_v34  ;;  %v12693_v44 = vcombine.low %v10686_v48, %v10694_v34  ;;  %v12695_v37 = vcombine.low %v10687_v50, %v10695_v3 }
0x2605   :  { %11617 = vmatpush1.bf16.msra.mxu1 %v12689_v57  ;;  %11660 = vmatpush1.bf16.msra.mxu0 %v12691_v29  ;;  %v12696_v57 = vcombine.high %v10687_v50, %v10695_v3  ;;  %v10670_v29 = vld [vmem:[%s18784_s16 + $0x20] sm:$0xff] }
0x2606   :  { %11618 = vmatprep.subr.bf16.mxu1 %v12674_v42  ;;  %11661 = vmatprep.subr.bf16.mxu0 %v12676_v49  ;;  %v10678_v42 = vld [vmem:[%s18784_s16 + $0x60] sm:$0xff]  ;;  %v10671_v49 = vld [vmem:[%s18784_s16 + $0x28] sm:$0xff] }
0x2607   :  { %v12678_v52 = vcombine.high %v10670_v29, %v10678_v42  ;;  %v12677_v30 = vcombine.low %v10670_v29, %v10678_v42  ;;  %v12679_v27 = vcombine.low %v10671_v49, %v10679_v10 }
0x2609   :  { %11619 = vmatpush1.bf16.msra.mxu1 %v12673_v58  ;;  %11662 = vmatpush1.bf16.msra.mxu0 %v12675_v9  ;;  %v12680_v58 = vcombine.high %v10671_v49, %v10679_v10  ;;  %v10784_v9 = vld [vmem:[%s18784_s16 + $0x3b0] sm:$0xff] }
0x260a   :  { %11690 = vmatprep.subr.bf16.mxu1 %v12790_v19  ;;  %11733 = vmatprep.subr.bf16.mxu0 %v12792_v54  ;;  %v10792_v19 = vld [vmem:[%s18784_s16 + $0x3f0] sm:$0xff]  ;;  %v10785_v54 = vld [vmem:[%s18784_s16 + $0x3b8] sm:$0xff] }
0x260b   :  { %v12794_v36 = vcombine.high %v10784_v9, %v10792_v19  ;;  %v12793_v5 = vcombine.low %v10784_v9, %v10792_v19  ;;  %v12795_v56 = vcombine.low %v10785_v54, %v10793_v45 }
0x260c   :  { %11637 = vmatmul.mubr.bf16.vlgmr.msra.gmra.mxu1 %v18461_v41  ;;  %11680 = vmatmul.mubr.bf16.vlgmr.msra.gmra.mxu0 %v18461_v41 }
0x260d   :  { %11691 = vmatpush1.bf16.msra.mxu1 %v12789_v60  ;;  %11734 = vmatpush1.bf16.msra.mxu0 %v12791_v28  ;;  %v12796_v60 = vcombine.high %v10785_v54, %v10793_v45  ;;  %v10768_v28 = vld [vmem:[%s18784_s16 + $0x330] sm:$0xff] }
0x260e   :  { %11692 = vmatprep.subr.bf16.mxu1 %v12774_v4  ;;  %11735 = vmatprep.subr.bf16.mxu0 %v12776_v43  ;;  %v10776_v4 = vld [vmem:[%s18784_s16 + $0x370] sm:$0xff]  ;;  %v10769_v43 = vld [vmem:[%s18784_s16 + $0x338] sm:$0xff] }
0x260f   :  { %11722 = vmatprep.mubr.bf16.mxu1 %v14831_v2  ;;  %11765 = vmatprep.mubr.bf16.mxu0 %v14831_v2  ;;  %v12778_v22 = vcombine.high %v10768_v28, %v10776_v4  ;;  %v12777_v33 = vcombine.low %v10768_v28, %v10776_v4  ;;  %v12779_v14 = vcombine.low %v10769_v43, %v10777_v17  ;;  %v10812_v28 = vsub.s32 3, %v16057_v16 }
0x2611   :  { %11693 = vmatpush1.bf16.msra.mxu1 %v12773_v21  ;;  %11736 = vmatpush1.bf16.msra.mxu0 %v12775_v32  ;;  %v12780_v21 = vcombine.high %v10769_v43, %v10777_v17  ;;  %v10752_v32 = vld [vmem:[%s18784_s16 + $0x2b0] sm:$0xff] }
0x2612   :  { %11694 = vmatprep.subr.bf16.mxu1 %v12758_v51  ;;  %11737 = vmatprep.subr.bf16.mxu0 %v12760_v63  ;;  %v10760_v51 = vld [vmem:[%s18784_s16 + $0x2f0] sm:$0xff]  ;;  %v10753_v63 = vld [vmem:[%s18784_s16 + $0x2b8] sm:$0xff] }
0x2613   :  { %v12762_v20 = vcombine.high %v10752_v32, %v10760_v51  ;;  %v12761_v31 = vcombine.low %v10752_v32, %v10760_v51  ;;  %v12763_v13 = vcombine.low %v10753_v63, %v10761_v53 }
0x2615   :  { %11695 = vmatpush1.bf16.msra.mxu1 %v12757_v55  ;;  %11738 = vmatpush1.bf16.msra.mxu0 %v12759_v38  ;;  %v12764_v55 = vcombine.high %v10753_v63, %v10761_v53  ;;  %v10736_v38 = vld [vmem:[%s18784_s16 + $0x230] sm:$0xff] }
0x2616   :  { %11696 = vmatprep.subr.bf16.mxu1 %v12742_v1  ;;  %11739 = vmatprep.subr.bf16.mxu0 %v12744_v6  ;;  %v10744_v1 = vld [vmem:[%s18784_s16 + $0x270] sm:$0xff]  ;;  %v10737_v6 = vld [vmem:[%s18784_s16 + $0x238] sm:$0xff] }
0x2617   :  { %v12746_v62 = vcombine.high %v10736_v38, %v10744_v1  ;;  %v12745_v24 = vcombine.low %v10736_v38, %v10744_v1  ;;  %v12747_v23 = vcombine.low %v10737_v6, %v10745_v35 }
0x2619   :  { %11697 = vmatpush1.bf16.msra.mxu1 %v12741_v47  ;;  %11740 = vmatpush1.bf16.msra.mxu0 %v12743_v61  ;;  %v12748_v47 = vcombine.high %v10737_v6, %v10745_v35  ;;  %v10720_v61 = vld [vmem:[%s18784_s16 + $0x1b0] sm:$0xff] }
0x261a   :  { %11698 = vmatprep.subr.bf16.mxu1 %v12726_v26  ;;  %11741 = vmatprep.subr.bf16.mxu0 %v12728_v46  ;;  %v10728_v26 = vld [vmem:[%s18784_s16 + $0x1f0] sm:$0xff]  ;;  %v10729_v46 = vld [vmem:[%s18784_s16 + $0x1f8] sm:$0xff] }
0x261b   :  { %v12730_v18 = vcombine.high %v10720_v61, %v10728_v26  ;;  %v12729_v48 = vcombine.low %v10720_v61, %v10728_v26 }
0x261d   :  { %11699 = vmatpush1.bf16.msra.mxu1 %v12725_v59  ;;  %11742 = vmatpush1.bf16.msra.mxu0 %v12727_v8  ;;  %v10704_v59 = vld [vmem:[%s18784_s16 + $0x130] sm:$0xff] }
0x261e   :  { %11700 = vmatprep.subr.bf16.mxu1 %v12710_v7  ;;  %11743 = vmatprep.subr.bf16.mxu0 %v12712_v0  ;;  %v10712_v8 = vld [vmem:[%s18784_s16 + $0x170] sm:$0xff]  ;;  %v10705_v7 = vld [vmem:[%s18784_s16 + $0x138] sm:$0xff] }
0x261f   :  { %v10713_v0 = vld [vmem:[%s18784_s16 + $0x178] sm:$0xff]  ;;  %v12714_v50 = vcombine.high %v10704_v59, %v10712_v8  ;;  %v12713_v29 = vcombine.low %v10704_v59, %v10712_v8 }
0x2620   :  { %v12716_v3 = vcombine.high %v10705_v7, %v10713_v0  ;;  %v12715_v42 = vcombine.low %v10705_v7, %v10713_v0 }
0x2621   :  { %11701 = vmatpush1.bf16.msra.mxu1 %v12709_v25  ;;  %11744 = vmatpush1.bf16.msra.mxu0 %v12711_v11  ;;  %v10688_v25 = vld [vmem:[%s18784_s16 + $0xb0] sm:$0xff] }
0x2622   :  { %11702 = vmatprep.subr.bf16.mxu1 %v12694_v40  ;;  %11745 = vmatprep.subr.bf16.mxu0 %v12696_v57  ;;  %v10696_v11 = vld [vmem:[%s18784_s16 + $0xf0] sm:$0xff]  ;;  %v10689_v40 = vld [vmem:[%s18784_s16 + $0xb8] sm:$0xff] }
0x2623   :  { %v10697_v57 = vld [vmem:[%s18784_s16 + $0xf8] sm:$0xff]  ;;  %v12698_v49 = vcombine.high %v10688_v25, %v10696_v11  ;;  %v12697_v9 = vcombine.low %v10688_v25, %v10696_v11 }
0x2624   :  { %v12700_v10 = vcombine.high %v10689_v40, %v10697_v57  ;;  %v12699_v19 = vcombine.low %v10689_v40, %v10697_v57 }
0x2625   :  { %11703 = vmatpush1.bf16.msra.mxu1 %v12693_v44  ;;  %11746 = vmatpush1.bf16.msra.mxu0 %v12695_v37  ;;  %v10672_v44 = vld [vmem:[%s18784_s16 + $0x30] sm:$0xff] }
0x2626   :  { %11704 = vmatprep.subr.bf16.mxu1 %v12678_v52  ;;  %11747 = vmatprep.subr.bf16.mxu0 %v12680_v58  ;;  %v10680_v37 = vld [vmem:[%s18784_s16 + $0x70] sm:$0xff]  ;;  %v10673_v52 = vld [vmem:[%s18784_s16 + $0x38] sm:$0xff] }
0x2627   :  { %v10681_v58 = vld [vmem:[%s18784_s16 + $0x78] sm:$0xff]  ;;  %v12682_v54 = vcombine.high %v10672_v44, %v10680_v37 }
0x2628   :  { %v12684_v45 = vcombine.high %v10673_v52, %v10681_v58 }
0x2629   :  { %11705 = vmatpush1.bf16.msra.mxu1 %v12677_v30  ;;  %11748 = vmatpush1.bf16.msra.mxu0 %v12679_v27  ;;  %v12681_v30 = vcombine.low %v10672_v44, %v10680_v37  ;;  %v12683_v27 = vcombine.low %v10673_v52, %v10681_v58 }
0x262a   :  { %11776 = vmatprep.subr.bf16.mxu1 %v12794_v36  ;;  %11819 = vmatprep.subr.bf16.mxu0 %v12796_v60  ;;  %v10808_v36 = vsub.s32 2, %v16057_v16  ;;  %v10794_v60 = vld [vmem:[%s18785_s17] sm:$0xff] }
0x262b   :  { %v10801_v4 = vrot.slane %v10794_v60, %v16459_v12  ;;  %v10805_v17 = vrot.slane %v10794_v60, %v16465_v39 }
0x262c   :  { %11723 = vmatmul.mubr.bf16.vlgmr.msra.gmra.mxu1 %v18461_v41  ;;  %11766 = vmatmul.mubr.bf16.vlgmr.msra.gmra.mxu0 %v18461_v41  ;;  %v10809_v43 = vrot.slane %v10794_v60, %v10808_v36 }
0x262d   :  { %11777 = vmatpush1.bf16.msra.mxu1 %v12793_v5  ;;  %11820 = vmatpush1.bf16.msra.mxu0 %v12795_v56  ;;  %v10813_v5 = vrot.slane %v10794_v60, %v10812_v28 }
0x262e   :  { %11778 = vmatprep.subr.bf16.mxu1 %v12778_v22  ;;  %11821 = vmatprep.subr.bf16.mxu0 %v12780_v21 }
0x262f   :  { %11808 = vmatprep.mubr.bf16.mxu1 %v14831_v2  ;;  %11851 = vmatprep.mubr.bf16.mxu0 %v14831_v2  ;;  %v10721_v2 = vld [vmem:[%s18784_s16 + $0x1b8] sm:$0xff] }
0x2630   :  { %v12732_v15 = vcombine.high %v10721_v2, %v10729_v46  ;;  %v12731_v34 = vcombine.low %v10721_v2, %v10729_v46 }
0x2631   :  { %11779 = vmatpush1.bf16.msra.mxu1 %v12777_v33  ;;  %11822 = vmatpush1.bf16.msra.mxu0 %v12779_v14 }
0x2632   :  { %11780 = vmatprep.subr.bf16.mxu1 %v12762_v20  ;;  %11823 = vmatprep.subr.bf16.mxu0 %v12764_v55 }
0x2635   :  { %11781 = vmatpush1.bf16.msra.mxu1 %v12761_v31  ;;  %11824 = vmatpush1.bf16.msra.mxu0 %v12763_v13  ;;  %v10816_v31 = vsub.s32 4, %v16057_v16  ;;  %v10824_v13 = vsub.s32 6, %v16057_v16 }
0x2636   :  { %11782 = vmatprep.subr.bf16.mxu1 %v12746_v62  ;;  %11825 = vmatprep.subr.bf16.mxu0 %v12748_v47  ;;  %v10820_v62 = vsub.s32 5, %v16057_v16  ;;  %v10828_v47 = vsub.s32 7, %v16057_v16 }
0x2637   :  { %v10817_v61 = vrot.slane %v10794_v60, %v10816_v31  ;;  %v10825_v26 = vrot.slane %v10794_v60, %v10824_v13 }
0x2638   :  { %v10821_v2 = vrot.slane %v10794_v60, %v10820_v62  ;;  %v10829_v46 = vrot.slane %v10794_v60, %v10828_v47 }
0x2639   :  { %11783 = vmatpush1.bf16.msra.mxu1 %v12745_v24  ;;  %11826 = vmatpush1.bf16.msra.mxu0 %v12747_v23 }
0x263a   :  { %11784 = vmatprep.subr.bf16.mxu1 %v12730_v18  ;;  %11827 = vmatprep.subr.bf16.mxu0 %v12732_v15 }
0x263d   :  { %11785 = vmatpush1.bf16.msra.mxu1 %v12729_v48  ;;  %11828 = vmatpush1.bf16.msra.mxu0 %v12731_v34 }
0x263e   :  { %11786 = vmatprep.subr.bf16.mxu1 %v12714_v50  ;;  %11829 = vmatprep.subr.bf16.mxu0 %v12716_v3 }
0x2641   :  { %11787 = vmatpush1.bf16.msra.mxu1 %v12713_v29  ;;  %11830 = vmatpush1.bf16.msra.mxu0 %v12715_v42  ;;  %v10795_v29 = vld [vmem:[%s18785_s17 + $0x8] sm:$0xff]  ;;  %s14835_s17 = smov [#allocation2]  }
0x2642   :  { %11788 = vmatprep.subr.bf16.mxu1 %v12698_v49  ;;  %11831 = vmatprep.subr.bf16.mxu0 %v12700_v10  ;;  %v10833_v42 = vrot.slane %v10795_v29, %v16459_v12  ;;  %v10841_v49 = vrot.slane %v10795_v29, %v10808_v36  ;;  %v10837_v10 = vrot.slane %v10795_v29, %v16465_v39  ;;  %s11899_s25 = sshll.u32 %s14835_s17, 4  ;;  %s11900_s25 = int_to_ptr.vmem [resolvable:$true] %s11899_s25 }
0x2643   :  { %v10845_v44 = vrot.slane %v10795_v29, %v10812_v28  ;;  %s14809_s8 = scalar_lea.vmem %s11900_s25, 4096  ;;  %p14814_p1 = scmp.lt.s32.totalorder %s11900_s25, %s11900_s25 }
0x2644   :  { %p14810_p0 = scmp.ne.s32.totalorder %s11900_s25, %s14809_s8  ;;  %p14815_p2 = scmp.lt.s32.totalorder %s14809_s8, %s14809_s8 }
0x2645   :  { %11789 = vmatpush1.bf16.msra.mxu1 %v12697_v9  ;;  %11832 = vmatpush1.bf16.msra.mxu0 %v12699_v19 }
0x2646   :  { %11790 = vmatprep.subr.bf16.mxu1 %v12682_v54  ;;  %11833 = vmatprep.subr.bf16.mxu0 %v12684_v45  ;;  %p14816_p3 = por %p14815_p2, %p14814_p1 }
0x2648   :  { %p14817_p4 = pnand %p14816_p3, %p14810_p0 }
0x2649   :  { %11791 = vmatpush1.bf16.msra.mxu1 %v12681_v30  ;;  %11834 = vmatpush1.bf16.msra.mxu0 %v12683_v27 }
0x264c   :  { %11809 = vmatmul.mubr.bf16.vlgmr.msra.gmra.mxu1 %v18461_v41  ;;  %11852 = vmatmul.mubr.bf16.vlgmr.msra.gmra.mxu0 %v18461_v41 }
0x26ac   :  { %v11552_v56 = vpop.f32.mrf.mxu1  ;;  %v11595_v41 = vpop.f32.mrf.mxu0 }
0x26ad   :  { %v11553_v22 = vadd.f32 %v11552_v56, %v10801_v4  ;;  %v11596_v21 = vadd.f32 %v11595_v41, %v10809_v43  ;;  %v10861_v56 = vrot.slane %v10795_v29, %v10828_v47 }
0x26ae   :  { %v11554_v32 = vpop.f32.mrf.mxu1  ;;  %v11597_v51 = vpop.f32.mrf.mxu0 }
0x26af   :  { %11862 = vst [vmem:[#allocation2] sm:$0xff] %v11553_v22  ;;  %11864 = vst [vmem:[#allocation2 + $0x10] sm:$0xff] %v11596_v21  ;;  %v11555_v63 = vadd.f32 %v11554_v32, %v10805_v17  ;;  %v11598_v53 = vadd.f32 %v11597_v51, %v10813_v5 }
0x26b0   :  { %v11556_v33 = vpop.f32.mrf.mxu1  ;;  %v11599_v14 = vpop.f32.mrf.mxu0 }
0x26b1   :  { %11863 = vst [vmem:[#allocation2 + $0x8] sm:$0xff] %v11555_v63  ;;  %11865 = vst [vmem:[#allocation2 + $0x18] sm:$0xff] %v11598_v53  ;;  %v11557_v20 = vadd.f32 %v11556_v33, %v10801_v4  ;;  %v11600_v55 = vadd.f32 %v11599_v14, %v10809_v43  ;;  %v10849_v43 = vrot.slane %v10795_v29, %v10816_v31 }
0x26b2   :  { %v11558_v38 = vpop.f32.mrf.mxu1  ;;  %v11601_v1 = vpop.f32.mrf.mxu0 }
0x26b3   :  { %11878 = vst [vmem:[#allocation2 + $0x80] sm:$0xff] %v11557_v20  ;;  %11880 = vst [vmem:[#allocation2 + $0x90] sm:$0xff] %v11600_v55  ;;  %v11559_v6 = vadd.f32 %v11558_v38, %v10805_v17  ;;  %v11602_v35 = vadd.f32 %v11601_v1, %v10813_v5  ;;  %v10857_v17 = vrot.slane %v10795_v29, %v10824_v13 }
0x26b4   :  { %v10853_v5 = vrot.slane %v10795_v29, %v10820_v62 }
0x26b5   :  { %11879 = vst [vmem:[#allocation2 + $0x88] sm:$0xff] %v11559_v6  ;;  %11881 = vst [vmem:[#allocation2 + $0x98] sm:$0xff] %v11602_v35 }
0x26cc   :  { %v11638_v24 = vpop.f32.mrf.mxu1  ;;  %v11681_v23 = vpop.f32.mrf.mxu0 }
0x26cd   :  { %v11639_v18 = vadd.f32 %v11638_v24, %v10817_v61  ;;  %v11682_v15 = vadd.f32 %v11681_v23, %v10825_v26 }
0x26ce   :  { %v11640_v59 = vpop.f32.mrf.mxu1  ;;  %v11683_v8 = vpop.f32.mrf.mxu0 }
0x26cf   :  { %11866 = vst [vmem:[#allocation2 + $0x20] sm:$0xff] %v11639_v18  ;;  %11868 = vst [vmem:[#allocation2 + $0x30] sm:$0xff] %v11682_v15  ;;  %v11641_v7 = vadd.f32 %v11640_v59, %v10821_v2  ;;  %v11684_v0 = vadd.f32 %v11683_v8, %v10829_v46 }
0x26d0   :  { %v11642_v48 = vpop.f32.mrf.mxu1  ;;  %v11685_v34 = vpop.f32.mrf.mxu0 }
0x26d1   :  { %11867 = vst [vmem:[#allocation2 + $0x28] sm:$0xff] %v11641_v7  ;;  %11869 = vst [vmem:[#allocation2 + $0x38] sm:$0xff] %v11684_v0  ;;  %v11643_v50 = vadd.f32 %v11642_v48, %v10817_v61  ;;  %v11686_v3 = vadd.f32 %v11685_v34, %v10825_v26 }
0x26d2   :  { %v11644_v25 = vpop.f32.mrf.mxu1  ;;  %v11687_v11 = vpop.f32.mrf.mxu0 }
0x26d3   :  { %11882 = vst [vmem:[#allocation2 + $0xa0] sm:$0xff] %v11643_v50  ;;  %11884 = vst [vmem:[#allocation2 + $0xb0] sm:$0xff] %v11686_v3  ;;  %v11645_v40 = vadd.f32 %v11644_v25, %v10821_v2  ;;  %v11688_v57 = vadd.f32 %v11687_v11, %v10829_v46 }
0x26d5   :  { %11883 = vst [vmem:[#allocation2 + $0xa8] sm:$0xff] %v11645_v40  ;;  %11885 = vst [vmem:[#allocation2 + $0xb8] sm:$0xff] %v11688_v57 }
0x26ec   :  { %v11724_v37 = vpop.f32.mrf.mxu1  ;;  %v11767_v52 = vpop.f32.mrf.mxu0 }
0x26ed   :  { %v11725_v58 = vadd.f32 %v11724_v37, %v10833_v42  ;;  %v11768_v9 = vadd.f32 %v11767_v52, %v10841_v49 }
0x26ee   :  { %v11726_v19 = vpop.f32.mrf.mxu1  ;;  %v11769_v54 = vpop.f32.mrf.mxu0 }
0x26ef   :  { %11870 = vst [vmem:[#allocation2 + $0x40] sm:$0xff] %v11725_v58  ;;  %11872 = vst [vmem:[#allocation2 + $0x50] sm:$0xff] %v11768_v9  ;;  %v11727_v45 = vadd.f32 %v11726_v19, %v10837_v10  ;;  %v11770_v30 = vadd.f32 %v11769_v54, %v10845_v44 }
0x26f0   :  { %v11728_v27 = vpop.f32.mrf.mxu1  ;;  %v11771_v12 = vpop.f32.mrf.mxu0 }
0x26f1   :  { %11871 = vst [vmem:[#allocation2 + $0x48] sm:$0xff] %v11727_v45  ;;  %11873 = vst [vmem:[#allocation2 + $0x58] sm:$0xff] %v11770_v30  ;;  %v11729_v36 = vadd.f32 %v11728_v27, %v10833_v42  ;;  %v11772_v60 = vadd.f32 %v11771_v12, %v10841_v49 }
0x26f2   :  { %v11730_v39 = vpop.f32.mrf.mxu1  ;;  %v11773_v4 = vpop.f32.mrf.mxu0 }
0x26f3   :  { %11886 = vst [vmem:[#allocation2 + $0xc0] sm:$0xff] %v11729_v36  ;;  %11888 = vst [vmem:[#allocation2 + $0xd0] sm:$0xff] %v11772_v60  ;;  %v11731_v16 = vadd.f32 %v11730_v39, %v10837_v10  ;;  %v11774_v28 = vadd.f32 %v11773_v4, %v10845_v44 }
0x26f5   :  { %11887 = vst [vmem:[#allocation2 + $0xc8] sm:$0xff] %v11731_v16  ;;  %11889 = vst [vmem:[#allocation2 + $0xd8] sm:$0xff] %v11774_v28 }
0x270c   :  { %v11810_v41 = vpop.f32.mrf.mxu1  ;;  %v11853_v22 = vpop.f32.mrf.mxu0 }
0x270d   :  { %v11811_v21 = vadd.f32 %v11810_v41, %v10849_v43  ;;  %v11854_v32 = vadd.f32 %v11853_v22, %v10857_v17 }
0x270e   :  { %v11812_v51 = vpop.f32.mrf.mxu1  ;;  %v11855_v63 = vpop.f32.mrf.mxu0 }
0x270f   :  { %11874 = vst [vmem:[#allocation2 + $0x60] sm:$0xff] %v11811_v21  ;;  %11876 = vst [vmem:[#allocation2 + $0x70] sm:$0xff] %v11854_v32  ;;  %v11813_v53 = vadd.f32 %v11812_v51, %v10853_v5  ;;  %v11856_v33 = vadd.f32 %v11855_v63, %v10861_v56 }
0x2710   :  { %v11814_v14 = vpop.f32.mrf.mxu1  ;;  %v11857_v20 = vpop.f32.mrf.mxu0 }
0x2711   :  { %11875 = vst [vmem:[#allocation2 + $0x68] sm:$0xff] %v11813_v53  ;;  %11877 = vst [vmem:[#allocation2 + $0x78] sm:$0xff] %v11856_v33  ;;  %v11815_v55 = vadd.f32 %v11814_v14, %v10849_v43  ;;  %v11858_v38 = vadd.f32 %v11857_v20, %v10857_v17 }
0x2712   :  { %v11816_v1 = vpop.f32.mrf.mxu1  ;;  %v11859_v6 = vpop.f32.mrf.mxu0 }
0x2713   :  { %11890 = vst [vmem:[#allocation2 + $0xe0] sm:$0xff] %v11815_v55  ;;  %11892 = vst [vmem:[#allocation2 + $0xf0] sm:$0xff] %v11858_v38  ;;  %v11817_v35 = vadd.f32 %v11816_v1, %v10853_v5  ;;  %v11860_v31 = vadd.f32 %v11859_v6, %v10861_v56 }
0x2715   :  { %11891 = vst [vmem:[#allocation2 + $0xe8] sm:$0xff] %v11817_v35  ;;  %11893 = vst [vmem:[#allocation2 + $0xf8] sm:$0xff] %v11860_v31 }
0x2716   :  { %14820 = shalt.err (!%p14817_p4)
}
0x2717   :  { %s14836_s6 = smov 2048   ;;  %s14837_s5 = smov 128  }
0x2718   :  { %11905 = dma.vmem_to_hbm [thread:$0]  %s11900_s25, 4096, %s18786_s18, [#allocation3], %s14836_s6, %s14836_s6, %s14837_s5  }
0x2719   :  { %14829 = dma.done.wait [#allocation3], 4096  }
0x271a   :  { %14830 = vsyncadd [#allocation3], 4294963200 }
0x271b   :  { %11909 = vsyncpa [#allocation3], 1 }

</bundles_post_ra>
